<compile_context>
chip_gen: v7x
topology: tpu7x:2x2x1
jax: 0.10.0
libtpu: 0.0.40
codegen_flags: <defaults>
</compile_context>

<pallas_src>
import jax
import jax.numpy as jnp
import numpy as np
from jax.experimental import pallas as pl
from jax.experimental.pallas import tpu as pltpu

CONV_CHANNELS = (3, 6, 9, 12, 15)   # module: 3->6->9->12->15
KERNEL_SIZE = 5                     # scaled down from 1000
FC_WIDTHS = (4096, 1024, 31 * 3)    # fc1/fc2/fc3 output widths
FC3_PAD = 128                       # fc3 output padded to lane-dense 128 (sliced back to 93)
FC2_TILE = 512                      # fc2 output-column tile (fits VMEM on v5e/v6e/v7x)


# ----------------------------- Fused conv stack kernel ----------------------------------

def _conv_stack_kernel(x_ref, *refs):
    """Fused 4x [Conv1d(valid) + bias + ReLU + MaxPool1d(2,2)] for one sample.

    Layout inside the kernel: (length, channels) = (sublane, lane).
    x_ref: (1, L0, C0).  Per layer: w_ref (K*Cin, Cout) rows ordered (k, cin), b_ref (1, Cout).
    o_ref: (1, L4, C4).  pool_sc: VMEM scratch for the stride-2 max-pool reads.
    """
    *wb_refs, o_ref, pool_sc = refs
    h = x_ref[0]                                            # (L, Cin) f32
    for idx in range(0, len(wb_refs), 2):
        w_ref, b_ref = wb_refs[idx], wb_refs[idx + 1]
        l_in, c_in = h.shape
        kc, c_out = w_ref.shape
        k_taps = kc // c_in
        l_out = l_in - k_taps + 1

        # im2col window (Lout, K*Cin) -> one MXU matmul per layer (instead of K tap-matmuls).
        win = jnp.concatenate([h[k:k + l_out, :] for k in range(k_taps)], axis=1)
        acc = jnp.dot(win, w_ref[...], preferred_element_type=jnp.float32)
        acc = jnp.maximum(acc + b_ref[...], 0.0)            # bias + ReLU

        # MaxPool1d(kernel=2, stride=2, floor): pairwise max of stride-2 sublane reads.
        l_pool = l_out // 2
        pool_sc[0:l_out, 0:c_out] = acc
        h = jnp.maximum(pool_sc[pl.ds(0, l_pool, stride=2), pl.ds(0, c_out)],
                        pool_sc[pl.ds(1, l_pool, stride=2), pl.ds(0, c_out)])
    o_ref[0] = h                                            # (L4, C4)


def conv_stack(x_lc, conv_params):
    """x_lc: (N, L, Cin) channels-last.  conv_params: [(w (K*Cin, Cout), b (1, Cout)), ...].
    Returns (N, L_final, C_final) with all four conv/relu/pool stages fused."""
    n, l, c = x_lc.shape
    max_l_out, max_c_out = 0, c
    for w, _ in conv_params:
        k = w.shape[0] // c
        c = w.shape[1]
        l_out = l - k + 1
        max_l_out = max(max_l_out, l_out)
        max_c_out = max(max_c_out, c)
        l = l_out // 2
    l_fin, c_fin = l, c

    in_specs = [pl.BlockSpec((1, x_lc.shape[1], x_lc.shape[2]), lambda i: (i, 0, 0))]
    args = [x_lc]
    for w, b in conv_params:
        in_specs.append(pl.BlockSpec(w.shape, lambda i: (0, 0)))
        in_specs.append(pl.BlockSpec(b.shape, lambda i: (0, 0)))
        args.extend([w, b])

    scratch_rows = ((max_l_out + 7) // 8) * 8
    return pl.pallas_call(
        _conv_stack_kernel,
        out_shape=jax.ShapeDtypeStruct((n, l_fin, c_fin), jnp.float32),
        grid=(n,),
        in_specs=in_specs,
        out_specs=pl.BlockSpec((1, l_fin, c_fin), lambda i: (i, 0, 0)),
        scratch_shapes=[pltpu.VMEM((scratch_rows, max_c_out), jnp.float32)],
        compiler_params=pltpu.CompilerParams(dimension_semantics=("parallel",)),
    )(*args)


# ----------------------------- Fused FC stack kernel ------------------------------------

def _fc_stack_kernel(x_ref, w1_ref, b1_ref, w2_ref, b2_ref, w3_ref, b3_ref,
                     o_ref, h1_sc, acc_sc):
    """Fused fc1+ReLU -> fc2+ReLU -> fc3.  The grid streams fc2 weight column tiles; the fc1
    activation and the fc3 partial sums stay resident in VMEM scratch across grid steps."""
    j = pl.program_id(0)

    @pl.when(j == 0)
    def _():
        h1 = jnp.dot(x_ref[...].astype(jnp.bfloat16), w1_ref[...],
                     preferred_element_type=jnp.float32) + b1_ref[...]
        h1_sc[...] = jnp.maximum(h1, 0.0)
        acc_sc[...] = jnp.zeros_like(acc_sc)

    h2 = jnp.dot(h1_sc[...].astype(jnp.bfloat16), w2_ref[...],
                 preferred_element_type=jnp.float32) + b2_ref[...]
    h2 = jnp.maximum(h2, 0.0)
    acc_sc[...] += jnp.dot(h2.astype(jnp.bfloat16), w3_ref[...],
                           preferred_element_type=jnp.float32)

    @pl.when(j == pl.num_programs(0) - 1)
    def _():
        o_ref[...] = acc_sc[...] + b3_ref[...]


def fc_stack(x, fc_params, *, tile_n=FC2_TILE):
    """x: (N, F).  fc_params: [(W1 (F,4096) bf16, b1), (W2 (4096,1024) bf16, b2),
    (W3 (1024,128) bf16, b3)].  Returns (N, 128) f32 (fc3 output, lane-padded)."""
    (w1, b1), (w2, b2), (w3, b3) = fc_params
    n, f0 = x.shape
    d1, d2, d3 = w1.shape[1], w2.shape[1], w3.shape[1]
    tn = tile_n if d2 % tile_n == 0 else d2
    return pl.pallas_call(
        _fc_stack_kernel,
        out_shape=jax.ShapeDtypeStruct((n, d3), jnp.float32),
        grid=(d2 // tn,),
        in_specs=[
            pl.BlockSpec((n, f0), lambda j: (0, 0)),      # activations (resident)
            pl.BlockSpec((f0, d1), lambda j: (0, 0)),     # W1 (loaded once)
            pl.BlockSpec((1, d1), lambda j: (0, 0)),      # b1
            pl.BlockSpec((d1, tn), lambda j: (0, j)),     # W2 column tile (streamed)
            pl.BlockSpec((1, tn), lambda j: (0, j)),      # b2 tile
            pl.BlockSpec((tn, d3), lambda j: (j, 0)),     # W3 row tile (streamed)
            pl.BlockSpec((1, d3), lambda j: (0, 0)),      # b3
        ],
        out_specs=pl.BlockSpec((n, d3), lambda j: (0, 0)),
        scratch_shapes=[pltpu.VMEM((n, d1), jnp.float32),   # fc1 activation
                        pltpu.VMEM((n, d3), jnp.float32)],  # fc3 accumulator
        compiler_params=pltpu.CompilerParams(dimension_semantics=("arbitrary",)),
    )(x, w1, b1, w2, b2, w3, b3)


# ----------------------------- Parameters -----------------------------------------------

def _conv_pool_len(l, k):
    return (l - k + 1) // 2


def init_params(key, seq_len):
    """Deterministic parameters in PyTorch layouts: conv (Cout, Cin, K), fc (out, in)."""
    params = {"convs": [], "fcs": []}
    l = seq_len
    for c_in, c_out in zip(CONV_CHANNELS[:-1], CONV_CHANNELS[1:]):
        key, kw, kb = jax.random.split(key, 3)
        fan_in = c_in * KERNEL_SIZE
        w = jax.random.normal(kw, (c_out, c_in, KERNEL_SIZE), jnp.float32) / np.sqrt(fan_in)
        b = jax.random.normal(kb, (c_out,), jnp.float32) * 0.01
        params["convs"].append((w, b))
        l = _conv_pool_len(l, KERNEL_SIZE)
    f_in = CONV_CHANNELS[-1] * l                    # num_flat_features
    for f_out in FC_WIDTHS:
        key, kw, kb = jax.random.split(key, 3)
        w = jax.random.normal(kw, (f_out, f_in), jnp.float32) / np.sqrt(f_in)
        b = jax.random.normal(kb, (f_out,), jnp.float32) * 0.01
        params["fcs"].append((w, b))
        f_in = f_out
    return params


def prepare_params(params, seq_len):
    """One-time conversion to kernel layouts (done outside the forward pass):
       * conv weights (Cout,Cin,K) -> im2col (K*Cin, Cout), rows ordered (k, cin)
       * fc weights -> (in, out); fc1 rows permuted to the kernel's (L, C) flatten order
       * fc3 padded to a lane-dense 128 output; fc weights cast to bf16 (f32 accumulation)."""
    convs = []
    l = seq_len
    for w, b in params["convs"]:
        c_out, c_in, k = w.shape
        wk = jnp.transpose(w, (2, 1, 0)).reshape(k * c_in, c_out)
        convs.append((wk, b.reshape(1, c_out)))
        l = _conv_pool_len(l, k)
    c_fin, l_fin = params["convs"][-1][0].shape[0], l

    (w1, b1), (w2, b2), (w3, b3) = params["fcs"]
    # torch feature order is (C, L); the kernel flattens (L, C) -> permute fc1 rows once.
    w1p = jnp.transpose(w1.reshape(w1.shape[0], c_fin, l_fin), (2, 1, 0))
    w1p = w1p.reshape(l_fin * c_fin, w1.shape[0])
    w2p = w2.T
    pad = FC3_PAD - w3.shape[0]
    w3p = jnp.pad(w3.T, ((0, 0), (0, pad)))
    b3p = jnp.pad(b3, (0, pad))
    fcs = [(w1p.astype(jnp.bfloat16), b1.reshape(1, -1)),
           (w2p.astype(jnp.bfloat16), b2.reshape(1, -1)),
           (w3p.astype(jnp.bfloat16), b3p.reshape(1, -1))]
    return {"convs": convs, "fcs": fcs}


# ----------------------------- Forward ---------------------------------------------------

def net_forward(x, prepared):
    """x: (N, 3, L) in PyTorch NCL layout -> (N, 93)."""
    h = jnp.transpose(x, (0, 2, 1))                 # channels-last (N, L, C), tiny one-time op
    h = conv_stack(h, prepared["convs"])            # fused 4x conv/relu/pool -> (N, L4, C4)
    h = h.reshape(h.shape[0], -1)                   # fc1 rows are pre-permuted to this order
    out = fc_stack(h, prepared["fcs"])              # fused fc1/fc2/fc3 -> (N, 128)
    return out[:, :FC_WIDTHS[-1]]                   # strip fc3 lane padding -> (N, 93)


# ----------------------------- Pure-JAX reference (f32, torch layout) -------------------

def _ref_conv1d(h, w, b):
    c_out, c_in, k_taps = w.shape
    l_out = h.shape[2] - k_taps + 1
    out = jnp.zeros((h.shape[0], c_out, l_out), jnp.float32)
    for k in range(k_taps):
        out = out + jnp.einsum("ncl,oc->nol", h[:, :, k:k + l_out], w[:, :, k])
    return out + b[None, :, None]


def ref_forward(x, params):
    h = x
    for w, b in params["convs"]:
        h = jnp.maximum(_ref_conv1d(h, w, b), 0.0)
        n, c, lo = h.shape
        lp = lo // 2
        h = h[:, :, :2 * lp].reshape(n, c, lp, 2).max(axis=-1)
    h = h.reshape(h.shape[0], -1)
    for i, (w, b) in enumerate(params["fcs"]):
        h = h @ w.T + b
        if i < len(params["fcs"]) - 1:
            h = jnp.maximum(h, 0.0)
    return h


# ----------------------------- Main -------------------------------------------------------

if __name__ == "__main__":
    N, C_IN, L = 2, 3, 128
    key = jax.random.PRNGKey(0)
    key, kx = jax.random.split(key)
    x = jax.random.normal(kx, (N, C_IN, L), jnp.float32)
    params = init_params(key, L)
    prepared = prepare_params(params, L)

    out = jax.jit(net_forward)(x, prepared)
    out = jax.block_until_ready(out)

    ref = ref_forward(x, params)
    assert out.shape == (N, 31 * 3), out.shape
    # FC weights are bf16 (f32 accumulation), so compare a bit looser than pure-f32 exact.
    np.testing.assert_allclose(np.asarray(out), np.asarray(ref), rtol=2e-2, atol=2e-2)
    print("KERNEL_OK")
</pallas_src>

<mosaic_0001>
module attributes {stable_mosaic.version = 11 : i64} {
  func.func @_conv_stack_kernel(%arg0: i32, %arg1: memref<1x128x3xf32, #tpu.memory_space<vmem>>, %arg2: memref<15x6xf32, #tpu.memory_space<vmem>>, %arg3: memref<1x6xf32, #tpu.memory_space<vmem>>, %arg4: memref<30x9xf32, #tpu.memory_space<vmem>>, %arg5: memref<1x9xf32, #tpu.memory_space<vmem>>, %arg6: memref<45x12xf32, #tpu.memory_space<vmem>>, %arg7: memref<1x12xf32, #tpu.memory_space<vmem>>, %arg8: memref<60x15xf32, #tpu.memory_space<vmem>>, %arg9: memref<1x15xf32, #tpu.memory_space<vmem>>, %arg10: memref<1x4x15xf32, #tpu.memory_space<vmem>>, %arg11: memref<128x15xf32, #tpu.memory_space<vmem>>) attributes {dimension_semantics = [#tpu.dimension_semantics<parallel>], iteration_bounds = array<i64: 2>, scalar_prefetch = 0 : i64, scratch_operands = 1 : i64, tpu.core_type = #tpu.core_type<tc>, window_params = [{transform_indices = @transform_0, window_bounds = array<i64: 1, 128, 3>}, {pipeline_mode = #tpu.pipeline_mode<synchronous>, transform_indices = @transform_1, window_bounds = array<i64: 15, 6>}, {pipeline_mode = #tpu.pipeline_mode<synchronous>, transform_indices = @transform_2, window_bounds = array<i64: 1, 6>}, {pipeline_mode = #tpu.pipeline_mode<synchronous>, transform_indices = @transform_3, window_bounds = array<i64: 30, 9>}, {pipeline_mode = #tpu.pipeline_mode<synchronous>, transform_indices = @transform_4, window_bounds = array<i64: 1, 9>}, {pipeline_mode = #tpu.pipeline_mode<synchronous>, transform_indices = @transform_5, window_bounds = array<i64: 45, 12>}, {pipeline_mode = #tpu.pipeline_mode<synchronous>, transform_indices = @transform_6, window_bounds = array<i64: 1, 12>}, {pipeline_mode = #tpu.pipeline_mode<synchronous>, transform_indices = @transform_7, window_bounds = array<i64: 60, 15>}, {pipeline_mode = #tpu.pipeline_mode<synchronous>, transform_indices = @transform_8, window_bounds = array<i64: 1, 15>}, {transform_indices = @transform_9, window_bounds = array<i64: 1, 4, 15>}]} {
    %c0 = arith.constant 0 : index
    %c0_0 = arith.constant 0 : index
    %c0_1 = arith.constant 0 : index
    %0 = vector.load %arg1[%c0, %c0_0, %c0_1] : memref<1x128x3xf32, #tpu.memory_space<vmem>>, vector<1x128x3xf32>
    %1 = vector.shape_cast %0 : vector<1x128x3xf32> to vector<128x3xf32>
    %2 = vector.extract_strided_slice %1 {offsets = [0, 0], sizes = [124, 3], strides = [1, 1]} : vector<128x3xf32> to vector<124x3xf32>
    %3 = vector.extract_strided_slice %1 {offsets = [1, 0], sizes = [124, 3], strides = [1, 1]} : vector<128x3xf32> to vector<124x3xf32>
    %4 = vector.extract_strided_slice %1 {offsets = [2, 0], sizes = [124, 3], strides = [1, 1]} : vector<128x3xf32> to vector<124x3xf32>
    %5 = vector.extract_strided_slice %1 {offsets = [3, 0], sizes = [124, 3], strides = [1, 1]} : vector<128x3xf32> to vector<124x3xf32>
    %6 = vector.extract_strided_slice %1 {offsets = [4, 0], sizes = [124, 3], strides = [1, 1]} : vector<128x3xf32> to vector<124x3xf32>
    %7 = tpu.concatenate %2, %3, %4, %5, %6 in 1 : vector<124x3xf32>, vector<124x3xf32>, vector<124x3xf32>, vector<124x3xf32>, vector<124x3xf32> -> vector<124x15xf32>
    %c0_2 = arith.constant 0 : index
    %c0_3 = arith.constant 0 : index
    %8 = vector.load %arg2[%c0_2, %c0_3] : memref<15x6xf32, #tpu.memory_space<vmem>>, vector<15x6xf32>
    %cst = arith.constant dense<0.000000e+00> : vector<124x6xf32>
    %9 = tpu.matmul %7, %8, %cst {dimension_numbers = #tpu.dot_dimension_numbers<[1], [0], [0], [1], [0, 0, 1, 1], [], []>} : vector<124x15xf32>, vector<15x6xf32>, vector<124x6xf32> -> vector<124x6xf32>
    %c0_4 = arith.constant 0 : index
    %c0_5 = arith.constant 0 : index
    %10 = vector.load %arg3[%c0_4, %c0_5] : memref<1x6xf32, #tpu.memory_space<vmem>>, vector<1x6xf32>
    %11 = vector.broadcast %10 : vector<1x6xf32> to vector<124x6xf32>
    %12 = arith.addf %9, %11 : vector<124x6xf32>
    %cst_6 = arith.constant 0.000000e+00 : f32
    %13 = vector.broadcast %cst_6 : f32 to vector<124x6xf32>
    %14 = arith.maximumf %12, %13 : vector<124x6xf32>
    %c0_7 = arith.constant 0 : index
    %c0_8 = arith.constant 0 : index
    %15 = vector.load %arg11[%c0_7, %c0_8] : memref<128x15xf32, #tpu.memory_space<vmem>>, vector<124x6xf32>
    tpu.vector_store %arg11[%c0_7, %c0_8], %14 {strides = array<i32>} : memref<128x15xf32, #tpu.memory_space<vmem>>, vector<124x6xf32>,
    %c0_9 = arith.constant 0 : index
    %c0_10 = arith.constant 0 : index
    %16 = tpu.strided_load %arg11[%c0_9, %c0_10] {strides = array<i32: 2, 1>} : memref<128x15xf32, #tpu.memory_space<vmem>>, vector<62x6xf32>
    %c1 = arith.constant 1 : index
    %c0_11 = arith.constant 0 : index
    %17 = tpu.strided_load %arg11[%c1, %c0_11] {strides = array<i32: 2, 1>} : memref<128x15xf32, #tpu.memory_space<vmem>>, vector<62x6xf32>
    %18 = arith.maximumf %16, %17 : vector<62x6xf32>
    %19 = vector.extract_strided_slice %18 {offsets = [0, 0], sizes = [58, 6], strides = [1, 1]} : vector<62x6xf32> to vector<58x6xf32>
    %20 = vector.extract_strided_slice %18 {offsets = [1, 0], sizes = [58, 6], strides = [1, 1]} : vector<62x6xf32> to vector<58x6xf32>
    %21 = vector.extract_strided_slice %18 {offsets = [2, 0], sizes = [58, 6], strides = [1, 1]} : vector<62x6xf32> to vector<58x6xf32>
    %22 = vector.extract_strided_slice %18 {offsets = [3, 0], sizes = [58, 6], strides = [1, 1]} : vector<62x6xf32> to vector<58x6xf32>
    %23 = vector.extract_strided_slice %18 {offsets = [4, 0], sizes = [58, 6], strides = [1, 1]} : vector<62x6xf32> to vector<58x6xf32>
    %24 = tpu.concatenate %19, %20, %21, %22, %23 in 1 : vector<58x6xf32>, vector<58x6xf32>, vector<58x6xf32>, vector<58x6xf32>, vector<58x6xf32> -> vector<58x30xf32>
    %c0_12 = arith.constant 0 : index
    %c0_13 = arith.constant 0 : index
    %25 = vector.load %arg4[%c0_12, %c0_13] : memref<30x9xf32, #tpu.memory_space<vmem>>, vector<30x9xf32>
    %cst_14 = arith.constant dense<0.000000e+00> : vector<58x9xf32>
    %26 = tpu.matmul %24, %25, %cst_14 {dimension_numbers = #tpu.dot_dimension_numbers<[1], [0], [0], [1], [0, 0, 1, 1], [], []>} : vector<58x30xf32>, vector<30x9xf32>, vector<58x9xf32> -> vector<58x9xf32>
    %c0_15 = arith.constant 0 : index
    %c0_16 = arith.constant 0 : index
    %27 = vector.load %arg5[%c0_15, %c0_16] : memref<1x9xf32, #tpu.memory_space<vmem>>, vector<1x9xf32>
    %28 = vector.broadcast %27 : vector<1x9xf32> to vector<58x9xf32>
    %29 = arith.addf %26, %28 : vector<58x9xf32>
    %cst_17 = arith.constant 0.000000e+00 : f32
    %30 = vector.broadcast %cst_17 : f32 to vector<58x9xf32>
    %31 = arith.maximumf %29, %30 : vector<58x9xf32>
    %c0_18 = arith.constant 0 : index
    %c0_19 = arith.constant 0 : index
    %32 = vector.load %arg11[%c0_18, %c0_19] : memref<128x15xf32, #tpu.memory_space<vmem>>, vector<58x9xf32>
    tpu.vector_store %arg11[%c0_18, %c0_19], %31 {strides = array<i32>} : memref<128x15xf32, #tpu.memory_space<vmem>>, vector<58x9xf32>,
    %c0_20 = arith.constant 0 : index
    %c0_21 = arith.constant 0 : index
    %33 = tpu.strided_load %arg11[%c0_20, %c0_21] {strides = array<i32: 2, 1>} : memref<128x15xf32, #tpu.memory_space<vmem>>, vector<29x9xf32>
    %c1_22 = arith.constant 1 : index
    %c0_23 = arith.constant 0 : index
    %34 = tpu.strided_load %arg11[%c1_22, %c0_23] {strides = array<i32: 2, 1>} : memref<128x15xf32, #tpu.memory_space<vmem>>, vector<29x9xf32>
    %35 = arith.maximumf %33, %34 : vector<29x9xf32>
    %36 = vector.extract_strided_slice %35 {offsets = [0, 0], sizes = [25, 9], strides = [1, 1]} : vector<29x9xf32> to vector<25x9xf32>
    %37 = vector.extract_strided_slice %35 {offsets = [1, 0], sizes = [25, 9], strides = [1, 1]} : vector<29x9xf32> to vector<25x9xf32>
    %38 = vector.extract_strided_slice %35 {offsets = [2, 0], sizes = [25, 9], strides = [1, 1]} : vector<29x9xf32> to vector<25x9xf32>
    %39 = vector.extract_strided_slice %35 {offsets = [3, 0], sizes = [25, 9], strides = [1, 1]} : vector<29x9xf32> to vector<25x9xf32>
    %40 = vector.extract_strided_slice %35 {offsets = [4, 0], sizes = [25, 9], strides = [1, 1]} : vector<29x9xf32> to vector<25x9xf32>
    %41 = tpu.concatenate %36, %37, %38, %39, %40 in 1 : vector<25x9xf32>, vector<25x9xf32>, vector<25x9xf32>, vector<25x9xf32>, vector<25x9xf32> -> vector<25x45xf32>
    %c0_24 = arith.constant 0 : index
    %c0_25 = arith.constant 0 : index
    %42 = vector.load %arg6[%c0_24, %c0_25] : memref<45x12xf32, #tpu.memory_space<vmem>>, vector<45x12xf32>
    %cst_26 = arith.constant dense<0.000000e+00> : vector<25x12xf32>
    %43 = tpu.matmul %41, %42, %cst_26 {dimension_numbers = #tpu.dot_dimension_numbers<[1], [0], [0], [1], [0, 0, 1, 1], [], []>} : vector<25x45xf32>, vector<45x12xf32>, vector<25x12xf32> -> vector<25x12xf32>
    %c0_27 = arith.constant 0 : index
    %c0_28 = arith.constant 0 : index
    %44 = vector.load %arg7[%c0_27, %c0_28] : memref<1x12xf32, #tpu.memory_space<vmem>>, vector<1x12xf32>
    %45 = vector.broadcast %44 : vector<1x12xf32> to vector<25x12xf32>
    %46 = arith.addf %43, %45 : vector<25x12xf32>
    %cst_29 = arith.constant 0.000000e+00 : f32
    %47 = vector.broadcast %cst_29 : f32 to vector<25x12xf32>
    %48 = arith.maximumf %46, %47 : vector<25x12xf32>
    %c0_30 = arith.constant 0 : index
    %c0_31 = arith.constant 0 : index
    %49 = vector.load %arg11[%c0_30, %c0_31] : memref<128x15xf32, #tpu.memory_space<vmem>>, vector<25x12xf32>
    tpu.vector_store %arg11[%c0_30, %c0_31], %48 {strides = array<i32>} : memref<128x15xf32, #tpu.memory_space<vmem>>, vector<25x12xf32>,
    %c0_32 = arith.constant 0 : index
    %c0_33 = arith.constant 0 : index
    %50 = tpu.strided_load %arg11[%c0_32, %c0_33] {strides = array<i32: 2, 1>} : memref<128x15xf32, #tpu.memory_space<vmem>>, vector<12x12xf32>
    %c1_34 = arith.constant 1 : index
    %c0_35 = arith.constant 0 : index
    %51 = tpu.strided_load %arg11[%c1_34, %c0_35] {strides = array<i32: 2, 1>} : memref<128x15xf32, #tpu.memory_space<vmem>>, vector<12x12xf32>
    %52 = arith.maximumf %50, %51 : vector<12x12xf32>
    %53 = vector.extract_strided_slice %52 {offsets = [0, 0], sizes = [8, 12], strides = [1, 1]} : vector<12x12xf32> to vector<8x12xf32>
    %54 = vector.extract_strided_slice %52 {offsets = [1, 0], sizes = [8, 12], strides = [1, 1]} : vector<12x12xf32> to vector<8x12xf32>
    %55 = vector.extract_strided_slice %52 {offsets = [2, 0], sizes = [8, 12], strides = [1, 1]} : vector<12x12xf32> to vector<8x12xf32>
    %56 = vector.extract_strided_slice %52 {offsets = [3, 0], sizes = [8, 12], strides = [1, 1]} : vector<12x12xf32> to vector<8x12xf32>
    %57 = vector.extract_strided_slice %52 {offsets = [4, 0], sizes = [8, 12], strides = [1, 1]} : vector<12x12xf32> to vector<8x12xf32>
    %58 = tpu.concatenate %53, %54, %55, %56, %57 in 1 : vector<8x12xf32>, vector<8x12xf32>, vector<8x12xf32>, vector<8x12xf32>, vector<8x12xf32> -> vector<8x60xf32>
    %c0_36 = arith.constant 0 : index
    %c0_37 = arith.constant 0 : index
    %59 = vector.load %arg8[%c0_36, %c0_37] : memref<60x15xf32, #tpu.memory_space<vmem>>, vector<60x15xf32>
    %cst_38 = arith.constant dense<0.000000e+00> : vector<8x15xf32>
    %60 = tpu.matmul %58, %59, %cst_38 {dimension_numbers = #tpu.dot_dimension_numbers<[1], [0], [0], [1], [0, 0, 1, 1], [], []>} : vector<8x60xf32>, vector<60x15xf32>, vector<8x15xf32> -> vector<8x15xf32>
    %c0_39 = arith.constant 0 : index
    %c0_40 = arith.constant 0 : index
    %61 = vector.load %arg9[%c0_39, %c0_40] : memref<1x15xf32, #tpu.memory_space<vmem>>, vector<1x15xf32>
    %62 = vector.broadcast %61 : vector<1x15xf32> to vector<8x15xf32>
    %63 = arith.addf %60, %62 : vector<8x15xf32>
    %cst_41 = arith.constant 0.000000e+00 : f32
    %64 = vector.broadcast %cst_41 : f32 to vector<8x15xf32>
    %65 = arith.maximumf %63, %64 : vector<8x15xf32>
    %c0_42 = arith.constant 0 : index
    %c0_43 = arith.constant 0 : index
    %66 = vector.load %arg11[%c0_42, %c0_43] : memref<128x15xf32, #tpu.memory_space<vmem>>, vector<8x15xf32>
    tpu.vector_store %arg11[%c0_42, %c0_43], %65 {strides = array<i32>} : memref<128x15xf32, #tpu.memory_space<vmem>>, vector<8x15xf32>,
    %c0_44 = arith.constant 0 : index
    %c0_45 = arith.constant 0 : index
    %67 = tpu.strided_load %arg11[%c0_44, %c0_45] {strides = array<i32: 2, 1>} : memref<128x15xf32, #tpu.memory_space<vmem>>, vector<4x15xf32>
    %c1_46 = arith.constant 1 : index
    %c0_47 = arith.constant 0 : index
    %68 = tpu.strided_load %arg11[%c1_46, %c0_47] {strides = array<i32: 2, 1>} : memref<128x15xf32, #tpu.memory_space<vmem>>, vector<4x15xf32>
    %69 = arith.maximumf %67, %68 : vector<4x15xf32>
    %c0_48 = arith.constant 0 : index
    %c0_49 = arith.constant 0 : index
    %c0_50 = arith.constant 0 : index
    %70 = vector.load %arg10[%c0_48, %c0_49, %c0_50] : memref<1x4x15xf32, #tpu.memory_space<vmem>>, vector<1x4x15xf32>
    %71 = vector.shape_cast %70 : vector<1x4x15xf32> to vector<4x15xf32>
    %72 = vector.shape_cast %69 : vector<4x15xf32> to vector<1x4x15xf32>
    tpu.vector_store %arg10[%c0_48, %c0_49, %c0_50], %72 {strides = array<i32>} : memref<1x4x15xf32, #tpu.memory_space<vmem>>, vector<1x4x15xf32>,
    return
  }
  func.func @transform_0(%arg0: i32) -> (i32, i32, i32) {
    %c0_i32 = arith.constant 0 : i32
    %c0_i32_0 = arith.constant 0 : i32
    %c0_i32_1 = arith.constant 0 : i32
    return %arg0, %c0_i32, %c0_i32_0 : i32, i32, i32
  }
  func.func @transform_1(%arg0: i32) -> (i32, i32) {
    %c0_i32 = arith.constant 0 : i32
    %c0_i32_0 = arith.constant 0 : i32
    %c0_i32_1 = arith.constant 0 : i32
    return %c0_i32, %c0_i32_0 : i32, i32
  }
  func.func @transform_2(%arg0: i32) -> (i32, i32) {
    %c0_i32 = arith.constant 0 : i32
    %c0_i32_0 = arith.constant 0 : i32
    %c0_i32_1 = arith.constant 0 : i32
    return %c0_i32, %c0_i32_0 : i32, i32
  }
  func.func @transform_3(%arg0: i32) -> (i32, i32) {
    %c0_i32 = arith.constant 0 : i32
    %c0_i32_0 = arith.constant 0 : i32
    %c0_i32_1 = arith.constant 0 : i32
    return %c0_i32, %c0_i32_0 : i32, i32
  }
  func.func @transform_4(%arg0: i32) -> (i32, i32) {
    %c0_i32 = arith.constant 0 : i32
    %c0_i32_0 = arith.constant 0 : i32
    %c0_i32_1 = arith.constant 0 : i32
    return %c0_i32, %c0_i32_0 : i32, i32
  }
  func.func @transform_5(%arg0: i32) -> (i32, i32) {
    %c0_i32 = arith.constant 0 : i32
    %c0_i32_0 = arith.constant 0 : i32
    %c0_i32_1 = arith.constant 0 : i32
    return %c0_i32, %c0_i32_0 : i32, i32
  }
  func.func @transform_6(%arg0: i32) -> (i32, i32) {
    %c0_i32 = arith.constant 0 : i32
    %c0_i32_0 = arith.constant 0 : i32
    %c0_i32_1 = arith.constant 0 : i32
    return %c0_i32, %c0_i32_0 : i32, i32
  }
  func.func @transform_7(%arg0: i32) -> (i32, i32) {
    %c0_i32 = arith.constant 0 : i32
    %c0_i32_0 = arith.constant 0 : i32
    %c0_i32_1 = arith.constant 0 : i32
    return %c0_i32, %c0_i32_0 : i32, i32
  }
  func.func @transform_8(%arg0: i32) -> (i32, i32) {
    %c0_i32 = arith.constant 0 : i32
    %c0_i32_0 = arith.constant 0 : i32
    %c0_i32_1 = arith.constant 0 : i32
    return %c0_i32, %c0_i32_0 : i32, i32
  }
  func.func @transform_9(%arg0: i32) -> (i32, i32, i32) {
    %c0_i32 = arith.constant 0 : i32
    %c0_i32_0 = arith.constant 0 : i32
    %c0_i32_1 = arith.constant 0 : i32
    return %arg0, %c0_i32, %c0_i32_0 : i32, i32, i32
  }
}

module attributes {stable_mosaic.version = 11 : i64} {
  func.func @_fc_stack_kernel(%arg0: i32, %arg1: memref<2x60xf32, #tpu.memory_space<vmem>>, %arg2: memref<60x4096xbf16, #tpu.memory_space<vmem>>, %arg3: memref<1x4096xf32, #tpu.memory_space<vmem>>, %arg4: memref<4096x512xbf16, #tpu.memory_space<vmem>>, %arg5: memref<1x512xf32, #tpu.memory_space<vmem>>, %arg6: memref<512x128xbf16, #tpu.memory_space<vmem>>, %arg7: memref<1x128xf32, #tpu.memory_space<vmem>>, %arg8: memref<2x128xf32, #tpu.memory_space<vmem>>, %arg9: memref<2x4096xf32, #tpu.memory_space<vmem>>, %arg10: memref<2x128xf32, #tpu.memory_space<vmem>>) attributes {dimension_semantics = [#tpu.dimension_semantics<arbitrary>], iteration_bounds = array<i64: 2>, scalar_prefetch = 0 : i64, scratch_operands = 2 : i64, tpu.core_type = #tpu.core_type<tc>, window_params = [{pipeline_mode = #tpu.pipeline_mode<synchronous>, transform_indices = @transform_0, window_bounds = array<i64: 2, 60>}, {pipeline_mode = #tpu.pipeline_mode<synchronous>, transform_indices = @transform_1, window_bounds = array<i64: 60, 4096>}, {pipeline_mode = #tpu.pipeline_mode<synchronous>, transform_indices = @transform_2, window_bounds = array<i64: 1, 4096>}, {transform_indices = @transform_3, window_bounds = array<i64: 4096, 512>}, {transform_indices = @transform_4, window_bounds = array<i64: 1, 512>}, {transform_indices = @transform_5, window_bounds = array<i64: 512, 128>}, {pipeline_mode = #tpu.pipeline_mode<synchronous>, transform_indices = @transform_6, window_bounds = array<i64: 1, 128>}, {pipeline_mode = #tpu.pipeline_mode<synchronous>, transform_indices = @transform_7, window_bounds = array<i64: 2, 128>}]} {
    %c0_i32 = arith.constant 0 : i32
    %0 = arith.cmpi eq, %arg0, %c0_i32 : i32
    %1 = arith.extui %0 : i1 to i32
    %c0_i32_0 = arith.constant 0 : i32
    %2 = arith.cmpi ne, %1, %c0_i32_0 : i32
    scf.if %2 {
      %c0_15 = arith.constant 0 : index
      %c0_16 = arith.constant 0 : index
      %21 = vector.load %arg1[%c0_15, %c0_16] : memref<2x60xf32, #tpu.memory_space<vmem>>, vector<2x60xf32>
      %22 = arith.truncf %21 : vector<2x60xf32> to vector<2x60xbf16>
      %c0_17 = arith.constant 0 : index
      %c0_18 = arith.constant 0 : index
      %23 = vector.load %arg2[%c0_17, %c0_18] : memref<60x4096xbf16, #tpu.memory_space<vmem>>, vector<60x4096xbf16>
      %cst_19 = arith.constant dense<0.000000e+00> : vector<2x4096xf32>
      %24 = tpu.matmul %22, %23, %cst_19 {dimension_numbers = #tpu.dot_dimension_numbers<[1], [0], [0], [1], [0, 0, 1, 1], [], []>} : vector<2x60xbf16>, vector<60x4096xbf16>, vector<2x4096xf32> -> vector<2x4096xf32>
      %c0_20 = arith.constant 0 : index
      %c0_21 = arith.constant 0 : index
      %25 = vector.load %arg3[%c0_20, %c0_21] : memref<1x4096xf32, #tpu.memory_space<vmem>>, vector<1x4096xf32>
      %26 = vector.broadcast %25 : vector<1x4096xf32> to vector<2x4096xf32>
      %27 = arith.addf %24, %26 : vector<2x4096xf32>
      %cst_22 = arith.constant 0.000000e+00 : f32
      %28 = vector.broadcast %cst_22 : f32 to vector<2x4096xf32>
      %29 = arith.maximumf %27, %28 : vector<2x4096xf32>
      %c0_23 = arith.constant 0 : index
      %c0_24 = arith.constant 0 : index
      %30 = vector.load %arg9[%c0_23, %c0_24] : memref<2x4096xf32, #tpu.memory_space<vmem>>, vector<2x4096xf32>
      tpu.vector_store %arg9[%c0_23, %c0_24], %29 {strides = array<i32>} : memref<2x4096xf32, #tpu.memory_space<vmem>>, vector<2x4096xf32>,
      %cst_25 = arith.constant 0.000000e+00 : f32
      %31 = vector.broadcast %cst_25 : f32 to vector<2x128xf32>
      %c0_26 = arith.constant 0 : index
      %c0_27 = arith.constant 0 : index
      %32 = vector.load %arg10[%c0_26, %c0_27] : memref<2x128xf32, #tpu.memory_space<vmem>>, vector<2x128xf32>
      tpu.vector_store %arg10[%c0_26, %c0_27], %31 {strides = array<i32>} : memref<2x128xf32, #tpu.memory_space<vmem>>, vector<2x128xf32>,
    } else {
    }
    %c0 = arith.constant 0 : index
    %c0_1 = arith.constant 0 : index
    %3 = vector.load %arg9[%c0, %c0_1] : memref<2x4096xf32, #tpu.memory_space<vmem>>, vector<2x4096xf32>
    %4 = arith.truncf %3 : vector<2x4096xf32> to vector<2x4096xbf16>
    %c0_2 = arith.constant 0 : index
    %c0_3 = arith.constant 0 : index
    %5 = vector.load %arg4[%c0_2, %c0_3] : memref<4096x512xbf16, #tpu.memory_space<vmem>>, vector<4096x512xbf16>
    %cst = arith.constant dense<0.000000e+00> : vector<2x512xf32>
    %6 = tpu.matmul %4, %5, %cst {dimension_numbers = #tpu.dot_dimension_numbers<[1], [0], [0], [1], [0, 0, 1, 1], [], []>} : vector<2x4096xbf16>, vector<4096x512xbf16>, vector<2x512xf32> -> vector<2x512xf32>
    %c0_4 = arith.constant 0 : index
    %c0_5 = arith.constant 0 : index
    %7 = vector.load %arg5[%c0_4, %c0_5] : memref<1x512xf32, #tpu.memory_space<vmem>>, vector<1x512xf32>
    %8 = vector.broadcast %7 : vector<1x512xf32> to vector<2x512xf32>
    %9 = arith.addf %6, %8 : vector<2x512xf32>
    %cst_6 = arith.constant 0.000000e+00 : f32
    %10 = vector.broadcast %cst_6 : f32 to vector<2x512xf32>
    %11 = arith.maximumf %9, %10 : vector<2x512xf32>
    %c0_7 = arith.constant 0 : index
    %c0_8 = arith.constant 0 : index
    %12 = vector.load %arg10[%c0_7, %c0_8] : memref<2x128xf32, #tpu.memory_space<vmem>>, vector<2x128xf32>
    %13 = arith.truncf %11 : vector<2x512xf32> to vector<2x512xbf16>
    %c0_9 = arith.constant 0 : index
    %c0_10 = arith.constant 0 : index
    %14 = vector.load %arg6[%c0_9, %c0_10] : memref<512x128xbf16, #tpu.memory_space<vmem>>, vector<512x128xbf16>
    %cst_11 = arith.constant dense<0.000000e+00> : vector<2x128xf32>
    %15 = tpu.matmul %13, %14, %cst_11 {dimension_numbers = #tpu.dot_dimension_numbers<[1], [0], [0], [1], [0, 0, 1, 1], [], []>} : vector<2x512xbf16>, vector<512x128xbf16>, vector<2x128xf32> -> vector<2x128xf32>
    %16 = arith.addf %12, %15 : vector<2x128xf32>
    %c0_12 = arith.constant 0 : index
    %c0_13 = arith.constant 0 : index
    %17 = vector.load %arg10[%c0_12, %c0_13] : memref<2x128xf32, #tpu.memory_space<vmem>>, vector<2x128xf32>
    tpu.vector_store %arg10[%c0_12, %c0_13], %16 {strides = array<i32>} : memref<2x128xf32, #tpu.memory_space<vmem>>, vector<2x128xf32>,
    %c1_i32 = arith.constant 1 : i32
    %18 = arith.cmpi eq, %arg0, %c1_i32 : i32
    %19 = arith.extui %18 : i1 to i32
    %c0_i32_14 = arith.constant 0 : i32
    %20 = arith.cmpi ne, %19, %c0_i32_14 : i32
    scf.if %20 {
      %c0_15 = arith.constant 0 : index
      %c0_16 = arith.constant 0 : index
      %21 = vector.load %arg10[%c0_15, %c0_16] : memref<2x128xf32, #tpu.memory_space<vmem>>, vector<2x128xf32>
      %c0_17 = arith.constant 0 : index
      %c0_18 = arith.constant 0 : index
      %22 = vector.load %arg7[%c0_17, %c0_18] : memref<1x128xf32, #tpu.memory_space<vmem>>, vector<1x128xf32>
      %23 = vector.broadcast %22 : vector<1x128xf32> to vector<2x128xf32>
      %24 = arith.addf %21, %23 : vector<2x128xf32>
      %c0_19 = arith.constant 0 : index
      %c0_20 = arith.constant 0 : index
      %25 = vector.load %arg8[%c0_19, %c0_20] : memref<2x128xf32, #tpu.memory_space<vmem>>, vector<2x128xf32>
      tpu.vector_store %arg8[%c0_19, %c0_20], %24 {strides = array<i32>} : memref<2x128xf32, #tpu.memory_space<vmem>>, vector<2x128xf32>,
    } else {
    }
    return
  }
  func.func @transform_0(%arg0: i32) -> (i32, i32) {
    %c0_i32 = arith.constant 0 : i32
    %c0_i32_0 = arith.constant 0 : i32
    %c0_i32_1 = arith.constant 0 : i32
    return %c0_i32, %c0_i32_0 : i32, i32
  }
  func.func @transform_1(%arg0: i32) -> (i32, i32) {
    %c0_i32 = arith.constant 0 : i32
    %c0_i32_0 = arith.constant 0 : i32
    %c0_i32_1 = arith.constant 0 : i32
    return %c0_i32, %c0_i32_0 : i32, i32
  }
  func.func @transform_2(%arg0: i32) -> (i32, i32) {
    %c0_i32 = arith.constant 0 : i32
    %c0_i32_0 = arith.constant 0 : i32
    %c0_i32_1 = arith.constant 0 : i32
    return %c0_i32, %c0_i32_0 : i32, i32
  }
  func.func @transform_3(%arg0: i32) -> (i32, i32) {
    %c0_i32 = arith.constant 0 : i32
    %c0_i32_0 = arith.constant 0 : i32
    return %c0_i32, %arg0 : i32, i32
  }
  func.func @transform_4(%arg0: i32) -> (i32, i32) {
    %c0_i32 = arith.constant 0 : i32
    %c0_i32_0 = arith.constant 0 : i32
    return %c0_i32, %arg0 : i32, i32
  }
  func.func @transform_5(%arg0: i32) -> (i32, i32) {
    %c0_i32 = arith.constant 0 : i32
    %c0_i32_0 = arith.constant 0 : i32
    return %arg0, %c0_i32 : i32, i32
  }
  func.func @transform_6(%arg0: i32) -> (i32, i32) {
    %c0_i32 = arith.constant 0 : i32
    %c0_i32_0 = arith.constant 0 : i32
    %c0_i32_1 = arith.constant 0 : i32
    return %c0_i32, %c0_i32_0 : i32, i32
  }
  func.func @transform_7(%arg0: i32) -> (i32, i32) {
    %c0_i32 = arith.constant 0 : i32
    %c0_i32_0 = arith.constant 0 : i32
    %c0_i32_1 = arith.constant 0 : i32
    return %c0_i32, %c0_i32_0 : i32, i32
  }
}

</mosaic_0001>

<bundles_post_ra>
// kernel: net_forward.2
= control target key start
LH: loop header
LB: loop body
LE: loop exit
PB: predicated region body
PF: predicated region fallthrough
CT: control target
= control target key end

     0   :  { %14 = vsyncpa [#allocation4], 0  ;;  %s3241_s0 = inlined_call_operand.vmem [shape: f32[2,128,3], index: 0, kind: input, shape index: {}]   ;;  %s3242_s1 = inlined_call_operand.vmem [shape: f32[15,6], index: 1, kind: input, shape index: {}]   ;;  %s3243_s2 = inlined_call_operand.hbm [shape: f32[1,6], index: 2, kind: input, shape index: {}]   ;;  %s3244_s3 = inlined_call_operand.vmem [shape: f32[30,9], index: 3, kind: input, shape index: {}]   ;;  %s3245_s4 = inlined_call_operand.hbm [shape: f32[1,9], index: 4, kind: input, shape index: {}]   ;;  %s3246_s5 = inlined_call_operand.vmem [shape: f32[45,12], index: 5, kind: input, shape index: {}]   ;;  %s3247_s6 = inlined_call_operand.hbm [shape: f32[1,12], index: 6, kind: input, shape index: {}]   ;;  %s3248_s7 = inlined_call_operand.vmem [shape: f32[60,15], index: 7, kind: input, shape index: {}]   ;;  %s3249_s8 = inlined_call_operand.hbm [shape: f32[1,15], index: 8, kind: input, shape index: {}]   ;;  %s3250_s9 = inlined_call_operand.vmem [shape: f32[2,4,15], index: 9, kind: output, shape index: {}]  }
   0x1   :  { %15 = vsyncpa [#allocation6], 0 }
   0x2   :  { %16 = vsyncpa [#allocation9], 0  ;;  %s2396_s30 = smov 0  }
   0x3 LB: > { %s2402_s10 = sadd.s32 4294967295, %s2327_s30   ;;  %p1904_p0 = scmp.ge.s32.totalorder %s2327_s30, 1  ;;  %s2327_s30 = sphi %s2396_s30, %s22_s30  }
   0x4   : > { %p247_p1 = scmp.lt.s32.totalorder %s2327_s30, 3  ;;  %p3251_p2 = scmp.eq.s32.totalorder %s2402_s10, 0 }
   0x5   : > { %s2329_s11 = smov [#allocation5]   ;;  %s2330_s14 = smov [#allocation3]  }
   0x6   : > { %s277_s12 = sshll.u32 %s2329_s11, 4  ;;  %p2407_p3 = pnand %p1904_p0, %p247_p1  ;;  %s278_s12 = int_to_ptr.vmem [resolvable:$true] %s277_s12 }
   0x7   : > { %s263_s15 = sshll.u32 %s2330_s14, 4  ;;  %s2331_s16 = smov [#allocation7]   ;;  %s2419_s15 = int_to_ptr.vmem [resolvable:$true] %s263_s15 }
   0x8   : > { %s3253_s13 = scalar_select %p2407_p3, 1, 0 }
   0x9   : > { %p2151_p4 = pneg %p2407_p3  ;;  %s291_s17 = sshll.u32 %s2331_s16, 4  ;;  %s2421_s17 = int_to_ptr.vmem [resolvable:$true] %s291_s17 }
   0xa   : > { %s2332_s19 = smov [#allocation8]   ;;  %s2197_s23 = scalar_lea.hbm %s3245_s4, 16 }
   0xb   : > { %p2415_p5 = pnand %p3251_p2, %p2151_p4  ;;  %s305_s20 = sshll.u32 %s2332_s19, 4  ;;  %s2423_s20 = int_to_ptr.vmem [resolvable:$true] %s305_s20 }
   0xc   : > { %p2198_p6 = scmp.ne.s32.totalorder %s3245_s4, %s2197_s23  ;;  %p2204_p10 = scmp.lt.u32.totalorder %s2197_s23, %s3245_s4 }
   0xd   : > { %p2433_p7 = pneg %p2415_p5 }
   0xf   : > { %p2200_p8 = pnand %p2433_p7, %p2198_p6 }
  0x11   : > { %p2201_p9 = pneg %p2200_p8 }
  0x13   : > { %p2206_p11 = pnand %p2204_p10, %p2201_p9 }
  0x15   : > { %2209 = shalt.err (!%p2206_p11)
}
  0x16   : > { %s2210_s29 = scalar_lea.vmem %s278_s12, 16  ;;  %s2217_s11 = scalar_lea.vmem %s278_s12, 32 }
  0x17   : > { %p2211_p12 = scmp.ne.s32.totalorder %s278_s12, %s2210_s29  ;;  %p2218_p1 = scmp.lt.s32.totalorder %s278_s12, %s278_s12 }
  0x18   : > { %p2219_p4 = scmp.lt.s32.totalorder %s2217_s11, %s2210_s29 }
  0x19   : > { %p2213_p13 = pnand %p2211_p12, %p2433_p7 }
  0x1a   : > { %p2220_p2 = por %p2219_p4, %p2218_p1 }
  0x1b   : > { %p2214_p0 = pneg %p2213_p13 }
  0x1d   : > { %p2221_p3 = pnand %p2220_p2, %p2214_p0 }
  0x1f   : > { %2224 = shalt.err (!%p2221_p3)
}
  0x20   : > { %2157 = dma.hbm_to_vmem [thread:$0]  (!%p2415_p5), %s3245_s4, 16, %s278_s12, [#allocation6]  }
  0x21   : > { %s2225_s22 = scalar_lea.hbm %s3243_s2, 16 }
  0x22   : > { %p2226_p6 = scmp.ne.s32.totalorder %s3243_s2, %s2225_s22  ;;  %p2232_p2 = scmp.lt.u32.totalorder %s2225_s22, %s3243_s2 }
  0x24   : > { %p2228_p8 = pnand %p2226_p6, %p2433_p7 }
  0x26   : > { %p2229_p9 = pneg %p2228_p8 }
  0x28   : > { %p2234_p3 = pnand %p2232_p2, %p2229_p9 }
  0x2a   : > { %2237 = shalt.err (!%p2234_p3)
}
  0x2b   : > { %s2238_s12 = scalar_lea.vmem %s2419_s15, 16  ;;  %s2245_s28 = scalar_lea.vmem %s2419_s15, 32 }
  0x2c   : > { %p2239_p10 = scmp.ne.s32.totalorder %s2419_s15, %s2238_s12  ;;  %p2246_p13 = scmp.lt.s32.totalorder %s2419_s15, %s2419_s15 }
  0x2d   : > { %p2247_p0 = scmp.lt.s32.totalorder %s2245_s28, %s2238_s12 }
  0x2e   : > { %p2241_p11 = pnand %p2239_p10, %p2433_p7 }
  0x2f   : > { %p2248_p1 = por %p2247_p0, %p2246_p13 }
  0x30   : > { %p2242_p12 = pneg %p2241_p11 }
  0x32   : > { %p2249_p4 = pnand %p2248_p1, %p2242_p12 }
  0x34   : > { %2252 = shalt.err (!%p2249_p4)
}
  0x35   : > { %2154 = dma.hbm_to_vmem [thread:$0]  (!%p2415_p5), %s3243_s2, 16, %s2419_s15, [#allocation4]  }
  0x36   : > { %s2253_s19 = scalar_lea.hbm %s3247_s6, 16 }
  0x37   : > { %p2254_p6 = scmp.ne.s32.totalorder %s3247_s6, %s2253_s19  ;;  %p2260_p2 = scmp.lt.u32.totalorder %s2253_s19, %s3247_s6 }
  0x39   : > { %p2256_p8 = pnand %p2254_p6, %p2433_p7 }
  0x3b   : > { %p2257_p9 = pneg %p2256_p8 }
  0x3d   : > { %p2262_p3 = pnand %p2260_p2, %p2257_p9 }
  0x3f   : > { %2265 = shalt.err (!%p2262_p3)
}
  0x40   : > { %s2266_s15 = scalar_lea.vmem %s2421_s17, 16  ;;  %s2273_s25 = scalar_lea.vmem %s2421_s17, 32 }
  0x41   : > { %p2267_p10 = scmp.ne.s32.totalorder %s2421_s17, %s2266_s15  ;;  %p2274_p13 = scmp.lt.s32.totalorder %s2421_s17, %s2421_s17 }
  0x42   : > { %p2275_p0 = scmp.lt.s32.totalorder %s2273_s25, %s2266_s15 }
  0x43   : > { %p2269_p11 = pnand %p2267_p10, %p2433_p7 }
  0x44   : > { %p2276_p1 = por %p2275_p0, %p2274_p13 }
  0x45   : > { %p2270_p12 = pneg %p2269_p11 }
  0x47   : > { %p2277_p4 = pnand %p2276_p1, %p2270_p12 }
  0x49   : > { %2280 = shalt.err (!%p2277_p4)
}
  0x4a   : > { %2160 = dma.hbm_to_vmem [thread:$0]  (!%p2415_p5), %s3247_s6, 16, %s2421_s17, [#allocation6]  }
  0x4b   : > { %s2281_s11 = scalar_lea.hbm %s3249_s8, 16 }
  0x4c   : > { %p2282_p6 = scmp.ne.s32.totalorder %s3249_s8, %s2281_s11  ;;  %p2288_p2 = scmp.lt.u32.totalorder %s2281_s11, %s3249_s8 }
  0x4e   : > { %p2284_p8 = pnand %p2282_p6, %p2433_p7 }
  0x50   : > { %p2285_p9 = pneg %p2284_p8 }
  0x52   : > { %p2290_p3 = pnand %p2288_p2, %p2285_p9 }
  0x54   : > { %2293 = shalt.err (!%p2290_p3)
}
  0x55   : > { %s2294_s17 = scalar_lea.vmem %s2423_s20, 16  ;;  %s2301_s22 = scalar_lea.vmem %s2423_s20, 32 }
  0x56   : > { %p2295_p10 = scmp.ne.s32.totalorder %s2423_s20, %s2294_s17  ;;  %p2302_p13 = scmp.lt.s32.totalorder %s2423_s20, %s2423_s20 }
  0x57   : > { %p2303_p0 = scmp.lt.s32.totalorder %s2301_s22, %s2294_s17 }
  0x58   : > { %p2297_p11 = pnand %p2295_p10, %p2433_p7 }
  0x59   : > { %p2304_p1 = por %p2303_p0, %p2302_p13 }
  0x5a   : > { %p2298_p12 = pneg %p2297_p11 }
  0x5c   : > { %p2305_p4 = pnand %p2304_p1, %p2298_p12 }
  0x5e   : > { %2308 = shalt.err (!%p2305_p4)
}
  0x5f   : > { %2163 = dma.hbm_to_vmem [thread:$0]  (!%p2415_p5), %s3249_s8, 16, %s2423_s20, [#allocation9]  }
  0x60   : > { %p3256_p6 = scmp.ne.s32.totalorder %s3253_s13, 0 }
  0x61   : > { %p3257_p7 = scmp.eq.s32.totalorder (!%p3256_p6), %s2402_s10, 0 }
  0x62   : > { %326 = sbr.rel (%p3256_p6) target bundleno = 1663 (0x67f), region = 56 }
  0x69   : > { %2314 = dma.done.wait (%p3257_p7), [#allocation4], 16   ;;  %p3258_p8 = pmov %p3257_p7 }
  0x6a   : > { %p3259_p9 = pmov %p3257_p7 }
  0x6b   : > { %2316 = vsyncadd (%p3258_p8), [#allocation4], 4294967280 }
  0x6c   : > { %2318 = dma.done.wait (%p3259_p9), [#allocation6], 32   ;;  %p3260_p2 = pmov %p3257_p7 }
  0x6e   : > { %2320 = vsyncadd (%p3260_p2), [#allocation6], 4294967264  ;;  %p3261_p3 = pmov %p3260_p2 }
  0x6f   : > { %p3262_p5 = pmov %p3260_p2 }
  0x70   : > { %2322 = dma.done.wait (%p3261_p3), [#allocation9], 16  }
  0x71   : > { %2324 = vsyncadd (%p3262_p5), [#allocation9], 4294967280  ;;  %p373_p10 = scmp.lt.s32.totalorder %s2402_s10, 1  ;;  %vm494_vm0 = vcmask 1045504   ;;  %vm414_vm1 = vcmask 1046528   ;;  %s2333_s15 = smov 6  }
  0x72   : > { %s2334_s25 = smov 3   ;;  %vm574_vm2 = vcmask 1044480   ;;  %vm654_vm3 = vcmask 1043456   ;;  %s2335_s27 = smov 9   ;;  %v802_v41 = vld [vmem:[%s3242_s1] sm:$0xff]  ;;  %vm2337_vm4 = vmmov 1  }
  0x73   : > { %s3264_s10 = smov (!%p373_p10, %s2402_s10), 1  ;;  %s2336_s12 = smov 12   ;;  %v803_v42 = vld [vmem:[%s3242_s1 + $0x8] sm:$0x7f]  ;;  %vm2093_vm5 = vmpackc.low %vm414_vm1, %vm2337_vm4  ;;  %vm734_vm6 = vcmask 23552   ;;  %vm751_vm7 = vcmask 48128  }
  0x74   : > { %s1957_s13 = sshll.u32 %s3264_s10, 7  ;;  %v2092_v47 = vpack.c.bf16 %v803_v42, %v802_v41  ;;  %vm768_vm8 = vcmask 72704   ;;  %vm785_vm9 = vcmask 97280   ;;  %vm811_vm10 = vcmask 121856   ;;  %vm2103_vm11 = vmpackc.low %vm494_vm0, %vm2337_vm4  ;;  %s2338_s18 = smov 18  }
  0x75   : > { %s2543_s26 = scalar_lea.vmem %s3241_s0, %s1957_s13  ;;  %s2339_s20 = smov 24   ;;  %vm1039_vm12 = vcmask 44032   ;;  %vm1260_vm13 = vcmask 146432   ;;  %vm1269_vm14 = vcmask 195584   ;;  %vm1289_vm15 = vcmask 244736  }
  0x76   : > { %v2546_v0 = vld [vmem:[%s2543_s26] sm:$0xff]  ;;  %v2549_v1 = vld [vmem:[%s2543_s26 + $0x8] sm:$0xff]  ;;  %v2552_v2 = vld [vmem:[%s2543_s26 + $0x10] sm:$0xff]  ;;  %2094 = vmatprep.subr.msk.bf16.mxu0 %vm2093_vm5, %v2092_v47  ;;  %s2340_s29 = smov 27   ;;  %s2341_s11 = smov 36  }
  0x77   : > { %v495_v3 = vrot.slane %v2546_v0, 2  ;;  %v496_v4 = vrot.slane %v2549_v1, 2  ;;  %v415_v5 = vrot.slane %v2546_v0, 1  ;;  %v416_v6 = vrot.slane %v2549_v1, 1  ;;  %v2570_v16 = vld [vmem:[%s2543_s26 + $0x18] sm:$0xff]  ;;  %v2580_v22 = vld [vmem:[%s2543_s26 + $0x20] sm:$0xff]  ;;  %2097 = vmatpush3.bf16.msk.msra.mxu0 %vm2093_vm5, %v2092_v47  ;;  %vm2117_vm5 = vmpackc.low %vm574_vm2, %vm2337_vm4 }
  0x78   : > { %v498_v7 = vrot.slane %v2552_v2, 2  ;;  %v418_v8 = vrot.slane %v2552_v2, 1  ;;  %v576_v11 = vrot.slane %v2549_v1, 3  ;;  %v578_v14 = vrot.slane %v2552_v2, 3  ;;  %v2601_v35 = vld [vmem:[%s2543_s26 + $0x28] sm:$0xff]  ;;  %v2610_v40 = vld [vmem:[%s2543_s26 + $0x30] sm:$0xff] }
  0x79   : > { %v497_v9 = vsel %vm494_vm0, %v495_v3, %v496_v4  ;;  %v417_v10 = vsel %vm414_vm1, %v415_v5, %v416_v6  ;;  %v575_v15 = vrot.slane %v2546_v0, 3  ;;  %v420_v17 = vrot.slane %v2570_v16, 1  ;;  %v2639_v56 = vld [vmem:[%s2543_s26 + $0x38] sm:$0xff]  ;;  %v2648_v61 = vld [vmem:[%s2543_s26 + $0x40] sm:$0xff] }
  0x7a   : > { %526 = vrot.lane.b32.xlu1 %v497_v9, %s2333_s15  ;;  %446 = vrot.lane.b32.xlu0 %v417_v10, %s2334_s25  ;;  %v499_v12 = vsel %vm494_vm0, %v496_v4, %v498_v7  ;;  %v419_v13 = vsel %vm414_vm1, %v416_v6, %v418_v8  ;;  %v579_v18 = vsel %vm574_vm2, %v576_v11, %v578_v14  ;;  %v655_v20 = vrot.slane %v2546_v0, 4 }
  0x7b   : > { %v577_v19 = vsel %vm574_vm2, %v575_v15, %v576_v11  ;;  %v656_v21 = vrot.slane %v2549_v1, 4  ;;  %v421_v23 = vsel %vm414_vm1, %v418_v8, %v420_v17  ;;  %v422_v25 = vrot.slane %v2580_v22, 1 }
  0x7c   : > { %v658_v26 = vrot.slane %v2552_v2, 4  ;;  %v500_v29 = vrot.slane %v2570_v16, 2  ;;  %v502_v30 = vrot.slane %v2580_v22, 2  ;;  %v580_v33 = vrot.slane %v2570_v16, 3 }
  0x7d   : > { %v657_v24 = vsel %vm654_vm3, %v655_v20, %v656_v21  ;;  %v423_v27 = vsel %vm414_vm1, %v420_v17, %v422_v25  ;;  %v582_v34 = vrot.slane %v2580_v22, 3  ;;  %v424_v38 = vrot.slane %v2601_v35, 1 }
  0x7e   : > { %528 = vrot.lane.b32.xlu1 %v499_v12, %s2333_s15  ;;  %448 = vrot.lane.b32.xlu0 %v419_v13, %s2334_s25  ;;  %v659_v28 = vsel %vm654_vm3, %v656_v21, %v658_v26  ;;  %v503_v31 = vsel %vm494_vm0, %v500_v29, %v502_v30  ;;  %v501_v32 = vsel %vm494_vm0, %v498_v7, %v500_v29  ;;  %v660_v39 = vrot.slane %v2570_v16, 4  ;;  %v2669_v13 = vld [vmem:[%s2543_s26 + $0x48] sm:$0xff] }
  0x7f   : > { %v583_v36 = vsel %vm574_vm2, %v580_v33, %v582_v34  ;;  %v581_v37 = vsel %vm574_vm2, %v578_v14, %v580_v33  ;;  %v425_v43 = vsel %vm414_vm1, %v422_v25, %v424_v38  ;;  %v426_v45 = vrot.slane %v2610_v40, 1  ;;  %v2699_v33 = vld [vmem:[%s2543_s26 + $0x58] sm:$0xff] }
  0x80   : > { %v661_v44 = vsel %vm654_vm3, %v658_v26, %v660_v39  ;;  %v662_v46 = vrot.slane %v2580_v22, 4  ;;  %v504_v50 = vrot.slane %v2601_v35, 2  ;;  %v506_v51 = vrot.slane %v2610_v40, 2 }
  0x81   : > { %v427_v48 = vsel %vm414_vm1, %v424_v38, %v426_v45  ;;  %v584_v54 = vrot.slane %v2601_v35, 3  ;;  %v586_v55 = vrot.slane %v2610_v40, 3  ;;  %v428_v59 = vrot.slane %v2639_v56, 1 }
  0x82   : > { %608 = vrot.lane.b32.xlu1 %v579_v18, %s2335_s27  ;;  %606 = vrot.lane.b32.xlu0 %v577_v19, %s2335_s27  ;;  %v663_v49 = vsel %vm654_vm3, %v660_v39, %v662_v46  ;;  %v507_v52 = vsel %vm494_vm0, %v504_v50, %v506_v51  ;;  %v505_v53 = vsel %vm494_vm0, %v502_v30, %v504_v50  ;;  %v664_v60 = vrot.slane %v2601_v35, 4  ;;  %v2678_v19 = vld [vmem:[%s2543_s26 + $0x50] sm:$0xff]  ;;  %v2708_v39 = vld [vmem:[%s2543_s26 + $0x60] sm:$0xff] }
  0x83   : > { %v587_v57 = vsel %vm574_vm2, %v584_v54, %v586_v55  ;;  %v585_v58 = vsel %vm574_vm2, %v582_v34, %v584_v54  ;;  %v429_v62 = vsel %vm414_vm1, %v426_v45, %v428_v59  ;;  %v430_v3 = vrot.slane %v2648_v61, 1 }
  0x84   : > { %v665_v63 = vsel %vm654_vm3, %v662_v46, %v664_v60  ;;  %v666_v4 = vrot.slane %v2610_v40, 4  ;;  %v508_v7 = vrot.slane %v2639_v56, 2  ;;  %v510_v8 = vrot.slane %v2648_v61, 2 }
  0x85   : > { %v431_v5 = vsel %vm414_vm1, %v428_v59, %v430_v3  ;;  %v588_v11 = vrot.slane %v2639_v56, 3  ;;  %v590_v12 = vrot.slane %v2648_v61, 3  ;;  %v432_v17 = vrot.slane %v2669_v13, 1  ;;  %v2738_v59 = vld [vmem:[%s2543_s26 + $0x70] sm:$0xff] }
  0x86   : > { %450 = vrot.lane.b32.xlu1 %v421_v23, %s2334_s25  ;;  %686 = vrot.lane.b32.xlu0 %v657_v24, %s2336_s12  ;;  %v667_v6 = vsel %vm654_vm3, %v664_v60, %v666_v4  ;;  %v511_v9 = vsel %vm494_vm0, %v508_v7, %v510_v8  ;;  %v509_v10 = vsel %vm494_vm0, %v506_v51, %v508_v7  ;;  %v668_v18 = vrot.slane %v2639_v56, 4 }
  0x87   : > { %v591_v14 = vsel %vm574_vm2, %v588_v11, %v590_v12  ;;  %v589_v15 = vsel %vm574_vm2, %v586_v55, %v588_v11  ;;  %v433_v20 = vsel %vm414_vm1, %v430_v3, %v432_v17  ;;  %v434_v23 = vrot.slane %v2678_v19, 1 }
  0x88   : > { %v669_v21 = vsel %vm654_vm3, %v666_v4, %v668_v18  ;;  %v670_v24 = vrot.slane %v2648_v61, 4  ;;  %v672_v38 = vrot.slane %v2669_v13, 4  ;;  %v516_v47 = vrot.slane %v2699_v33, 2 }
  0x89   : > { %v435_v25 = vsel %vm414_vm1, %v432_v17, %v434_v23  ;;  %v596_v51 = vrot.slane %v2699_v33, 3  ;;  %v678_v3 = vrot.slane %v2708_v39, 4  ;;  %v522_v7 = vrot.slane %v2738_v59, 2 }
  0x8a   : > { %452 = vrot.lane.b32.xlu1 %v423_v27, %s2334_s25  ;;  %688 = vrot.lane.b32.xlu0 %v659_v28, %s2336_s12  ;;  %v671_v26 = vsel %vm654_vm3, %v668_v18, %v670_v24  ;;  %v512_v27 = vrot.slane %v2669_v13, 2  ;;  %v514_v28 = vrot.slane %v2678_v19, 2  ;;  %v673_v42 = vsel %vm654_vm3, %v670_v24, %v672_v38 }
  0x8b   : > { %v602_v11 = vrot.slane %v2738_v59, 3 }
  0x8c   : > { %v515_v29 = vsel %vm494_vm0, %v512_v27, %v514_v28  ;;  %v513_v30 = vsel %vm494_vm0, %v510_v8, %v512_v27  ;;  %v517_v50 = vsel %vm494_vm0, %v514_v28, %v516_v47 }
  0x8e   : > { %532 = vrot.lane.b32.xlu1 %v503_v31, %s2333_s15  ;;  %530 = vrot.lane.b32.xlu0 %v501_v32, %s2333_s15  ;;  %v592_v31 = vrot.slane %v2669_v13, 3  ;;  %v594_v32 = vrot.slane %v2678_v19, 3 }
  0x90   : > { %v595_v34 = vsel %vm574_vm2, %v592_v31, %v594_v32  ;;  %v597_v55 = vsel %vm574_vm2, %v594_v32, %v596_v51 }
  0x92   : > { %612 = vrot.lane.b32.xlu1 %v583_v36, %s2335_s27  ;;  %610 = vrot.lane.b32.xlu0 %v581_v37, %s2335_s27  ;;  %v593_v36 = vsel %vm574_vm2, %v590_v12, %v592_v31  ;;  %v436_v37 = vrot.slane %v2699_v33, 1  ;;  %v2759_v12 = vld [vmem:[%s2543_s26 + $0x78] sm:$0xff] }
  0x93   : > { %v444_v17 = vrot.slane %v2759_v12, 1  ;;  %v604_v27 = vrot.slane %v2759_v12, 3  ;;  %v684_v31 = vrot.slane %v2759_v12, 4 }
  0x94   : > { %v437_v41 = vsel %vm414_vm1, %v434_v23, %v436_v37  ;;  %v682_v23 = vrot.slane %v2738_v59, 4 }
  0x96   : > { %454 = vrot.lane.b32.xlu1 %v425_v43, %s2334_s25  ;;  %690 = vrot.lane.b32.xlu0 %v661_v44, %s2336_s12  ;;  %v438_v43 = vrot.slane %v2708_v39, 1  ;;  %v674_v44 = vrot.slane %v2678_v19, 4 }
  0x98   : > { %v439_v45 = vsel %vm414_vm1, %v436_v37, %v438_v43  ;;  %v675_v46 = vsel %vm654_vm3, %v672_v38, %v674_v44 }
  0x9a   : > { %456 = vrot.lane.b32.xlu1 %v427_v48, %s2334_s25  ;;  %692 = vrot.lane.b32.xlu0 %v663_v49, %s2336_s12  ;;  %v518_v48 = vrot.slane %v2708_v39, 2 }
  0x9c   : > { %v519_v49 = vsel %vm494_vm0, %v516_v47, %v518_v48 }
  0x9e   : > { %536 = vrot.lane.b32.xlu1 %v507_v52, %s2333_s15  ;;  %534 = vrot.lane.b32.xlu0 %v505_v53, %s2333_s15  ;;  %v598_v52 = vrot.slane %v2708_v39, 3  ;;  %v2729_v53 = vld [vmem:[%s2543_s26 + $0x68] sm:$0xff] }
  0x9f   : > { %v680_v18 = vrot.slane %v2729_v53, 4 }
  0xa0   : > { %v599_v54 = vsel %vm574_vm2, %v596_v51, %v598_v52 }
  0xa1   : > { %v683_v24 = vsel %vm654_vm3, %v680_v18, %v682_v23 }
  0xa2   : > { %616 = vrot.lane.b32.xlu1 %v587_v57, %s2335_s27  ;;  %614 = vrot.lane.b32.xlu0 %v585_v58, %s2335_s27  ;;  %v440_v57 = vrot.slane %v2729_v53, 1  ;;  %v676_v58 = vrot.slane %v2699_v33, 4 }
  0xa4   : > { %v441_v60 = vsel %vm414_vm1, %v438_v43, %v440_v57 }
  0xa6   : > { %458 = vrot.lane.b32.xlu1 %v429_v62, %s2334_s25  ;;  %694 = vrot.lane.b32.xlu0 %v665_v63, %s2336_s12  ;;  %v677_v62 = vsel %vm654_vm3, %v674_v44, %v676_v58  ;;  %v442_v63 = vrot.slane %v2738_v59, 1 }
  0xa8   : > { %v443_v4 = vsel %vm414_vm1, %v440_v57, %v442_v63 }
  0xaa   : > { %460 = vrot.lane.b32.xlu1 %v431_v5, %s2334_s25  ;;  %696 = vrot.lane.b32.xlu0 %v667_v6, %s2336_s12  ;;  %v679_v5 = vsel %vm654_vm3, %v676_v58, %v678_v3  ;;  %v520_v6 = vrot.slane %v2729_v53, 2 }
  0xac   : > { %v523_v8 = vsel %vm494_vm0, %v520_v6, %v522_v7 }
  0xae   : > { %540 = vrot.lane.b32.xlu1 %v511_v9, %s2333_s15  ;;  %538 = vrot.lane.b32.xlu0 %v509_v10, %s2333_s15  ;;  %v521_v9 = vsel %vm494_vm0, %v518_v48, %v520_v6  ;;  %v600_v10 = vrot.slane %v2729_v53, 3 }
  0xb2   : > { %620 = vrot.lane.b32.xlu1 %v591_v14, %s2335_s27  ;;  %618 = vrot.lane.b32.xlu0 %v589_v15, %s2335_s27  ;;  %v603_v14 = vsel %vm574_vm2, %v600_v10, %v602_v11  ;;  %v601_v15 = vsel %vm574_vm2, %v598_v52, %v600_v10 }
  0xb6   : > { %462 = vrot.lane.b32.xlu1 %v433_v20, %s2334_s25  ;;  %698 = vrot.lane.b32.xlu0 %v669_v21, %s2336_s12  ;;  %v445_v20 = vsel %vm414_vm1, %v442_v63, %v444_v17  ;;  %v681_v21 = vsel %vm654_vm3, %v678_v3, %v680_v18 }
  0xba   : > { %464 = vrot.lane.b32.xlu1 %v435_v25, %s2334_s25  ;;  %700 = vrot.lane.b32.xlu0 %v671_v26, %s2336_s12  ;;  %v524_v25 = vrot.slane %v2759_v12, 2 }
  0xbc   : > { %v525_v26 = vsel %vm494_vm0, %v522_v7, %v524_v25 }
  0xbe   : > { %544 = vrot.lane.b32.xlu1 %v515_v29, %s2333_s15  ;;  %542 = vrot.lane.b32.xlu0 %v513_v30, %s2333_s15  ;;  %v605_v30 = vsel %vm574_vm2, %v602_v11, %v604_v27 }
  0xc2   : > { %624 = vrot.lane.b32.xlu1 %v595_v34, %s2335_s27  ;;  %622 = vrot.lane.b32.xlu0 %v593_v36, %s2335_s27  ;;  %v685_v36 = vsel %vm654_vm3, %v682_v23, %v684_v31 }
  0xc6   : > { %466 = vrot.lane.b32.xlu1 %v437_v41, %s2334_s25  ;;  %702 = vrot.lane.b32.xlu0 %v673_v42, %s2336_s12 }
  0xca   : > { %468 = vrot.lane.b32.xlu1 %v439_v45, %s2334_s25  ;;  %704 = vrot.lane.b32.xlu0 %v675_v46, %s2336_s12 }
  0xce   : > { %548 = vrot.lane.b32.xlu1 %v519_v49, %s2333_s15  ;;  %546 = vrot.lane.b32.xlu0 %v517_v50, %s2333_s15 }
  0xd2   : > { %628 = vrot.lane.b32.xlu1 %v599_v54, %s2335_s27  ;;  %626 = vrot.lane.b32.xlu0 %v597_v55, %s2335_s27 }
  0xd6   : > { %470 = vrot.lane.b32.xlu1 %v441_v60, %s2334_s25  ;;  %706 = vrot.lane.b32.xlu0 %v677_v62, %s2336_s12 }
  0xda   : > { %472 = vrot.lane.b32.xlu1 %v443_v4, %s2334_s25  ;;  %708 = vrot.lane.b32.xlu0 %v679_v5, %s2336_s12 }
  0xde   : > { %552 = vrot.lane.b32.xlu1 %v523_v8, %s2333_s15  ;;  %550 = vrot.lane.b32.xlu0 %v521_v9, %s2333_s15 }
  0xe2   : > { %632 = vrot.lane.b32.xlu1 %v603_v14, %s2335_s27  ;;  %630 = vrot.lane.b32.xlu0 %v601_v15, %s2335_s27 }
  0xe6   : > { %474 = vrot.lane.b32.xlu1 %v445_v20, %s2334_s25  ;;  %710 = vrot.lane.b32.xlu0 %v681_v21, %s2336_s12 }
  0xea   : > { %476 = vrot.lane.b32.xlu1 %v444_v17, %s2334_s25  ;;  %712 = vrot.lane.b32.xlu0 %v683_v24, %s2336_s12 }
  0xec   : > { %v527_v28 = vpop.permute.xlu1 %526  ;;  %v447_v29 = vpop.permute.xlu0 %446 }
  0xed   : > { %v735_v37 = vsel %vm734_vm6, %v2546_v0, %v447_v29 }
  0xee   : > { %556 = vrot.lane.b32.xlu1 %v524_v25, %s2333_s15  ;;  %554 = vrot.lane.b32.xlu0 %v525_v26, %s2333_s15  ;;  %v752_v42 = vsel %vm751_vm7, %v735_v37, %v527_v28 }
  0xf0   : > { %v529_v32 = vpop.permute.xlu1 %528  ;;  %v449_v34 = vpop.permute.xlu0 %448 }
  0xf1   : > { %v736_v43 = vsel %vm734_vm6, %v2549_v1, %v449_v34 }
  0xf2   : > { %636 = vrot.lane.b32.xlu1 %v604_v27, %s2335_s27  ;;  %634 = vrot.lane.b32.xlu0 %v605_v30, %s2335_s27  ;;  %v753_v47 = vsel %vm751_vm7, %v736_v43, %v529_v32 }
  0xf4   : > { %v609_v38 = vpop.permute.xlu1 %608  ;;  %v607_v41 = vpop.permute.xlu0 %606 }
  0xf5   : > { %v769_v44 = vsel %vm768_vm8, %v752_v42, %v607_v41  ;;  %v770_v48 = vsel %vm768_vm8, %v753_v47, %v609_v38 }
  0xf6   : > { %716 = vrot.lane.b32.xlu1 %v684_v31, %s2336_s12  ;;  %714 = vrot.lane.b32.xlu0 %v685_v36, %s2336_s12 }
  0xf8   : > { %v451_v45 = vpop.permute.xlu1 %450  ;;  %v687_v46 = vpop.permute.xlu0 %686 }
  0xf9   : > { %v786_v0 = vsel %vm785_vm9, %v769_v44, %v687_v46  ;;  %v737_v57 = vsel %vm734_vm6, %v2552_v2, %v451_v45 }
  0xfa   : > { %2011 = vmatprep.mubr.msk.f32.mxu0 %vm811_vm10, %v786_v0 }
  0xfc   : > { %v453_v49 = vpop.permute.xlu1 %452  ;;  %v689_v50 = vpop.permute.xlu0 %688 }
  0xfd   : > { %v787_v51 = vsel %vm785_vm9, %v770_v48, %v689_v50  ;;  %v738_v4 = vsel %vm734_vm6, %v2570_v16, %v453_v49 }
  0xfe   : > { %2012 = vmatmul.mubr.msk.f32.vlgmr.msra.gmra.mrb[0].mxu0 %vm811_vm10, %v787_v51 }
 0x100   : > { %v533_v52 = vpop.permute.xlu1 %532  ;;  %v531_v1 = vpop.permute.xlu0 %530 }
 0x101   : > { %v754_v58 = vsel %vm751_vm7, %v737_v57, %v531_v1  ;;  %v755_v5 = vsel %vm751_vm7, %v738_v4, %v533_v52 }
 0x104   : > { %v613_v54 = vpop.permute.xlu1 %612  ;;  %v611_v55 = vpop.permute.xlu0 %610 }
 0x105   : > { %v771_v60 = vsel %vm768_vm8, %v754_v58, %v611_v55  ;;  %v772_v6 = vsel %vm768_vm8, %v755_v5, %v613_v54 }
 0x108   : > { %v455_v62 = vpop.permute.xlu1 %454  ;;  %v691_v63 = vpop.permute.xlu0 %690 }
 0x109   : > { %v788_v3 = vsel %vm785_vm9, %v771_v60, %v691_v63  ;;  %v739_v15 = vsel %vm734_vm6, %v2580_v22, %v455_v62 }
 0x10a   : > { %2014 = vmatprep.mubr.msk.f32.mxu0 %vm811_vm10, %v788_v3 }
 0x10c   : > { %v457_v7 = vpop.permute.xlu1 %456  ;;  %v693_v8 = vpop.permute.xlu0 %692 }
 0x10d   : > { %v789_v2 = vsel %vm785_vm9, %v772_v6, %v693_v8  ;;  %v740_v23 = vsel %vm734_vm6, %v2601_v35, %v457_v7 }
 0x10e   : > { %2015 = vmatmul.mubr.msk.f32.gmra.mrb[2].mxu0 %vm811_vm10, %v789_v2 }
 0x110   : > { %v537_v9 = vpop.permute.xlu1 %536  ;;  %v535_v10 = vpop.permute.xlu0 %534 }
 0x111   : > { %v756_v16 = vsel %vm751_vm7, %v739_v15, %v535_v10  ;;  %v757_v24 = vsel %vm751_vm7, %v740_v23, %v537_v9 }
 0x114   : > { %v617_v11 = vpop.permute.xlu1 %616  ;;  %v615_v14 = vpop.permute.xlu0 %614 }
 0x115   : > { %v773_v17 = vsel %vm768_vm8, %v756_v16, %v615_v14  ;;  %v774_v25 = vsel %vm768_vm8, %v757_v24, %v617_v11 }
 0x118   : > { %v459_v18 = vpop.permute.xlu1 %458  ;;  %v695_v20 = vpop.permute.xlu0 %694 }
 0x119   : > { %v790_v21 = vsel %vm785_vm9, %v773_v17, %v695_v20  ;;  %v741_v32 = vsel %vm734_vm6, %v2610_v40, %v459_v18 }
 0x11a   : > { %2017 = vmatprep.mubr.msk.f32.mxu0 %vm811_vm10, %v790_v21 }
 0x11c   : > { %v461_v26 = vpop.permute.xlu1 %460  ;;  %v697_v27 = vpop.permute.xlu0 %696 }
 0x11d   : > { %v791_v22 = vsel %vm785_vm9, %v774_v25, %v697_v27  ;;  %v742_v41 = vsel %vm734_vm6, %v2639_v56, %v461_v26 }
 0x11e   : > { %2018 = vmatmul.mubr.msk.f32.gmra.mrb[4].mxu0 %vm811_vm10, %v791_v22 }
 0x120   : > { %v541_v28 = vpop.permute.xlu1 %540  ;;  %v539_v29 = vpop.permute.xlu0 %538 }
 0x121   : > { %v758_v35 = vsel %vm751_vm7, %v741_v32, %v539_v29  ;;  %v759_v42 = vsel %vm751_vm7, %v742_v41, %v541_v28 }
 0x124   : > { %v621_v30 = vpop.permute.xlu1 %620  ;;  %v619_v31 = vpop.permute.xlu0 %618 }
 0x125   : > { %v775_v34 = vsel %vm768_vm8, %v758_v35, %v619_v31  ;;  %v776_v43 = vsel %vm768_vm8, %v759_v42, %v621_v30 }
 0x128   : > { %v463_v36 = vpop.permute.xlu1 %462  ;;  %v699_v37 = vpop.permute.xlu0 %698 }
 0x129   : > { %v792_v38 = vsel %vm785_vm9, %v775_v34, %v699_v37  ;;  %v743_v49 = vsel %vm734_vm6, %v2648_v61, %v463_v36 }
 0x12a   : > { %2020 = vmatprep.mubr.msk.f32.mxu0 %vm811_vm10, %v792_v38 }
 0x12c   : > { %v465_v44 = vpop.permute.xlu1 %464  ;;  %v701_v45 = vpop.permute.xlu0 %700 }
 0x12d   : > { %v793_v40 = vsel %vm785_vm9, %v776_v43, %v701_v45  ;;  %v744_v54 = vsel %vm734_vm6, %v2669_v13, %v465_v44 }
 0x12e   : > { %2021 = vmatmul.mubr.msk.f32.gmra.mrb[6].mxu0 %vm811_vm10, %v793_v40 }
 0x130   : > { %v545_v46 = vpop.permute.xlu1 %544  ;;  %v543_v0 = vpop.permute.xlu0 %542 }
 0x131   : > { %v760_v56 = vsel %vm751_vm7, %v743_v49, %v543_v0  ;;  %v761_v55 = vsel %vm751_vm7, %v744_v54, %v545_v46 }
 0x134   : > { %v625_v47 = vpop.permute.xlu1 %624  ;;  %v623_v48 = vpop.permute.xlu0 %622 }
 0x135   : > { %v777_v50 = vsel %vm768_vm8, %v760_v56, %v623_v48  ;;  %v778_v57 = vsel %vm768_vm8, %v761_v55, %v625_v47 }
 0x138   : > { %v467_v51 = vpop.permute.xlu1 %466  ;;  %v703_v52 = vpop.permute.xlu0 %702 }
 0x139   : > { %v794_v1 = vsel %vm785_vm9, %v777_v50, %v703_v52  ;;  %v745_v5 = vsel %vm734_vm6, %v2678_v19, %v467_v51 }
 0x13a   : > { %2023 = vmatprep.mubr.msk.f32.mxu0 %vm811_vm10, %v794_v1 }
 0x13c   : > { %v469_v58 = vpop.permute.xlu1 %468  ;;  %v705_v60 = vpop.permute.xlu0 %704 }
 0x13d   : > { %v795_v61 = vsel %vm785_vm9, %v778_v57, %v705_v60  ;;  %v746_v9 = vsel %vm734_vm6, %v2699_v33, %v469_v58 }
 0x13e   : > { %2024 = vmatmul.mubr.msk.f32.gmra.mrb[8].mxu0 %vm811_vm10, %v795_v61 }
 0x140   : > { %v549_v62 = vpop.permute.xlu1 %548  ;;  %v547_v63 = vpop.permute.xlu0 %546 }
 0x141   : > { %v762_v13 = vsel %vm751_vm7, %v745_v5, %v547_v63  ;;  %v763_v10 = vsel %vm751_vm7, %v746_v9, %v549_v62 }
 0x144   : > { %v629_v3 = vpop.permute.xlu1 %628  ;;  %v627_v4 = vpop.permute.xlu0 %626 }
 0x145   : > { %v779_v6 = vsel %vm768_vm8, %v762_v13, %v627_v4  ;;  %v780_v11 = vsel %vm768_vm8, %v763_v10, %v629_v3 }
 0x148   : > { %v471_v7 = vpop.permute.xlu1 %470  ;;  %v707_v8 = vpop.permute.xlu0 %706 }
 0x149   : > { %v796_v2 = vsel %vm785_vm9, %v779_v6, %v707_v8  ;;  %v747_v21 = vsel %vm734_vm6, %v2708_v39, %v471_v7 }
 0x14a   : > { %2026 = vmatprep.mubr.msk.f32.mxu0 %vm811_vm10, %v796_v2 }
 0x14c   : > { %v473_v14 = vpop.permute.xlu1 %472  ;;  %v709_v15 = vpop.permute.xlu0 %708 }
 0x14d   : > { %v797_v19 = vsel %vm785_vm9, %v780_v11, %v709_v15  ;;  %v748_v27 = vsel %vm734_vm6, %v2729_v53, %v473_v14  ;;  %v1278_v15 = vld [vmem:[%s3244_s3] sm:$0xff] }
 0x14e   : > { %2027 = vmatmul.mubr.msk.f32.gmra.mrb[10].mxu0 %vm811_vm10, %v797_v19  ;;  %v1279_v19 = vld [vmem:[%s3244_s3 + $0x8] sm:$0xff] }
 0x150   : > { %v553_v16 = vpop.permute.xlu1 %552  ;;  %v551_v17 = vpop.permute.xlu0 %550 }
 0x151   : > { %v764_v33 = vsel %vm751_vm7, %v747_v21, %v551_v17  ;;  %v765_v22 = vsel %vm751_vm7, %v748_v27, %v553_v16  ;;  %v2098_v16 = vpack.c.bf16 %v1279_v19, %v1278_v15  ;;  %v1280_v21 = vld [vmem:[%s3244_s3 + $0x10] sm:$0xff] }
 0x153   : > { %2099 = vmatprep.subr.bf16.mxu1 %v2098_v16 }
 0x154   : > { %v633_v18 = vpop.permute.xlu1 %632  ;;  %v631_v20 = vpop.permute.xlu0 %630  ;;  %2101 = vmatpush3.bf16.msra.mxu1 %v2098_v16 }
 0x155   : > { %v781_v23 = vsel %vm768_vm8, %v764_v33, %v631_v20  ;;  %v782_v28 = vsel %vm768_vm8, %v765_v22, %v633_v18  ;;  %v1281_v33 = vld [vmem:[%s3244_s3 + $0x18] sm:$0x3f] }
 0x158   : > { %v475_v24 = vpop.permute.xlu1 %474  ;;  %v711_v25 = vpop.permute.xlu0 %710 }
 0x159   : > { %v798_v26 = vsel %vm785_vm9, %v781_v23, %v711_v25  ;;  %v749_v36 = vsel %vm734_vm6, %v2738_v59, %v475_v24  ;;  %v2885_v59 = vld [vmem:[#allocation3] ss:$0 sm:$0xff]  ;;  %v2102_v23 = vpack.c.bf16 %v1281_v33, %v1280_v21 }
 0x15a   : > { %2029 = vmatprep.mubr.msk.f32.mxu0 %vm811_vm10, %v798_v26 }
 0x15b   : > { %2104 = vmatprep.subr.msk.bf16.mxu1 %vm2103_vm11, %v2102_v23 }
 0x15c   : > { %v477_v29 = vpop.permute.xlu1 %476  ;;  %v713_v30 = vpop.permute.xlu0 %712  ;;  %2107 = vmatpush3.bf16.msk.msra.mxu1 %vm2103_vm11, %v2102_v23  ;;  %vm1544_vm11 = vcmask 293888  }
 0x15d   : > { %v799_v39 = vsel %vm785_vm9, %v782_v28, %v713_v30  ;;  %v750_v53 = vsel %vm734_vm6, %v2759_v12, %v477_v29  ;;  %vm1437_vm6 = vcmask 66560  }
 0x15e   : > { %2030 = vmatmul.mubr.msk.f32.gmra.mrb[12].mxu0 %vm811_vm10, %v799_v39 }
 0x160   : > { %v557_v31 = vpop.permute.xlu1 %556  ;;  %v555_v32 = vpop.permute.xlu0 %554 }
 0x161   : > { %v767_v37 = vsel %vm751_vm7, %v750_v53, %v557_v31  ;;  %v766_v38 = vsel %vm751_vm7, %v749_v36, %v555_v32 }
 0x164   : > { %v637_v35 = vpop.permute.xlu1 %636  ;;  %v635_v34 = vpop.permute.xlu0 %634 }
 0x165   : > { %v784_v41 = vsel %vm768_vm8, %v767_v37, %v637_v35  ;;  %v783_v42 = vsel %vm768_vm8, %v766_v38, %v635_v34 }
 0x168   : > { %v717_v43 = vpop.permute.xlu1 %716  ;;  %v715_v44 = vpop.permute.xlu0 %714 }
 0x169   : > { %v801_v45 = vsel %vm785_vm9, %v784_v41, %v717_v43  ;;  %v800_v40 = vsel %vm785_vm9, %v783_v42, %v715_v44 }
 0x16a   : > { %2032 = vmatprep.mubr.msk.f32.mxu0 %vm811_vm10, %v800_v40 }
 0x16b   : > { %2033 = vmatmul.mubr.msk.f32.gmra.mrb[14].mxu0 %vm811_vm10, %v801_v45 }
 0x1d1   : > { %v2013_v12 = vpop.f32.mrb[0].mxu0 }
 0x1d2   : > { %v935_v46 = vadd.f32 %v2013_v12, %v2885_v59  ;;  %v929_v0 = vpop.f32.mrb[1].mxu0 }
 0x1d3   : > { %v930_v47 = vadd.f32 %v2885_v59, %v929_v0 }
 0x1d4   : > { %v1009_v48 = vmax.f32 %v935_v46, 0.0 }
 0x1d5   : > { %v1008_v49 = vmax.f32 %v930_v47, 0.0 }
 0x1d6   : > { %1025 = vst.msk [vmem:[#allocation2 + $0x8] sm:$0xff] %vm751_vm7, %v1009_v48 }
 0x1d7   : > { %1024 = vst.msk [vmem:[#allocation2] sm:$0xff] %vm751_vm7, %v1008_v49 }
 0x1de   : > { %v1041_v55 = vld [vmem:[#allocation2] ss:$2 sm:$0xff]  ;;  %v1057_v57 = vld [vmem:[#allocation2 + $0x1] ss:$2 sm:$0xff] }
 0x1df   : > { %v2895_v58 = vmax.f32 %v1041_v55, %v1057_v57 }
 0x1e1   : > { %v2016_v56 = vpop.f32.mrb[2].mxu0  ;;  %v1088_v3 = vrot.slane %v2895_v58, 1  ;;  %v1127_v10 = vrot.slane %v2895_v58, 2  ;;  %v1166_v17 = vrot.slane %v2895_v58, 3  ;;  %v1205_v24 = vrot.slane %v2895_v58, 4 }
 0x1e2   : > { %v945_v50 = vadd.f32 %v2016_v56, %v2885_v59  ;;  %v939_v51 = vpop.f32.mrb[3].mxu0 }
 0x1e3   : > { %v940_v52 = vadd.f32 %v2885_v59, %v939_v51 }
 0x1e4   : > { %v1011_v1 = vmax.f32 %v945_v50, 0.0 }
 0x1e5   : > { %v1010_v54 = vmax.f32 %v940_v52, 0.0 }
 0x1e6   : > { %1027 = vst.msk [vmem:[#allocation2 + $0x18] sm:$0xff] %vm751_vm7, %v1011_v1 }
 0x1e7   : > { %1026 = vst.msk [vmem:[#allocation2 + $0x10] sm:$0xff] %vm751_vm7, %v1010_v54 }
 0x1ee   : > { %v1043_v60 = vld [vmem:[#allocation2 + $0x10] ss:$2 sm:$0xff]  ;;  %v1059_v61 = vld [vmem:[#allocation2 + $0x11] ss:$2 sm:$0xff] }
 0x1ef   : > { %v2897_v62 = vmax.f32 %v1043_v60, %v1059_v61 }
 0x1f1   : > { %v2019_v63 = vpop.f32.mrb[4].mxu0  ;;  %v1089_v4 = vrot.slane %v2897_v62, 1  ;;  %v1128_v8 = vrot.slane %v2897_v62, 2  ;;  %v1167_v14 = vrot.slane %v2897_v62, 3  ;;  %v1206_v20 = vrot.slane %v2897_v62, 4 }
 0x1f2   : > { %v955_v5 = vadd.f32 %v2019_v63, %v2885_v59  ;;  %v949_v13 = vpop.f32.mrb[5].mxu0 }
 0x1f3   : > { %v950_v6 = vadd.f32 %v2885_v59, %v949_v13  ;;  %v1090_v7 = vsel %vm414_vm1, %v1088_v3, %v1089_v4  ;;  %v1129_v11 = vsel %vm494_vm0, %v1127_v10, %v1128_v8  ;;  %v1168_v18 = vsel %vm574_vm2, %v1166_v17, %v1167_v14 }
 0x1f4   : > { %v1013_v2 = vmax.f32 %v955_v5, 0.0  ;;  %1103 = vrot.lane.b32.xlu0 %v1090_v7, %s2333_s15  ;;  %v1207_v27 = vsel %vm654_vm3, %v1205_v24, %v1206_v20 }
 0x1f5   : > { %v1012_v9 = vmax.f32 %v950_v6, 0.0 }
 0x1f6   : > { %1029 = vst.msk [vmem:[#allocation2 + $0x28] sm:$0xff] %vm751_vm7, %v1013_v2 }
 0x1f7   : > { %1028 = vst.msk [vmem:[#allocation2 + $0x20] sm:$0xff] %vm751_vm7, %v1012_v9 }
 0x1f8   : > { %1142 = vrot.lane.b32.xlu0 %v1129_v11, %s2336_s12 }
 0x1fc   : > { %1181 = vrot.lane.b32.xlu0 %v1168_v18, %s2338_s18 }
 0x1fe   : > { %v1045_v25 = vld [vmem:[#allocation2 + $0x20] ss:$2 sm:$0xff]  ;;  %v1061_v26 = vld [vmem:[#allocation2 + $0x21] ss:$2 sm:$0xff] }
 0x1ff   : > { %v2932_v22 = vmax.f32 %v1045_v25, %v1061_v26 }
 0x200   : > { %1220 = vrot.lane.b32.xlu0 %v1207_v27, %s2339_s20 }
 0x201   : > { %v2022_v28 = vpop.f32.mrb[6].mxu0  ;;  %v1208_v29 = vrot.slane %v2932_v22, 4  ;;  %v1091_v30 = vrot.slane %v2932_v22, 1  ;;  %v1130_v36 = vrot.slane %v2932_v22, 2  ;;  %v1169_v41 = vrot.slane %v2932_v22, 3 }
 0x202   : > { %v965_v39 = vadd.f32 %v2022_v28, %v2885_v59  ;;  %v959_v31 = vpop.f32.mrb[7].mxu0 }
 0x203   : > { %v960_v32 = vadd.f32 %v2885_v59, %v959_v31  ;;  %v1209_v35 = vsel %vm654_vm3, %v1206_v20, %v1208_v29  ;;  %v1092_v34 = vsel %vm414_vm1, %v1089_v4, %v1091_v30  ;;  %v1131_v38 = vsel %vm494_vm0, %v1128_v8, %v1130_v36 }
 0x204   : > { %v1015_v53 = vmax.f32 %v965_v39, 0.0  ;;  %1222 = vrot.lane.b32.xlu0 %v1209_v35, %s2339_s20  ;;  %1105 = vrot.lane.b32.xlu1 %v1092_v34, %s2333_s15  ;;  %v1170_v42 = vsel %vm574_vm2, %v1167_v14, %v1169_v41 }
 0x205   : > { %v1014_v37 = vmax.f32 %v960_v32, 0.0 }
 0x206   : > { %1031 = vst.msk [vmem:[#allocation2 + $0x38] sm:$0xff] %vm751_vm7, %v1015_v53 }
 0x207   : > { %1030 = vst.msk [vmem:[#allocation2 + $0x30] sm:$0xff] %vm751_vm7, %v1014_v37 }
 0x208   : > { %1144 = vrot.lane.b32.xlu1 %v1131_v38, %s2336_s12 }
 0x20c   : > { %1183 = vrot.lane.b32.xlu1 %v1170_v42, %s2338_s18 }
 0x20e   : > { %v1047_v43 = vld [vmem:[#allocation2 + $0x30] ss:$2 sm:$0xff]  ;;  %v1063_v44 = vld [vmem:[#allocation2 + $0x31] ss:$2 sm:$0xff] }
 0x20f   : > { %v2951_v45 = vmax.f32 %v1047_v43, %v1063_v44 }
 0x211   : > { %v2025_v40 = vpop.f32.mrb[8].mxu0  ;;  %v1132_v12 = vrot.slane %v2951_v45, 2  ;;  %v1093_v46 = vrot.slane %v2951_v45, 1  ;;  %v1171_v50 = vrot.slane %v2951_v45, 3  ;;  %v1210_v54 = vrot.slane %v2951_v45, 4 }
 0x212   : > { %v975_v0 = vadd.f32 %v2025_v40, %v2885_v59  ;;  %v969_v47 = vpop.f32.mrb[9].mxu0 }
 0x213   : > { %v970_v48 = vadd.f32 %v2885_v59, %v969_v47  ;;  %v1133_v49 = vsel %vm494_vm0, %v1130_v36, %v1132_v12  ;;  %v1094_v56 = vsel %vm414_vm1, %v1091_v30, %v1093_v46  ;;  %v1172_v1 = vsel %vm574_vm2, %v1169_v41, %v1171_v50 }
 0x214   : > { %v1017_v51 = vmax.f32 %v975_v0, 0.0  ;;  %1146 = vrot.lane.b32.xlu0 %v1133_v49, %s2336_s12  ;;  %1107 = vrot.lane.b32.xlu1 %v1094_v56, %s2333_s15  ;;  %v1211_v55 = vsel %vm654_vm3, %v1208_v29, %v1210_v54 }
 0x215   : > { %v1016_v52 = vmax.f32 %v970_v48, 0.0 }
 0x216   : > { %1033 = vst.msk [vmem:[#allocation2 + $0x48] sm:$0xff] %vm751_vm7, %v1017_v51 }
 0x217   : > { %1032 = vst.msk [vmem:[#allocation2 + $0x40] sm:$0xff] %vm751_vm7, %v1016_v52 }
 0x218   : > { %1185 = vrot.lane.b32.xlu0 %v1172_v1, %s2338_s18 }
 0x21c   : > { %1224 = vrot.lane.b32.xlu0 %v1211_v55, %s2339_s20 }
 0x21e   : > { %v1049_v57 = vld [vmem:[#allocation2 + $0x40] ss:$2 sm:$0xff]  ;;  %v1065_v60 = vld [vmem:[#allocation2 + $0x41] ss:$2 sm:$0xff] }
 0x21f   : > { %v2969_v61 = vmax.f32 %v1049_v57, %v1065_v60 }
 0x221   : > { %v2028_v63 = vpop.f32.mrb[10].mxu0  ;;  %v1212_v3 = vrot.slane %v2969_v61, 4  ;;  %v1095_v4 = vrot.slane %v2969_v61, 1  ;;  %v1134_v2 = vrot.slane %v2969_v61, 2  ;;  %v1173_v14 = vrot.slane %v2969_v61, 3 }
 0x222   : > { %v985_v5 = vadd.f32 %v2028_v63, %v2885_v59  ;;  %v979_v13 = vpop.f32.mrb[11].mxu0 }
 0x223   : > { %v980_v6 = vadd.f32 %v2885_v59, %v979_v13  ;;  %v1213_v7 = vsel %vm654_vm3, %v1210_v54, %v1212_v3  ;;  %v1096_v8 = vsel %vm414_vm1, %v1093_v46, %v1095_v4  ;;  %v1135_v11 = vsel %vm494_vm0, %v1132_v12, %v1134_v2 }
 0x224   : > { %v1019_v9 = vmax.f32 %v985_v5, 0.0  ;;  %1226 = vrot.lane.b32.xlu0 %v1213_v7, %s2339_s20  ;;  %1109 = vrot.lane.b32.xlu1 %v1096_v8, %s2333_s15  ;;  %v1174_v15 = vsel %vm574_vm2, %v1171_v50, %v1173_v14 }
 0x225   : > { %v1018_v10 = vmax.f32 %v980_v6, 0.0 }
 0x226   : > { %1035 = vst.msk [vmem:[#allocation2 + $0x58] sm:$0xff] %vm751_vm7, %v1019_v9 }
 0x227   : > { %1034 = vst.msk [vmem:[#allocation2 + $0x50] sm:$0xff] %vm751_vm7, %v1018_v10 }
 0x228   : > { %1148 = vrot.lane.b32.xlu1 %v1135_v11, %s2336_s12 }
 0x22c   : > { %1187 = vrot.lane.b32.xlu1 %v1174_v15, %s2338_s18 }
 0x22e   : > { %v1051_v19 = vld [vmem:[#allocation2 + $0x50] ss:$2 sm:$0xff]  ;;  %v1067_v16 = vld [vmem:[#allocation2 + $0x51] ss:$2 sm:$0xff] }
 0x22f   : > { %v2987_v17 = vmax.f32 %v1051_v19, %v1067_v16 }
 0x231   : > { %v2031_v18 = vpop.f32.mrb[12].mxu0  ;;  %v1136_v20 = vrot.slane %v2987_v17, 2  ;;  %v1097_v21 = vrot.slane %v2987_v17, 1  ;;  %v1175_v27 = vrot.slane %v2987_v17, 3  ;;  %v1214_v39 = vrot.slane %v2987_v17, 4 }
 0x232   : > { %v995_v33 = vadd.f32 %v2031_v18, %v2885_v59  ;;  %v989_v23 = vpop.f32.mrb[13].mxu0 }
 0x233   : > { %v990_v24 = vadd.f32 %v2885_v59, %v989_v23  ;;  %v1137_v25 = vsel %vm494_vm0, %v1134_v2, %v1136_v20  ;;  %v1098_v26 = vsel %vm414_vm1, %v1095_v4, %v1097_v21  ;;  %v1176_v30 = vsel %vm574_vm2, %v1173_v14, %v1175_v27 }
 0x234   : > { %v1021_v28 = vmax.f32 %v995_v33, 0.0  ;;  %1150 = vrot.lane.b32.xlu0 %v1137_v25, %s2336_s12  ;;  %1111 = vrot.lane.b32.xlu1 %v1098_v26, %s2333_s15  ;;  %v1215_v31 = vsel %vm654_vm3, %v1212_v3, %v1214_v39 }
 0x235   : > { %v1020_v29 = vmax.f32 %v990_v24, 0.0 }
 0x236   : > { %1037 = vst.msk [vmem:[#allocation2 + $0x68] sm:$0xff] %vm751_vm7, %v1021_v28 }
 0x237   : > { %1036 = vst.msk [vmem:[#allocation2 + $0x60] sm:$0xff] %vm751_vm7, %v1020_v29 }
 0x238   : > { %1189 = vrot.lane.b32.xlu0 %v1176_v30, %s2338_s18 }
 0x23c   : > { %1228 = vrot.lane.b32.xlu0 %v1215_v31, %s2339_s20 }
 0x23e   : > { %v2034_v32 = vpop.f32.mrb[14].mxu0  ;;  %v1053_v35 = vld [vmem:[#allocation2 + $0x60] ss:$2 sm:$0xff]  ;;  %v1069_v34 = vld [vmem:[#allocation2 + $0x61] ss:$2 sm:$0xff] }
 0x23f   : > { %v1005_v36 = vadd.f32 %v2034_v32, %v2885_v59  ;;  %v999_v53 = vpop.f32.mrb[15].mxu0  ;;  %v3006_v37 = vmax.f32 %v1053_v35, %v1069_v34 }
 0x240   : > { %v1000_v38 = vadd.f32 %v2885_v59, %v999_v53 }
 0x241   : > { %v1023_v41 = vmax.f32 %v1005_v36, 0.0  ;;  %v1216_v42 = vrot.slane %v3006_v37, 4  ;;  %v1099_v43 = vrot.slane %v3006_v37, 1  ;;  %v1138_v46 = vrot.slane %v3006_v37, 2 }
 0x242   : > { %v1022_v44 = vmax.f32 %v1000_v38, 0.0  ;;  %v1177_v0 = vrot.slane %v3006_v37, 3 }
 0x243   : > { %1040 = vst.msk [vmem:[#allocation2 + $0x78] sm:$0xf] %vm1039_vm12, %v1023_v41  ;;  %v1217_v40 = vsel %vm654_vm3, %v1214_v39, %v1216_v42  ;;  %v1100_v12 = vsel %vm414_vm1, %v1097_v21, %v1099_v43  ;;  %v1139_v59 = vsel %vm494_vm0, %v1136_v20, %v1138_v46  ;;  %vm1562_vm12 = vcmask 367616  }
 0x244   : > { %1038 = vst.msk [vmem:[#allocation2 + $0x70] sm:$0xff] %vm751_vm7, %v1022_v44  ;;  %1230 = vrot.lane.b32.xlu0 %v1217_v40, %s2339_s20  ;;  %1113 = vrot.lane.b32.xlu1 %v1100_v12, %s2333_s15  ;;  %v1178_v47 = vsel %vm574_vm2, %v1175_v27, %v1177_v0 }
 0x248   : > { %1152 = vrot.lane.b32.xlu1 %v1139_v59, %s2336_s12 }
 0x24b   : > { %v1055_v48 = vld [vmem:[#allocation2 + $0x70] ss:$2 sm:$0x3f]  ;;  %v1071_v49 = vld [vmem:[#allocation2 + $0x71] ss:$2 sm:$0x3f] }
 0x24c   : > { %1191 = vrot.lane.b32.xlu1 %v1178_v47, %s2338_s18  ;;  %v3022_v56 = vmax.f32 %v1055_v48, %v1071_v49 }
 0x24e   : > { %v1101_v50 = vrot.slane %v3022_v56, 1  ;;  %v1140_v51 = vrot.slane %v3022_v56, 2  ;;  %v1179_v1 = vrot.slane %v3022_v56, 3  ;;  %v1218_v55 = vrot.slane %v3022_v56, 4 }
 0x250   : > { %1117 = vrot.lane.b32.xlu1 %v1101_v50, %s2333_s15  ;;  %v1141_v52 = vsel %vm494_vm0, %v1138_v46, %v1140_v51  ;;  %v1180_v54 = vsel %vm574_vm2, %v1177_v0, %v1179_v1  ;;  %v1219_v57 = vsel %vm654_vm3, %v1216_v42, %v1218_v55  ;;  %v1102_v60 = vsel %vm414_vm1, %v1099_v43, %v1101_v50 }
 0x251   : > { %1154 = vrot.lane.b32.xlu0 %v1141_v52, %s2336_s12 }
 0x254   : > { %1156 = vrot.lane.b32.xlu1 %v1140_v51, %s2336_s12 }
 0x255   : > { %1193 = vrot.lane.b32.xlu0 %v1180_v54, %s2338_s18 }
 0x258   : > { %1195 = vrot.lane.b32.xlu1 %v1179_v1, %s2338_s18 }
 0x259   : > { %1232 = vrot.lane.b32.xlu0 %v1219_v57, %s2339_s20 }
 0x25c   : > { %1115 = vrot.lane.b32.xlu1 %v1102_v60, %s2333_s15 }
 0x260   : > { %1234 = vrot.lane.b32.xlu1 %v1218_v55, %s2339_s20 }
 0x266   : > { %v1104_v63 = vpop.permute.xlu0 %1103 }
 0x267   : > { %v1244_v5 = vsel %vm751_vm7, %v2895_v58, %v1104_v63 }
 0x26a   : > { %v1143_v3 = vpop.permute.xlu0 %1142 }
 0x26b   : > { %v1252_v13 = vsel %vm785_vm9, %v1244_v5, %v1143_v3 }
 0x26e   : > { %v1182_v4 = vpop.permute.xlu0 %1181 }
 0x26f   : > { %v1261_v6 = vsel %vm1260_vm13, %v1252_v13, %v1182_v4 }
 0x272   : > { %v1221_v7 = vpop.permute.xlu0 %1220 }
 0x273   : > { %v1270_v8 = vsel %vm1269_vm14, %v1261_v6, %v1221_v7 }
 0x274   : > { %2043 = vmatprep.mubr.msk.f32.mxu1 %vm1289_vm15, %v1270_v8 }
 0x276   : > { %v1106_v2 = vpop.permute.xlu1 %1105  ;;  %v1223_v58 = vpop.permute.xlu0 %1222 }
 0x277   : > { %v1245_v10 = vsel %vm751_vm7, %v2897_v62, %v1106_v2 }
 0x27a   : > { %v1145_v9 = vpop.permute.xlu1 %1144 }
 0x27b   : > { %v1253_v11 = vsel %vm785_vm9, %v1245_v10, %v1145_v9 }
 0x27e   : > { %v1184_v14 = vpop.permute.xlu1 %1183 }
 0x27f   : > { %v1262_v15 = vsel %vm1260_vm13, %v1253_v11, %v1184_v14 }
 0x280   : > { %v1271_v19 = vsel %vm1269_vm14, %v1262_v15, %v1223_v58 }
 0x281   : > { %2044 = vmatmul.mubr.msk.f32.vlgmr.msra.gmra.mrb[0].mxu1 %vm1289_vm15, %v1271_v19 }
 0x286   : > { %v1147_v16 = vpop.permute.xlu0 %1146  ;;  %v1108_v18 = vpop.permute.xlu1 %1107 }
 0x287   : > { %v1246_v20 = vsel %vm751_vm7, %v2932_v22, %v1108_v18 }
 0x288   : > { %v1254_v33 = vsel %vm785_vm9, %v1246_v20, %v1147_v16 }
 0x28a   : > { %v1186_v21 = vpop.permute.xlu0 %1185 }
 0x28b   : > { %v1263_v62 = vsel %vm1260_vm13, %v1254_v33, %v1186_v21 }
 0x28e   : > { %v1225_v23 = vpop.permute.xlu0 %1224 }
 0x28f   : > { %v1272_v24 = vsel %vm1269_vm14, %v1263_v62, %v1225_v23 }
 0x290   : > { %2046 = vmatprep.mubr.msk.f32.mxu1 %vm1289_vm15, %v1272_v24  ;;  %v1549_v24 = vld [vmem:[%s3246_s5] sm:$0xff] }
 0x296   : > { %v1110_v25 = vpop.permute.xlu1 %1109  ;;  %v1227_v30 = vpop.permute.xlu0 %1226 }
 0x297   : > { %v1247_v27 = vsel %vm751_vm7, %v2951_v45, %v1110_v25  ;;  %v1550_v25 = vld [vmem:[%s3246_s5 + $0x8] sm:$0xff] }
 0x29a   : > { %v1149_v26 = vpop.permute.xlu1 %1148 }
 0x29b   : > { %v1255_v28 = vsel %vm785_vm9, %v1247_v27, %v1149_v26  ;;  %v2108_v27 = vpack.c.bf16 %v1550_v25, %v1549_v24 }
 0x29d   : > { %2109 = vmatprep.subr.bf16.mxu1 %v2108_v27 }
 0x29e   : > { %v1188_v29 = vpop.permute.xlu1 %1187  ;;  %2111 = vmatpush3.bf16.msra.mxu1 %v2108_v27 }
 0x29f   : > { %v1264_v22 = vsel %vm1260_vm13, %v1255_v28, %v1188_v29 }
 0x2a0   : > { %v1273_v39 = vsel %vm1269_vm14, %v1264_v22, %v1227_v30 }
 0x2a1   : > { %2047 = vmatmul.mubr.msk.f32.gmra.mrb[2].mxu1 %vm1289_vm15, %v1273_v39 }
 0x2a6   : > { %v1151_v31 = vpop.permute.xlu0 %1150  ;;  %v1112_v32 = vpop.permute.xlu1 %1111 }
 0x2a7   : > { %v1248_v35 = vsel %vm751_vm7, %v2969_v61, %v1112_v32 }
 0x2a8   : > { %v1256_v36 = vsel %vm785_vm9, %v1248_v35, %v1151_v31 }
 0x2aa   : > { %v1190_v34 = vpop.permute.xlu0 %1189 }
 0x2ab   : > { %v1265_v45 = vsel %vm1260_vm13, %v1256_v36, %v1190_v34 }
 0x2ae   : > { %v1229_v53 = vpop.permute.xlu0 %1228 }
 0x2af   : > { %v1274_v38 = vsel %vm1269_vm14, %v1265_v45, %v1229_v53 }
 0x2b0   : > { %2049 = vmatprep.mubr.msk.f32.mxu1 %vm1289_vm15, %v1274_v38 }
 0x2b6   : > { %v1114_v41 = vpop.permute.xlu1 %1113  ;;  %v1231_v12 = vpop.permute.xlu0 %1230 }
 0x2b7   : > { %v1249_v43 = vsel %vm751_vm7, %v2987_v17, %v1114_v41  ;;  %v1551_v41 = vld [vmem:[%s3246_s5 + $0x10] sm:$0xff] }
 0x2ba   : > { %v1153_v42 = vpop.permute.xlu1 %1152 }
 0x2bb   : > { %v1257_v44 = vsel %vm785_vm9, %v1249_v43, %v1153_v42  ;;  %v1552_v42 = vld [vmem:[%s3246_s5 + $0x18] sm:$0xff] }
 0x2bc   : > { %v2112_v43 = vpack.c.bf16 %v1552_v42, %v1551_v41 }
 0x2be   : > { %v1192_v40 = vpop.permute.xlu1 %1191  ;;  %2113 = vmatprep.subr.bf16.mxu1 %v2112_v43 }
 0x2bf   : > { %v1266_v61 = vsel %vm1260_vm13, %v1257_v44, %v1192_v40  ;;  %2115 = vmatpush3.bf16.msra.mxu1 %v2112_v43  ;;  %v1553_v44 = vld [vmem:[%s3246_s5 + $0x20] sm:$0xff]  ;;  %v1554_v40 = vld [vmem:[%s3246_s5 + $0x28] sm:$0x1f] }
 0x2c0   : > { %v1275_v46 = vsel %vm1269_vm14, %v1266_v61, %v1231_v12  ;;  %v2116_v12 = vpack.c.bf16 %v1554_v40, %v1553_v44  ;;  %v1709_v43 = vld [vmem:[%s3248_s7] sm:$0xff]  ;;  %v1710_v44 = vld [vmem:[%s3248_s7 + $0x8] sm:$0xff]  ;;  %v1711_v40 = vld [vmem:[%s3248_s7 + $0x10] sm:$0xff] }
 0x2c1   : > { %2050 = vmatmul.mubr.msk.f32.gmra.mrb[4].mxu1 %vm1289_vm15, %v1275_v46 }
 0x2c2   : > { %v1118_v59 = vpop.permute.xlu1 %1117  ;;  %2118 = vmatprep.subr.msk.bf16.mxu1 %vm2117_vm5, %v2116_v12 }
 0x2c3   : > { %v1155_v0 = vpop.permute.xlu0 %1154  ;;  %v1251_v17 = vsel %vm751_vm7, %v3022_v56, %v1118_v59  ;;  %2121 = vmatpush3.bf16.msk.msra.mxu1 %vm2117_vm5, %v2116_v12  ;;  %v2342_v12 = vmov 0.0|0.0  }
 0x2c4   : > { %2122 = vmatprep.subr.bf16.mxu0 %v2342_v12 }
 0x2c6   : > { %v1157_v47 = vpop.permute.xlu1 %1156 }
 0x2c7   : > { %v1194_v49 = vpop.permute.xlu0 %1193  ;;  %v1259_v1 = vsel %vm785_vm9, %v1251_v17, %v1157_v47 }
 0x2ca   : > { %v1196_v48 = vpop.permute.xlu1 %1195 }
 0x2cb   : > { %v1233_v54 = vpop.permute.xlu0 %1232  ;;  %v1268_v57 = vsel %vm1260_vm13, %v1259_v1, %v1196_v48 }
 0x2ce   : > { %v1116_v50 = vpop.permute.xlu1 %1115 }
 0x2cf   : > { %v1250_v51 = vsel %vm751_vm7, %v3006_v37, %v1116_v50  ;;  %v3088_v37 = vld [vmem:[#allocation5] ss:$0 sm:$0xff]  ;;  %vm1539_vm7 = vcmask 220160  }
 0x2d0   : > { %v1258_v52 = vsel %vm785_vm9, %v1250_v51, %v1155_v0 }
 0x2d1   : > { %v1267_v55 = vsel %vm1260_vm13, %v1258_v52, %v1194_v49 }
 0x2d2   : > { %v1235_v60 = vpop.permute.xlu1 %1234  ;;  %v1276_v63 = vsel %vm1269_vm14, %v1267_v55, %v1233_v54 }
 0x2d3   : > { %v1277_v3 = vsel %vm1269_vm14, %v1268_v57, %v1235_v60  ;;  %2052 = vmatprep.mubr.msk.f32.mxu1 %vm1289_vm15, %v1276_v63 }
 0x2d4   : > { %2053 = vmatmul.mubr.msk.f32.gmra.mrb[6].mxu1 %vm1289_vm15, %v1277_v3 }
 0x354   : > { %v2045_v56 = vpop.f32.mrb[0].mxu1 }
 0x355   : > { %v1389_v4 = vadd.f32 %v2045_v56, %v3088_v37  ;;  %v1383_v5 = vpop.f32.mrb[1].mxu1 }
 0x356   : > { %v1384_v13 = vadd.f32 %v3088_v37, %v1383_v5 }
 0x357   : > { %v1423_v6 = vmax.f32 %v1389_v4, 0.0 }
 0x358   : > { %v1422_v7 = vmax.f32 %v1384_v13, 0.0 }
 0x359   : > { %1431 = vst.msk [vmem:[#allocation2 + $0x8] sm:$0xff] %vm768_vm8, %v1423_v6 }
 0x35a   : > { %1430 = vst.msk [vmem:[#allocation2] sm:$0xff] %vm768_vm8, %v1422_v7 }
 0x361   : > { %v1439_v58 = vld [vmem:[#allocation2] ss:$2 sm:$0xff]  ;;  %v1443_v15 = vld [vmem:[#allocation2 + $0x1] ss:$2 sm:$0xff] }
 0x362   : > { %v3098_v19 = vmax.f32 %v1439_v58, %v1443_v15 }
 0x364   : > { %v1455_v21 = vrot.slane %v3098_v19, 1  ;;  %v1474_v26 = vrot.slane %v3098_v19, 2  ;;  %v1493_v30 = vrot.slane %v3098_v19, 3  ;;  %v1512_v31 = vrot.slane %v3098_v19, 4 }
 0x374   : > { %v2048_v8 = vpop.f32.mrb[2].mxu1 }
 0x375   : > { %v1399_v2 = vadd.f32 %v2048_v8, %v3088_v37  ;;  %v1393_v9 = vpop.f32.mrb[3].mxu1 }
 0x376   : > { %v1394_v10 = vadd.f32 %v3088_v37, %v1393_v9 }
 0x377   : > { %v1425_v11 = vmax.f32 %v1399_v2, 0.0 }
 0x378   : > { %v1424_v14 = vmax.f32 %v1394_v10, 0.0 }
 0x379   : > { %1433 = vst.msk [vmem:[#allocation2 + $0x18] sm:$0xff] %vm768_vm8, %v1425_v11 }
 0x37a   : > { %1432 = vst.msk [vmem:[#allocation2 + $0x10] sm:$0xff] %vm768_vm8, %v1424_v14 }
 0x381   : > { %v1440_v16 = vld [vmem:[#allocation2 + $0x10] ss:$2 sm:$0xff]  ;;  %v1444_v18 = vld [vmem:[#allocation2 + $0x11] ss:$2 sm:$0xff] }
 0x382   : > { %v3100_v20 = vmax.f32 %v1440_v16, %v1444_v18 }
 0x384   : > { %v1456_v33 = vrot.slane %v3100_v20, 1  ;;  %v1475_v23 = vrot.slane %v3100_v20, 2  ;;  %v1494_v29 = vrot.slane %v3100_v20, 3  ;;  %v1513_v39 = vrot.slane %v3100_v20, 4 }
 0x386   : > { %v1457_v62 = vsel %vm414_vm1, %v1455_v21, %v1456_v33  ;;  %v1476_v28 = vsel %vm494_vm0, %v1474_v26, %v1475_v23  ;;  %v1495_v22 = vsel %vm574_vm2, %v1493_v30, %v1494_v29  ;;  %v1514_v32 = vsel %vm654_vm3, %v1512_v31, %v1513_v39 }
 0x387   : > { %1462 = vrot.lane.b32.xlu0 %v1457_v62, %s2335_s27 }
 0x38b   : > { %1481 = vrot.lane.b32.xlu0 %v1476_v28, %s2338_s18 }
 0x38f   : > { %1500 = vrot.lane.b32.xlu0 %v1495_v22, %s2340_s29 }
 0x393   : > { %1519 = vrot.lane.b32.xlu0 %v1514_v32, %s2341_s11 }
 0x394   : > { %v2051_v35 = vpop.f32.mrb[4].mxu1 }
 0x395   : > { %v1409_v34 = vadd.f32 %v2051_v35, %v3088_v37  ;;  %v1403_v36 = vpop.f32.mrb[5].mxu1 }
 0x396   : > { %v1404_v45 = vadd.f32 %v3088_v37, %v1403_v36 }
 0x397   : > { %v1427_v53 = vmax.f32 %v1409_v34, 0.0 }
 0x398   : > { %v1426_v38 = vmax.f32 %v1404_v45, 0.0 }
 0x399   : > { %1435 = vst.msk [vmem:[#allocation2 + $0x28] sm:$0xff] %vm768_vm8, %v1427_v53 }
 0x39a   : > { %1434 = vst.msk [vmem:[#allocation2 + $0x20] sm:$0xff] %vm768_vm8, %v1426_v38 }
 0x3a1   : > { %v1441_v61 = vld [vmem:[#allocation2 + $0x20] ss:$2 sm:$0xff]  ;;  %v1445_v46 = vld [vmem:[#allocation2 + $0x21] ss:$2 sm:$0xff] }
 0x3a2   : > { %v3142_v59 = vmax.f32 %v1441_v61, %v1445_v46  ;;  %v2123_v61 = vpack.c.bf16 %v1710_v44, %v1709_v43  ;;  %v1712_v46 = vld [vmem:[%s3248_s7 + $0x18] sm:$0xff] }
 0x3a4   : > { %v1515_v0 = vrot.slane %v3142_v59, 4  ;;  %v1458_v47 = vrot.slane %v3142_v59, 1  ;;  %v1477_v50 = vrot.slane %v3142_v59, 2  ;;  %v1496_v57 = vrot.slane %v3142_v59, 3  ;;  %2124 = vmatpush3.bf16.msra.mxu0 %v2123_v61 }
 0x3a5   : > { %2125 = vmatprep.subr.bf16.mxu0 %v2342_v12 }
 0x3a6   : > { %v1516_v48 = vsel %vm654_vm3, %v1513_v39, %v1515_v0  ;;  %v1459_v49 = vsel %vm414_vm1, %v1456_v33, %v1458_v47  ;;  %v1478_v55 = vsel %vm494_vm0, %v1475_v23, %v1477_v50  ;;  %v1497_v63 = vsel %vm574_vm2, %v1494_v29, %v1496_v57 }
 0x3a7   : > { %1521 = vrot.lane.b32.xlu0 %v1516_v48, %s2341_s11  ;;  %1464 = vrot.lane.b32.xlu1 %v1459_v49, %s2335_s27  ;;  %v2054_v51 = vpop.f32.mrb[6].mxu1  ;;  %v1715_v49 = vld [vmem:[%s3248_s7 + $0x30] sm:$0xff] }
 0x3a8   : > { %v1419_v17 = vadd.f32 %v2054_v51, %v3088_v37  ;;  %v1413_v52 = vpop.f32.mrb[7].mxu1 }
 0x3a9   : > { %v1414_v1 = vadd.f32 %v3088_v37, %v1413_v52 }
 0x3aa   : > { %v1429_v54 = vmax.f32 %v1419_v17, 0.0  ;;  %v1946_v17 = vld [vmem:[#allocation7] ss:$0 sm:$0xff] }
 0x3ab   : > { %v1428_v60 = vmax.f32 %v1414_v1, 0.0  ;;  %1483 = vrot.lane.b32.xlu1 %v1478_v55, %s2338_s18 }
 0x3ac   : > { %1438 = vst.msk [vmem:[#allocation2 + $0x38] sm:$0x3] %vm1437_vm6, %v1429_v54 }
 0x3ad   : > { %1436 = vst.msk [vmem:[#allocation2 + $0x30] sm:$0xff] %vm768_vm8, %v1428_v60 }
 0x3af   : > { %1502 = vrot.lane.b32.xlu1 %v1497_v63, %s2340_s29 }
 0x3b4   : > { %v1442_v3 = vld [vmem:[#allocation2 + $0x30] ss:$2 sm:$0x1f]  ;;  %v1446_v56 = vld [vmem:[#allocation2 + $0x31] ss:$2 sm:$0x1f] }
 0x3b5   : > { %v1450_v4 = vmax.f32 %v1442_v3, %v1446_v56 }
 0x3b7   : > { %v1460_v5 = vrot.slane %v1450_v4, 1  ;;  %v1479_v37 = vrot.slane %v1450_v4, 2  ;;  %v1498_v6 = vrot.slane %v1450_v4, 3  ;;  %v1517_v8 = vrot.slane %v1450_v4, 4 }
 0x3b9   : > { %1468 = vrot.lane.b32.xlu1 %v1460_v5, %s2335_s27  ;;  %v1480_v13 = vsel %vm494_vm0, %v1477_v50, %v1479_v37  ;;  %v1499_v7 = vsel %vm574_vm2, %v1496_v57, %v1498_v6  ;;  %v1518_v2 = vsel %vm654_vm3, %v1515_v0, %v1517_v8  ;;  %v1461_v9 = vsel %vm414_vm1, %v1458_v47, %v1460_v5  ;;  %v1713_v0 = vld [vmem:[%s3248_s7 + $0x20] sm:$0xff]  ;;  %v1714_v47 = vld [vmem:[%s3248_s7 + $0x28] sm:$0xff]  ;;  %v1716_v50 = vld [vmem:[%s3248_s7 + $0x38] sm:$0xf] }
 0x3ba   : > { %1485 = vrot.lane.b32.xlu0 %v1480_v13, %s2338_s18  ;;  %v2129_v48 = vpack.c.bf16 %v1714_v47, %v1713_v0  ;;  %v2132_v51 = vpack.c.bf16 %v1716_v50, %v1715_v49 }
 0x3bd   : > { %1487 = vrot.lane.b32.xlu1 %v1479_v37, %s2338_s18 }
 0x3be   : > { %1504 = vrot.lane.b32.xlu0 %v1499_v7, %s2340_s29 }
 0x3c1   : > { %1506 = vrot.lane.b32.xlu1 %v1498_v6, %s2340_s29 }
 0x3c2   : > { %1523 = vrot.lane.b32.xlu0 %v1518_v2, %s2341_s11 }
 0x3c5   : > { %1466 = vrot.lane.b32.xlu1 %v1461_v9, %s2335_s27  ;;  %s2345_s27 = smov 48  }
 0x3c9   : > { %1525 = vrot.lane.b32.xlu1 %v1517_v8, %s2341_s11  ;;  %v2344_v8 = vmov 0.0  }
 0x3f9   : > { %v1463_v10 = vpop.permute.xlu0 %1462 }
 0x3fa   : > { %v1531_v58 = vsel %vm768_vm8, %v3098_v19, %v1463_v10 }
 0x3fd   : > { %v1482_v11 = vpop.permute.xlu0 %1481 }
 0x3fe   : > { %v1535_v15 = vsel %vm1260_vm13, %v1531_v58, %v1482_v11 }
 0x401   : > { %v1501_v14 = vpop.permute.xlu0 %1500 }
 0x402   : > { %v1540_v16 = vsel %vm1539_vm7, %v1535_v15, %v1501_v14 }
 0x405   : > { %v1520_v18 = vpop.permute.xlu0 %1519 }
 0x406   : > { %v1545_v21 = vsel %vm1544_vm11, %v1540_v16, %v1520_v18 }
 0x407   : > { %2067 = vmatprep.mubr.msk.f32.mxu1 %vm1562_vm12, %v1545_v21 }
 0x419   : > { %v1465_v33 = vpop.permute.xlu1 %1464  ;;  %v1522_v19 = vpop.permute.xlu0 %1521 }
 0x41a   : > { %v1532_v23 = vsel %vm768_vm8, %v3100_v20, %v1465_v33 }
 0x41d   : > { %v1484_v62 = vpop.permute.xlu1 %1483 }
 0x41e   : > { %v1536_v24 = vsel %vm1260_vm13, %v1532_v23, %v1484_v62 }
 0x421   : > { %v1503_v25 = vpop.permute.xlu1 %1502 }
 0x422   : > { %v1541_v26 = vsel %vm1539_vm7, %v1536_v24, %v1503_v25 }
 0x423   : > { %v1546_v27 = vsel %vm1544_vm11, %v1541_v26, %v1522_v19 }
 0x424   : > { %2068 = vmatmul.mubr.msk.f32.vlgmr.msra.gmra.mrb[8].mxu1 %vm1562_vm12, %v1546_v27 }
 0x42b   : > { %v1469_v28 = vpop.permute.xlu1 %1468 }
 0x42c   : > { %v1486_v29 = vpop.permute.xlu0 %1485  ;;  %v1534_v20 = vsel %vm768_vm8, %v1450_v4, %v1469_v28 }
 0x42f   : > { %v1488_v30 = vpop.permute.xlu1 %1487 }
 0x430   : > { %v1505_v39 = vpop.permute.xlu0 %1504  ;;  %v1538_v34 = vsel %vm1260_vm13, %v1534_v20, %v1488_v30 }
 0x433   : > { %v1507_v22 = vpop.permute.xlu1 %1506 }
 0x434   : > { %v1524_v36 = vpop.permute.xlu0 %1523  ;;  %v1543_v53 = vsel %vm1539_vm7, %v1538_v34, %v1507_v22 }
 0x437   : > { %v1467_v31 = vpop.permute.xlu1 %1466 }
 0x438   : > { %v1533_v32 = vsel %vm768_vm8, %v3142_v59, %v1467_v31  ;;  %v2126_v59 = vpack.c.bf16 %v1712_v46, %v1711_v40  ;;  %vm2133_vm8 = vmpackc.low %vm654_vm3, %vm2337_vm4  ;;  %vm2343_vm4 = vmmov 0   ;;  %v1952_v31 = vld [vmem:[#allocation8] ss:$0 sm:$0xff] }
 0x439   : > { %v1537_v35 = vsel %vm1260_vm13, %v1533_v32, %v1486_v29  ;;  %vm1670_vm13 = vcmask 90112   ;;  %2089 = vmatprep.mubr.msk.f32.mxu0 %vm2343_vm4, %v2344_v8 }
 0x43a   : > { %v1542_v45 = vsel %vm1539_vm7, %v1537_v35, %v1505_v39  ;;  %2127 = vmatpush3.bf16.msra.mxu0 %v2126_v59 }
 0x43b   : > { %v1526_v38 = vpop.permute.xlu1 %1525  ;;  %v1547_v41 = vsel %vm1544_vm11, %v1542_v45, %v1524_v36  ;;  %2128 = vmatprep.subr.bf16.mxu0 %v2342_v12 }
 0x43c   : > { %v1548_v42 = vsel %vm1544_vm11, %v1543_v53, %v1526_v38  ;;  %2070 = vmatprep.mubr.msk.f32.mxu1 %vm1562_vm12, %v1547_v41 }
 0x43d   : > { %2071 = vmatmul.mubr.msk.f32.gmra.mrb[10].mxu1 %vm1562_vm12, %v1548_v42 }
 0x43e   : > { %2130 = vmatpush3.bf16.msra.mxu0 %v2129_v48 }
 0x43f   : > { %2131 = vmatprep.subr.bf16.mxu0 %v2342_v12 }
 0x442   : > { %2134 = vmatpush3.bf16.msk.msra.mxu0 %vm2133_vm8, %v2132_v51 }
 0x4f7   : > { %v2069_v52 = vpop.f32.mrb[8].mxu1 }
 0x4f8   : > { %v1650_v1 = vadd.f32 %v2069_v52, %v1946_v17  ;;  %v1644_v54 = vpop.f32.mrb[9].mxu1 }
 0x4f9   : > { %v1645_v55 = vadd.f32 %v1946_v17, %v1644_v54 }
 0x4fa   : > { %v1664_v57 = vmax.f32 %v1650_v1, 0.0 }
 0x4fb   : > { %v1663_v60 = vmax.f32 %v1645_v55, 0.0 }
 0x4fc   : > { %1668 = vst.msk [vmem:[#allocation2 + $0x8] sm:$0xff] %vm785_vm9, %v1664_v57 }
 0x4fd   : > { %1667 = vst.msk [vmem:[#allocation2] sm:$0xff] %vm785_vm9, %v1663_v60 }
 0x504   : > { %v1672_v13 = vld [vmem:[#allocation2] ss:$2 sm:$0xff]  ;;  %v1674_v6 = vld [vmem:[#allocation2 + $0x1] ss:$2 sm:$0xff] }
 0x505   : > { %v1676_v7 = vmax.f32 %v1672_v13, %v1674_v6 }
 0x507   : > { %v1686_v11 = vrot.slane %v1676_v7, 2  ;;  %v1680_v58 = vrot.slane %v1676_v7, 1  ;;  %v1698_v62 = vrot.slane %v1676_v7, 4  ;;  %v1692_v23 = vrot.slane %v1676_v7, 3 }
 0x510   : > { %v2072_v63 = vpop.f32.mrb[10].mxu1 }
 0x511   : > { %v1660_v3 = vadd.f32 %v2072_v63, %v1946_v17  ;;  %v1654_v56 = vpop.f32.mrb[11].mxu1 }
 0x512   : > { %v1655_v4 = vadd.f32 %v1946_v17, %v1654_v56 }
 0x513   : > { %v1666_v5 = vmax.f32 %v1660_v3, 0.0 }
 0x514   : > { %v1665_v37 = vmax.f32 %v1655_v4, 0.0 }
 0x515   : > { %1671 = vst.msk [vmem:[#allocation2 + $0x18] sm:$0x1] %vm1670_vm13, %v1666_v5 }
 0x516   : > { %1669 = vst.msk [vmem:[#allocation2 + $0x10] sm:$0xff] %vm785_vm9, %v1665_v37 }
 0x51d   : > { %v1673_v2 = vld [vmem:[#allocation2 + $0x10] ss:$2 sm:$0xf]  ;;  %v1675_v9 = vld [vmem:[#allocation2 + $0x11] ss:$2 sm:$0xf] }
 0x51e   : > { %v1677_v10 = vmax.f32 %v1673_v2, %v1675_v9 }
 0x520   : > { %v1687_v14 = vrot.slane %v1677_v10, 2  ;;  %v1681_v15 = vrot.slane %v1677_v10, 1  ;;  %v1699_v21 = vrot.slane %v1677_v10, 4  ;;  %v1693_v33 = vrot.slane %v1677_v10, 3 }
 0x522   : > { %v1688_v16 = vsel %vm494_vm0, %v1686_v11, %v1687_v14  ;;  %v1682_v18 = vsel %vm414_vm1, %v1680_v58, %v1681_v15  ;;  %v1700_v24 = vsel %vm654_vm3, %v1698_v62, %v1699_v21  ;;  %v1694_v25 = vsel %vm574_vm2, %v1692_v23, %v1693_v33 }
 0x523   : > { %1689 = vrot.lane.b32.xlu1 %v1688_v16, %s2339_s20  ;;  %1683 = vrot.lane.b32.xlu0 %v1682_v18, %s2336_s12  ;;  %vm1707_vm0 = vcmask 392192   ;;  %vm1724_vm1 = vcmask 490496   ;;  %s1917_s12 = sshll.u32 %s3264_s10, 2  ;;  %vm1806_vm2 = vcmask 117760  }
 0x524   : > { %s381_s13 = scalar_lea.vmem %s3250_s9, %s1917_s12 }
 0x527   : > { %1701 = vrot.lane.b32.xlu1 %v1700_v24, %s2345_s27  ;;  %1695 = vrot.lane.b32.xlu0 %v1694_v25, %s2341_s11 }
 0x595   : > { %v1690_v19 = vpop.permute.xlu1 %1689  ;;  %v1684_v26 = vpop.permute.xlu0 %1683 }
 0x596   : > { %v1704_v27 = vsel %vm785_vm9, %v1676_v7, %v1684_v26 }
 0x597   : > { %v1705_v29 = vsel %vm1269_vm14, %v1704_v27, %v1690_v19 }
 0x599   : > { %v1702_v28 = vpop.permute.xlu1 %1701  ;;  %v1696_v30 = vpop.permute.xlu0 %1695 }
 0x59a   : > { %v1706_v22 = vsel %vm1544_vm11, %v1705_v29, %v1696_v30 }
 0x59b   : > { %v1708_v39 = vsel %vm1707_vm0, %v1706_v22, %v1702_v28 }
 0x59c   : > { %2090 = vmatmul.mubr.msk.f32.vlgmr.msra.gmra.mrb[16].mxu0 %vm1724_vm1, %v1708_v39 }
 0x66f   : > { %v1797_v32 = vpop.f32.mrb[16].mxu0 }
 0x670   : > { %v1798_v20 = vadd.f32 %v1952_v31, %v1797_v32  ;;  %v2091_v35 = vpop.f32.mrb[17].mxu0 }
 0x672   : > { %v1801_v34 = vmax.f32 %v1798_v20, 0.0 }
 0x674   : > { %1802 = vst.msk [vmem:[#allocation2] sm:$0xff] %vm811_vm10, %v1801_v34 }
 0x67b   : > { %v1803_v36 = vld [vmem:[#allocation2] ss:$2 sm:$0xf]  ;;  %v1804_v45 = vld [vmem:[#allocation2 + $0x1] ss:$2 sm:$0xf] }
 0x67c   : > { %v1805_v53 = vmax.f32 %v1803_v36, %v1804_v45 }
 0x67e   : > { %1807 = vst.msk [vmem:[%s381_s13] sm:$0xf] %vm1806_vm2, %v1805_v53 }
 0x67f PF: > { %s22_s30 = sadd.s32 1, %s2327_s30  }
 0x680   : > { %p19_p11 = scmp.ge.s32.totalorder %s22_s30, 4  }
 0x682   :  { %21 = sbr.rel (!%p19_p11) target bundleno = 3 (0x3), region = 118 }
 0x689   :  { %1827 = vsyncpa [#allocation4], 1 }
 0x68a   :  { %1829 = vsyncpa [#allocation4 + $0x1], 1 }
 0x68b   :  { %1830 = vsyncpa [#allocation6], 1 }
 0x68c   :  { %1831 = vsyncpa [#allocation9], 1 }

// kernel: net_forward.3
= control target key start
LH: loop header
LB: loop body
LE: loop exit
PB: predicated region body
PF: predicated region fallthrough
CT: control target
= control target key end

     0   :  { %s15504_s0 = inlined_call_operand.vmem [shape: f32[2,60], index: 0, kind: input, shape index: {}]   ;;  %s15505_s1 = inlined_call_operand.hbm [shape: bf16[60,4096], index: 1, kind: input, shape index: {}]   ;;  %s15506_s2 = inlined_call_operand.hbm [shape: f32[1,4096], index: 2, kind: input, shape index: {}]   ;;  %s15507_s3 = inlined_call_operand.hbm [shape: bf16[4096,1024], index: 3, kind: input, shape index: {}]   ;;  %s15508_s4 = inlined_call_operand.hbm [shape: f32[1,1024], index: 4, kind: input, shape index: {}]   ;;  %s15509_s5 = inlined_call_operand.hbm [shape: bf16[1024,128], index: 5, kind: input, shape index: {}]   ;;  %s15510_s6 = inlined_call_operand.hbm [shape: f32[1,128], index: 6, kind: input, shape index: {}]   ;;  %s15511_s7 = inlined_call_operand.hbm [shape: f32[2,128], index: 7, kind: output, shape index: {}]  }
   0x1   :  { %15526 = sst [smem:[#allocation22_spill]] %s15505_s1 }
   0x2   :  { %15527 = sst [smem:[#allocation23_spill]] %s15507_s3 }
   0x3   :  { %15528 = sst [smem:[#allocation24_spill]] %s15511_s7 }
   0x4   :  { %12 = vsyncpa [#allocation5], 0 }
   0x5   :  { %13 = vsyncpa [#allocation8], 0 }
   0x6   :  { %14 = vsyncpa [#allocation6], 0  ;;  %s13862_s24 = smov 0   ;;  %s13864_s25 = smov 0  }
   0x7   :  { %s13866_s26 = smov 0   ;;  %s13868_s27 = smov 0  }
   0x8 LB: > { %15529 = sst [smem:[#allocation19_spill]] %s13798_s26  ;;  %s13881_s28 = sadd.s32 4294967295, %s13802_s27   ;;  %s13802_s27 = sphi %s13868_s27, %s15559_s27   ;;  %s13798_s26 = sphi %s13866_s26, %s15561_s26   ;;  %s13794_s25 = sphi %s13864_s25, %s15563_s25   ;;  %s13790_s24 = sphi %s13862_s24, %s15562_s24  }
   0x9   : > { %s13884_s29 = sadd.s32 1, %s13802_s27   ;;  %s90_s8 = sadd.s32 1, %s13798_s26 }
   0xa   : > { %15530 = sst [smem:[#allocation20_spill]] %s13884_s29  ;;  %s87_s30 = ssub.s32 %s13802_s27, %s13884_s29 }
   0xb   : > { %p88_p0 = scmp.eq.s32.totalorder %s87_s30, 0  ;;  %p97_p1 = scmp.ne.s32.totalorder %s13798_s26, %s13794_s25 }
   0xc   : > { %p98_p2 = scmp.eq.s32.totalorder %s13802_s27, 0  ;;  %p103_p3 = scmp.ne.s32.totalorder %s13794_s25, %s13790_s24 }
   0xd   : > { %s13894_s9 = scalar_select %p88_p0, %s13798_s26, %s90_s8  }
   0xe   : > { %p13896_p4 = por %p98_p2, %p97_p1  ;;  %p15512_p5 = scmp.eq.s32.totalorder %s13881_s28, 0 }
   0xf   : > { %15531 = sst [smem:[#allocation21_spill]] %s13894_s9  ;;  %p10463_p6 = scmp.ge.s32.totalorder %s13802_s27, 1 }
  0x10   : > { %p208_p7 = scmp.lt.s32.totalorder %s13802_s27, 3  ;;  %p13905_p8 = por %p15512_p5, %p103_p3 }
  0x11   : > { %s13804_s13 = smov [#allocation4]   ;;  %p11923_p13 = scmp.lt.s32.totalorder %s13802_s27, 2 }
  0x12   : > { %s15533_s11 = scalar_select %p13905_p8, 1, 0 }
  0x13   : > { %p13910_p10 = pnand %p10463_p6, %p208_p7  ;;  %s223_s14 = sshll.u32 %s13804_s13, 4  ;;  %s224_s14 = int_to_ptr.vmem [resolvable:$true] %s223_s14 }
  0x14   : > { %s259_s16 = sand.u32 1, %s13802_s27   ;;  %s13925_s17 = sand.u32 1, %s13798_s26  }
  0x15   : > { %s15534_s12 = scalar_select %p13910_p10, 1, 0 }
  0x16   : > { %p11900_p11 = pneg %p13910_p10  ;;  %p13929_p0 = pnand %p11923_p13, %p13896_p4 }
  0x17   : > { %s15537_s1 = sld [smem:[#allocation22_spill]] }
  0x18   : > { %p13918_p12 = pnand %p11900_p11, %p15512_p5 }
  0x19   : > { %s15536_s18 = scalar_select %p13929_p0, 1, 0 }
  0x1a   : > { %s15535_s15 = scalar_select %p13918_p12, 1, 0 }
  0x1b   : > { %p13941_p2 = pneg %p13918_p12 }
  0x1d   : > { %s13552_s21 = scalar_lea.hbm %s15537_s1, 16384 }
  0x1e   : > { %p13553_p1 = scmp.ne.s32.totalorder %s15537_s1, %s13552_s21  ;;  %p13559_p6 = scmp.lt.u32.totalorder %s13552_s21, %s15537_s1 }
  0x1f   : > { %s15538_s24 = scalar_select %p13941_p2, 1, 0 }
  0x20   : > { %p13555_p3 = pnand %p13941_p2, %p13553_p1 }
  0x22   : > { %p13556_p4 = pneg %p13555_p3 }
  0x24   : > { %p13561_p7 = pnand %p13559_p6, %p13556_p4 }
  0x26   : > { %13564 = shalt.err (!%p13561_p7)
}
  0x27   : > { %s13565_s10 = scalar_lea.vmem %s224_s14, 16384  ;;  %p13573_p5 = scmp.lt.s32.totalorder %s224_s14, %s224_s14 }
  0x28   : > { %p13566_p11 = scmp.ne.s32.totalorder %s224_s14, %s13565_s10  ;;  %p13574_p8 = scmp.lt.s32.totalorder %s13565_s10, %s13565_s10 }
  0x2a   : > { %p13568_p13 = pnand %p13566_p11, %p13941_p2  ;;  %p13575_p10 = por %p13574_p8, %p13573_p5 }
  0x2c   : > { %p13569_p9 = pneg %p13568_p13 }
  0x2e   : > { %p13576_p0 = pnand %p13575_p10, %p13569_p9 }
  0x30   : > { %13579 = shalt.err (!%p13576_p0)
}
  0x31   : > { %s13805_s13 = smov 2048   ;;  %s13806_s19 = smov 128  }
  0x32   : > { %11903 = dma.hbm_to_vmem [thread:$0]  (!%p13918_p12), %s15537_s1, 16384, %s224_s14, [#allocation5], %s13805_s13, %s13805_s13, %s13806_s19  }
  0x33   : > { %s10468_s22 = sshll.u32 %s13925_s17, 13  ;;  %s11707_s23 = sshll.u32 %s13802_s27, 8 }
  0x34   : > { %s15539_s3 = sld [smem:[#allocation23_spill]]  ;;  %s263_s9 = scalar_lea.vmem [#allocation9], %s10468_s22 }
  0x35   : > { %s270_s26 = sshll.u32 %s263_s9, 4  ;;  %s13966_s29 = scalar_lea.sflag [#allocation5], %s259_s16  ;;  %s13964_s26 = int_to_ptr.vmem [resolvable:$true] %s270_s26 }
  0x36   : > { %p15540_p8 = scmp.ne.s32.totalorder %s15536_s18, 0 }
  0x38   : > { %p13972_p9 = pneg %p15540_p8 }
  0x3a   : > { %s13962_s10 = scalar_lea.hbm %s15539_s3, %s11707_s23  ;;  %s13585_s20 = scalar_lea.hbm %s15539_s3, 262144 }
  0x3b   : > { %s13580_s7 = scalar_lea.hbm %s13962_s10, 131072  ;;  %p13586_p1 = scmp.lt.u32.totalorder %s13962_s10, %s15539_s3 }
  0x3c   : > { %p13581_p5 = scmp.ne.s32.totalorder %s13962_s10, %s13580_s7  ;;  %p13587_p3 = scmp.lt.u32.totalorder %s13585_s20, %s13580_s7 }
  0x3d   : > { %p13589_p6 = scmp.lt.u32.totalorder %s13580_s7, %s13962_s10 }
  0x3e   : > { %p13583_p10 = pnand %p13972_p9, %p13581_p5  ;;  %p13588_p4 = por %p13587_p3, %p13586_p1 }
  0x40   : > { %p13584_p0 = pneg %p13583_p10  ;;  %p13590_p7 = por %p13589_p6, %p13588_p4 }
  0x42   : > { %p13591_p11 = pnand %p13590_p7, %p13584_p0 }
  0x44   : > { %13594 = shalt.err (!%p13591_p11)
}
  0x45   : > { %s13595_s16 = scalar_lea.vmem %s13964_s26, 131072  ;;  %s13807_s22 = smov [#allocation9]  }
  0x46   : > { %p13596_p13 = scmp.ne.s32.totalorder %s13964_s26, %s13595_s16  ;;  %s13600_s23 = sshll.u32 %s13807_s22, 4  ;;  %s13601_s23 = int_to_ptr.vmem [resolvable:$false] %s13600_s23 }
  0x47   : > { %s13602_s30 = scalar_lea.vmem %s13601_s23, 262144  ;;  %p13603_p12 = scmp.lt.s32.totalorder %s13964_s26, %s13601_s23 }
  0x48   : > { %p13598_p5 = pnand %p13596_p13, %p13972_p9  ;;  %p13604_p2 = scmp.lt.s32.totalorder %s13602_s30, %s13595_s16 }
  0x4a   : > { %p13599_p10 = pneg %p13598_p5  ;;  %p13605_p1 = por %p13604_p2, %p13603_p12 }
  0x4c   : > { %p13606_p3 = pnand %p13605_p1, %p13599_p10 }
  0x4e   : > { %13609 = shalt.err (!%p13606_p3)
}
  0x4f   : > { %s13808_s7 = smov 512   ;;  %s13809_s8 = smov 256  }
  0x50   : > { %s13810_s13 = smov 16   ;;  %s13811_s19 = smov [#allocation7]  }
  0x51   : > { %11913 = dma.hbm_to_vmem [thread:$0]  (!%p15540_p8), %s13962_s10, 131072, %s13964_s26, %s13966_s29, %s13808_s7, %s13809_s8, %s13810_s13  }
  0x52   : > { %s237_s20 = sshll.u32 %s13811_s19, 4  ;;  %s10471_s9 = sshll.u32 %s13925_s17, 2  ;;  %s238_s20 = int_to_ptr.vmem [resolvable:$true] %s237_s20 }
  0x53   : > { %s13610_s22 = scalar_lea.hbm %s15506_s2, 512  ;;  %p15542_p2 = scmp.ne.s32.totalorder %s15538_s24, 0 }
  0x54   : > { %p13611_p12 = scmp.ne.s32.totalorder %s15506_s2, %s13610_s22  ;;  %p13617_p6 = scmp.lt.u32.totalorder %s13610_s22, %s15506_s2 }
  0x56   : > { %p13613_p0 = pnand %p13611_p12, %p15542_p2 }
  0x58   : > { %p13614_p4 = pneg %p13613_p0 }
  0x5a   : > { %p13619_p7 = pnand %p13617_p6, %p13614_p4 }
  0x5c   : > { %13622 = shalt.err (!%p13619_p7)
}
  0x5d   : > { %s13623_s26 = scalar_lea.vmem %s238_s20, 512  ;;  %p13631_p10 = scmp.lt.s32.totalorder %s238_s20, %s238_s20 }
  0x5e   : > { %p13624_p11 = scmp.ne.s32.totalorder %s238_s20, %s13623_s26  ;;  %p13632_p1 = scmp.lt.s32.totalorder %s13623_s26, %s13623_s26 }
  0x60   : > { %p13626_p13 = pnand %p13624_p11, %p15542_p2  ;;  %p13633_p3 = por %p13632_p1, %p13631_p10 }
  0x62   : > { %p13627_p5 = pneg %p13626_p13 }
  0x64   : > { %p13634_p8 = pnand %p13633_p3, %p13627_p5 }
  0x66   : > { %13637 = shalt.err (!%p13634_p8)
}
  0x67   : > { %p15543_p12 = scmp.ne.s32.totalorder %s15535_s15, 0  ;;  %s11708_s1 = sshll.u32 %s13802_s27, 6 }
  0x68   : > { %s284_s3 = scalar_lea.vmem [#allocation10], %s10471_s9  ;;  %s290_s21 = scalar_lea.hbm %s15508_s4, %s11708_s1 }
  0x69   : > { %11906 = dma.hbm_to_vmem [thread:$0]  (!%p15543_p12), %s15506_s2, 512, %s238_s20, [#allocation8]  }
  0x6a   : > { %s292_s8 = sshll.u32 %s284_s3, 4  ;;  %s13638_s16 = scalar_lea.hbm %s290_s21, 64  ;;  %s293_s8 = int_to_ptr.vmem [resolvable:$true] %s292_s8 }
  0x6b   : > { %p13639_p0 = scmp.ne.s32.totalorder %s290_s21, %s13638_s16  ;;  %s13643_s30 = scalar_lea.hbm %s15508_s4, 128 }
  0x6c   : > { %p13644_p6 = scmp.lt.u32.totalorder %s290_s21, %s15508_s4  ;;  %p13645_p7 = scmp.lt.u32.totalorder %s13643_s30, %s13638_s16 }
  0x6d   : > { %p13641_p8 = pnand %p13639_p0, %p13972_p9  ;;  %p13647_p13 = scmp.lt.u32.totalorder %s13638_s16, %s290_s21 }
  0x6e   : > { %p13646_p11 = por %p13645_p7, %p13644_p6 }
  0x6f   : > { %p13642_p4 = pneg %p13641_p8 }
  0x70   : > { %p13648_p5 = por %p13647_p13, %p13646_p11 }
  0x72   : > { %p13649_p10 = pnand %p13648_p5, %p13642_p4 }
  0x74   : > { %13652 = shalt.err (!%p13649_p10)
}
  0x75   : > { %s13653_s20 = scalar_lea.vmem %s293_s8, 64  ;;  %s13812_s9 = smov [#allocation10]  }
  0x76   : > { %p13654_p1 = scmp.ne.s32.totalorder %s293_s8, %s13653_s20  ;;  %s13658_s7 = sshll.u32 %s13812_s9, 4  ;;  %s13659_s7 = int_to_ptr.vmem [resolvable:$false] %s13658_s7 }
  0x77   : > { %s13660_s1 = scalar_lea.vmem %s13659_s7, 128  ;;  %p13661_p8 = scmp.lt.s32.totalorder %s293_s8, %s13659_s7 }
  0x78   : > { %p13656_p3 = pnand %p13654_p1, %p13972_p9  ;;  %p13662_p12 = scmp.lt.s32.totalorder %s13660_s1, %s13653_s20 }
  0x7a   : > { %p13657_p0 = pneg %p13656_p3  ;;  %p13663_p2 = por %p13662_p12, %p13661_p8 }
  0x7c   : > { %p13664_p6 = pnand %p13663_p2, %p13657_p0 }
  0x7e   : > { %13667 = shalt.err (!%p13664_p6)
}
  0x7f   : > { %p15544_p7 = scmp.ne.s32.totalorder %s15536_s18, 0  ;;  %s10474_s3 = sshll.u32 %s13925_s17, 8 }
  0x80   : > { %s13813_s13 = smov [#allocation12]   ;;  %s11709_s16 = sshll.u32 %s13802_s27, 12 }
  0x81   : > { %11916 = dma.hbm_to_vmem [thread:$0]  (!%p15544_p7), %s290_s21, 64, %s293_s8, %s13966_s29  }
  0x82   : > { %s248_s19 = sshll.u32 %s13813_s13, 4  ;;  %s13668_s30 = scalar_lea.hbm %s15510_s6, 16  ;;  %s249_s19 = int_to_ptr.vmem [resolvable:$true] %s248_s19 }
  0x83   : > { %p13669_p2 = scmp.ne.s32.totalorder %s15510_s6, %s13668_s30  ;;  %p15545_p12 = scmp.ne.s32.totalorder %s15538_s24, 0 }
  0x84   : > { %p13675_p13 = scmp.lt.u32.totalorder %s13668_s30, %s15510_s6 }
  0x85   : > { %p13671_p4 = pnand %p13669_p2, %p15545_p12 }
  0x87   : > { %p13672_p11 = pneg %p13671_p4 }
  0x89   : > { %p13677_p5 = pnand %p13675_p13, %p13672_p11 }
  0x8b   : > { %13680 = shalt.err (!%p13677_p5)
}
  0x8c   : > { %s13681_s17 = scalar_lea.vmem %s249_s19, 16  ;;  %s13688_s27 = scalar_lea.vmem %s249_s19, 32 }
  0x8d   : > { %p13682_p10 = scmp.ne.s32.totalorder %s249_s19, %s13681_s17  ;;  %p13689_p0 = scmp.lt.s32.totalorder %s249_s19, %s249_s19 }
  0x8e   : > { %p13690_p8 = scmp.lt.s32.totalorder %s13688_s27, %s13681_s17 }
  0x8f   : > { %p13684_p1 = pnand %p13682_p10, %p15545_p12 }
  0x90   : > { %p13691_p6 = por %p13690_p8, %p13689_p0 }
  0x91   : > { %p13685_p3 = pneg %p13684_p1 }
  0x93   : > { %p13692_p7 = pnand %p13691_p6, %p13685_p3 }
  0x95   : > { %13695 = shalt.err (!%p13692_p7)
}
  0x96   : > { %p15546_p2 = scmp.ne.s32.totalorder %s15535_s15, 0  ;;  %s14055_s13 = scalar_lea.hbm %s15509_s5, %s11709_s16 }
  0x97   : > { %s303_s24 = scalar_lea.vmem [#allocation11], %s10474_s3  ;;  %s13696_s23 = scalar_lea.hbm %s14055_s13, 4096 }
  0x98   : > { %11909 = dma.hbm_to_vmem [thread:$0]  (!%p15546_p2), %s15510_s6, 16, %s249_s19, [#allocation8]  }
  0x99   : > { %s310_s22 = sshll.u32 %s303_s24, 4  ;;  %p13697_p7 = scmp.ne.s32.totalorder %s14055_s13, %s13696_s23  ;;  %s14057_s22 = int_to_ptr.vmem [resolvable:$true] %s310_s22 }
  0x9a   : > { %s13701_s30 = scalar_lea.hbm %s15509_s5, 8192  ;;  %p13702_p11 = scmp.lt.u32.totalorder %s14055_s13, %s15509_s5 }
  0x9b   : > { %p13699_p12 = pnand %p13697_p7, %p13972_p9  ;;  %p13703_p13 = scmp.lt.u32.totalorder %s13701_s30, %s13696_s23 }
  0x9c   : > { %p13705_p10 = scmp.lt.u32.totalorder %s13696_s23, %s14055_s13 }
  0x9d   : > { %p13700_p4 = pneg %p13699_p12  ;;  %p13704_p5 = por %p13703_p13, %p13702_p11 }
  0x9f   : > { %p13706_p1 = por %p13705_p10, %p13704_p5 }
  0xa1   : > { %p13707_p3 = pnand %p13706_p1, %p13700_p4 }
  0xa3   : > { %13710 = shalt.err (!%p13707_p3)
}
  0xa4   : > { %s13711_s3 = scalar_lea.vmem %s14057_s22, 4096  ;;  %s13814_s10 = smov [#allocation11]  }
  0xa5   : > { %p13712_p0 = scmp.ne.s32.totalorder %s14057_s22, %s13711_s3  ;;  %s13716_s20 = sshll.u32 %s13814_s10, 4  ;;  %s13717_s20 = int_to_ptr.vmem [resolvable:$false] %s13716_s20 }
  0xa6   : > { %s13718_s9 = scalar_lea.vmem %s13717_s20, 8192  ;;  %p13719_p2 = scmp.lt.s32.totalorder %s14057_s22, %s13717_s20 }
  0xa7   : > { %p13714_p8 = pnand %p13712_p0, %p13972_p9  ;;  %p13720_p7 = scmp.lt.s32.totalorder %s13718_s9, %s13711_s3 }
  0xa9   : > { %p13715_p6 = pneg %p13714_p8  ;;  %p13721_p12 = por %p13720_p7, %p13719_p2 }
  0xab   : > { %p13722_p11 = pnand %p13721_p12, %p13715_p6 }
  0xad   : > { %13725 = shalt.err (!%p13722_p11)
}
  0xae   : > { %s13815_s17 = smov 64   ;;  %s13816_s27 = smov 4  }
  0xaf   : > { %p15547_p4 = scmp.ne.s32.totalorder %s15536_s18, 0  ;;  %p15548_p9 = scmp.ne.s32.totalorder %s15534_s12, 0 }
  0xb0   : > { %p15549_p13 = scmp.eq.s32.totalorder (!%p15548_p9), %s13881_s28, 0 }
  0xb1   : > { %11919 = dma.hbm_to_vmem [thread:$0]  (!%p15547_p4), %s14055_s13, 4096, %s14057_s22, %s13966_s29, %s13815_s17, %s13815_s17, %s13816_s27  }
  0xb2   : > { %322 = sbr.rel (%p15548_p9) target bundleno = 2063 (0x80f), region = 48 }
  0xb9   : > { %13769 = dma.done.wait (%p15549_p13), [#allocation5], 16384   ;;  %p15550_p5 = pmov %p15549_p13 }
  0xbb   : > { %13771 = vsyncadd (%p15550_p5), [#allocation5], 4294950912  ;;  %p15551_p10 = pmov %p15550_p5 }
  0xbc   : > { %p15552_p1 = pmov %p15550_p5 }
  0xbd   : > { %13773 = dma.done.wait (%p15551_p10), [#allocation8], 512  }
  0xbe   : > { %13775 = vsyncadd (%p15552_p1), [#allocation8], 4294966784  ;;  %s332_s18 = sand.u32 1, %s13881_s28   ;;  %s334_s29 = sand.u32 1, %s13794_s25  }
  0xbf   : > { %s10480_s14 = sshll.u32 %s334_s29, 13  ;;  %s333_s12 = scalar_lea.sflag [#allocation5], %s332_s18 }
  0xc0   : > { %s14093_s8 = scalar_lea.vmem [#allocation9], %s10480_s14  ;;  %p15553_p3 = scmp.ne.s32.totalorder %s15533_s11, 0 }
  0xc2   : > { %13777 = dma.done.wait (%p15553_p3), %s333_s12, 135232  }
  0xc3   : > { %13779 = vsyncadd (%p15553_p3), %s333_s12, 4294832064  ;;  %s10481_s21 = sshll.u32 %s334_s29, 2  ;;  %s10482_s7 = sshll.u32 %s334_s29, 8 }
  0xc4   : > { %s14099_s1 = scalar_lea.vmem [#allocation10], %s10481_s21  ;;  %s14101_s13 = scalar_lea.vmem [#allocation11], %s10482_s7 }
  0xc5   : > { %p15554_p0 = pmov %p15552_p1 }
  0xc7   : > { %13781 = dma.done.wait (%p15554_p0), [#allocation8], 16   ;;  %p15555_p8 = pmov %p15554_p0 }
  0xc8   : > { %p15556_p6 = scmp.ne.s32.totalorder %s13881_s28, 0 }
  0xc9   : > { %13783 = vsyncadd (%p15555_p8), [#allocation8], 4294967280  ;;  %v404_v0 = vld [vmem:[#allocation4] sm:$0xff] (!%p15556_p6)  ;;  %v405_v2 = vld [vmem:[#allocation4 + $0x8] sm:$0xff] (!%p15556_p6)  ;;  %v13817_v8 = vmov (!%p15556_p6), 0   ;;  %vm1312_vm0 = vcmask (!%p15556_p6), 1045504  }
  0xca   : > { %401 = sbr.rel (%p15556_p6) target bundleno = 557 (0x22d), region = 76  ;;  %v420_v1 = vld [vmem:[#allocation4 + $0x80] sm:$0xff] (!%p15556_p6)  ;;  %v421_v4 = vld [vmem:[#allocation4 + $0x88] sm:$0xff] (!%p15556_p6)  ;;  %1441 = vmatprep.mubr.bf16.mxu0 (!%p15556_p6), %v13817_v8  ;;  %1482 = vmatprep.mubr.bf16.mxu1 (!%p15556_p6), %v13817_v8  ;;  %v406_v33 = vld [vmem:[#allocation4 + $0x10] sm:$0xff] (!%p15556_p6)  ;;  %vm1308_vm1 = vcmask (!%p15556_p6), 490496  }
  0xcb   : > { %v10486_v3 = vcombine.high (!%p15556_p6), %v404_v0, %v420_v1  ;;  %v10485_v5 = vcombine.low (!%p15556_p6), %v404_v0, %v420_v1  ;;  %v436_v6 = vld [vmem:[#allocation4 + $0x100] sm:$0xff] (!%p15556_p6)  ;;  %v10488_v9 = vcombine.high (!%p15556_p6), %v405_v2, %v421_v4  ;;  %v10487_v10 = vcombine.low (!%p15556_p6), %v405_v2, %v421_v4  ;;  %v437_v12 = vld [vmem:[#allocation4 + $0x108] sm:$0xff] (!%p15556_p6)  ;;  %v422_v34 = vld [vmem:[#allocation4 + $0x90] sm:$0xff] (!%p15556_p6) }
  0xcc   : > { %v452_v7 = vld [vmem:[#allocation4 + $0x180] sm:$0xff] (!%p15556_p6)  ;;  %v453_v13 = vld [vmem:[#allocation4 + $0x188] sm:$0xff] (!%p15556_p6)  ;;  %v407_v35 = vld [vmem:[#allocation4 + $0x18] sm:$0xff] (!%p15556_p6)  ;;  %v10490_v39 = vcombine.high (!%p15556_p6), %v406_v33, %v422_v34  ;;  %v10489_v47 = vcombine.low (!%p15556_p6), %v406_v33, %v422_v34 }
  0xcd   : > { %v10518_v11 = vcombine.high (!%p15556_p6), %v436_v6, %v452_v7  ;;  %v468_v14 = vld [vmem:[#allocation4 + $0x200] sm:$0xff] (!%p15556_p6)  ;;  %1409 = vmatprep.subr.bf16.mxu0 (!%p15556_p6), %v10486_v3  ;;  %v10520_v15 = vcombine.high (!%p15556_p6), %v437_v12, %v453_v13  ;;  %v469_v17 = vld [vmem:[#allocation4 + $0x208] sm:$0xff] (!%p15556_p6)  ;;  %1450 = vmatprep.subr.bf16.mxu1 (!%p15556_p6), %v10488_v9  ;;  %v10517_v19 = vcombine.low (!%p15556_p6), %v436_v6, %v452_v7  ;;  %v423_v36 = vld [vmem:[#allocation4 + $0x98] sm:$0xff] (!%p15556_p6) }
  0xce   : > { %v484_v16 = vld [vmem:[#allocation4 + $0x280] sm:$0xff] (!%p15556_p6)  ;;  %v485_v18 = vld [vmem:[#allocation4 + $0x288] sm:$0xff] (!%p15556_p6)  ;;  %1410 = vmatpush1.bf16.msra.mxu0 (!%p15556_p6), %v10485_v5  ;;  %1451 = vmatpush1.bf16.msra.mxu1 (!%p15556_p6), %v10487_v10  ;;  %v10519_v20 = vcombine.low (!%p15556_p6), %v437_v12, %v453_v13  ;;  %v402_v37 = vld [vmem:[%s15504_s0] sm:$0x3] (!%p15556_p6)  ;;  %v10492_v41 = vcombine.high (!%p15556_p6), %v407_v35, %v423_v36  ;;  %v10491_v48 = vcombine.low (!%p15556_p6), %v407_v35, %v423_v36 }
  0xcf   : > { %1411 = vmatprep.subr.bf16.mxu0 (!%p15556_p6), %v10518_v11  ;;  %v10550_v21 = vcombine.high (!%p15556_p6), %v468_v14, %v484_v16  ;;  %1452 = vmatprep.subr.bf16.mxu1 (!%p15556_p6), %v10520_v15  ;;  %v10552_v22 = vcombine.high (!%p15556_p6), %v469_v17, %v485_v18  ;;  %v500_v23 = vld [vmem:[#allocation4 + $0x300] sm:$0xff] (!%p15556_p6)  ;;  %v501_v25 = vld [vmem:[#allocation4 + $0x308] sm:$0xff] (!%p15556_p6)  ;;  %v10549_v27 = vcombine.low (!%p15556_p6), %v468_v14, %v484_v16  ;;  %v438_v42 = vld [vmem:[#allocation4 + $0x110] sm:$0xff] (!%p15556_p6) }
  0xd0   : > { %v516_v24 = vld [vmem:[#allocation4 + $0x380] sm:$0x33] (!%p15556_p6)  ;;  %v517_v26 = vld [vmem:[#allocation4 + $0x388] sm:$0x33] (!%p15556_p6)  ;;  %v10551_v28 = vcombine.low (!%p15556_p6), %v469_v17, %v485_v18  ;;  %v454_v43 = vld [vmem:[#allocation4 + $0x190] sm:$0xff] (!%p15556_p6)  ;;  %v14118_v44 = vpack.c.bf16 (!%p15556_p6), %v402_v37, %v402_v37 }
  0xd1   : > { %v10582_v29 = vcombine.high %v500_v23, %v516_v24  ;;  %v10581_v30 = vcombine.low %v500_v23, %v516_v24  ;;  %v10584_v31 = vcombine.high %v501_v25, %v517_v26  ;;  %v10583_v32 = vcombine.low %v501_v25, %v517_v26  ;;  %v439_v45 = vld [vmem:[#allocation4 + $0x118] sm:$0xff]  ;;  %v470_v51 = vld [vmem:[#allocation4 + $0x210] sm:$0xff]  ;;  %v408_v5 = vld [vmem:[#allocation4 + $0x20] sm:$0xff] }
  0xd2   : > { %1412 = vmatpush1.bf16.msra.mxu0 %v10517_v19  ;;  %1453 = vmatpush1.bf16.msra.mxu1 %v10519_v20  ;;  %v455_v46 = vld [vmem:[#allocation4 + $0x198] sm:$0xff]  ;;  %v10522_v49 = vcombine.high %v438_v42, %v454_v43  ;;  %v486_v52 = vld [vmem:[#allocation4 + $0x290] sm:$0xff]  ;;  %v10521_v55 = vcombine.low %v438_v42, %v454_v43  ;;  %v424_v6 = vld [vmem:[#allocation4 + $0xa0] sm:$0xff] }
  0xd3   : > { %1413 = vmatprep.subr.bf16.mxu0 %v10550_v21  ;;  %1454 = vmatprep.subr.bf16.mxu1 %v10552_v22  ;;  %v1314_v38 = vsel %vm1312_vm0, %v10581_v30, 0  ;;  %v1320_v40 = vsel %vm1312_vm0, %v10583_v32, 0  ;;  %v10524_v50 = vcombine.high %v439_v45, %v455_v46  ;;  %v471_v53 = vld [vmem:[#allocation4 + $0x218] sm:$0xff]  ;;  %v10523_v56 = vcombine.low %v439_v45, %v455_v46  ;;  %v502_v59 = vld [vmem:[#allocation4 + $0x310] sm:$0xff]  ;;  %v409_v7 = vld [vmem:[#allocation4 + $0x28] sm:$0xff] }
  0xd4   : > { %v487_v54 = vld [vmem:[#allocation4 + $0x298] sm:$0xff]  ;;  %v10554_v57 = vcombine.high %v470_v51, %v486_v52  ;;  %v518_v60 = vld [vmem:[#allocation4 + $0x390] sm:$0x33]  ;;  %v10553_v63 = vcombine.low %v470_v51, %v486_v52  ;;  %v425_v9 = vld [vmem:[#allocation4 + $0xa8] sm:$0xff]  ;;  %v10494_v11 = vcombine.high %v408_v5, %v424_v6  ;;  %v10493_v18 = vcombine.low %v408_v5, %v424_v6 }
  0xd5   : > { %v10556_v58 = vcombine.high %v471_v53, %v487_v54  ;;  %v503_v61 = vld [vmem:[#allocation4 + $0x318] sm:$0xff]  ;;  %v10555_v0 = vcombine.low %v471_v53, %v487_v54  ;;  %v10586_v1 = vcombine.high %v502_v59, %v518_v60  ;;  %v10585_v2 = vcombine.low %v502_v59, %v518_v60  ;;  %v440_v14 = vld [vmem:[#allocation4 + $0x120] sm:$0xff]  ;;  %v441_v16 = vld [vmem:[#allocation4 + $0x128] sm:$0xff] }
  0xd6   : > { %1414 = vmatpush1.bf16.msra.mxu0 %v10549_v27  ;;  %1455 = vmatpush1.bf16.msra.mxu1 %v10551_v28  ;;  %v519_v62 = vld [vmem:[#allocation4 + $0x398] sm:$0x33]  ;;  %v10496_v13 = vcombine.high %v409_v7, %v425_v9  ;;  %v456_v15 = vld [vmem:[#allocation4 + $0x1a0] sm:$0xff]  ;;  %v457_v17 = vld [vmem:[#allocation4 + $0x1a8] sm:$0xff]  ;;  %v10495_v19 = vcombine.low %v409_v7, %v425_v9 }
  0xd7   : > { %10613 = vmatprep.subr.msk.bf16.mxu0 %vm1312_vm0, %v10582_v29  ;;  %10615 = vmatprep.subr.msk.bf16.mxu1 %vm1312_vm0, %v10584_v31  ;;  %v10588_v3 = vcombine.high %v503_v61, %v519_v62  ;;  %v10587_v4 = vcombine.low %v503_v61, %v519_v62  ;;  %v1326_v10 = vsel %vm1312_vm0, %v10585_v2, 0  ;;  %v10526_v20 = vcombine.high %v440_v14, %v456_v15  ;;  %v472_v22 = vld [vmem:[#allocation4 + $0x220] sm:$0xff]  ;;  %v473_v24 = vld [vmem:[#allocation4 + $0x228] sm:$0xff]  ;;  %v411_v42 = vld [vmem:[#allocation4 + $0x38] sm:$0xff] }
  0xd8   : > { %v10528_v21 = vcombine.high %v441_v16, %v457_v17  ;;  %v488_v23 = vld [vmem:[#allocation4 + $0x2a0] sm:$0xff]  ;;  %v489_v25 = vld [vmem:[#allocation4 + $0x2a8] sm:$0xff]  ;;  %v10525_v26 = vcombine.low %v440_v14, %v456_v15  ;;  %v10527_v27 = vcombine.low %v441_v16, %v457_v17  ;;  %v427_v43 = vld [vmem:[#allocation4 + $0xb8] sm:$0xff] }
  0xd9   : > { %v1332_v12 = vsel %vm1312_vm0, %v10587_v4, 0  ;;  %v10558_v28 = vcombine.high %v472_v22, %v488_v23  ;;  %v10560_v29 = vcombine.high %v473_v24, %v489_v25  ;;  %v504_v30 = vld [vmem:[#allocation4 + $0x320] sm:$0xff]  ;;  %v505_v32 = vld [vmem:[#allocation4 + $0x328] sm:$0xff]  ;;  %v10557_v34 = vcombine.low %v472_v22, %v488_v23  ;;  %v443_v51 = vld [vmem:[#allocation4 + $0x138] sm:$0xff] }
  0xda   : > { %1416 = vmatpush1.bf16.msra.mxu0 %v1314_v38  ;;  %1457 = vmatpush1.bf16.msra.mxu1 %v1320_v40  ;;  %v520_v31 = vld [vmem:[#allocation4 + $0x3a0] sm:$0x33]  ;;  %v521_v33 = vld [vmem:[#allocation4 + $0x3a8] sm:$0x33]  ;;  %v10559_v35 = vcombine.low %v473_v24, %v489_v25  ;;  %v410_v40 = vld [vmem:[#allocation4 + $0x30] sm:$0xff]  ;;  %v10499_v54 = vcombine.low %v411_v42, %v427_v43 }
  0xdb   : > { %1491 = vmatprep.subr.bf16.mxu0 %v10490_v39  ;;  %1532 = vmatprep.subr.bf16.mxu1 %v10492_v41  ;;  %v10590_v36 = vcombine.high %v504_v30, %v520_v31  ;;  %v10589_v37 = vcombine.low %v504_v30, %v520_v31  ;;  %v10592_v38 = vcombine.high %v505_v32, %v521_v33  ;;  %v426_v41 = vld [vmem:[#allocation4 + $0xb0] sm:$0xff]  ;;  %v459_v52 = vld [vmem:[#allocation4 + $0x1b8] sm:$0xff]  ;;  %v413_v14 = vld [vmem:[#allocation4 + $0x48] sm:$0xff] }
  0xdc   : > { %v10591_v39 = vcombine.low %v505_v32, %v521_v33  ;;  %v10498_v46 = vcombine.high %v410_v40, %v426_v41  ;;  %v10497_v53 = vcombine.low %v410_v40, %v426_v41  ;;  %v475_v59 = vld [vmem:[#allocation4 + $0x238] sm:$0xff]  ;;  %v10531_v62 = vcombine.low %v443_v51, %v459_v52  ;;  %v522_v2 = vld [vmem:[#allocation4 + $0x3b0] sm:$0x33]  ;;  %v429_v15 = vld [vmem:[#allocation4 + $0xc8] sm:$0xff] }
  0xdd   : > { %10614 = vmatmul.mubr.msk.bf16.vlgmr.msra.gmra.mrb[0].mxu0 %vm1308_vm1, %v14118_v44  ;;  %10616 = vmatmul.mubr.msk.bf16.vlgmr.msra.gmra.mrb[0].mxu1 %vm1308_vm1, %v14118_v44  ;;  %v1338_v45 = vsel %vm1312_vm0, %v10589_v37, 0  ;;  %v491_v60 = vld [vmem:[#allocation4 + $0x2b8] sm:$0xff]  ;;  %v445_v22 = vld [vmem:[#allocation4 + $0x148] sm:$0xff]  ;;  %v10503_v25 = vcombine.low %v413_v14, %v429_v15  ;;  %v524_v37 = vld [vmem:[#allocation4 + $0x3c0] sm:$0x33] }
  0xde   : > { %1492 = vmatpush1.bf16.msra.mxu0 %v10489_v47  ;;  %1533 = vmatpush1.bf16.msra.mxu1 %v10491_v48  ;;  %v1344_v47 = vsel %vm1312_vm0, %v10591_v39, 0  ;;  %v10500_v48 = vcombine.high %v411_v42, %v427_v43  ;;  %v523_v4 = vld [vmem:[#allocation4 + $0x3b8] sm:$0x33]  ;;  %v10563_v6 = vcombine.low %v475_v59, %v491_v60  ;;  %v461_v23 = vld [vmem:[#allocation4 + $0x1c8] sm:$0xff] }
  0xdf   : > { %1493 = vmatprep.subr.bf16.mxu0 %v10522_v49  ;;  %1534 = vmatprep.subr.bf16.mxu1 %v10524_v50  ;;  %v442_v49 = vld [vmem:[#allocation4 + $0x130] sm:$0xff]  ;;  %v477_v30 = vld [vmem:[#allocation4 + $0x248] sm:$0xff]  ;;  %v10535_v33 = vcombine.low %v445_v22, %v461_v23 }
  0xe0   : > { %1523 = vmatprep.mubr.bf16.mxu0 %v13817_v8  ;;  %1564 = vmatprep.mubr.bf16.mxu1 %v13817_v8  ;;  %v458_v50 = vld [vmem:[#allocation4 + $0x1b0] sm:$0xff]  ;;  %v493_v31 = vld [vmem:[#allocation4 + $0x2c8] sm:$0xff] }
  0xe1   : > { %v10529_v61 = vcombine.low %v442_v49, %v458_v50  ;;  %v525_v39 = vld [vmem:[#allocation4 + $0x3c8] sm:$0x33]  ;;  %v10567_v41 = vcombine.low %v477_v30, %v493_v31 }
  0xe2   : > { %1494 = vmatpush1.bf16.msra.mxu0 %v10521_v55  ;;  %1535 = vmatpush1.bf16.msra.mxu1 %v10523_v56  ;;  %v10530_v55 = vcombine.high %v442_v49, %v458_v50  ;;  %v10532_v56 = vcombine.high %v443_v51, %v459_v52  ;;  %v415_v49 = vld [vmem:[#allocation4 + $0x58] sm:$0xff] }
  0xe3   : > { %1495 = vmatprep.subr.bf16.mxu0 %v10554_v57  ;;  %1536 = vmatprep.subr.bf16.mxu1 %v10556_v58  ;;  %v474_v57 = vld [vmem:[#allocation4 + $0x230] sm:$0xff]  ;;  %v431_v50 = vld [vmem:[#allocation4 + $0xd8] sm:$0xff] }
  0xe4   : > { %v490_v58 = vld [vmem:[#allocation4 + $0x2b0] sm:$0xff] }
  0xe5   : > { %v10561_v5 = vcombine.low %v474_v57, %v490_v58 }
  0xe6   : > { %1496 = vmatpush1.bf16.msra.mxu0 %v10553_v63  ;;  %1537 = vmatpush1.bf16.msra.mxu1 %v10555_v0  ;;  %v10562_v63 = vcombine.high %v474_v57, %v490_v58  ;;  %v10564_v0 = vcombine.high %v475_v59, %v491_v60  ;;  %v447_v57 = vld [vmem:[#allocation4 + $0x158] sm:$0xff]  ;;  %v10507_v60 = vcombine.low %v415_v49, %v431_v50 }
  0xe7   : > { %10617 = vmatprep.subr.msk.bf16.mxu0 %vm1312_vm0, %v10586_v1  ;;  %10619 = vmatprep.subr.msk.bf16.mxu1 %vm1312_vm0, %v10588_v3  ;;  %v506_v1 = vld [vmem:[#allocation4 + $0x330] sm:$0xff]  ;;  %v507_v3 = vld [vmem:[#allocation4 + $0x338] sm:$0xff] }
  0xe8   : > { %v10594_v7 = vcombine.high %v506_v1, %v522_v2  ;;  %v10593_v9 = vcombine.low %v506_v1, %v522_v2  ;;  %v463_v58 = vld [vmem:[#allocation4 + $0x1d8] sm:$0xff] }
  0xe9   : > { %v479_v1 = vld [vmem:[#allocation4 + $0x258] sm:$0xff] }
  0xea   : > { %1498 = vmatpush1.bf16.msra.mxu0 %v1326_v10  ;;  %1539 = vmatpush1.bf16.msra.mxu1 %v1332_v12  ;;  %v10596_v10 = vcombine.high %v507_v3, %v523_v4  ;;  %v412_v12 = vld [vmem:[#allocation4 + $0x40] sm:$0xff]  ;;  %v1350_v16 = vsel %vm1312_vm0, %v10593_v9, 0  ;;  %v495_v2 = vld [vmem:[#allocation4 + $0x2d8] sm:$0xff]  ;;  %v526_v9 = vld [vmem:[#allocation4 + $0x3d0] sm:$0x33] }
  0xeb   : > { %1573 = vmatprep.subr.bf16.mxu0 %v10494_v11  ;;  %1614 = vmatprep.subr.bf16.mxu1 %v10496_v13  ;;  %v10595_v11 = vcombine.low %v507_v3, %v523_v4  ;;  %v428_v13 = vld [vmem:[#allocation4 + $0xc0] sm:$0xff]  ;;  %v10539_v4 = vcombine.low %v447_v57, %v463_v58 }
  0xec   : > { %v10502_v17 = vcombine.high %v412_v12, %v428_v13  ;;  %v10501_v24 = vcombine.low %v412_v12, %v428_v13  ;;  %v10571_v13 = vcombine.low %v479_v1, %v495_v2 }
  0xed   : > { %10618 = vmatmul.mubr.msk.bf16.vlgmr.msra.gmra.mrb[4].mxu0 %vm1308_vm1, %v14118_v44  ;;  %10620 = vmatmul.mubr.msk.bf16.vlgmr.msra.gmra.mrb[4].mxu1 %vm1308_vm1, %v14118_v44 }
  0xee   : > { %1574 = vmatpush1.bf16.msra.mxu0 %v10493_v18  ;;  %1615 = vmatpush1.bf16.msra.mxu1 %v10495_v19  ;;  %v1356_v18 = vsel %vm1312_vm0, %v10595_v11, 0  ;;  %v10504_v19 = vcombine.high %v413_v14, %v429_v15  ;;  %v527_v11 = vld [vmem:[#allocation4 + $0x3d8] sm:$0x33] }
  0xef   : > { %1575 = vmatprep.subr.bf16.mxu0 %v10526_v20  ;;  %1616 = vmatprep.subr.bf16.mxu1 %v10528_v21  ;;  %v444_v20 = vld [vmem:[#allocation4 + $0x140] sm:$0xff] }
  0xf0   : > { %1605 = vmatprep.mubr.bf16.mxu0 %v13817_v8  ;;  %1646 = vmatprep.mubr.bf16.mxu1 %v13817_v8  ;;  %v460_v21 = vld [vmem:[#allocation4 + $0x1c0] sm:$0xff] }
  0xf1   : > { %v10533_v32 = vcombine.low %v444_v20, %v460_v21 }
  0xf2   : > { %1576 = vmatpush1.bf16.msra.mxu0 %v10525_v26  ;;  %1617 = vmatpush1.bf16.msra.mxu1 %v10527_v27  ;;  %v10534_v26 = vcombine.high %v444_v20, %v460_v21  ;;  %v10536_v27 = vcombine.high %v445_v22, %v461_v23  ;;  %v417_v20 = vld [vmem:[#allocation4 + $0x68] sm:$0xff] }
  0xf3   : > { %1577 = vmatprep.subr.bf16.mxu0 %v10558_v28  ;;  %1618 = vmatprep.subr.bf16.mxu1 %v10560_v29  ;;  %v476_v28 = vld [vmem:[#allocation4 + $0x240] sm:$0xff]  ;;  %v433_v21 = vld [vmem:[#allocation4 + $0xe8] sm:$0xff] }
  0xf4   : > { %v492_v29 = vld [vmem:[#allocation4 + $0x2c0] sm:$0xff] }
  0xf5   : > { %v10565_v40 = vcombine.low %v476_v28, %v492_v29 }
  0xf6   : > { %1578 = vmatpush1.bf16.msra.mxu0 %v10557_v34  ;;  %1619 = vmatpush1.bf16.msra.mxu1 %v10559_v35  ;;  %v10566_v34 = vcombine.high %v476_v28, %v492_v29  ;;  %v10568_v35 = vcombine.high %v477_v30, %v493_v31  ;;  %v449_v28 = vld [vmem:[#allocation4 + $0x168] sm:$0xff]  ;;  %v10511_v31 = vcombine.low %v417_v20, %v433_v21 }
  0xf7   : > { %10621 = vmatprep.subr.msk.bf16.mxu0 %vm1312_vm0, %v10590_v36  ;;  %10623 = vmatprep.subr.msk.bf16.mxu1 %vm1312_vm0, %v10592_v38  ;;  %v508_v36 = vld [vmem:[#allocation4 + $0x340] sm:$0xff]  ;;  %v509_v38 = vld [vmem:[#allocation4 + $0x348] sm:$0xff] }
  0xf8   : > { %v10598_v42 = vcombine.high %v508_v36, %v524_v37  ;;  %v10597_v43 = vcombine.low %v508_v36, %v524_v37  ;;  %v465_v29 = vld [vmem:[#allocation4 + $0x1e8] sm:$0xff] }
  0xf9   : > { %v481_v36 = vld [vmem:[#allocation4 + $0x268] sm:$0xff] }
  0xfa   : > { %1580 = vmatpush1.bf16.msra.mxu0 %v1338_v45  ;;  %1621 = vmatpush1.bf16.msra.mxu1 %v1344_v47  ;;  %v10600_v45 = vcombine.high %v509_v38, %v525_v39  ;;  %v414_v47 = vld [vmem:[#allocation4 + $0x50] sm:$0xff]  ;;  %v1362_v51 = vsel %vm1312_vm0, %v10597_v43, 0  ;;  %v497_v37 = vld [vmem:[#allocation4 + $0x2e8] sm:$0xff]  ;;  %v528_v43 = vld [vmem:[#allocation4 + $0x3e0] sm:$0x33] }
  0xfb   : > { %1655 = vmatprep.subr.bf16.mxu0 %v10498_v46  ;;  %1696 = vmatprep.subr.bf16.mxu1 %v10500_v48  ;;  %v10599_v46 = vcombine.low %v509_v38, %v525_v39  ;;  %v430_v48 = vld [vmem:[#allocation4 + $0xd0] sm:$0xff]  ;;  %v10543_v39 = vcombine.low %v449_v28, %v465_v29 }
  0xfc   : > { %v10506_v52 = vcombine.high %v414_v47, %v430_v48  ;;  %v10505_v59 = vcombine.low %v414_v47, %v430_v48  ;;  %v10575_v48 = vcombine.low %v481_v36, %v497_v37 }
  0xfd   : > { %10622 = vmatmul.mubr.msk.bf16.vlgmr.msra.gmra.mrb[8].mxu0 %vm1308_vm1, %v14118_v44  ;;  %10624 = vmatmul.mubr.msk.bf16.vlgmr.msra.gmra.mrb[8].mxu1 %vm1308_vm1, %v14118_v44 }
  0xfe   : > { %1656 = vmatpush1.bf16.msra.mxu0 %v10497_v53  ;;  %1697 = vmatpush1.bf16.msra.mxu1 %v10499_v54  ;;  %v1368_v53 = vsel %vm1312_vm0, %v10599_v46, 0  ;;  %v10508_v54 = vcombine.high %v415_v49, %v431_v50  ;;  %v529_v46 = vld [vmem:[#allocation4 + $0x3e8] sm:$0x33] }
  0xff   : > { %1657 = vmatprep.subr.bf16.mxu0 %v10530_v55  ;;  %1698 = vmatprep.subr.bf16.mxu1 %v10532_v56  ;;  %v446_v55 = vld [vmem:[#allocation4 + $0x150] sm:$0xff] }
 0x100   : > { %1687 = vmatprep.mubr.bf16.mxu0 %v13817_v8  ;;  %1728 = vmatprep.mubr.bf16.mxu1 %v13817_v8  ;;  %v462_v56 = vld [vmem:[#allocation4 + $0x1d0] sm:$0xff] }
 0x101   : > { %v10537_v3 = vcombine.low %v446_v55, %v462_v56 }
 0x102   : > { %1658 = vmatpush1.bf16.msra.mxu0 %v10529_v61  ;;  %1699 = vmatpush1.bf16.msra.mxu1 %v10531_v62  ;;  %v10538_v61 = vcombine.high %v446_v55, %v462_v56  ;;  %v10540_v62 = vcombine.high %v447_v57, %v463_v58  ;;  %v419_v55 = vld [vmem:[#allocation4 + $0x78] sm:$0xff] }
 0x103   : > { %1659 = vmatprep.subr.bf16.mxu0 %v10562_v63  ;;  %1700 = vmatprep.subr.bf16.mxu1 %v10564_v0  ;;  %v478_v63 = vld [vmem:[#allocation4 + $0x250] sm:$0xff]  ;;  %v435_v56 = vld [vmem:[#allocation4 + $0xf8] sm:$0xff] }
 0x104   : > { %v494_v0 = vld [vmem:[#allocation4 + $0x2d0] sm:$0xff] }
 0x105   : > { %v10569_v12 = vcombine.low %v478_v63, %v494_v0 }
 0x106   : > { %1660 = vmatpush1.bf16.msra.mxu0 %v10561_v5  ;;  %1701 = vmatpush1.bf16.msra.mxu1 %v10563_v6  ;;  %v10570_v5 = vcombine.high %v478_v63, %v494_v0  ;;  %v10572_v6 = vcombine.high %v479_v1, %v495_v2  ;;  %v451_v63 = vld [vmem:[#allocation4 + $0x178] sm:$0xff]  ;;  %v10515_v2 = vcombine.low %v419_v55, %v435_v56 }
 0x107   : > { %10625 = vmatprep.subr.msk.bf16.mxu0 %vm1312_vm0, %v10594_v7  ;;  %10627 = vmatprep.subr.msk.bf16.mxu1 %vm1312_vm0, %v10596_v10  ;;  %v510_v7 = vld [vmem:[#allocation4 + $0x350] sm:$0xff]  ;;  %v511_v10 = vld [vmem:[#allocation4 + $0x358] sm:$0xff] }
 0x108   : > { %v10602_v14 = vcombine.high %v510_v7, %v526_v9  ;;  %v10601_v15 = vcombine.low %v510_v7, %v526_v9  ;;  %v467_v0 = vld [vmem:[#allocation4 + $0x1f8] sm:$0xff] }
 0x109   : > { %v483_v7 = vld [vmem:[#allocation4 + $0x278] sm:$0xff] }
 0x10a   : > { %1662 = vmatpush1.bf16.msra.mxu0 %v1350_v16  ;;  %1703 = vmatpush1.bf16.msra.mxu1 %v1356_v18  ;;  %v10604_v16 = vcombine.high %v511_v10, %v527_v11  ;;  %v416_v18 = vld [vmem:[#allocation4 + $0x60] sm:$0xff]  ;;  %v1374_v22 = vsel %vm1312_vm0, %v10601_v15, 0  ;;  %v499_v9 = vld [vmem:[#allocation4 + $0x2f8] sm:$0xff]  ;;  %v530_v15 = vld [vmem:[#allocation4 + $0x3f0] sm:$0x33] }
 0x10b   : > { %1737 = vmatprep.subr.bf16.mxu0 %v10502_v17  ;;  %1778 = vmatprep.subr.bf16.mxu1 %v10504_v19  ;;  %v10603_v17 = vcombine.low %v511_v10, %v527_v11  ;;  %v432_v19 = vld [vmem:[#allocation4 + $0xe0] sm:$0xff]  ;;  %v10547_v11 = vcombine.low %v451_v63, %v467_v0 }
 0x10c   : > { %v10510_v23 = vcombine.high %v416_v18, %v432_v19  ;;  %v10509_v30 = vcombine.low %v416_v18, %v432_v19  ;;  %v10579_v19 = vcombine.low %v483_v7, %v499_v9 }
 0x10d   : > { %10626 = vmatmul.mubr.msk.bf16.vlgmr.msra.gmra.mrb[12].mxu0 %vm1308_vm1, %v14118_v44  ;;  %10628 = vmatmul.mubr.msk.bf16.vlgmr.msra.gmra.mrb[12].mxu1 %vm1308_vm1, %v14118_v44 }
 0x10e   : > { %1738 = vmatpush1.bf16.msra.mxu0 %v10501_v24  ;;  %1779 = vmatpush1.bf16.msra.mxu1 %v10503_v25  ;;  %v1380_v24 = vsel %vm1312_vm0, %v10603_v17, 0  ;;  %v10512_v25 = vcombine.high %v417_v20, %v433_v21  ;;  %v531_v17 = vld [vmem:[#allocation4 + $0x3f8] sm:$0x33] }
 0x10f   : > { %1739 = vmatprep.subr.bf16.mxu0 %v10534_v26  ;;  %1780 = vmatprep.subr.bf16.mxu1 %v10536_v27  ;;  %v448_v26 = vld [vmem:[#allocation4 + $0x160] sm:$0xff] }
 0x110   : > { %1769 = vmatprep.mubr.bf16.mxu0 %v13817_v8  ;;  %1810 = vmatprep.mubr.bf16.mxu1 %v13817_v8  ;;  %v464_v27 = vld [vmem:[#allocation4 + $0x1e0] sm:$0xff] }
 0x111   : > { %v10541_v38 = vcombine.low %v448_v26, %v464_v27 }
 0x112   : > { %1740 = vmatpush1.bf16.msra.mxu0 %v10533_v32  ;;  %1781 = vmatpush1.bf16.msra.mxu1 %v10535_v33  ;;  %v10542_v32 = vcombine.high %v448_v26, %v464_v27  ;;  %v10544_v33 = vcombine.high %v449_v28, %v465_v29  ;;  %v532_v28 = vld [vmem:[#allocation7] sm:$0xff] }
 0x113   : > { %1741 = vmatprep.subr.bf16.mxu0 %v10566_v34  ;;  %1782 = vmatprep.subr.bf16.mxu1 %v10568_v35  ;;  %v480_v34 = vld [vmem:[#allocation4 + $0x260] sm:$0xff] }
 0x114   : > { %v496_v35 = vld [vmem:[#allocation4 + $0x2e0] sm:$0xff] }
 0x115   : > { %v10573_v47 = vcombine.low %v480_v34, %v496_v35 }
 0x116   : > { %1742 = vmatpush1.bf16.msra.mxu0 %v10565_v40  ;;  %1783 = vmatpush1.bf16.msra.mxu1 %v10567_v41  ;;  %v10574_v40 = vcombine.high %v480_v34, %v496_v35  ;;  %v10576_v41 = vcombine.high %v481_v36, %v497_v37  ;;  %v13819_v35 = vmov 0.0  }
 0x117   : > { %10629 = vmatprep.subr.msk.bf16.mxu0 %vm1312_vm0, %v10598_v42  ;;  %10631 = vmatprep.subr.msk.bf16.mxu1 %vm1312_vm0, %v10600_v45  ;;  %v512_v42 = vld [vmem:[#allocation4 + $0x360] sm:$0xff]  ;;  %v513_v45 = vld [vmem:[#allocation4 + $0x368] sm:$0xff]  ;;  %2281 = vst [vmem:[#allocation3] sm:$0x3] %v13819_v35 }
 0x118   : > { %v10606_v49 = vcombine.high %v512_v42, %v528_v43  ;;  %v10605_v50 = vcombine.low %v512_v42, %v528_v43 }
 0x11a   : > { %1744 = vmatpush1.bf16.msra.mxu0 %v1362_v51  ;;  %1785 = vmatpush1.bf16.msra.mxu1 %v1368_v53  ;;  %v10608_v51 = vcombine.high %v513_v45, %v529_v46  ;;  %v418_v53 = vld [vmem:[#allocation4 + $0x70] sm:$0xff]  ;;  %v1386_v57 = vsel %vm1312_vm0, %v10605_v50, 0 }
 0x11b   : > { %1819 = vmatprep.subr.bf16.mxu0 %v10506_v52  ;;  %1860 = vmatprep.subr.bf16.mxu1 %v10508_v54  ;;  %v10607_v52 = vcombine.low %v513_v45, %v529_v46  ;;  %v434_v54 = vld [vmem:[#allocation4 + $0xf0] sm:$0xff] }
 0x11c   : > { %v10514_v58 = vcombine.high %v418_v53, %v434_v54  ;;  %v10513_v1 = vcombine.low %v418_v53, %v434_v54 }
 0x11d   : > { %10630 = vmatmul.mubr.msk.bf16.vlgmr.msra.gmra.mrb[16].mxu0 %vm1308_vm1, %v14118_v44  ;;  %10632 = vmatmul.mubr.msk.bf16.vlgmr.msra.gmra.mrb[16].mxu1 %vm1308_vm1, %v14118_v44 }
 0x11e   : > { %1820 = vmatpush1.bf16.msra.mxu0 %v10505_v59  ;;  %1861 = vmatpush1.bf16.msra.mxu1 %v10507_v60  ;;  %v1392_v59 = vsel %vm1312_vm0, %v10607_v52, 0  ;;  %v10516_v60 = vcombine.high %v419_v55, %v435_v56 }
 0x11f   : > { %1821 = vmatprep.subr.bf16.mxu0 %v10538_v61  ;;  %1862 = vmatprep.subr.bf16.mxu1 %v10540_v62  ;;  %v450_v61 = vld [vmem:[#allocation4 + $0x170] sm:$0xff] }
 0x120   : > { %1851 = vmatprep.mubr.bf16.mxu0 %v13817_v8  ;;  %1892 = vmatprep.mubr.bf16.mxu1 %v13817_v8  ;;  %v466_v62 = vld [vmem:[#allocation4 + $0x1f0] sm:$0xff] }
 0x121   : > { %v10545_v10 = vcombine.low %v450_v61, %v466_v62 }
 0x122   : > { %1822 = vmatpush1.bf16.msra.mxu0 %v10537_v3  ;;  %1863 = vmatpush1.bf16.msra.mxu1 %v10539_v4  ;;  %v10546_v3 = vcombine.high %v450_v61, %v466_v62  ;;  %v10548_v4 = vcombine.high %v451_v63, %v467_v0 }
 0x123   : > { %1823 = vmatprep.subr.bf16.mxu0 %v10570_v5  ;;  %1864 = vmatprep.subr.bf16.mxu1 %v10572_v6  ;;  %v482_v5 = vld [vmem:[#allocation4 + $0x270] sm:$0xff] }
 0x124   : > { %v498_v6 = vld [vmem:[#allocation4 + $0x2f0] sm:$0xff] }
 0x125   : > { %v10577_v18 = vcombine.low %v482_v5, %v498_v6 }
 0x126   : > { %1824 = vmatpush1.bf16.msra.mxu0 %v10569_v12  ;;  %1865 = vmatpush1.bf16.msra.mxu1 %v10571_v13  ;;  %v10578_v12 = vcombine.high %v482_v5, %v498_v6  ;;  %v10580_v13 = vcombine.high %v483_v7, %v499_v9 }
 0x127   : > { %10633 = vmatprep.subr.msk.bf16.mxu0 %vm1312_vm0, %v10602_v14  ;;  %10635 = vmatprep.subr.msk.bf16.mxu1 %vm1312_vm0, %v10604_v16  ;;  %v514_v14 = vld [vmem:[#allocation4 + $0x370] sm:$0xff]  ;;  %v515_v16 = vld [vmem:[#allocation4 + $0x378] sm:$0xff] }
 0x128   : > { %v10610_v20 = vcombine.high %v514_v14, %v530_v15  ;;  %v10609_v21 = vcombine.low %v514_v14, %v530_v15 }
 0x12a   : > { %1826 = vmatpush1.bf16.msra.mxu0 %v1374_v22  ;;  %1867 = vmatpush1.bf16.msra.mxu1 %v1380_v24  ;;  %v10612_v22 = vcombine.high %v515_v16, %v531_v17  ;;  %v1398_v24 = vsel %vm1312_vm0, %v10609_v21, 0 }
 0x12b   : > { %1901 = vmatprep.subr.bf16.mxu0 %v10510_v23  ;;  %1942 = vmatprep.subr.bf16.mxu1 %v10512_v25  ;;  %v10611_v23 = vcombine.low %v515_v16, %v531_v17  ;;  %v540_v25 = vlaneseq }
 0x12d   : > { %10634 = vmatmul.mubr.msk.bf16.vlgmr.msra.gmra.mrb[20].mxu0 %vm1308_vm1, %v14118_v44  ;;  %10636 = vmatmul.mubr.msk.bf16.vlgmr.msra.gmra.mrb[20].mxu1 %vm1308_vm1, %v14118_v44  ;;  %v541_v26 = vshrl.u32 %v540_v25, 7 }
 0x12e   : > { %1902 = vmatpush1.bf16.msra.mxu0 %v10509_v30  ;;  %1943 = vmatpush1.bf16.msra.mxu1 %v10511_v31 }
 0x12f   : > { %1903 = vmatprep.subr.bf16.mxu0 %v10542_v32  ;;  %1944 = vmatprep.subr.bf16.mxu1 %v10544_v33  ;;  %v14194_v27 = vsub.s32 0, %v541_v26  ;;  %v14196_v29 = vsub.s32 2, %v541_v26  ;;  %v14198_v30 = vsub.s32 1, %v541_v26  ;;  %v14200_v31 = vsub.s32 3, %v541_v26 }
 0x130   : > { %1933 = vmatprep.mubr.bf16.mxu0 %v13817_v8  ;;  %1974 = vmatprep.mubr.bf16.mxu1 %v13817_v8  ;;  %v13818_v32 = vmov 1983009808   ;;  %v14210_v61 = vsub.s32 4, %v541_v26  ;;  %v14212_v62 = vsub.s32 6, %v541_v26  ;;  %v14214_v63 = vsub.s32 5, %v541_v26 }
 0x131   : > { %v2132_v33 = vunpack.c.l.s4 %v13818_v32  ;;  %v543_v34 = vrot.slane %v532_v28, %v14194_v27  ;;  %v551_v36 = vrot.slane %v532_v28, %v14196_v29  ;;  %v555_v37 = vrot.slane %v532_v28, %v14200_v31 }
 0x132   : > { %1904 = vmatpush1.bf16.msra.mxu0 %v10541_v38  ;;  %1945 = vmatpush1.bf16.msra.mxu1 %v10543_v39 }
 0x133   : > { %1905 = vmatprep.subr.bf16.mxu0 %v10574_v40  ;;  %1946 = vmatprep.subr.bf16.mxu1 %v10576_v41  ;;  %v2133_v39 = vunpack.c.0.s8 %v2132_v33 }
 0x135   : > { %v14206_v54 = vsub.s32 %v2133_v39, %v541_v26 }
 0x136   : > { %1906 = vmatpush1.bf16.msra.mxu0 %v10573_v47  ;;  %1947 = vmatpush1.bf16.msra.mxu1 %v10575_v48 }
 0x137   : > { %10637 = vmatprep.subr.msk.bf16.mxu0 %vm1312_vm0, %v10606_v49  ;;  %10639 = vmatprep.subr.msk.bf16.mxu1 %vm1312_vm0, %v10608_v51 }
 0x13a   : > { %1908 = vmatpush1.bf16.msra.mxu0 %v1386_v57  ;;  %1949 = vmatpush1.bf16.msra.mxu1 %v1392_v59 }
 0x13b   : > { %1983 = vmatprep.subr.bf16.mxu0 %v10514_v58  ;;  %2024 = vmatprep.subr.bf16.mxu1 %v10516_v60 }
 0x13d   : > { %10638 = vmatmul.mubr.msk.bf16.vlgmr.msra.gmra.mrb[24].mxu0 %vm1308_vm1, %v14118_v44  ;;  %10640 = vmatmul.mubr.msk.bf16.vlgmr.msra.gmra.mrb[24].mxu1 %vm1308_vm1, %v14118_v44 }
 0x13e   : > { %1984 = vmatpush1.bf16.msra.mxu0 %v10513_v1  ;;  %2025 = vmatpush1.bf16.msra.mxu1 %v10515_v2  ;;  %v14216_v1 = vsub.s32 7, %v541_v26  ;;  %v559_v2 = vrot.slane %v532_v28, %v14210_v61  ;;  %v533_v26 = vld [vmem:[#allocation7 + $0x8] sm:$0xff] }
 0x13f   : > { %1985 = vmatprep.subr.bf16.mxu0 %v10546_v3  ;;  %2026 = vmatprep.subr.bf16.mxu1 %v10548_v4  ;;  %v567_v3 = vrot.slane %v532_v28, %v14212_v62  ;;  %v563_v4 = vrot.slane %v532_v28, %v14214_v63  ;;  %v575_v32 = vrot.slane %v533_v26, %v14194_v27 }
 0x140   : > { %2015 = vmatprep.mubr.bf16.mxu0 %v13817_v8  ;;  %2056 = vmatprep.mubr.bf16.mxu1 %v13817_v8  ;;  %v1404_v8 = vsel %vm1312_vm0, %v10611_v23, 0  ;;  %v571_v5 = vrot.slane %v532_v28, %v14216_v1  ;;  %v583_v33 = vrot.slane %v533_v26, %v14196_v29  ;;  %v587_v35 = vrot.slane %v533_v26, %v14200_v31 }
 0x142   : > { %1986 = vmatpush1.bf16.msra.mxu0 %v10545_v10  ;;  %2027 = vmatpush1.bf16.msra.mxu1 %v10547_v11 }
 0x143   : > { %1987 = vmatprep.subr.bf16.mxu0 %v10578_v12  ;;  %2028 = vmatprep.subr.bf16.mxu1 %v10580_v13 }
 0x146   : > { %1988 = vmatpush1.bf16.msra.mxu0 %v10577_v18  ;;  %2029 = vmatpush1.bf16.msra.mxu1 %v10579_v19 }
 0x147   : > { %10641 = vmatprep.subr.msk.bf16.mxu0 %vm1312_vm0, %v10610_v20  ;;  %10643 = vmatprep.subr.msk.bf16.mxu1 %vm1312_vm0, %v10612_v22 }
 0x14a   : > { %1990 = vmatpush1.bf16.msra.mxu0 %v1398_v24  ;;  %2031 = vmatpush1.bf16.msra.mxu1 %v1404_v8 }
 0x14d   : > { %10642 = vmatmul.mubr.msk.bf16.vlgmr.msra.gmra.mrb[28].mxu0 %vm1308_vm1, %v14118_v44  ;;  %10644 = vmatmul.mubr.msk.bf16.vlgmr.msra.gmra.mrb[28].mxu1 %vm1308_vm1, %v14118_v44  ;;  %v547_v44 = vrot.slane %v532_v28, %v14198_v30 }
 0x1b0   : > { %v1443_v38 = vpop.f32.mrb[0].mxu0  ;;  %v1484_v41 = vpop.f32.mrb[0].mxu1 }
 0x1b1   : > { %v1444_v40 = vadd.f32 %v1443_v38, %v543_v34  ;;  %v1445_v42 = vpop.f32.mrb[1].mxu0  ;;  %v1485_v43 = vadd.f32 %v1484_v41, %v551_v36  ;;  %v1486_v46 = vpop.f32.mrb[1].mxu1  ;;  %v579_v34 = vrot.slane %v533_v26, %v14198_v30 }
 0x1b2   : > { %v1446_v45 = vadd.f32 %v1445_v42, %v547_v44  ;;  %v1447_v47 = vpop.f32.mrb[2].mxu0  ;;  %v1487_v49 = vadd.f32 %v1486_v46, %v555_v37  ;;  %v1488_v50 = vpop.f32.mrb[2].mxu1 }
 0x1b3   : > { %v2065_v48 = vmax.f32 %v1444_v40, 0.0  ;;  %v1448_v51 = vpop.f32.mrb[3].mxu0  ;;  %v2067_v52 = vmax.f32 %v1485_v43, 0.0  ;;  %v1489_v55 = vpop.f32.mrb[3].mxu1 }
 0x1b4   : > { %v2066_v53 = vmax.f32 %v1446_v45, 0.0  ;;  %v2068_v56 = vmax.f32 %v1487_v49, 0.0 }
 0x1b6   : > { %v2129_v57 = vcombine.low %v2065_v48, %v2066_v53  ;;  %v2130_v58 = vcombine.low %v2067_v52, %v2068_v56 }
 0x1b8   : > { %v2137_v59 = vrot.slane %v2129_v57, %v14206_v54  ;;  %v2144_v60 = vrot.slane %v2130_v58, %v14206_v54  ;;  %v591_v58 = vrot.slane %v533_v26, %v14210_v61 }
 0x1ba   : > { %v2145_v0 = vcombine.low %v2137_v59, %v2144_v60  ;;  %v599_v59 = vrot.slane %v533_v26, %v14212_v62  ;;  %v595_v60 = vrot.slane %v533_v26, %v14214_v63 }
 0x1bc   : > { %2273 = vst [vmem:[#allocation2] sm:$0xff] %v2145_v0  ;;  %v603_v0 = vrot.slane %v533_v26, %v14216_v1 }
 0x1c0   : > { %v1525_v6 = vpop.f32.mrb[4].mxu0  ;;  %v1566_v9 = vpop.f32.mrb[4].mxu1 }
 0x1c1   : > { %v1526_v7 = vadd.f32 %v1525_v6, %v559_v2  ;;  %v1527_v10 = vpop.f32.mrb[5].mxu0  ;;  %v1567_v11 = vadd.f32 %v1566_v9, %v567_v3  ;;  %v1568_v13 = vpop.f32.mrb[5].mxu1 }
 0x1c2   : > { %v1528_v12 = vadd.f32 %v1527_v10, %v563_v4  ;;  %v1529_v14 = vpop.f32.mrb[6].mxu0  ;;  %v1569_v16 = vadd.f32 %v1568_v13, %v571_v5  ;;  %v1570_v17 = vpop.f32.mrb[6].mxu1 }
 0x1c3   : > { %v2069_v15 = vmax.f32 %v1526_v7, 0.0  ;;  %v1530_v18 = vpop.f32.mrb[7].mxu0  ;;  %v2071_v19 = vmax.f32 %v1567_v11, 0.0  ;;  %v1571_v21 = vpop.f32.mrb[7].mxu1 }
 0x1c4   : > { %v2070_v20 = vmax.f32 %v1528_v12, 0.0  ;;  %v2072_v22 = vmax.f32 %v1569_v16, 0.0 }
 0x1c6   : > { %v2146_v23 = vcombine.low %v2069_v15, %v2070_v20  ;;  %v2147_v24 = vcombine.low %v2071_v19, %v2072_v22 }
 0x1c8   : > { %v2154_v8 = vrot.slane %v2146_v23, %v14206_v54  ;;  %v2161_v25 = vrot.slane %v2147_v24, %v14206_v54  ;;  %v534_v23 = vld [vmem:[#allocation7 + $0x10] sm:$0xff] }
 0x1c9   : > { %v611_v26 = vrot.slane %v534_v23, %v14198_v30 }
 0x1ca   : > { %v2162_v28 = vcombine.low %v2154_v8, %v2161_v25  ;;  %v607_v8 = vrot.slane %v534_v23, %v14194_v27  ;;  %v615_v25 = vrot.slane %v534_v23, %v14196_v29 }
 0x1cc   : > { %2274 = vst [vmem:[#allocation2 + $0x8] sm:$0xff] %v2162_v28  ;;  %v619_v28 = vrot.slane %v534_v23, %v14200_v31 }
 0x1d0   : > { %v1607_v36 = vpop.f32.mrb[8].mxu0  ;;  %v1648_v37 = vpop.f32.mrb[8].mxu1 }
 0x1d1   : > { %v1608_v44 = vadd.f32 %v1607_v36, %v575_v32  ;;  %v1609_v38 = vpop.f32.mrb[9].mxu0  ;;  %v1649_v39 = vadd.f32 %v1648_v37, %v583_v33  ;;  %v1650_v41 = vpop.f32.mrb[9].mxu1 }
 0x1d2   : > { %v1610_v40 = vadd.f32 %v1609_v38, %v579_v34  ;;  %v1611_v42 = vpop.f32.mrb[10].mxu0  ;;  %v1651_v45 = vadd.f32 %v1650_v41, %v587_v35  ;;  %v1652_v46 = vpop.f32.mrb[10].mxu1 }
 0x1d3   : > { %v2073_v43 = vmax.f32 %v1608_v44, 0.0  ;;  %v1612_v47 = vpop.f32.mrb[11].mxu0  ;;  %v2075_v48 = vmax.f32 %v1649_v39, 0.0  ;;  %v1653_v50 = vpop.f32.mrb[11].mxu1 }
 0x1d4   : > { %v2074_v49 = vmax.f32 %v1610_v40, 0.0  ;;  %v2076_v51 = vmax.f32 %v1651_v45, 0.0 }
 0x1d6   : > { %v2163_v52 = vcombine.low %v2073_v43, %v2074_v49  ;;  %v2164_v53 = vcombine.low %v2075_v48, %v2076_v51 }
 0x1d8   : > { %v2171_v55 = vrot.slane %v2163_v52, %v14206_v54  ;;  %v2178_v56 = vrot.slane %v2164_v53, %v14206_v54  ;;  %v623_v53 = vrot.slane %v534_v23, %v14210_v61 }
 0x1da   : > { %v2179_v57 = vcombine.low %v2171_v55, %v2178_v56  ;;  %v631_v55 = vrot.slane %v534_v23, %v14212_v62  ;;  %v627_v56 = vrot.slane %v534_v23, %v14214_v63 }
 0x1dc   : > { %2275 = vst [vmem:[#allocation2 + $0x10] sm:$0xff] %v2179_v57  ;;  %v635_v57 = vrot.slane %v534_v23, %v14216_v1 }
 0x1e0   : > { %v1689_v2 = vpop.f32.mrb[12].mxu0  ;;  %v1730_v4 = vpop.f32.mrb[12].mxu1 }
 0x1e1   : > { %v1690_v3 = vadd.f32 %v1689_v2, %v591_v58  ;;  %v1691_v5 = vpop.f32.mrb[13].mxu0  ;;  %v1731_v6 = vadd.f32 %v1730_v4, %v599_v59  ;;  %v1732_v9 = vpop.f32.mrb[13].mxu1 }
 0x1e2   : > { %v1692_v7 = vadd.f32 %v1691_v5, %v595_v60  ;;  %v1693_v10 = vpop.f32.mrb[14].mxu0  ;;  %v1733_v12 = vadd.f32 %v1732_v9, %v603_v0  ;;  %v1734_v13 = vpop.f32.mrb[14].mxu1 }
 0x1e3   : > { %v2077_v11 = vmax.f32 %v1690_v3, 0.0  ;;  %v1694_v14 = vpop.f32.mrb[15].mxu0  ;;  %v2079_v15 = vmax.f32 %v1731_v6, 0.0  ;;  %v1735_v17 = vpop.f32.mrb[15].mxu1 }
 0x1e4   : > { %v2078_v16 = vmax.f32 %v1692_v7, 0.0  ;;  %v2080_v18 = vmax.f32 %v1733_v12, 0.0 }
 0x1e6   : > { %v2180_v19 = vcombine.low %v2077_v11, %v2078_v16  ;;  %v2181_v20 = vcombine.low %v2079_v15, %v2080_v18 }
 0x1e8   : > { %v2188_v21 = vrot.slane %v2180_v19, %v14206_v54  ;;  %v2195_v22 = vrot.slane %v2181_v20, %v14206_v54  ;;  %v535_v19 = vld [vmem:[#allocation7 + $0x18] sm:$0xff] }
 0x1e9   : > { %v643_v23 = vrot.slane %v535_v19, %v14198_v30 }
 0x1ea   : > { %v2196_v24 = vcombine.low %v2188_v21, %v2195_v22  ;;  %v639_v21 = vrot.slane %v535_v19, %v14194_v27  ;;  %v647_v22 = vrot.slane %v535_v19, %v14196_v29 }
 0x1ec   : > { %2276 = vst [vmem:[#allocation2 + $0x18] sm:$0xff] %v2196_v24  ;;  %v651_v24 = vrot.slane %v535_v19, %v14200_v31 }
 0x1f0   : > { %v1771_v32 = vpop.f32.mrb[16].mxu0  ;;  %v1812_v34 = vpop.f32.mrb[16].mxu1 }
 0x1f1   : > { %v1772_v33 = vadd.f32 %v1771_v32, %v607_v8  ;;  %v1773_v35 = vpop.f32.mrb[17].mxu0  ;;  %v1813_v36 = vadd.f32 %v1812_v34, %v615_v25  ;;  %v1814_v37 = vpop.f32.mrb[17].mxu1 }
 0x1f2   : > { %v1774_v44 = vadd.f32 %v1773_v35, %v611_v26  ;;  %v1775_v38 = vpop.f32.mrb[18].mxu0  ;;  %v1815_v40 = vadd.f32 %v1814_v37, %v619_v28  ;;  %v1816_v41 = vpop.f32.mrb[18].mxu1 }
 0x1f3   : > { %v2081_v39 = vmax.f32 %v1772_v33, 0.0  ;;  %v1776_v42 = vpop.f32.mrb[19].mxu0  ;;  %v2083_v43 = vmax.f32 %v1813_v36, 0.0  ;;  %v1817_v46 = vpop.f32.mrb[19].mxu1 }
 0x1f4   : > { %v2082_v45 = vmax.f32 %v1774_v44, 0.0  ;;  %v2084_v47 = vmax.f32 %v1815_v40, 0.0  ;;  %v663_v46 = vrot.slane %v535_v19, %v14212_v62 }
 0x1f6   : > { %v2197_v48 = vcombine.low %v2081_v39, %v2082_v45  ;;  %v2198_v49 = vcombine.low %v2083_v43, %v2084_v47  ;;  %v655_v45 = vrot.slane %v535_v19, %v14210_v61  ;;  %v659_v47 = vrot.slane %v535_v19, %v14214_v63 }
 0x1f8   : > { %v2205_v50 = vrot.slane %v2197_v48, %v14206_v54  ;;  %v2212_v51 = vrot.slane %v2198_v49, %v14206_v54  ;;  %v667_v48 = vrot.slane %v535_v19, %v14216_v1 }
 0x1fa   : > { %v2213_v52 = vcombine.low %v2205_v50, %v2212_v51 }
 0x1fc   : > { %2277 = vst [vmem:[#allocation2 + $0x20] sm:$0xff] %v2213_v52 }
 0x200   : > { %v1853_v58 = vpop.f32.mrb[20].mxu0  ;;  %v1894_v60 = vpop.f32.mrb[20].mxu1 }
 0x201   : > { %v1854_v59 = vadd.f32 %v1853_v58, %v623_v53  ;;  %v1855_v0 = vpop.f32.mrb[21].mxu0  ;;  %v1895_v2 = vadd.f32 %v1894_v60, %v631_v55  ;;  %v1896_v4 = vpop.f32.mrb[21].mxu1 }
 0x202   : > { %v1856_v3 = vadd.f32 %v1855_v0, %v627_v56  ;;  %v1857_v5 = vpop.f32.mrb[22].mxu0  ;;  %v1897_v7 = vadd.f32 %v1896_v4, %v635_v57  ;;  %v1898_v9 = vpop.f32.mrb[22].mxu1 }
 0x203   : > { %v2085_v6 = vmax.f32 %v1854_v59, 0.0  ;;  %v1858_v10 = vpop.f32.mrb[23].mxu0  ;;  %v2087_v11 = vmax.f32 %v1895_v2, 0.0  ;;  %v1899_v13 = vpop.f32.mrb[23].mxu1 }
 0x204   : > { %v2086_v12 = vmax.f32 %v1856_v3, 0.0  ;;  %v2088_v14 = vmax.f32 %v1897_v7, 0.0 }
 0x206   : > { %v2214_v15 = vcombine.low %v2085_v6, %v2086_v12  ;;  %v2215_v16 = vcombine.low %v2087_v11, %v2088_v14 }
 0x208   : > { %v2222_v17 = vrot.slane %v2214_v15, %v14206_v54  ;;  %v2229_v18 = vrot.slane %v2215_v16, %v14206_v54 }
 0x20a   : > { %v2230_v20 = vcombine.low %v2222_v17, %v2229_v18 }
 0x20c   : > { %2278 = vst [vmem:[#allocation2 + $0x28] sm:$0xff] %v2230_v20 }
 0x210   : > { %v1935_v8 = vpop.f32.mrb[24].mxu0  ;;  %v1976_v26 = vpop.f32.mrb[24].mxu1 }
 0x211   : > { %v1936_v25 = vadd.f32 %v1935_v8, %v639_v21  ;;  %v1937_v28 = vpop.f32.mrb[25].mxu0  ;;  %v1977_v32 = vadd.f32 %v1976_v26, %v647_v22  ;;  %v1978_v34 = vpop.f32.mrb[25].mxu1 }
 0x212   : > { %v1938_v33 = vadd.f32 %v1937_v28, %v643_v23  ;;  %v1939_v35 = vpop.f32.mrb[26].mxu0  ;;  %v1979_v44 = vadd.f32 %v1978_v34, %v651_v24  ;;  %v1980_v37 = vpop.f32.mrb[26].mxu1 }
 0x213   : > { %v2089_v36 = vmax.f32 %v1936_v25, 0.0  ;;  %v1940_v38 = vpop.f32.mrb[27].mxu0  ;;  %v2091_v39 = vmax.f32 %v1977_v32, 0.0  ;;  %v1981_v40 = vpop.f32.mrb[27].mxu1 }
 0x214   : > { %v2090_v27 = vmax.f32 %v1938_v33, 0.0  ;;  %v2092_v29 = vmax.f32 %v1979_v44, 0.0 }
 0x216   : > { %v2231_v41 = vcombine.low %v2089_v36, %v2090_v27  ;;  %v2232_v30 = vcombine.low %v2091_v39, %v2092_v29 }
 0x218   : > { %v2239_v31 = vrot.slane %v2231_v41, %v14206_v54  ;;  %v2246_v42 = vrot.slane %v2232_v30, %v14206_v54 }
 0x21a   : > { %v2247_v43 = vcombine.low %v2239_v31, %v2246_v42 }
 0x21c   : > { %2279 = vst [vmem:[#allocation2 + $0x30] sm:$0xff] %v2247_v43 }
 0x220   : > { %v2017_v49 = vpop.f32.mrb[28].mxu0  ;;  %v2058_v51 = vpop.f32.mrb[28].mxu1 }
 0x221   : > { %v2018_v50 = vadd.f32 %v2017_v49, %v655_v45  ;;  %v2019_v52 = vpop.f32.mrb[29].mxu0  ;;  %v2059_v53 = vadd.f32 %v2058_v51, %v663_v46  ;;  %v2060_v56 = vpop.f32.mrb[29].mxu1 }
 0x222   : > { %v2020_v55 = vadd.f32 %v2019_v52, %v659_v47  ;;  %v2021_v57 = vpop.f32.mrb[30].mxu0  ;;  %v2061_v59 = vadd.f32 %v2060_v56, %v667_v48  ;;  %v2062_v60 = vpop.f32.mrb[30].mxu1 }
 0x223   : > { %v2093_v58 = vmax.f32 %v2018_v50, 0.0  ;;  %v2022_v0 = vpop.f32.mrb[31].mxu0  ;;  %v2095_v2 = vmax.f32 %v2059_v53, 0.0  ;;  %v2063_v3 = vpop.f32.mrb[31].mxu1 }
 0x224   : > { %v2094_v61 = vmax.f32 %v2020_v55, 0.0  ;;  %v2096_v62 = vmax.f32 %v2061_v59, 0.0 }
 0x226   : > { %v2248_v4 = vcombine.low %v2093_v58, %v2094_v61  ;;  %v2249_v63 = vcombine.low %v2095_v2, %v2096_v62 }
 0x228   : > { %v2256_v1 = vrot.slane %v2248_v4, %v14206_v54  ;;  %v2263_v5 = vrot.slane %v2249_v63, %v14206_v54 }
 0x22a   : > { %v2264_v6 = vcombine.low %v2256_v1, %v2263_v5 }
 0x22c   : > { %2280 = vst [vmem:[#allocation2 + $0x38] sm:$0xff] %v2264_v6 }
 0x22d PF: > { %v11976_v7 = vld [vmem:[%s14093_s8 + $0x4] ss:$16 sps:$4 sm:$0xff]   ;;  %v11978_v9 = vld [vmem:[%s14093_s8 + $0xc] ss:$16 sps:$4 sm:$0xff]   ;;  %v11980_v10 = vld [vmem:[%s14093_s8] ss:$16 sps:$4 sm:$0xff]   ;;  %v2302_v43 = vlaneseq }
 0x22e   : > { %8664 = vmatprep.subr.bf16.mxu0 %v11976_v7  ;;  %v11981_v54 = vld [vmem:[%s14093_s8 + $0x8] ss:$16 sps:$4 sm:$0xff]   ;;  %9320 = vmatprep.subr.bf16.mxu1 %v11978_v9  ;;  %v11982_v11 = vld [vmem:[%s14093_s8 + $0x24] ss:$16 sps:$4 sm:$0xff]   ;;  %v11984_v12 = vld [vmem:[%s14093_s8 + $0x2c] ss:$16 sps:$4 sm:$0xff]  }
 0x22f   : > { %8665 = vmatpush1.bf16.msra.mxu0 %v11980_v10  ;;  %9321 = vmatpush1.bf16.msra.mxu1 %v11981_v54  ;;  %v11986_v13 = vld [vmem:[%s14093_s8 + $0x20] ss:$16 sps:$4 sm:$0xff]   ;;  %v11987_v14 = vld [vmem:[%s14093_s8 + $0x28] ss:$16 sps:$4 sm:$0xff]   ;;  %v11988_v15 = vld [vmem:[%s14093_s8 + $0x44] ss:$16 sps:$4 sm:$0xff]  }
 0x230   : > { %8666 = vmatprep.subr.bf16.mxu0 %v11982_v11  ;;  %9322 = vmatprep.subr.bf16.mxu1 %v11984_v12  ;;  %v11990_v16 = vld [vmem:[%s14093_s8 + $0x4c] ss:$16 sps:$4 sm:$0xff]   ;;  %v11992_v17 = vld [vmem:[%s14093_s8 + $0x40] ss:$16 sps:$4 sm:$0xff]   ;;  %v11993_v18 = vld [vmem:[%s14093_s8 + $0x48] ss:$16 sps:$4 sm:$0xff]  }
 0x231   : > { %v11994_v19 = vld [vmem:[%s14093_s8 + $0x64] ss:$16 sps:$4 sm:$0xff]   ;;  %v11996_v20 = vld [vmem:[%s14093_s8 + $0x6c] ss:$16 sps:$4 sm:$0xff]   ;;  %v11998_v21 = vld [vmem:[%s14093_s8 + $0x60] ss:$16 sps:$4 sm:$0xff]  }
 0x232   : > { %v11999_v22 = vld [vmem:[%s14093_s8 + $0x68] ss:$16 sps:$4 sm:$0xff]   ;;  %v12000_v23 = vld [vmem:[%s14093_s8 + $0x84] ss:$16 sps:$4 sm:$0xff]   ;;  %v12002_v24 = vld [vmem:[%s14093_s8 + $0x8c] ss:$16 sps:$4 sm:$0xff]  }
 0x233   : > { %8667 = vmatpush1.bf16.msra.mxu0 %v11986_v13  ;;  %9323 = vmatpush1.bf16.msra.mxu1 %v11987_v14  ;;  %v12004_v8 = vld [vmem:[%s14093_s8 + $0x80] ss:$16 sps:$4 sm:$0xff]   ;;  %v12005_v25 = vld [vmem:[%s14093_s8 + $0x88] ss:$16 sps:$4 sm:$0xff]   ;;  %v12006_v26 = vld [vmem:[%s14093_s8 + $0xa4] ss:$16 sps:$4 sm:$0xff]  }
 0x234   : > { %8668 = vmatprep.subr.bf16.mxu0 %v11988_v15  ;;  %9324 = vmatprep.subr.bf16.mxu1 %v11990_v16  ;;  %v12008_v28 = vld [vmem:[%s14093_s8 + $0xac] ss:$16 sps:$4 sm:$0xff]   ;;  %v12010_v32 = vld [vmem:[%s14093_s8 + $0xa0] ss:$16 sps:$4 sm:$0xff]   ;;  %v12011_v33 = vld [vmem:[%s14093_s8 + $0xa8] ss:$16 sps:$4 sm:$0xff]  }
 0x235   : > { %v12012_v34 = vld [vmem:[%s14093_s8 + $0xc4] ss:$16 sps:$4 sm:$0xff]   ;;  %v12014_v35 = vld [vmem:[%s14093_s8 + $0xcc] ss:$16 sps:$4 sm:$0xff]   ;;  %v12016_v36 = vld [vmem:[%s14093_s8 + $0xc0] ss:$16 sps:$4 sm:$0xff]  }
 0x236   : > { %v12017_v44 = vld [vmem:[%s14093_s8 + $0xc8] ss:$16 sps:$4 sm:$0xff]   ;;  %v12018_v37 = vld [vmem:[%s14093_s8 + $0xe4] ss:$16 sps:$4 sm:$0xff]   ;;  %v12020_v38 = vld [vmem:[%s14093_s8 + $0xec] ss:$16 sps:$4 sm:$0xff]  }
 0x237   : > { %8669 = vmatpush1.bf16.msra.mxu0 %v11992_v17  ;;  %9325 = vmatpush1.bf16.msra.mxu1 %v11993_v18  ;;  %v12022_v39 = vld [vmem:[%s14093_s8 + $0xe0] ss:$16 sps:$4 sm:$0xff]   ;;  %v12023_v27 = vld [vmem:[%s14093_s8 + $0xe8] ss:$16 sps:$4 sm:$0xff]   ;;  %v12024_v40 = vld [vmem:[%s14093_s8 + $0x104] ss:$16 sps:$4 sm:$0xff]  }
 0x238   : > { %8670 = vmatprep.subr.bf16.mxu0 %v11994_v19  ;;  %9326 = vmatprep.subr.bf16.mxu1 %v11996_v20  ;;  %v12026_v29 = vld [vmem:[%s14093_s8 + $0x10c] ss:$16 sps:$4 sm:$0xff]   ;;  %v12028_v41 = vld [vmem:[%s14093_s8 + $0x100] ss:$16 sps:$4 sm:$0xff]   ;;  %v12029_v30 = vld [vmem:[%s14093_s8 + $0x108] ss:$16 sps:$4 sm:$0xff]  }
 0x239   : > { %v13820_v31 = vmov 1983009808   ;;  %v12030_v45 = vld [vmem:[%s14093_s8 + $0x124] ss:$16 sps:$4 sm:$0xff]   ;;  %v12032_v46 = vld [vmem:[%s14093_s8 + $0x12c] ss:$16 sps:$4 sm:$0xff]  }
 0x23a   : > { %v2300_v42 = vunpack.c.l.s4 %v13820_v31  ;;  %v12034_v47 = vld [vmem:[%s14093_s8 + $0x120] ss:$16 sps:$4 sm:$0xff]   ;;  %v14299_v49 = vshrl.u32 %v2302_v43, 7  ;;  %v12035_v50 = vld [vmem:[%s14093_s8 + $0x128] ss:$16 sps:$4 sm:$0xff]   ;;  %p11701_p2 = scmp.ne.s32.totalorder %s13881_s28, 1 }
 0x23b   : > { %8671 = vmatpush1.bf16.msra.mxu0 %v11998_v21  ;;  %9327 = vmatpush1.bf16.msra.mxu1 %v11999_v22  ;;  %v12036_v51 = vld [vmem:[%s14093_s8 + $0x144] ss:$16 sps:$4 sm:$0xff]   ;;  %v12038_v52 = vld [vmem:[%s14093_s8 + $0x14c] ss:$16 sps:$4 sm:$0xff]   ;;  %v12040_v53 = vld [vmem:[%s14093_s8 + $0x140] ss:$16 sps:$4 sm:$0xff]  }
 0x23c   : > { %8672 = vmatprep.subr.bf16.mxu0 %v12000_v23  ;;  %9328 = vmatprep.subr.bf16.mxu1 %v12002_v24  ;;  %v2301_v48 = vunpack.c.0.s8 %v2300_v42  ;;  %v12041_v55 = vld [vmem:[%s14093_s8 + $0x148] ss:$16 sps:$4 sm:$0xff]   ;;  %v12042_v57 = vld [vmem:[%s14093_s8 + $0x164] ss:$16 sps:$4 sm:$0xff]   ;;  %v12044_v58 = vld [vmem:[%s14093_s8 + $0x16c] ss:$16 sps:$4 sm:$0xff]  }
 0x23d   : > { %v2282_v59 = vld [vmem:[#allocation2] sm:$0xff]  ;;  %v12047_v2 = vld [vmem:[%s14093_s8 + $0x168] ss:$16 sps:$4 sm:$0xff]  }
 0x23e   : > { %v14307_v56 = vsub.s32 %v2301_v48, %v14299_v49  ;;  %v12046_v60 = vld [vmem:[%s14093_s8 + $0x160] ss:$16 sps:$4 sm:$0xff]   ;;  %v12048_v61 = vld [vmem:[%s14093_s8 + $0x184] ss:$16 sps:$4 sm:$0xff]   ;;  %v12050_v3 = vld [vmem:[%s14093_s8 + $0x18c] ss:$16 sps:$4 sm:$0xff]   ;;  %v2298_v11 = vcombine.high %v2282_v59, %v2282_v59 }
 0x23f   : > { %8673 = vmatpush1.bf16.msra.mxu0 %v12004_v8  ;;  %9329 = vmatpush1.bf16.msra.mxu1 %v12005_v25  ;;  %v12052_v4 = vld [vmem:[%s14093_s8 + $0x180] ss:$16 sps:$4 sm:$0xff]   ;;  %v12053_v1 = vld [vmem:[%s14093_s8 + $0x188] ss:$16 sps:$4 sm:$0xff]   ;;  %v12054_v5 = vld [vmem:[%s14093_s8 + $0x1a4] ss:$16 sps:$4 sm:$0xff]  }
 0x240   : > { %8674 = vmatprep.subr.bf16.mxu0 %v12006_v26  ;;  %9330 = vmatprep.subr.bf16.mxu1 %v12008_v28  ;;  %v2305_v0 = vrot.slane %v2282_v59, %v14307_v56  ;;  %v12056_v6 = vld [vmem:[%s14093_s8 + $0x1ac] ss:$16 sps:$4 sm:$0xff]   ;;  %v12058_v7 = vld [vmem:[%s14093_s8 + $0x1a0] ss:$16 sps:$4 sm:$0xff]   ;;  %v12059_v9 = vld [vmem:[%s14093_s8 + $0x1a8] ss:$16 sps:$4 sm:$0xff]   ;;  %v14329_v16 = vrot.slane %v2298_v11, %v14307_v56 }
 0x241   : > { %v12060_v10 = vld [vmem:[%s14093_s8 + $0x1c4] ss:$16 sps:$4 sm:$0xff]   ;;  %v12062_v54 = vld [vmem:[%s14093_s8 + $0x1cc] ss:$16 sps:$4 sm:$0xff]   ;;  %v12064_v12 = vld [vmem:[%s14093_s8 + $0x1c0] ss:$16 sps:$4 sm:$0xff]  }
 0x242   : > { %v2313_v62 = vcombine.high %v2305_v0, %v2305_v0  ;;  %v12065_v13 = vld [vmem:[%s14093_s8 + $0x1c8] ss:$16 sps:$4 sm:$0xff]   ;;  %v12066_v14 = vld [vmem:[%s14093_s8 + $0x1e4] ss:$16 sps:$4 sm:$0xff]   ;;  %v12068_v15 = vld [vmem:[%s14093_s8 + $0x1ec] ss:$16 sps:$4 sm:$0xff]   ;;  %v2314_v21 = vcombine.high %v14329_v16, %v14329_v16  ;;  %v2466_v23 = vpack.c.bf16 %v2305_v0, %v2305_v0 }
 0x243   : > { %8675 = vmatpush1.bf16.msra.mxu0 %v12010_v32  ;;  %9331 = vmatpush1.bf16.msra.mxu1 %v12011_v33  ;;  %v12070_v17 = vld [vmem:[%s14093_s8 + $0x1e0] ss:$16 sps:$4 sm:$0xff]   ;;  %v12071_v18 = vld [vmem:[%s14093_s8 + $0x1e8] ss:$16 sps:$4 sm:$0xff]   ;;  %v12075_v19 = vld [vmem:[%s14093_s8 + $0x204] ss:$16 sps:$4 sm:$0xff]  }
 0x244   : > { %8676 = vmatprep.subr.bf16.mxu0 %v12012_v34  ;;  %9332 = vmatprep.subr.bf16.mxu1 %v12014_v35  ;;  %v2467_v63 = vpack.c.bf16 %v2313_v62, %v2313_v62  ;;  %v12078_v20 = vld [vmem:[%s14093_s8 + $0x20c] ss:$16 sps:$4 sm:$0xff]   ;;  %v12073_v22 = vld [vmem:[%s14093_s8 + $0x200] ss:$16 sps:$4 sm:$0xff]   ;;  %v12076_v24 = vld [vmem:[%s14093_s8 + $0x208] ss:$16 sps:$4 sm:$0xff]   ;;  %v2469_v26 = vpack.c.bf16 %v2314_v21, %v2314_v21 }
 0x245   : > { %v12081_v8 = vld [vmem:[%s14093_s8 + $0x224] ss:$16 sps:$4 sm:$0xff]   ;;  %v12084_v25 = vld [vmem:[%s14093_s8 + $0x22c] ss:$16 sps:$4 sm:$0xff]   ;;  %v12079_v28 = vld [vmem:[%s14093_s8 + $0x220] ss:$16 sps:$4 sm:$0xff]  }
 0x246   : > { %8696 = vmatprep.mubr.bf16.mxu0 %v2467_v63  ;;  %9352 = vmatprep.mubr.bf16.mxu1 %v2467_v63  ;;  %v12082_v32 = vld [vmem:[%s14093_s8 + $0x228] ss:$16 sps:$4 sm:$0xff]   ;;  %v12087_v33 = vld [vmem:[%s14093_s8 + $0x244] ss:$16 sps:$4 sm:$0xff]   ;;  %v12090_v34 = vld [vmem:[%s14093_s8 + $0x24c] ss:$16 sps:$4 sm:$0xff]  }
 0x247   : > { %8677 = vmatpush1.bf16.msra.mxu0 %v12016_v36  ;;  %9333 = vmatpush1.bf16.msra.mxu1 %v12017_v44  ;;  %v12085_v35 = vld [vmem:[%s14093_s8 + $0x240] ss:$16 sps:$4 sm:$0xff]   ;;  %v12088_v36 = vld [vmem:[%s14093_s8 + $0x248] ss:$16 sps:$4 sm:$0xff]   ;;  %v12093_v44 = vld [vmem:[%s14093_s8 + $0x264] ss:$16 sps:$4 sm:$0xff]  }
 0x248   : > { %8678 = vmatprep.subr.bf16.mxu0 %v12018_v37  ;;  %9334 = vmatprep.subr.bf16.mxu1 %v12020_v38  ;;  %v12096_v37 = vld [vmem:[%s14093_s8 + $0x26c] ss:$16 sps:$4 sm:$0xff]   ;;  %v12091_v38 = vld [vmem:[%s14093_s8 + $0x260] ss:$16 sps:$4 sm:$0xff]   ;;  %v12106_v43 = vld [vmem:[%s14093_s8 + $0x2a8] ss:$16 sps:$4 sm:$0xff]  }
 0x249   : > { %v12108_v31 = vld [vmem:[%s14093_s8 + $0x2ac] ss:$16 sps:$4 sm:$0xff]   ;;  %v12103_v42 = vld [vmem:[%s14093_s8 + $0x2a0] ss:$16 sps:$4 sm:$0xff]   ;;  %v12112_v48 = vld [vmem:[%s14093_s8 + $0x2c8] ss:$16 sps:$4 sm:$0xff]  }
 0x24a   : > { %v12124_v59 = vld [vmem:[%s14093_s8 + $0x308] ss:$16 sps:$4 sm:$0xff]   ;;  %v12132_v0 = vld [vmem:[%s14093_s8 + $0x32c] ss:$16 sps:$4 sm:$0xff]   ;;  %v12165_v21 = vld [vmem:[%s14093_s8 + $0x3e4] ss:$16 sps:$4 sm:$0xff]  }
 0x24b   : > { %8679 = vmatpush1.bf16.msra.mxu0 %v12022_v39  ;;  %9335 = vmatpush1.bf16.msra.mxu1 %v12023_v27  ;;  %v12094_v39 = vld [vmem:[%s14093_s8 + $0x268] ss:$16 sps:$4 sm:$0xff]   ;;  %v12099_v27 = vld [vmem:[%s14093_s8 + $0x284] ss:$16 sps:$4 sm:$0xff]   ;;  %v12138_v62 = vld [vmem:[%s14093_s8 + $0x34c] ss:$16 sps:$4 sm:$0xff]  }
 0x24c   : > { %8680 = vmatprep.subr.bf16.mxu0 %v12024_v40  ;;  %9336 = vmatprep.subr.bf16.mxu1 %v12026_v29  ;;  %v12102_v40 = vld [vmem:[%s14093_s8 + $0x28c] ss:$16 sps:$4 sm:$0xff]   ;;  %v12097_v29 = vld [vmem:[%s14093_s8 + $0x280] ss:$16 sps:$4 sm:$0xff]   ;;  %v12136_v63 = vld [vmem:[%s14093_s8 + $0x348] ss:$16 sps:$4 sm:$0xff]  }
 0x24d   : > { %v12148_v11 = vld [vmem:[%s14093_s8 + $0x388] ss:$16 sps:$4 sm:$0xff]  }
 0x24f   : > { %8681 = vmatpush1.bf16.msra.mxu0 %v12028_v41  ;;  %9337 = vmatpush1.bf16.msra.mxu1 %v12029_v30  ;;  %v12100_v41 = vld [vmem:[%s14093_s8 + $0x288] ss:$16 sps:$4 sm:$0xff]   ;;  %v12105_v30 = vld [vmem:[%s14093_s8 + $0x2a4] ss:$16 sps:$4 sm:$0xff]  }
 0x250   : > { %8682 = vmatprep.subr.bf16.mxu0 %v12030_v45  ;;  %9338 = vmatprep.subr.bf16.mxu1 %v12032_v46  ;;  %v12111_v45 = vld [vmem:[%s14093_s8 + $0x2c4] ss:$16 sps:$4 sm:$0xff]   ;;  %v12114_v46 = vld [vmem:[%s14093_s8 + $0x2cc] ss:$16 sps:$4 sm:$0xff]  }
 0x253   : > { %8683 = vmatpush1.bf16.msra.mxu0 %v12034_v47  ;;  %9339 = vmatpush1.bf16.msra.mxu1 %v12035_v50  ;;  %v12109_v47 = vld [vmem:[%s14093_s8 + $0x2c0] ss:$16 sps:$4 sm:$0xff]   ;;  %v12117_v50 = vld [vmem:[%s14093_s8 + $0x2e4] ss:$16 sps:$4 sm:$0xff]  }
 0x254   : > { %8684 = vmatprep.subr.bf16.mxu0 %v12036_v51  ;;  %9340 = vmatprep.subr.bf16.mxu1 %v12038_v52  ;;  %v12120_v51 = vld [vmem:[%s14093_s8 + $0x2ec] ss:$16 sps:$4 sm:$0xff]   ;;  %v12115_v52 = vld [vmem:[%s14093_s8 + $0x2e0] ss:$16 sps:$4 sm:$0xff]  }
 0x257   : > { %8685 = vmatpush1.bf16.msra.mxu0 %v12040_v53  ;;  %9341 = vmatpush1.bf16.msra.mxu1 %v12041_v55  ;;  %v12118_v53 = vld [vmem:[%s14093_s8 + $0x2e8] ss:$16 sps:$4 sm:$0xff]   ;;  %v12123_v55 = vld [vmem:[%s14093_s8 + $0x304] ss:$16 sps:$4 sm:$0xff]  }
 0x258   : > { %8686 = vmatprep.subr.bf16.mxu0 %v12042_v57  ;;  %9342 = vmatprep.subr.bf16.mxu1 %v12044_v58  ;;  %v12126_v57 = vld [vmem:[%s14093_s8 + $0x30c] ss:$16 sps:$4 sm:$0xff]   ;;  %v12121_v58 = vld [vmem:[%s14093_s8 + $0x300] ss:$16 sps:$4 sm:$0xff]  }
 0x25b   : > { %8687 = vmatpush1.bf16.msra.mxu0 %v12046_v60  ;;  %9343 = vmatpush1.bf16.msra.mxu1 %v12047_v2  ;;  %v12129_v60 = vld [vmem:[%s14093_s8 + $0x324] ss:$16 sps:$4 sm:$0xff]   ;;  %v12127_v2 = vld [vmem:[%s14093_s8 + $0x320] ss:$16 sps:$4 sm:$0xff]  }
 0x25c   : > { %8688 = vmatprep.subr.bf16.mxu0 %v12048_v61  ;;  %9344 = vmatprep.subr.bf16.mxu1 %v12050_v3  ;;  %v12130_v61 = vld [vmem:[%s14093_s8 + $0x328] ss:$16 sps:$4 sm:$0xff]   ;;  %v12135_v3 = vld [vmem:[%s14093_s8 + $0x344] ss:$16 sps:$4 sm:$0xff]  }
 0x25f   : > { %8689 = vmatpush1.bf16.msra.mxu0 %v12052_v4  ;;  %9345 = vmatpush1.bf16.msra.mxu1 %v12053_v1  ;;  %v12133_v4 = vld [vmem:[%s14093_s8 + $0x340] ss:$16 sps:$4 sm:$0xff]   ;;  %v12141_v1 = vld [vmem:[%s14093_s8 + $0x364] ss:$16 sps:$4 sm:$0xff]  }
 0x260   : > { %8690 = vmatprep.subr.bf16.mxu0 %v12054_v5  ;;  %9346 = vmatprep.subr.bf16.mxu1 %v12056_v6  ;;  %v12144_v5 = vld [vmem:[%s14093_s8 + $0x36c] ss:$16 sps:$4 sm:$0xff]   ;;  %v12139_v6 = vld [vmem:[%s14093_s8 + $0x360] ss:$16 sps:$4 sm:$0xff]  }
 0x263   : > { %8691 = vmatpush1.bf16.msra.mxu0 %v12058_v7  ;;  %9347 = vmatpush1.bf16.msra.mxu1 %v12059_v9  ;;  %v12142_v7 = vld [vmem:[%s14093_s8 + $0x368] ss:$16 sps:$4 sm:$0xff]   ;;  %v12147_v9 = vld [vmem:[%s14093_s8 + $0x384] ss:$16 sps:$4 sm:$0xff]  }
 0x264   : > { %8692 = vmatprep.subr.bf16.mxu0 %v12060_v10  ;;  %9348 = vmatprep.subr.bf16.mxu1 %v12062_v54  ;;  %v12150_v10 = vld [vmem:[%s14093_s8 + $0x38c] ss:$16 sps:$4 sm:$0xff]   ;;  %v12145_v54 = vld [vmem:[%s14093_s8 + $0x380] ss:$16 sps:$4 sm:$0xff]  }
 0x267   : > { %8693 = vmatpush1.bf16.msra.mxu0 %v12064_v12  ;;  %9349 = vmatpush1.bf16.msra.mxu1 %v12065_v13  ;;  %v12153_v12 = vld [vmem:[%s14093_s8 + $0x3a4] ss:$16 sps:$4 sm:$0xff]   ;;  %v12156_v13 = vld [vmem:[%s14093_s8 + $0x3ac] ss:$16 sps:$4 sm:$0xff]  }
 0x268   : > { %8694 = vmatprep.subr.bf16.mxu0 %v12066_v14  ;;  %9350 = vmatprep.subr.bf16.mxu1 %v12068_v15  ;;  %v12151_v14 = vld [vmem:[%s14093_s8 + $0x3a0] ss:$16 sps:$4 sm:$0xff]   ;;  %v12154_v15 = vld [vmem:[%s14093_s8 + $0x3a8] ss:$16 sps:$4 sm:$0xff]  }
 0x26b   : > { %8695 = vmatpush1.bf16.msra.mxu0 %v12070_v17  ;;  %9351 = vmatpush1.bf16.msra.mxu1 %v12071_v18  ;;  %v12159_v17 = vld [vmem:[%s14093_s8 + $0x3c4] ss:$16 sps:$4 sm:$0xff]   ;;  %v12162_v18 = vld [vmem:[%s14093_s8 + $0x3cc] ss:$16 sps:$4 sm:$0xff]  }
 0x26c   : > { %8705 = vmatprep.subr.bf16.mxu0 %v12075_v19  ;;  %9361 = vmatprep.subr.bf16.mxu1 %v12078_v20  ;;  %v12157_v19 = vld [vmem:[%s14093_s8 + $0x3c0] ss:$16 sps:$4 sm:$0xff]   ;;  %v12160_v20 = vld [vmem:[%s14093_s8 + $0x3c8] ss:$16 sps:$4 sm:$0xff]  }
 0x26e   : > { %8697 = vmatmul.mubr.bf16.vlgmr.msra.gmra.mrb[0].mxu0 %v2466_v23  ;;  %9353 = vmatmul.mubr.bf16.vlgmr.msra.gmra.mrb[0].mxu1 %v2466_v23  ;;  %v12163_v23 = vld [vmem:[%s14093_s8 + $0x3e0] ss:$16 sps:$4 sm:$0xff]  }
 0x26f   : > { %8706 = vmatpush1.bf16.msra.mxu0 %v12073_v22  ;;  %9362 = vmatpush1.bf16.msra.mxu1 %v12076_v24  ;;  %v12168_v22 = vld [vmem:[%s14093_s8 + $0x3ec] ss:$16 sps:$4 sm:$0xff]   ;;  %v12166_v24 = vld [vmem:[%s14093_s8 + $0x3e8] ss:$16 sps:$4 sm:$0xff]  }
 0x270   : > { %8707 = vmatprep.subr.bf16.mxu0 %v12081_v8  ;;  %9363 = vmatprep.subr.bf16.mxu1 %v12084_v25  ;;  %v12171_v8 = vld [vmem:[%s14093_s8 + $0x404] ss:$16 sps:$4 sm:$0xff]   ;;  %v12174_v25 = vld [vmem:[%s14093_s8 + $0x40c] ss:$16 sps:$4 sm:$0xff]  }
 0x271   : > { %8737 = vmatprep.mubr.bf16.mxu0 %v2469_v26  ;;  %9393 = vmatprep.mubr.bf16.mxu1 %v2469_v26  ;;  %v12169_v26 = vld [vmem:[%s14093_s8 + $0x400] ss:$16 sps:$4 sm:$0xff]  }
 0x273   : > { %8708 = vmatpush1.bf16.msra.mxu0 %v12079_v28  ;;  %9364 = vmatpush1.bf16.msra.mxu1 %v12082_v32  ;;  %v2468_v28 = vpack.c.bf16 %v14329_v16, %v14329_v16  ;;  %v12172_v32 = vld [vmem:[%s14093_s8 + $0x408] ss:$16 sps:$4 sm:$0xff]  }
 0x274   : > { %8709 = vmatprep.subr.bf16.mxu0 %v12087_v33  ;;  %9365 = vmatprep.subr.bf16.mxu1 %v12090_v34  ;;  %v14405_v33 = vld [vmem:[#allocation2 + $0x8] sm:$0xff] }
 0x275   : > { %v12177_v34 = vld [vmem:[%s14093_s8 + $0x424] ss:$16 sps:$4 sm:$0xff]  }
 0x277   : > { %8710 = vmatpush1.bf16.msra.mxu0 %v12085_v35  ;;  %9366 = vmatpush1.bf16.msra.mxu1 %v12088_v36  ;;  %v12180_v35 = vld [vmem:[%s14093_s8 + $0x42c] ss:$16 sps:$4 sm:$0xff]   ;;  %v14411_v36 = vrot.slane %v14405_v33, %v14307_v56 }
 0x278   : > { %8711 = vmatprep.subr.bf16.mxu0 %v12093_v44  ;;  %9367 = vmatprep.subr.bf16.mxu1 %v12096_v37  ;;  %v12175_v44 = vld [vmem:[%s14093_s8 + $0x420] ss:$16 sps:$4 sm:$0xff]   ;;  %v12178_v37 = vld [vmem:[%s14093_s8 + $0x428] ss:$16 sps:$4 sm:$0xff]  }
 0x279   : > { %v2330_v16 = vcombine.high %v14411_v36, %v14411_v36 }
 0x27b   : > { %8712 = vmatpush1.bf16.msra.mxu0 %v12091_v38  ;;  %9368 = vmatpush1.bf16.msra.mxu1 %v12094_v39  ;;  %v12183_v38 = vld [vmem:[%s14093_s8 + $0x444] ss:$16 sps:$4 sm:$0xff]   ;;  %v12186_v39 = vld [vmem:[%s14093_s8 + $0x44c] ss:$16 sps:$4 sm:$0xff]  }
 0x27c   : > { %8713 = vmatprep.subr.bf16.mxu0 %v12099_v27  ;;  %9369 = vmatprep.subr.bf16.mxu1 %v12102_v40  ;;  %v2471_v27 = vpack.c.bf16 %v2330_v16, %v2330_v16  ;;  %v12181_v40 = vld [vmem:[%s14093_s8 + $0x440] ss:$16 sps:$4 sm:$0xff]   ;;  %v12262_v16 = vld [vmem:[%s14093_s8 + $0x5e8] ss:$16 sps:$4 sm:$0xff]  }
 0x27f   : > { %8714 = vmatpush1.bf16.msra.mxu0 %v12097_v29  ;;  %9370 = vmatpush1.bf16.msra.mxu1 %v12100_v41  ;;  %v12184_v29 = vld [vmem:[%s14093_s8 + $0x448] ss:$16 sps:$4 sm:$0xff]   ;;  %v12189_v41 = vld [vmem:[%s14093_s8 + $0x464] ss:$16 sps:$4 sm:$0xff]  }
 0x280   : > { %8715 = vmatprep.subr.bf16.mxu0 %v12105_v30  ;;  %9371 = vmatprep.subr.bf16.mxu1 %v12108_v31  ;;  %v12192_v30 = vld [vmem:[%s14093_s8 + $0x46c] ss:$16 sps:$4 sm:$0xff]   ;;  %v12187_v31 = vld [vmem:[%s14093_s8 + $0x460] ss:$16 sps:$4 sm:$0xff]  }
 0x283   : > { %8716 = vmatpush1.bf16.msra.mxu0 %v12103_v42  ;;  %9372 = vmatpush1.bf16.msra.mxu1 %v12106_v43  ;;  %v12190_v42 = vld [vmem:[%s14093_s8 + $0x468] ss:$16 sps:$4 sm:$0xff]   ;;  %v12195_v43 = vld [vmem:[%s14093_s8 + $0x484] ss:$16 sps:$4 sm:$0xff]  }
 0x284   : > { %8717 = vmatprep.subr.bf16.mxu0 %v12111_v45  ;;  %9373 = vmatprep.subr.bf16.mxu1 %v12114_v46  ;;  %v12198_v45 = vld [vmem:[%s14093_s8 + $0x48c] ss:$16 sps:$4 sm:$0xff]   ;;  %v12193_v46 = vld [vmem:[%s14093_s8 + $0x480] ss:$16 sps:$4 sm:$0xff]  }
 0x287   : > { %8718 = vmatpush1.bf16.msra.mxu0 %v12109_v47  ;;  %9374 = vmatpush1.bf16.msra.mxu1 %v12112_v48  ;;  %v12196_v47 = vld [vmem:[%s14093_s8 + $0x488] ss:$16 sps:$4 sm:$0xff]   ;;  %v12201_v48 = vld [vmem:[%s14093_s8 + $0x4a4] ss:$16 sps:$4 sm:$0xff]  }
 0x288   : > { %8719 = vmatprep.subr.bf16.mxu0 %v12117_v50  ;;  %9375 = vmatprep.subr.bf16.mxu1 %v12120_v51  ;;  %v12204_v50 = vld [vmem:[%s14093_s8 + $0x4ac] ss:$16 sps:$4 sm:$0xff]   ;;  %v12199_v51 = vld [vmem:[%s14093_s8 + $0x4a0] ss:$16 sps:$4 sm:$0xff]  }
 0x28b   : > { %8720 = vmatpush1.bf16.msra.mxu0 %v12115_v52  ;;  %9376 = vmatpush1.bf16.msra.mxu1 %v12118_v53  ;;  %v12202_v52 = vld [vmem:[%s14093_s8 + $0x4a8] ss:$16 sps:$4 sm:$0xff]   ;;  %v12207_v53 = vld [vmem:[%s14093_s8 + $0x4c4] ss:$16 sps:$4 sm:$0xff]  }
 0x28c   : > { %8721 = vmatprep.subr.bf16.mxu0 %v12123_v55  ;;  %9377 = vmatprep.subr.bf16.mxu1 %v12126_v57  ;;  %v12210_v55 = vld [vmem:[%s14093_s8 + $0x4cc] ss:$16 sps:$4 sm:$0xff]   ;;  %v12205_v57 = vld [vmem:[%s14093_s8 + $0x4c0] ss:$16 sps:$4 sm:$0xff]  }
 0x28f   : > { %8722 = vmatpush1.bf16.msra.mxu0 %v12121_v58  ;;  %9378 = vmatpush1.bf16.msra.mxu1 %v12124_v59  ;;  %v12208_v58 = vld [vmem:[%s14093_s8 + $0x4c8] ss:$16 sps:$4 sm:$0xff]   ;;  %v12213_v59 = vld [vmem:[%s14093_s8 + $0x4e4] ss:$16 sps:$4 sm:$0xff]  }
 0x290   : > { %8723 = vmatprep.subr.bf16.mxu0 %v12129_v60  ;;  %9379 = vmatprep.subr.bf16.mxu1 %v12132_v0  ;;  %v12216_v60 = vld [vmem:[%s14093_s8 + $0x4ec] ss:$16 sps:$4 sm:$0xff]   ;;  %v12211_v0 = vld [vmem:[%s14093_s8 + $0x4e0] ss:$16 sps:$4 sm:$0xff]  }
 0x293   : > { %8724 = vmatpush1.bf16.msra.mxu0 %v12127_v2  ;;  %9380 = vmatpush1.bf16.msra.mxu1 %v12130_v61  ;;  %v12214_v2 = vld [vmem:[%s14093_s8 + $0x4e8] ss:$16 sps:$4 sm:$0xff]   ;;  %v12219_v61 = vld [vmem:[%s14093_s8 + $0x504] ss:$16 sps:$4 sm:$0xff]  }
 0x294   : > { %8725 = vmatprep.subr.bf16.mxu0 %v12135_v3  ;;  %9381 = vmatprep.subr.bf16.mxu1 %v12138_v62  ;;  %v12222_v3 = vld [vmem:[%s14093_s8 + $0x50c] ss:$16 sps:$4 sm:$0xff]   ;;  %v12217_v62 = vld [vmem:[%s14093_s8 + $0x500] ss:$16 sps:$4 sm:$0xff]  }
 0x297   : > { %8726 = vmatpush1.bf16.msra.mxu0 %v12133_v4  ;;  %9382 = vmatpush1.bf16.msra.mxu1 %v12136_v63  ;;  %v12220_v4 = vld [vmem:[%s14093_s8 + $0x508] ss:$16 sps:$4 sm:$0xff]   ;;  %v12225_v63 = vld [vmem:[%s14093_s8 + $0x524] ss:$16 sps:$4 sm:$0xff]  }
 0x298   : > { %8727 = vmatprep.subr.bf16.mxu0 %v12141_v1  ;;  %9383 = vmatprep.subr.bf16.mxu1 %v12144_v5  ;;  %v12228_v1 = vld [vmem:[%s14093_s8 + $0x52c] ss:$16 sps:$4 sm:$0xff]   ;;  %v12223_v5 = vld [vmem:[%s14093_s8 + $0x520] ss:$16 sps:$4 sm:$0xff]  }
 0x29b   : > { %8728 = vmatpush1.bf16.msra.mxu0 %v12139_v6  ;;  %9384 = vmatpush1.bf16.msra.mxu1 %v12142_v7  ;;  %v12226_v6 = vld [vmem:[%s14093_s8 + $0x528] ss:$16 sps:$4 sm:$0xff]   ;;  %v12231_v7 = vld [vmem:[%s14093_s8 + $0x544] ss:$16 sps:$4 sm:$0xff]  }
 0x29c   : > { %8729 = vmatprep.subr.bf16.mxu0 %v12147_v9  ;;  %9385 = vmatprep.subr.bf16.mxu1 %v12150_v10  ;;  %v12234_v9 = vld [vmem:[%s14093_s8 + $0x54c] ss:$16 sps:$4 sm:$0xff]   ;;  %v12229_v10 = vld [vmem:[%s14093_s8 + $0x540] ss:$16 sps:$4 sm:$0xff]  }
 0x29f   : > { %8730 = vmatpush1.bf16.msra.mxu0 %v12145_v54  ;;  %9386 = vmatpush1.bf16.msra.mxu1 %v12148_v11  ;;  %v12232_v54 = vld [vmem:[%s14093_s8 + $0x548] ss:$16 sps:$4 sm:$0xff]   ;;  %v12237_v11 = vld [vmem:[%s14093_s8 + $0x564] ss:$16 sps:$4 sm:$0xff]  }
 0x2a0   : > { %8731 = vmatprep.subr.bf16.mxu0 %v12153_v12  ;;  %9387 = vmatprep.subr.bf16.mxu1 %v12156_v13  ;;  %v12240_v12 = vld [vmem:[%s14093_s8 + $0x56c] ss:$16 sps:$4 sm:$0xff]   ;;  %v12235_v13 = vld [vmem:[%s14093_s8 + $0x560] ss:$16 sps:$4 sm:$0xff]  }
 0x2a3   : > { %8732 = vmatpush1.bf16.msra.mxu0 %v12151_v14  ;;  %9388 = vmatpush1.bf16.msra.mxu1 %v12154_v15  ;;  %v12238_v14 = vld [vmem:[%s14093_s8 + $0x568] ss:$16 sps:$4 sm:$0xff]   ;;  %v12243_v15 = vld [vmem:[%s14093_s8 + $0x584] ss:$16 sps:$4 sm:$0xff]  }
 0x2a4   : > { %8733 = vmatprep.subr.bf16.mxu0 %v12159_v17  ;;  %9389 = vmatprep.subr.bf16.mxu1 %v12162_v18  ;;  %v12246_v17 = vld [vmem:[%s14093_s8 + $0x58c] ss:$16 sps:$4 sm:$0xff]   ;;  %v12241_v18 = vld [vmem:[%s14093_s8 + $0x580] ss:$16 sps:$4 sm:$0xff]  }
 0x2a7   : > { %8734 = vmatpush1.bf16.msra.mxu0 %v12157_v19  ;;  %9390 = vmatpush1.bf16.msra.mxu1 %v12160_v20  ;;  %v12244_v19 = vld [vmem:[%s14093_s8 + $0x588] ss:$16 sps:$4 sm:$0xff]   ;;  %v12249_v20 = vld [vmem:[%s14093_s8 + $0x5a4] ss:$16 sps:$4 sm:$0xff]  }
 0x2a8   : > { %8735 = vmatprep.subr.bf16.mxu0 %v12165_v21  ;;  %9391 = vmatprep.subr.bf16.mxu1 %v12168_v22  ;;  %v12252_v21 = vld [vmem:[%s14093_s8 + $0x5ac] ss:$16 sps:$4 sm:$0xff]   ;;  %v12247_v22 = vld [vmem:[%s14093_s8 + $0x5a0] ss:$16 sps:$4 sm:$0xff]  }
 0x2ab   : > { %8736 = vmatpush1.bf16.msra.mxu0 %v12163_v23  ;;  %9392 = vmatpush1.bf16.msra.mxu1 %v12166_v24  ;;  %v12250_v23 = vld [vmem:[%s14093_s8 + $0x5a8] ss:$16 sps:$4 sm:$0xff]   ;;  %v12255_v24 = vld [vmem:[%s14093_s8 + $0x5c4] ss:$16 sps:$4 sm:$0xff]  }
 0x2ac   : > { %8746 = vmatprep.subr.bf16.mxu0 %v12171_v8  ;;  %9402 = vmatprep.subr.bf16.mxu1 %v12174_v25  ;;  %v12258_v8 = vld [vmem:[%s14093_s8 + $0x5cc] ss:$16 sps:$4 sm:$0xff]   ;;  %v2315_v25 = vcombine.high %v14405_v33, %v14405_v33  ;;  %v12259_v33 = vld [vmem:[%s14093_s8 + $0x5e0] ss:$16 sps:$4 sm:$0xff]  }
 0x2ae   : > { %8738 = vmatmul.mubr.bf16.vlgmr.msra.gmra.mrb[0].mxu0 %v2468_v28  ;;  %9394 = vmatmul.mubr.bf16.vlgmr.msra.gmra.mrb[0].mxu1 %v2468_v28  ;;  %v12256_v28 = vld [vmem:[%s14093_s8 + $0x5c8] ss:$16 sps:$4 sm:$0xff]  }
 0x2af   : > { %8747 = vmatpush1.bf16.msra.mxu0 %v12169_v26  ;;  %9403 = vmatpush1.bf16.msra.mxu1 %v12172_v32  ;;  %v12253_v26 = vld [vmem:[%s14093_s8 + $0x5c0] ss:$16 sps:$4 sm:$0xff]   ;;  %v12261_v32 = vld [vmem:[%s14093_s8 + $0x5e4] ss:$16 sps:$4 sm:$0xff]  }
 0x2b0   : > { %8748 = vmatprep.subr.bf16.mxu0 %v12177_v34  ;;  %9404 = vmatprep.subr.bf16.mxu1 %v12180_v35  ;;  %v12264_v34 = vld [vmem:[%s14093_s8 + $0x5ec] ss:$16 sps:$4 sm:$0xff]   ;;  %v14474_v35 = vrot.slane %v2315_v25, %v14307_v56  ;;  %v12340_v25 = vld [vmem:[%s14093_s8 + $0x788] ss:$16 sps:$4 sm:$0xff]  }
 0x2b1   : > { %8778 = vmatprep.mubr.bf16.mxu0 %v2471_v27  ;;  %9434 = vmatprep.mubr.bf16.mxu1 %v2471_v27  ;;  %v12265_v27 = vld [vmem:[%s14093_s8 + $0x600] ss:$16 sps:$4 sm:$0xff]  }
 0x2b3   : > { %8749 = vmatpush1.bf16.msra.mxu0 %v12175_v44  ;;  %9405 = vmatpush1.bf16.msra.mxu1 %v12178_v37  ;;  %v12267_v44 = vld [vmem:[%s14093_s8 + $0x604] ss:$16 sps:$4 sm:$0xff]   ;;  %v12270_v37 = vld [vmem:[%s14093_s8 + $0x60c] ss:$16 sps:$4 sm:$0xff]  }
 0x2b4   : > { %8750 = vmatprep.subr.bf16.mxu0 %v12183_v38  ;;  %9406 = vmatprep.subr.bf16.mxu1 %v12186_v39  ;;  %v2331_v38 = vcombine.high %v14474_v35, %v14474_v35  ;;  %v2470_v39 = vpack.c.bf16 %v14411_v36, %v14411_v36  ;;  %v12271_v36 = vld [vmem:[%s14093_s8 + $0x620] ss:$16 sps:$4 sm:$0xff]  }
 0x2b7   : > { %8751 = vmatpush1.bf16.msra.mxu0 %v12181_v40  ;;  %9407 = vmatpush1.bf16.msra.mxu1 %v12184_v29  ;;  %v12268_v40 = vld [vmem:[%s14093_s8 + $0x608] ss:$16 sps:$4 sm:$0xff]   ;;  %v12273_v29 = vld [vmem:[%s14093_s8 + $0x624] ss:$16 sps:$4 sm:$0xff]  }
 0x2b8   : > { %8752 = vmatprep.subr.bf16.mxu0 %v12189_v41  ;;  %9408 = vmatprep.subr.bf16.mxu1 %v12192_v30  ;;  %v12276_v41 = vld [vmem:[%s14093_s8 + $0x62c] ss:$16 sps:$4 sm:$0xff]   ;;  %v2473_v30 = vpack.c.bf16 %v2331_v38, %v2331_v38  ;;  %v12352_v38 = vld [vmem:[%s14093_s8 + $0x7c8] ss:$16 sps:$4 sm:$0xff]  }
 0x2bb   : > { %8753 = vmatpush1.bf16.msra.mxu0 %v12187_v31  ;;  %9409 = vmatpush1.bf16.msra.mxu1 %v12190_v42  ;;  %v12274_v31 = vld [vmem:[%s14093_s8 + $0x628] ss:$16 sps:$4 sm:$0xff]   ;;  %v12279_v42 = vld [vmem:[%s14093_s8 + $0x644] ss:$16 sps:$4 sm:$0xff]  }
 0x2bc   : > { %8754 = vmatprep.subr.bf16.mxu0 %v12195_v43  ;;  %9410 = vmatprep.subr.bf16.mxu1 %v12198_v45  ;;  %v12282_v43 = vld [vmem:[%s14093_s8 + $0x64c] ss:$16 sps:$4 sm:$0xff]   ;;  %v12277_v45 = vld [vmem:[%s14093_s8 + $0x640] ss:$16 sps:$4 sm:$0xff]  }
 0x2bf   : > { %8755 = vmatpush1.bf16.msra.mxu0 %v12193_v46  ;;  %9411 = vmatpush1.bf16.msra.mxu1 %v12196_v47  ;;  %v12280_v46 = vld [vmem:[%s14093_s8 + $0x648] ss:$16 sps:$4 sm:$0xff]   ;;  %v12285_v47 = vld [vmem:[%s14093_s8 + $0x664] ss:$16 sps:$4 sm:$0xff]  }
 0x2c0   : > { %8756 = vmatprep.subr.bf16.mxu0 %v12201_v48  ;;  %9412 = vmatprep.subr.bf16.mxu1 %v12204_v50  ;;  %v12288_v48 = vld [vmem:[%s14093_s8 + $0x66c] ss:$16 sps:$4 sm:$0xff]   ;;  %v12283_v50 = vld [vmem:[%s14093_s8 + $0x660] ss:$16 sps:$4 sm:$0xff]  }
 0x2c3   : > { %8757 = vmatpush1.bf16.msra.mxu0 %v12199_v51  ;;  %9413 = vmatpush1.bf16.msra.mxu1 %v12202_v52  ;;  %v12286_v51 = vld [vmem:[%s14093_s8 + $0x668] ss:$16 sps:$4 sm:$0xff]   ;;  %v12291_v52 = vld [vmem:[%s14093_s8 + $0x684] ss:$16 sps:$4 sm:$0xff]  }
 0x2c4   : > { %8758 = vmatprep.subr.bf16.mxu0 %v12207_v53  ;;  %9414 = vmatprep.subr.bf16.mxu1 %v12210_v55  ;;  %v12294_v53 = vld [vmem:[%s14093_s8 + $0x68c] ss:$16 sps:$4 sm:$0xff]   ;;  %v12289_v55 = vld [vmem:[%s14093_s8 + $0x680] ss:$16 sps:$4 sm:$0xff]  }
 0x2c7   : > { %8759 = vmatpush1.bf16.msra.mxu0 %v12205_v57  ;;  %9415 = vmatpush1.bf16.msra.mxu1 %v12208_v58  ;;  %v12292_v57 = vld [vmem:[%s14093_s8 + $0x688] ss:$16 sps:$4 sm:$0xff]   ;;  %v12297_v58 = vld [vmem:[%s14093_s8 + $0x6a4] ss:$16 sps:$4 sm:$0xff]  }
 0x2c8   : > { %8760 = vmatprep.subr.bf16.mxu0 %v12213_v59  ;;  %9416 = vmatprep.subr.bf16.mxu1 %v12216_v60  ;;  %v12300_v59 = vld [vmem:[%s14093_s8 + $0x6ac] ss:$16 sps:$4 sm:$0xff]   ;;  %v12295_v60 = vld [vmem:[%s14093_s8 + $0x6a0] ss:$16 sps:$4 sm:$0xff]  }
 0x2cb   : > { %8761 = vmatpush1.bf16.msra.mxu0 %v12211_v0  ;;  %9417 = vmatpush1.bf16.msra.mxu1 %v12214_v2  ;;  %v12298_v0 = vld [vmem:[%s14093_s8 + $0x6a8] ss:$16 sps:$4 sm:$0xff]   ;;  %v12303_v2 = vld [vmem:[%s14093_s8 + $0x6c4] ss:$16 sps:$4 sm:$0xff]  }
 0x2cc   : > { %8762 = vmatprep.subr.bf16.mxu0 %v12219_v61  ;;  %9418 = vmatprep.subr.bf16.mxu1 %v12222_v3  ;;  %v12306_v61 = vld [vmem:[%s14093_s8 + $0x6cc] ss:$16 sps:$4 sm:$0xff]   ;;  %v12301_v3 = vld [vmem:[%s14093_s8 + $0x6c0] ss:$16 sps:$4 sm:$0xff]  }
 0x2cf   : > { %8763 = vmatpush1.bf16.msra.mxu0 %v12217_v62  ;;  %9419 = vmatpush1.bf16.msra.mxu1 %v12220_v4  ;;  %v12304_v62 = vld [vmem:[%s14093_s8 + $0x6c8] ss:$16 sps:$4 sm:$0xff]   ;;  %v12309_v4 = vld [vmem:[%s14093_s8 + $0x6e4] ss:$16 sps:$4 sm:$0xff]  }
 0x2d0   : > { %8764 = vmatprep.subr.bf16.mxu0 %v12225_v63  ;;  %9420 = vmatprep.subr.bf16.mxu1 %v12228_v1  ;;  %v12312_v63 = vld [vmem:[%s14093_s8 + $0x6ec] ss:$16 sps:$4 sm:$0xff]   ;;  %v12307_v1 = vld [vmem:[%s14093_s8 + $0x6e0] ss:$16 sps:$4 sm:$0xff]  }
 0x2d3   : > { %8765 = vmatpush1.bf16.msra.mxu0 %v12223_v5  ;;  %9421 = vmatpush1.bf16.msra.mxu1 %v12226_v6  ;;  %v12310_v5 = vld [vmem:[%s14093_s8 + $0x6e8] ss:$16 sps:$4 sm:$0xff]   ;;  %v12315_v6 = vld [vmem:[%s14093_s8 + $0x704] ss:$16 sps:$4 sm:$0xff]  }
 0x2d4   : > { %8766 = vmatprep.subr.bf16.mxu0 %v12231_v7  ;;  %9422 = vmatprep.subr.bf16.mxu1 %v12234_v9  ;;  %v12318_v7 = vld [vmem:[%s14093_s8 + $0x70c] ss:$16 sps:$4 sm:$0xff]   ;;  %v12313_v9 = vld [vmem:[%s14093_s8 + $0x700] ss:$16 sps:$4 sm:$0xff]  }
 0x2d7   : > { %8767 = vmatpush1.bf16.msra.mxu0 %v12229_v10  ;;  %9423 = vmatpush1.bf16.msra.mxu1 %v12232_v54  ;;  %v12316_v10 = vld [vmem:[%s14093_s8 + $0x708] ss:$16 sps:$4 sm:$0xff]   ;;  %v12321_v54 = vld [vmem:[%s14093_s8 + $0x724] ss:$16 sps:$4 sm:$0xff]  }
 0x2d8   : > { %8768 = vmatprep.subr.bf16.mxu0 %v12237_v11  ;;  %9424 = vmatprep.subr.bf16.mxu1 %v12240_v12  ;;  %v12324_v11 = vld [vmem:[%s14093_s8 + $0x72c] ss:$16 sps:$4 sm:$0xff]   ;;  %v12319_v12 = vld [vmem:[%s14093_s8 + $0x720] ss:$16 sps:$4 sm:$0xff]  }
 0x2db   : > { %8769 = vmatpush1.bf16.msra.mxu0 %v12235_v13  ;;  %9425 = vmatpush1.bf16.msra.mxu1 %v12238_v14  ;;  %v12322_v13 = vld [vmem:[%s14093_s8 + $0x728] ss:$16 sps:$4 sm:$0xff]   ;;  %v12327_v14 = vld [vmem:[%s14093_s8 + $0x744] ss:$16 sps:$4 sm:$0xff]  }
 0x2dc   : > { %8770 = vmatprep.subr.bf16.mxu0 %v12243_v15  ;;  %9426 = vmatprep.subr.bf16.mxu1 %v12246_v17  ;;  %v12330_v15 = vld [vmem:[%s14093_s8 + $0x74c] ss:$16 sps:$4 sm:$0xff]   ;;  %v12325_v17 = vld [vmem:[%s14093_s8 + $0x740] ss:$16 sps:$4 sm:$0xff]  }
 0x2df   : > { %8771 = vmatpush1.bf16.msra.mxu0 %v12241_v18  ;;  %9427 = vmatpush1.bf16.msra.mxu1 %v12244_v19  ;;  %v12328_v18 = vld [vmem:[%s14093_s8 + $0x748] ss:$16 sps:$4 sm:$0xff]   ;;  %v12333_v19 = vld [vmem:[%s14093_s8 + $0x764] ss:$16 sps:$4 sm:$0xff]  }
 0x2e0   : > { %8772 = vmatprep.subr.bf16.mxu0 %v12249_v20  ;;  %9428 = vmatprep.subr.bf16.mxu1 %v12252_v21  ;;  %v12336_v20 = vld [vmem:[%s14093_s8 + $0x76c] ss:$16 sps:$4 sm:$0xff]   ;;  %v12331_v21 = vld [vmem:[%s14093_s8 + $0x760] ss:$16 sps:$4 sm:$0xff]  }
 0x2e3   : > { %8773 = vmatpush1.bf16.msra.mxu0 %v12247_v22  ;;  %9429 = vmatpush1.bf16.msra.mxu1 %v12250_v23  ;;  %v12334_v22 = vld [vmem:[%s14093_s8 + $0x768] ss:$16 sps:$4 sm:$0xff]   ;;  %v12339_v23 = vld [vmem:[%s14093_s8 + $0x784] ss:$16 sps:$4 sm:$0xff]  }
 0x2e4   : > { %8774 = vmatprep.subr.bf16.mxu0 %v12255_v24  ;;  %9430 = vmatprep.subr.bf16.mxu1 %v12258_v8  ;;  %v12342_v24 = vld [vmem:[%s14093_s8 + $0x78c] ss:$16 sps:$4 sm:$0xff]   ;;  %v12337_v8 = vld [vmem:[%s14093_s8 + $0x780] ss:$16 sps:$4 sm:$0xff]  }
 0x2e7   : > { %8775 = vmatpush1.bf16.msra.mxu0 %v12253_v26  ;;  %9431 = vmatpush1.bf16.msra.mxu1 %v12256_v28  ;;  %v12345_v26 = vld [vmem:[%s14093_s8 + $0x7a4] ss:$16 sps:$4 sm:$0xff]   ;;  %v12348_v28 = vld [vmem:[%s14093_s8 + $0x7ac] ss:$16 sps:$4 sm:$0xff]  }
 0x2e8   : > { %8776 = vmatprep.subr.bf16.mxu0 %v12261_v32  ;;  %9432 = vmatprep.subr.bf16.mxu1 %v12264_v34  ;;  %v12343_v32 = vld [vmem:[%s14093_s8 + $0x7a0] ss:$16 sps:$4 sm:$0xff]   ;;  %v12346_v34 = vld [vmem:[%s14093_s8 + $0x7a8] ss:$16 sps:$4 sm:$0xff]  }
 0x2eb   : > { %8777 = vmatpush1.bf16.msra.mxu0 %v12259_v33  ;;  %9433 = vmatpush1.bf16.msra.mxu1 %v12262_v16  ;;  %v12351_v33 = vld [vmem:[%s14093_s8 + $0x7c4] ss:$16 sps:$4 sm:$0xff]   ;;  %v12354_v16 = vld [vmem:[%s14093_s8 + $0x7cc] ss:$16 sps:$4 sm:$0xff]  }
 0x2ec   : > { %8787 = vmatprep.subr.bf16.mxu0 %v12267_v44  ;;  %9443 = vmatprep.subr.bf16.mxu1 %v12270_v37  ;;  %v12349_v44 = vld [vmem:[%s14093_s8 + $0x7c0] ss:$16 sps:$4 sm:$0xff]  }
 0x2ed   : > { %v14541_v37 = vld [vmem:[#allocation2 + $0x10] sm:$0xff] }
 0x2ee   : > { %8779 = vmatmul.mubr.bf16.vlgmr.msra.gmra.mrb[0].mxu0 %v2470_v39  ;;  %9435 = vmatmul.mubr.bf16.vlgmr.msra.gmra.mrb[0].mxu1 %v2470_v39  ;;  %v12357_v39 = vld [vmem:[%s14093_s8 + $0x7e4] ss:$16 sps:$4 sm:$0xff]  }
 0x2ef   : > { %8788 = vmatpush1.bf16.msra.mxu0 %v12265_v27  ;;  %9444 = vmatpush1.bf16.msra.mxu1 %v12268_v40  ;;  %v12360_v27 = vld [vmem:[%s14093_s8 + $0x7ec] ss:$16 sps:$4 sm:$0xff]   ;;  %v14548_v40 = vrot.slane %v14541_v37, %v14307_v56 }
 0x2f0   : > { %8789 = vmatprep.subr.bf16.mxu0 %v12273_v29  ;;  %9445 = vmatprep.subr.bf16.mxu1 %v12276_v41  ;;  %v12355_v29 = vld [vmem:[%s14093_s8 + $0x7e0] ss:$16 sps:$4 sm:$0xff]   ;;  %v12358_v41 = vld [vmem:[%s14093_s8 + $0x7e8] ss:$16 sps:$4 sm:$0xff]  }
 0x2f1   : > { %8819 = vmatprep.mubr.bf16.mxu0 %v2473_v30  ;;  %9475 = vmatprep.mubr.bf16.mxu1 %v2473_v30  ;;  %v12364_v30 = vld [vmem:[%s14093_s8 + $0x804] ss:$16 sps:$4 sm:$0xff]  }
 0x2f3   : > { %8790 = vmatpush1.bf16.msra.mxu0 %v12271_v36  ;;  %9446 = vmatpush1.bf16.msra.mxu1 %v12274_v31  ;;  %v12367_v36 = vld [vmem:[%s14093_s8 + $0x80c] ss:$16 sps:$4 sm:$0xff]   ;;  %v2347_v31 = vcombine.high %v14548_v40, %v14548_v40 }
 0x2f4   : > { %8791 = vmatprep.subr.bf16.mxu0 %v12279_v42  ;;  %9447 = vmatprep.subr.bf16.mxu1 %v12282_v43  ;;  %v12362_v42 = vld [vmem:[%s14093_s8 + $0x800] ss:$16 sps:$4 sm:$0xff]   ;;  %v2472_v43 = vpack.c.bf16 %v14474_v35, %v14474_v35  ;;  %v12376_v35 = vld [vmem:[%s14093_s8 + $0x844] ss:$16 sps:$4 sm:$0xff]  }
 0x2f7   : > { %8792 = vmatpush1.bf16.msra.mxu0 %v12277_v45  ;;  %9448 = vmatpush1.bf16.msra.mxu1 %v12280_v46  ;;  %v12365_v45 = vld [vmem:[%s14093_s8 + $0x808] ss:$16 sps:$4 sm:$0xff]   ;;  %v12370_v46 = vld [vmem:[%s14093_s8 + $0x824] ss:$16 sps:$4 sm:$0xff]  }
 0x2f8   : > { %8793 = vmatprep.subr.bf16.mxu0 %v12285_v47  ;;  %9449 = vmatprep.subr.bf16.mxu1 %v12288_v48  ;;  %v12373_v47 = vld [vmem:[%s14093_s8 + $0x82c] ss:$16 sps:$4 sm:$0xff]   ;;  %v2475_v48 = vpack.c.bf16 %v2347_v31, %v2347_v31  ;;  %v12446_v31 = vld [vmem:[%s14093_s8 + $0x9c0] ss:$16 sps:$4 sm:$0xff]  }
 0x2fb   : > { %8794 = vmatpush1.bf16.msra.mxu0 %v12283_v50  ;;  %9450 = vmatpush1.bf16.msra.mxu1 %v12286_v51  ;;  %v12368_v50 = vld [vmem:[%s14093_s8 + $0x820] ss:$16 sps:$4 sm:$0xff]   ;;  %v12371_v51 = vld [vmem:[%s14093_s8 + $0x828] ss:$16 sps:$4 sm:$0xff]  }
 0x2fc   : > { %8795 = vmatprep.subr.bf16.mxu0 %v12291_v52  ;;  %9451 = vmatprep.subr.bf16.mxu1 %v12294_v53  ;;  %v12379_v52 = vld [vmem:[%s14093_s8 + $0x84c] ss:$16 sps:$4 sm:$0xff]   ;;  %v12374_v53 = vld [vmem:[%s14093_s8 + $0x840] ss:$16 sps:$4 sm:$0xff]  }
 0x2ff   : > { %8796 = vmatpush1.bf16.msra.mxu0 %v12289_v55  ;;  %9452 = vmatpush1.bf16.msra.mxu1 %v12292_v57  ;;  %v12377_v55 = vld [vmem:[%s14093_s8 + $0x848] ss:$16 sps:$4 sm:$0xff]   ;;  %v12382_v57 = vld [vmem:[%s14093_s8 + $0x864] ss:$16 sps:$4 sm:$0xff]  }
 0x300   : > { %8797 = vmatprep.subr.bf16.mxu0 %v12297_v58  ;;  %9453 = vmatprep.subr.bf16.mxu1 %v12300_v59  ;;  %v12385_v58 = vld [vmem:[%s14093_s8 + $0x86c] ss:$16 sps:$4 sm:$0xff]   ;;  %v12380_v59 = vld [vmem:[%s14093_s8 + $0x860] ss:$16 sps:$4 sm:$0xff]  }
 0x303   : > { %8798 = vmatpush1.bf16.msra.mxu0 %v12295_v60  ;;  %9454 = vmatpush1.bf16.msra.mxu1 %v12298_v0  ;;  %v12383_v60 = vld [vmem:[%s14093_s8 + $0x868] ss:$16 sps:$4 sm:$0xff]   ;;  %v12388_v0 = vld [vmem:[%s14093_s8 + $0x884] ss:$16 sps:$4 sm:$0xff]  }
 0x304   : > { %8799 = vmatprep.subr.bf16.mxu0 %v12303_v2  ;;  %9455 = vmatprep.subr.bf16.mxu1 %v12306_v61  ;;  %v12391_v2 = vld [vmem:[%s14093_s8 + $0x88c] ss:$16 sps:$4 sm:$0xff]   ;;  %v12386_v61 = vld [vmem:[%s14093_s8 + $0x880] ss:$16 sps:$4 sm:$0xff]  }
 0x307   : > { %8800 = vmatpush1.bf16.msra.mxu0 %v12301_v3  ;;  %9456 = vmatpush1.bf16.msra.mxu1 %v12304_v62  ;;  %v12389_v3 = vld [vmem:[%s14093_s8 + $0x888] ss:$16 sps:$4 sm:$0xff]   ;;  %v12394_v62 = vld [vmem:[%s14093_s8 + $0x8a4] ss:$16 sps:$4 sm:$0xff]  }
 0x308   : > { %8801 = vmatprep.subr.bf16.mxu0 %v12309_v4  ;;  %9457 = vmatprep.subr.bf16.mxu1 %v12312_v63  ;;  %v12397_v4 = vld [vmem:[%s14093_s8 + $0x8ac] ss:$16 sps:$4 sm:$0xff]   ;;  %v12392_v63 = vld [vmem:[%s14093_s8 + $0x8a0] ss:$16 sps:$4 sm:$0xff]  }
 0x30b   : > { %8802 = vmatpush1.bf16.msra.mxu0 %v12307_v1  ;;  %9458 = vmatpush1.bf16.msra.mxu1 %v12310_v5  ;;  %v12395_v1 = vld [vmem:[%s14093_s8 + $0x8a8] ss:$16 sps:$4 sm:$0xff]   ;;  %v12400_v5 = vld [vmem:[%s14093_s8 + $0x8c4] ss:$16 sps:$4 sm:$0xff]  }
 0x30c   : > { %8803 = vmatprep.subr.bf16.mxu0 %v12315_v6  ;;  %9459 = vmatprep.subr.bf16.mxu1 %v12318_v7  ;;  %v12403_v6 = vld [vmem:[%s14093_s8 + $0x8cc] ss:$16 sps:$4 sm:$0xff]   ;;  %v12398_v7 = vld [vmem:[%s14093_s8 + $0x8c0] ss:$16 sps:$4 sm:$0xff]  }
 0x30f   : > { %8804 = vmatpush1.bf16.msra.mxu0 %v12313_v9  ;;  %9460 = vmatpush1.bf16.msra.mxu1 %v12316_v10  ;;  %v12401_v9 = vld [vmem:[%s14093_s8 + $0x8c8] ss:$16 sps:$4 sm:$0xff]   ;;  %v12406_v10 = vld [vmem:[%s14093_s8 + $0x8e4] ss:$16 sps:$4 sm:$0xff]  }
 0x310   : > { %8805 = vmatprep.subr.bf16.mxu0 %v12321_v54  ;;  %9461 = vmatprep.subr.bf16.mxu1 %v12324_v11  ;;  %v12409_v54 = vld [vmem:[%s14093_s8 + $0x8ec] ss:$16 sps:$4 sm:$0xff]   ;;  %v12404_v11 = vld [vmem:[%s14093_s8 + $0x8e0] ss:$16 sps:$4 sm:$0xff]  }
 0x313   : > { %8806 = vmatpush1.bf16.msra.mxu0 %v12319_v12  ;;  %9462 = vmatpush1.bf16.msra.mxu1 %v12322_v13  ;;  %v12407_v12 = vld [vmem:[%s14093_s8 + $0x8e8] ss:$16 sps:$4 sm:$0xff]   ;;  %v12412_v13 = vld [vmem:[%s14093_s8 + $0x904] ss:$16 sps:$4 sm:$0xff]  }
 0x314   : > { %8807 = vmatprep.subr.bf16.mxu0 %v12327_v14  ;;  %9463 = vmatprep.subr.bf16.mxu1 %v12330_v15  ;;  %v12415_v14 = vld [vmem:[%s14093_s8 + $0x90c] ss:$16 sps:$4 sm:$0xff]   ;;  %v12410_v15 = vld [vmem:[%s14093_s8 + $0x900] ss:$16 sps:$4 sm:$0xff]  }
 0x317   : > { %8808 = vmatpush1.bf16.msra.mxu0 %v12325_v17  ;;  %9464 = vmatpush1.bf16.msra.mxu1 %v12328_v18  ;;  %v12413_v17 = vld [vmem:[%s14093_s8 + $0x908] ss:$16 sps:$4 sm:$0xff]   ;;  %v12418_v18 = vld [vmem:[%s14093_s8 + $0x924] ss:$16 sps:$4 sm:$0xff]  }
 0x318   : > { %8809 = vmatprep.subr.bf16.mxu0 %v12333_v19  ;;  %9465 = vmatprep.subr.bf16.mxu1 %v12336_v20  ;;  %v12421_v19 = vld [vmem:[%s14093_s8 + $0x92c] ss:$16 sps:$4 sm:$0xff]   ;;  %v12416_v20 = vld [vmem:[%s14093_s8 + $0x920] ss:$16 sps:$4 sm:$0xff]  }
 0x31b   : > { %8810 = vmatpush1.bf16.msra.mxu0 %v12331_v21  ;;  %9466 = vmatpush1.bf16.msra.mxu1 %v12334_v22  ;;  %v12419_v21 = vld [vmem:[%s14093_s8 + $0x928] ss:$16 sps:$4 sm:$0xff]   ;;  %v12424_v22 = vld [vmem:[%s14093_s8 + $0x944] ss:$16 sps:$4 sm:$0xff]  }
 0x31c   : > { %8811 = vmatprep.subr.bf16.mxu0 %v12339_v23  ;;  %9467 = vmatprep.subr.bf16.mxu1 %v12342_v24  ;;  %v12427_v23 = vld [vmem:[%s14093_s8 + $0x94c] ss:$16 sps:$4 sm:$0xff]   ;;  %v12422_v24 = vld [vmem:[%s14093_s8 + $0x940] ss:$16 sps:$4 sm:$0xff]  }
 0x31f   : > { %8812 = vmatpush1.bf16.msra.mxu0 %v12337_v8  ;;  %9468 = vmatpush1.bf16.msra.mxu1 %v12340_v25  ;;  %v12425_v8 = vld [vmem:[%s14093_s8 + $0x948] ss:$16 sps:$4 sm:$0xff]   ;;  %v12430_v25 = vld [vmem:[%s14093_s8 + $0x964] ss:$16 sps:$4 sm:$0xff]  }
 0x320   : > { %8813 = vmatprep.subr.bf16.mxu0 %v12345_v26  ;;  %9469 = vmatprep.subr.bf16.mxu1 %v12348_v28  ;;  %v12433_v26 = vld [vmem:[%s14093_s8 + $0x96c] ss:$16 sps:$4 sm:$0xff]   ;;  %v12428_v28 = vld [vmem:[%s14093_s8 + $0x960] ss:$16 sps:$4 sm:$0xff]  }
 0x323   : > { %8814 = vmatpush1.bf16.msra.mxu0 %v12343_v32  ;;  %9470 = vmatpush1.bf16.msra.mxu1 %v12346_v34  ;;  %v12431_v32 = vld [vmem:[%s14093_s8 + $0x968] ss:$16 sps:$4 sm:$0xff]   ;;  %v12436_v34 = vld [vmem:[%s14093_s8 + $0x984] ss:$16 sps:$4 sm:$0xff]  }
 0x324   : > { %8815 = vmatprep.subr.bf16.mxu0 %v12351_v33  ;;  %9471 = vmatprep.subr.bf16.mxu1 %v12354_v16  ;;  %v12439_v33 = vld [vmem:[%s14093_s8 + $0x98c] ss:$16 sps:$4 sm:$0xff]   ;;  %v12434_v16 = vld [vmem:[%s14093_s8 + $0x980] ss:$16 sps:$4 sm:$0xff]  }
 0x327   : > { %8816 = vmatpush1.bf16.msra.mxu0 %v12349_v44  ;;  %9472 = vmatpush1.bf16.msra.mxu1 %v12352_v38  ;;  %v12437_v44 = vld [vmem:[%s14093_s8 + $0x988] ss:$16 sps:$4 sm:$0xff]   ;;  %v12442_v38 = vld [vmem:[%s14093_s8 + $0x9a4] ss:$16 sps:$4 sm:$0xff]  }
 0x328   : > { %8817 = vmatprep.subr.bf16.mxu0 %v12357_v39  ;;  %9473 = vmatprep.subr.bf16.mxu1 %v12360_v27  ;;  %v12445_v39 = vld [vmem:[%s14093_s8 + $0x9ac] ss:$16 sps:$4 sm:$0xff]   ;;  %v12440_v27 = vld [vmem:[%s14093_s8 + $0x9a0] ss:$16 sps:$4 sm:$0xff]  }
 0x32b   : > { %8818 = vmatpush1.bf16.msra.mxu0 %v12355_v29  ;;  %9474 = vmatpush1.bf16.msra.mxu1 %v12358_v41  ;;  %v12443_v29 = vld [vmem:[%s14093_s8 + $0x9a8] ss:$16 sps:$4 sm:$0xff]   ;;  %v12448_v41 = vld [vmem:[%s14093_s8 + $0x9c4] ss:$16 sps:$4 sm:$0xff]  }
 0x32c   : > { %8828 = vmatprep.subr.bf16.mxu0 %v12364_v30  ;;  %9484 = vmatprep.subr.bf16.mxu1 %v12367_v36  ;;  %v12451_v30 = vld [vmem:[%s14093_s8 + $0x9cc] ss:$16 sps:$4 sm:$0xff]   ;;  %v2332_v36 = vcombine.high %v14541_v37, %v14541_v37  ;;  %v12452_v37 = vld [vmem:[%s14093_s8 + $0x9e0] ss:$16 sps:$4 sm:$0xff]  }
 0x32e   : > { %8820 = vmatmul.mubr.bf16.vlgmr.msra.gmra.mrb[0].mxu0 %v2472_v43  ;;  %9476 = vmatmul.mubr.bf16.vlgmr.msra.gmra.mrb[0].mxu1 %v2472_v43  ;;  %v12454_v43 = vld [vmem:[%s14093_s8 + $0x9e4] ss:$16 sps:$4 sm:$0xff]  }
 0x32f   : > { %8829 = vmatpush1.bf16.msra.mxu0 %v12362_v42  ;;  %9485 = vmatpush1.bf16.msra.mxu1 %v12365_v45  ;;  %v12449_v42 = vld [vmem:[%s14093_s8 + $0x9c8] ss:$16 sps:$4 sm:$0xff]   ;;  %v12457_v45 = vld [vmem:[%s14093_s8 + $0x9ec] ss:$16 sps:$4 sm:$0xff]  }
 0x330   : > { %8830 = vmatprep.subr.bf16.mxu0 %v12370_v46  ;;  %9486 = vmatprep.subr.bf16.mxu1 %v12373_v47  ;;  %v14621_v46 = vrot.slane %v2332_v36, %v14307_v56  ;;  %v12455_v47 = vld [vmem:[%s14093_s8 + $0x9e8] ss:$16 sps:$4 sm:$0xff]  }
 0x331   : > { %8860 = vmatprep.mubr.bf16.mxu0 %v2475_v48  ;;  %9516 = vmatprep.mubr.bf16.mxu1 %v2475_v48  ;;  %v12460_v48 = vld [vmem:[%s14093_s8 + $0xa04] ss:$16 sps:$4 sm:$0xff]   ;;  %v12533_v36 = vld [vmem:[%s14093_s8 + $0xb88] ss:$16 sps:$4 sm:$0xff]  }
 0x333   : > { %8831 = vmatpush1.bf16.msra.mxu0 %v12368_v50  ;;  %9487 = vmatpush1.bf16.msra.mxu1 %v12371_v51  ;;  %v12463_v50 = vld [vmem:[%s14093_s8 + $0xa0c] ss:$16 sps:$4 sm:$0xff]   ;;  %v2348_v51 = vcombine.high %v14621_v46, %v14621_v46 }
 0x334   : > { %8832 = vmatprep.subr.bf16.mxu0 %v12376_v35  ;;  %9488 = vmatprep.subr.bf16.mxu1 %v12379_v52  ;;  %v2474_v35 = vpack.c.bf16 %v14548_v40, %v14548_v40  ;;  %v12458_v52 = vld [vmem:[%s14093_s8 + $0xa00] ss:$16 sps:$4 sm:$0xff]  }
 0x335   : > { %v12464_v40 = vld [vmem:[%s14093_s8 + $0xa20] ss:$16 sps:$4 sm:$0xff]  }
 0x337   : > { %8833 = vmatpush1.bf16.msra.mxu0 %v12374_v53  ;;  %9489 = vmatpush1.bf16.msra.mxu1 %v12377_v55  ;;  %v12461_v53 = vld [vmem:[%s14093_s8 + $0xa08] ss:$16 sps:$4 sm:$0xff]   ;;  %v12466_v55 = vld [vmem:[%s14093_s8 + $0xa24] ss:$16 sps:$4 sm:$0xff]  }
 0x338   : > { %8834 = vmatprep.subr.bf16.mxu0 %v12382_v57  ;;  %9490 = vmatprep.subr.bf16.mxu1 %v12385_v58  ;;  %v12469_v57 = vld [vmem:[%s14093_s8 + $0xa2c] ss:$16 sps:$4 sm:$0xff]   ;;  %v2477_v58 = vpack.c.bf16 %v2348_v51, %v2348_v51  ;;  %v12545_v51 = vld [vmem:[%s14093_s8 + $0xbc8] ss:$16 sps:$4 sm:$0xff]  }
 0x33b   : > { %8835 = vmatpush1.bf16.msra.mxu0 %v12380_v59  ;;  %9491 = vmatpush1.bf16.msra.mxu1 %v12383_v60  ;;  %v12467_v59 = vld [vmem:[%s14093_s8 + $0xa28] ss:$16 sps:$4 sm:$0xff]   ;;  %v12472_v60 = vld [vmem:[%s14093_s8 + $0xa44] ss:$16 sps:$4 sm:$0xff]  }
 0x33c   : > { %8836 = vmatprep.subr.bf16.mxu0 %v12388_v0  ;;  %9492 = vmatprep.subr.bf16.mxu1 %v12391_v2  ;;  %v12475_v0 = vld [vmem:[%s14093_s8 + $0xa4c] ss:$16 sps:$4 sm:$0xff]   ;;  %v12470_v2 = vld [vmem:[%s14093_s8 + $0xa40] ss:$16 sps:$4 sm:$0xff]  }
 0x33f   : > { %8837 = vmatpush1.bf16.msra.mxu0 %v12386_v61  ;;  %9493 = vmatpush1.bf16.msra.mxu1 %v12389_v3  ;;  %v12473_v61 = vld [vmem:[%s14093_s8 + $0xa48] ss:$16 sps:$4 sm:$0xff]   ;;  %v12478_v3 = vld [vmem:[%s14093_s8 + $0xa64] ss:$16 sps:$4 sm:$0xff]  }
 0x340   : > { %8838 = vmatprep.subr.bf16.mxu0 %v12394_v62  ;;  %9494 = vmatprep.subr.bf16.mxu1 %v12397_v4  ;;  %v12481_v62 = vld [vmem:[%s14093_s8 + $0xa6c] ss:$16 sps:$4 sm:$0xff]   ;;  %v12476_v4 = vld [vmem:[%s14093_s8 + $0xa60] ss:$16 sps:$4 sm:$0xff]  }
 0x343   : > { %8839 = vmatpush1.bf16.msra.mxu0 %v12392_v63  ;;  %9495 = vmatpush1.bf16.msra.mxu1 %v12395_v1  ;;  %v12479_v63 = vld [vmem:[%s14093_s8 + $0xa68] ss:$16 sps:$4 sm:$0xff]   ;;  %v12484_v1 = vld [vmem:[%s14093_s8 + $0xa84] ss:$16 sps:$4 sm:$0xff]  }
 0x344   : > { %8840 = vmatprep.subr.bf16.mxu0 %v12400_v5  ;;  %9496 = vmatprep.subr.bf16.mxu1 %v12403_v6  ;;  %v12487_v5 = vld [vmem:[%s14093_s8 + $0xa8c] ss:$16 sps:$4 sm:$0xff]   ;;  %v12482_v6 = vld [vmem:[%s14093_s8 + $0xa80] ss:$16 sps:$4 sm:$0xff]  }
 0x347   : > { %8841 = vmatpush1.bf16.msra.mxu0 %v12398_v7  ;;  %9497 = vmatpush1.bf16.msra.mxu1 %v12401_v9  ;;  %v12485_v7 = vld [vmem:[%s14093_s8 + $0xa88] ss:$16 sps:$4 sm:$0xff]   ;;  %v12490_v9 = vld [vmem:[%s14093_s8 + $0xaa4] ss:$16 sps:$4 sm:$0xff]  }
 0x348   : > { %8842 = vmatprep.subr.bf16.mxu0 %v12406_v10  ;;  %9498 = vmatprep.subr.bf16.mxu1 %v12409_v54  ;;  %v12493_v10 = vld [vmem:[%s14093_s8 + $0xaac] ss:$16 sps:$4 sm:$0xff]   ;;  %v12488_v54 = vld [vmem:[%s14093_s8 + $0xaa0] ss:$16 sps:$4 sm:$0xff]  }
 0x34b   : > { %8843 = vmatpush1.bf16.msra.mxu0 %v12404_v11  ;;  %9499 = vmatpush1.bf16.msra.mxu1 %v12407_v12  ;;  %v12491_v11 = vld [vmem:[%s14093_s8 + $0xaa8] ss:$16 sps:$4 sm:$0xff]   ;;  %v12496_v12 = vld [vmem:[%s14093_s8 + $0xac4] ss:$16 sps:$4 sm:$0xff]  }
 0x34c   : > { %8844 = vmatprep.subr.bf16.mxu0 %v12412_v13  ;;  %9500 = vmatprep.subr.bf16.mxu1 %v12415_v14  ;;  %v12499_v13 = vld [vmem:[%s14093_s8 + $0xacc] ss:$16 sps:$4 sm:$0xff]   ;;  %v12494_v14 = vld [vmem:[%s14093_s8 + $0xac0] ss:$16 sps:$4 sm:$0xff]  }
 0x34f   : > { %8845 = vmatpush1.bf16.msra.mxu0 %v12410_v15  ;;  %9501 = vmatpush1.bf16.msra.mxu1 %v12413_v17  ;;  %v12497_v15 = vld [vmem:[%s14093_s8 + $0xac8] ss:$16 sps:$4 sm:$0xff]   ;;  %v12502_v17 = vld [vmem:[%s14093_s8 + $0xae4] ss:$16 sps:$4 sm:$0xff]  }
 0x350   : > { %8846 = vmatprep.subr.bf16.mxu0 %v12418_v18  ;;  %9502 = vmatprep.subr.bf16.mxu1 %v12421_v19  ;;  %v12505_v18 = vld [vmem:[%s14093_s8 + $0xaec] ss:$16 sps:$4 sm:$0xff]   ;;  %v12500_v19 = vld [vmem:[%s14093_s8 + $0xae0] ss:$16 sps:$4 sm:$0xff]  }
 0x353   : > { %8847 = vmatpush1.bf16.msra.mxu0 %v12416_v20  ;;  %9503 = vmatpush1.bf16.msra.mxu1 %v12419_v21  ;;  %v12503_v20 = vld [vmem:[%s14093_s8 + $0xae8] ss:$16 sps:$4 sm:$0xff]   ;;  %v12508_v21 = vld [vmem:[%s14093_s8 + $0xb04] ss:$16 sps:$4 sm:$0xff]  }
 0x354   : > { %8848 = vmatprep.subr.bf16.mxu0 %v12424_v22  ;;  %9504 = vmatprep.subr.bf16.mxu1 %v12427_v23  ;;  %v12511_v22 = vld [vmem:[%s14093_s8 + $0xb0c] ss:$16 sps:$4 sm:$0xff]   ;;  %v12506_v23 = vld [vmem:[%s14093_s8 + $0xb00] ss:$16 sps:$4 sm:$0xff]  }
 0x357   : > { %8849 = vmatpush1.bf16.msra.mxu0 %v12422_v24  ;;  %9505 = vmatpush1.bf16.msra.mxu1 %v12425_v8  ;;  %v12509_v24 = vld [vmem:[%s14093_s8 + $0xb08] ss:$16 sps:$4 sm:$0xff]   ;;  %v12514_v8 = vld [vmem:[%s14093_s8 + $0xb24] ss:$16 sps:$4 sm:$0xff]  }
 0x358   : > { %8850 = vmatprep.subr.bf16.mxu0 %v12430_v25  ;;  %9506 = vmatprep.subr.bf16.mxu1 %v12433_v26  ;;  %v12517_v25 = vld [vmem:[%s14093_s8 + $0xb2c] ss:$16 sps:$4 sm:$0xff]   ;;  %v12512_v26 = vld [vmem:[%s14093_s8 + $0xb20] ss:$16 sps:$4 sm:$0xff]  }
 0x35b   : > { %8851 = vmatpush1.bf16.msra.mxu0 %v12428_v28  ;;  %9507 = vmatpush1.bf16.msra.mxu1 %v12431_v32  ;;  %v12515_v28 = vld [vmem:[%s14093_s8 + $0xb28] ss:$16 sps:$4 sm:$0xff]   ;;  %v12520_v32 = vld [vmem:[%s14093_s8 + $0xb44] ss:$16 sps:$4 sm:$0xff]  }
 0x35c   : > { %8852 = vmatprep.subr.bf16.mxu0 %v12436_v34  ;;  %9508 = vmatprep.subr.bf16.mxu1 %v12439_v33  ;;  %v12523_v34 = vld [vmem:[%s14093_s8 + $0xb4c] ss:$16 sps:$4 sm:$0xff]   ;;  %v12518_v33 = vld [vmem:[%s14093_s8 + $0xb40] ss:$16 sps:$4 sm:$0xff]  }
 0x35f   : > { %8853 = vmatpush1.bf16.msra.mxu0 %v12434_v16  ;;  %9509 = vmatpush1.bf16.msra.mxu1 %v12437_v44  ;;  %v12521_v16 = vld [vmem:[%s14093_s8 + $0xb48] ss:$16 sps:$4 sm:$0xff]   ;;  %v12526_v44 = vld [vmem:[%s14093_s8 + $0xb64] ss:$16 sps:$4 sm:$0xff]  }
 0x360   : > { %8854 = vmatprep.subr.bf16.mxu0 %v12442_v38  ;;  %9510 = vmatprep.subr.bf16.mxu1 %v12445_v39  ;;  %v12529_v38 = vld [vmem:[%s14093_s8 + $0xb6c] ss:$16 sps:$4 sm:$0xff]   ;;  %v12524_v39 = vld [vmem:[%s14093_s8 + $0xb60] ss:$16 sps:$4 sm:$0xff]  }
 0x363   : > { %8855 = vmatpush1.bf16.msra.mxu0 %v12440_v27  ;;  %9511 = vmatpush1.bf16.msra.mxu1 %v12443_v29  ;;  %v12527_v27 = vld [vmem:[%s14093_s8 + $0xb68] ss:$16 sps:$4 sm:$0xff]   ;;  %v12532_v29 = vld [vmem:[%s14093_s8 + $0xb84] ss:$16 sps:$4 sm:$0xff]  }
 0x364   : > { %8856 = vmatprep.subr.bf16.mxu0 %v12448_v41  ;;  %9512 = vmatprep.subr.bf16.mxu1 %v12451_v30  ;;  %v12535_v41 = vld [vmem:[%s14093_s8 + $0xb8c] ss:$16 sps:$4 sm:$0xff]   ;;  %v12530_v30 = vld [vmem:[%s14093_s8 + $0xb80] ss:$16 sps:$4 sm:$0xff]  }
 0x367   : > { %8857 = vmatpush1.bf16.msra.mxu0 %v12446_v31  ;;  %9513 = vmatpush1.bf16.msra.mxu1 %v12449_v42  ;;  %v12538_v31 = vld [vmem:[%s14093_s8 + $0xba4] ss:$16 sps:$4 sm:$0xff]   ;;  %v12541_v42 = vld [vmem:[%s14093_s8 + $0xbac] ss:$16 sps:$4 sm:$0xff]  }
 0x368   : > { %8858 = vmatprep.subr.bf16.mxu0 %v12454_v43  ;;  %9514 = vmatprep.subr.bf16.mxu1 %v12457_v45  ;;  %v12536_v43 = vld [vmem:[%s14093_s8 + $0xba0] ss:$16 sps:$4 sm:$0xff]   ;;  %v12539_v45 = vld [vmem:[%s14093_s8 + $0xba8] ss:$16 sps:$4 sm:$0xff]  }
 0x36b   : > { %8859 = vmatpush1.bf16.msra.mxu0 %v12452_v37  ;;  %9515 = vmatpush1.bf16.msra.mxu1 %v12455_v47  ;;  %v12544_v37 = vld [vmem:[%s14093_s8 + $0xbc4] ss:$16 sps:$4 sm:$0xff]   ;;  %v12547_v47 = vld [vmem:[%s14093_s8 + $0xbcc] ss:$16 sps:$4 sm:$0xff]  }
 0x36c   : > { %8869 = vmatprep.subr.bf16.mxu0 %v12460_v48  ;;  %9525 = vmatprep.subr.bf16.mxu1 %v12463_v50  ;;  %v14687_v48 = vld [vmem:[#allocation2 + $0x18] sm:$0xff]  ;;  %v12542_v50 = vld [vmem:[%s14093_s8 + $0xbc0] ss:$16 sps:$4 sm:$0xff]  }
 0x36e   : > { %8861 = vmatmul.mubr.bf16.vlgmr.msra.gmra.mrb[0].mxu0 %v2474_v35  ;;  %9517 = vmatmul.mubr.bf16.vlgmr.msra.gmra.mrb[0].mxu1 %v2474_v35  ;;  %v12550_v35 = vld [vmem:[%s14093_s8 + $0xbe4] ss:$16 sps:$4 sm:$0xff]  }
 0x36f   : > { %8870 = vmatpush1.bf16.msra.mxu0 %v12458_v52  ;;  %9526 = vmatpush1.bf16.msra.mxu1 %v12461_v53  ;;  %v12553_v52 = vld [vmem:[%s14093_s8 + $0xbec] ss:$16 sps:$4 sm:$0xff]   ;;  %v14695_v53 = vrot.slane %v14687_v48, %v14307_v56 }
 0x370   : > { %8871 = vmatprep.subr.bf16.mxu0 %v12466_v55  ;;  %9527 = vmatprep.subr.bf16.mxu1 %v12469_v57  ;;  %v12548_v55 = vld [vmem:[%s14093_s8 + $0xbe0] ss:$16 sps:$4 sm:$0xff]   ;;  %v12551_v57 = vld [vmem:[%s14093_s8 + $0xbe8] ss:$16 sps:$4 sm:$0xff]  }
 0x371   : > { %8901 = vmatprep.mubr.bf16.mxu0 %v2477_v58  ;;  %9557 = vmatprep.mubr.bf16.mxu1 %v2477_v58  ;;  %v12557_v58 = vld [vmem:[%s14093_s8 + $0xc04] ss:$16 sps:$4 sm:$0xff]  }
 0x373   : > { %8872 = vmatpush1.bf16.msra.mxu0 %v12464_v40  ;;  %9528 = vmatpush1.bf16.msra.mxu1 %v12467_v59  ;;  %v12560_v40 = vld [vmem:[%s14093_s8 + $0xc0c] ss:$16 sps:$4 sm:$0xff]   ;;  %v2364_v59 = vcombine.high %v14695_v53, %v14695_v53 }
 0x374   : > { %8873 = vmatprep.subr.bf16.mxu0 %v12472_v60  ;;  %9529 = vmatprep.subr.bf16.mxu1 %v12475_v0  ;;  %v2476_v60 = vpack.c.bf16 %v14621_v46, %v14621_v46  ;;  %v12555_v0 = vld [vmem:[%s14093_s8 + $0xc00] ss:$16 sps:$4 sm:$0xff]  }
 0x375   : > { %v12561_v46 = vld [vmem:[%s14093_s8 + $0xc20] ss:$16 sps:$4 sm:$0xff]  }
 0x377   : > { %8874 = vmatpush1.bf16.msra.mxu0 %v12470_v2  ;;  %9530 = vmatpush1.bf16.msra.mxu1 %v12473_v61  ;;  %v12558_v2 = vld [vmem:[%s14093_s8 + $0xc08] ss:$16 sps:$4 sm:$0xff]   ;;  %v12563_v61 = vld [vmem:[%s14093_s8 + $0xc24] ss:$16 sps:$4 sm:$0xff]  }
 0x378   : > { %8875 = vmatprep.subr.bf16.mxu0 %v12478_v3  ;;  %9531 = vmatprep.subr.bf16.mxu1 %v12481_v62  ;;  %v12566_v3 = vld [vmem:[%s14093_s8 + $0xc2c] ss:$16 sps:$4 sm:$0xff]   ;;  %v2479_v62 = vpack.c.bf16 %v2364_v59, %v2364_v59  ;;  %v12639_v59 = vld [vmem:[%s14093_s8 + $0xdc0] ss:$16 sps:$4 sm:$0xff]  }
 0x37b   : > { %8876 = vmatpush1.bf16.msra.mxu0 %v12476_v4  ;;  %9532 = vmatpush1.bf16.msra.mxu1 %v12479_v63  ;;  %v12564_v4 = vld [vmem:[%s14093_s8 + $0xc28] ss:$16 sps:$4 sm:$0xff]   ;;  %v12569_v63 = vld [vmem:[%s14093_s8 + $0xc44] ss:$16 sps:$4 sm:$0xff]  }
 0x37c   : > { %8877 = vmatprep.subr.bf16.mxu0 %v12484_v1  ;;  %9533 = vmatprep.subr.bf16.mxu1 %v12487_v5  ;;  %v12572_v1 = vld [vmem:[%s14093_s8 + $0xc4c] ss:$16 sps:$4 sm:$0xff]   ;;  %v12567_v5 = vld [vmem:[%s14093_s8 + $0xc40] ss:$16 sps:$4 sm:$0xff]  }
 0x37f   : > { %8878 = vmatpush1.bf16.msra.mxu0 %v12482_v6  ;;  %9534 = vmatpush1.bf16.msra.mxu1 %v12485_v7  ;;  %v12570_v6 = vld [vmem:[%s14093_s8 + $0xc48] ss:$16 sps:$4 sm:$0xff]   ;;  %v12575_v7 = vld [vmem:[%s14093_s8 + $0xc64] ss:$16 sps:$4 sm:$0xff]  }
 0x380   : > { %8879 = vmatprep.subr.bf16.mxu0 %v12490_v9  ;;  %9535 = vmatprep.subr.bf16.mxu1 %v12493_v10  ;;  %v12578_v9 = vld [vmem:[%s14093_s8 + $0xc6c] ss:$16 sps:$4 sm:$0xff]   ;;  %v12573_v10 = vld [vmem:[%s14093_s8 + $0xc60] ss:$16 sps:$4 sm:$0xff]  }
 0x383   : > { %8880 = vmatpush1.bf16.msra.mxu0 %v12488_v54  ;;  %9536 = vmatpush1.bf16.msra.mxu1 %v12491_v11  ;;  %v12576_v54 = vld [vmem:[%s14093_s8 + $0xc68] ss:$16 sps:$4 sm:$0xff]   ;;  %v12581_v11 = vld [vmem:[%s14093_s8 + $0xc84] ss:$16 sps:$4 sm:$0xff]  }
 0x384   : > { %8881 = vmatprep.subr.bf16.mxu0 %v12496_v12  ;;  %9537 = vmatprep.subr.bf16.mxu1 %v12499_v13  ;;  %v12584_v12 = vld [vmem:[%s14093_s8 + $0xc8c] ss:$16 sps:$4 sm:$0xff]   ;;  %v12579_v13 = vld [vmem:[%s14093_s8 + $0xc80] ss:$16 sps:$4 sm:$0xff]  }
 0x387   : > { %8882 = vmatpush1.bf16.msra.mxu0 %v12494_v14  ;;  %9538 = vmatpush1.bf16.msra.mxu1 %v12497_v15  ;;  %v12582_v14 = vld [vmem:[%s14093_s8 + $0xc88] ss:$16 sps:$4 sm:$0xff]   ;;  %v12587_v15 = vld [vmem:[%s14093_s8 + $0xca4] ss:$16 sps:$4 sm:$0xff]  }
 0x388   : > { %8883 = vmatprep.subr.bf16.mxu0 %v12502_v17  ;;  %9539 = vmatprep.subr.bf16.mxu1 %v12505_v18  ;;  %v12590_v17 = vld [vmem:[%s14093_s8 + $0xcac] ss:$16 sps:$4 sm:$0xff]   ;;  %v12585_v18 = vld [vmem:[%s14093_s8 + $0xca0] ss:$16 sps:$4 sm:$0xff]  }
 0x38b   : > { %8884 = vmatpush1.bf16.msra.mxu0 %v12500_v19  ;;  %9540 = vmatpush1.bf16.msra.mxu1 %v12503_v20  ;;  %v12588_v19 = vld [vmem:[%s14093_s8 + $0xca8] ss:$16 sps:$4 sm:$0xff]   ;;  %v12593_v20 = vld [vmem:[%s14093_s8 + $0xcc4] ss:$16 sps:$4 sm:$0xff]  }
 0x38c   : > { %8885 = vmatprep.subr.bf16.mxu0 %v12508_v21  ;;  %9541 = vmatprep.subr.bf16.mxu1 %v12511_v22  ;;  %v12596_v21 = vld [vmem:[%s14093_s8 + $0xccc] ss:$16 sps:$4 sm:$0xff]   ;;  %v12591_v22 = vld [vmem:[%s14093_s8 + $0xcc0] ss:$16 sps:$4 sm:$0xff]  }
 0x38f   : > { %8886 = vmatpush1.bf16.msra.mxu0 %v12506_v23  ;;  %9542 = vmatpush1.bf16.msra.mxu1 %v12509_v24  ;;  %v12594_v23 = vld [vmem:[%s14093_s8 + $0xcc8] ss:$16 sps:$4 sm:$0xff]   ;;  %v12599_v24 = vld [vmem:[%s14093_s8 + $0xce4] ss:$16 sps:$4 sm:$0xff]  }
 0x390   : > { %8887 = vmatprep.subr.bf16.mxu0 %v12514_v8  ;;  %9543 = vmatprep.subr.bf16.mxu1 %v12517_v25  ;;  %v12602_v8 = vld [vmem:[%s14093_s8 + $0xcec] ss:$16 sps:$4 sm:$0xff]   ;;  %v12597_v25 = vld [vmem:[%s14093_s8 + $0xce0] ss:$16 sps:$4 sm:$0xff]  }
 0x393   : > { %8888 = vmatpush1.bf16.msra.mxu0 %v12512_v26  ;;  %9544 = vmatpush1.bf16.msra.mxu1 %v12515_v28  ;;  %v12600_v26 = vld [vmem:[%s14093_s8 + $0xce8] ss:$16 sps:$4 sm:$0xff]   ;;  %v12605_v28 = vld [vmem:[%s14093_s8 + $0xd04] ss:$16 sps:$4 sm:$0xff]  }
 0x394   : > { %8889 = vmatprep.subr.bf16.mxu0 %v12520_v32  ;;  %9545 = vmatprep.subr.bf16.mxu1 %v12523_v34  ;;  %v12608_v32 = vld [vmem:[%s14093_s8 + $0xd0c] ss:$16 sps:$4 sm:$0xff]   ;;  %v12603_v34 = vld [vmem:[%s14093_s8 + $0xd00] ss:$16 sps:$4 sm:$0xff]  }
 0x397   : > { %8890 = vmatpush1.bf16.msra.mxu0 %v12518_v33  ;;  %9546 = vmatpush1.bf16.msra.mxu1 %v12521_v16  ;;  %v12606_v33 = vld [vmem:[%s14093_s8 + $0xd08] ss:$16 sps:$4 sm:$0xff]   ;;  %v12611_v16 = vld [vmem:[%s14093_s8 + $0xd24] ss:$16 sps:$4 sm:$0xff]  }
 0x398   : > { %8891 = vmatprep.subr.bf16.mxu0 %v12526_v44  ;;  %9547 = vmatprep.subr.bf16.mxu1 %v12529_v38  ;;  %v12614_v44 = vld [vmem:[%s14093_s8 + $0xd2c] ss:$16 sps:$4 sm:$0xff]   ;;  %v12609_v38 = vld [vmem:[%s14093_s8 + $0xd20] ss:$16 sps:$4 sm:$0xff]  }
 0x39b   : > { %8892 = vmatpush1.bf16.msra.mxu0 %v12524_v39  ;;  %9548 = vmatpush1.bf16.msra.mxu1 %v12527_v27  ;;  %v12612_v39 = vld [vmem:[%s14093_s8 + $0xd28] ss:$16 sps:$4 sm:$0xff]   ;;  %v12617_v27 = vld [vmem:[%s14093_s8 + $0xd44] ss:$16 sps:$4 sm:$0xff]  }
 0x39c   : > { %8893 = vmatprep.subr.bf16.mxu0 %v12532_v29  ;;  %9549 = vmatprep.subr.bf16.mxu1 %v12535_v41  ;;  %v12620_v29 = vld [vmem:[%s14093_s8 + $0xd4c] ss:$16 sps:$4 sm:$0xff]   ;;  %v12615_v41 = vld [vmem:[%s14093_s8 + $0xd40] ss:$16 sps:$4 sm:$0xff]  }
 0x39f   : > { %8894 = vmatpush1.bf16.msra.mxu0 %v12530_v30  ;;  %9550 = vmatpush1.bf16.msra.mxu1 %v12533_v36  ;;  %v12618_v30 = vld [vmem:[%s14093_s8 + $0xd48] ss:$16 sps:$4 sm:$0xff]   ;;  %v12623_v36 = vld [vmem:[%s14093_s8 + $0xd64] ss:$16 sps:$4 sm:$0xff]  }
 0x3a0   : > { %8895 = vmatprep.subr.bf16.mxu0 %v12538_v31  ;;  %9551 = vmatprep.subr.bf16.mxu1 %v12541_v42  ;;  %v12626_v31 = vld [vmem:[%s14093_s8 + $0xd6c] ss:$16 sps:$4 sm:$0xff]   ;;  %v12621_v42 = vld [vmem:[%s14093_s8 + $0xd60] ss:$16 sps:$4 sm:$0xff]  }
 0x3a3   : > { %8896 = vmatpush1.bf16.msra.mxu0 %v12536_v43  ;;  %9552 = vmatpush1.bf16.msra.mxu1 %v12539_v45  ;;  %v12624_v43 = vld [vmem:[%s14093_s8 + $0xd68] ss:$16 sps:$4 sm:$0xff]   ;;  %v12629_v45 = vld [vmem:[%s14093_s8 + $0xd84] ss:$16 sps:$4 sm:$0xff]  }
 0x3a4   : > { %8897 = vmatprep.subr.bf16.mxu0 %v12544_v37  ;;  %9553 = vmatprep.subr.bf16.mxu1 %v12547_v47  ;;  %v12632_v37 = vld [vmem:[%s14093_s8 + $0xd8c] ss:$16 sps:$4 sm:$0xff]   ;;  %v12627_v47 = vld [vmem:[%s14093_s8 + $0xd80] ss:$16 sps:$4 sm:$0xff]  }
 0x3a7   : > { %8898 = vmatpush1.bf16.msra.mxu0 %v12542_v50  ;;  %9554 = vmatpush1.bf16.msra.mxu1 %v12545_v51  ;;  %v12630_v50 = vld [vmem:[%s14093_s8 + $0xd88] ss:$16 sps:$4 sm:$0xff]   ;;  %v12635_v51 = vld [vmem:[%s14093_s8 + $0xda4] ss:$16 sps:$4 sm:$0xff]  }
 0x3a8   : > { %8899 = vmatprep.subr.bf16.mxu0 %v12550_v35  ;;  %9555 = vmatprep.subr.bf16.mxu1 %v12553_v52  ;;  %v12638_v35 = vld [vmem:[%s14093_s8 + $0xdac] ss:$16 sps:$4 sm:$0xff]   ;;  %v12633_v52 = vld [vmem:[%s14093_s8 + $0xda0] ss:$16 sps:$4 sm:$0xff]  }
 0x3ab   : > { %8900 = vmatpush1.bf16.msra.mxu0 %v12548_v55  ;;  %9556 = vmatpush1.bf16.msra.mxu1 %v12551_v57  ;;  %v12636_v55 = vld [vmem:[%s14093_s8 + $0xda8] ss:$16 sps:$4 sm:$0xff]   ;;  %v12641_v57 = vld [vmem:[%s14093_s8 + $0xdc4] ss:$16 sps:$4 sm:$0xff]  }
 0x3ac   : > { %8910 = vmatprep.subr.bf16.mxu0 %v12557_v58  ;;  %9566 = vmatprep.subr.bf16.mxu1 %v12560_v40  ;;  %v12644_v58 = vld [vmem:[%s14093_s8 + $0xdcc] ss:$16 sps:$4 sm:$0xff]   ;;  %v2349_v40 = vcombine.high %v14687_v48, %v14687_v48  ;;  %v12645_v48 = vld [vmem:[%s14093_s8 + $0xde0] ss:$16 sps:$4 sm:$0xff]  }
 0x3ae   : > { %8902 = vmatmul.mubr.bf16.vlgmr.msra.gmra.mrb[0].mxu0 %v2476_v60  ;;  %9558 = vmatmul.mubr.bf16.vlgmr.msra.gmra.mrb[0].mxu1 %v2476_v60  ;;  %v12642_v60 = vld [vmem:[%s14093_s8 + $0xdc8] ss:$16 sps:$4 sm:$0xff]  }
 0x3af   : > { %8911 = vmatpush1.bf16.msra.mxu0 %v12555_v0  ;;  %9567 = vmatpush1.bf16.msra.mxu1 %v12558_v2  ;;  %v12647_v0 = vld [vmem:[%s14093_s8 + $0xde4] ss:$16 sps:$4 sm:$0xff]   ;;  %v12650_v2 = vld [vmem:[%s14093_s8 + $0xdec] ss:$16 sps:$4 sm:$0xff]  }
 0x3b0   : > { %8912 = vmatprep.subr.bf16.mxu0 %v12563_v61  ;;  %9568 = vmatprep.subr.bf16.mxu1 %v12566_v3  ;;  %v14768_v61 = vrot.slane %v2349_v40, %v14307_v56  ;;  %v12648_v3 = vld [vmem:[%s14093_s8 + $0xde8] ss:$16 sps:$4 sm:$0xff]  }
 0x3b1   : > { %8942 = vmatprep.mubr.bf16.mxu0 %v2479_v62  ;;  %9598 = vmatprep.mubr.bf16.mxu1 %v2479_v62  ;;  %v12653_v62 = vld [vmem:[%s14093_s8 + $0xe04] ss:$16 sps:$4 sm:$0xff]   ;;  %v12726_v40 = vld [vmem:[%s14093_s8 + $0xf88] ss:$16 sps:$4 sm:$0xff]  }
 0x3b3   : > { %8913 = vmatpush1.bf16.msra.mxu0 %v12561_v46  ;;  %9569 = vmatpush1.bf16.msra.mxu1 %v12564_v4  ;;  %v12656_v46 = vld [vmem:[%s14093_s8 + $0xe0c] ss:$16 sps:$4 sm:$0xff]   ;;  %v2365_v4 = vcombine.high %v14768_v61, %v14768_v61 }
 0x3b4   : > { %8914 = vmatprep.subr.bf16.mxu0 %v12569_v63  ;;  %9570 = vmatprep.subr.bf16.mxu1 %v12572_v1  ;;  %v2478_v63 = vpack.c.bf16 %v14695_v53, %v14695_v53  ;;  %v12651_v1 = vld [vmem:[%s14093_s8 + $0xe00] ss:$16 sps:$4 sm:$0xff]  }
 0x3b5   : > { %v12657_v53 = vld [vmem:[%s14093_s8 + $0xe20] ss:$16 sps:$4 sm:$0xff]  }
 0x3b7   : > { %8915 = vmatpush1.bf16.msra.mxu0 %v12567_v5  ;;  %9571 = vmatpush1.bf16.msra.mxu1 %v12570_v6  ;;  %v12654_v5 = vld [vmem:[%s14093_s8 + $0xe08] ss:$16 sps:$4 sm:$0xff]   ;;  %v12659_v6 = vld [vmem:[%s14093_s8 + $0xe24] ss:$16 sps:$4 sm:$0xff]  }
 0x3b8   : > { %8916 = vmatprep.subr.bf16.mxu0 %v12575_v7  ;;  %9572 = vmatprep.subr.bf16.mxu1 %v12578_v9  ;;  %v12662_v7 = vld [vmem:[%s14093_s8 + $0xe2c] ss:$16 sps:$4 sm:$0xff]   ;;  %v2481_v9 = vpack.c.bf16 %v2365_v4, %v2365_v4  ;;  %v12738_v4 = vld [vmem:[%s14093_s8 + $0xfc8] ss:$16 sps:$4 sm:$0xff]  }
 0x3bb   : > { %8917 = vmatpush1.bf16.msra.mxu0 %v12573_v10  ;;  %9573 = vmatpush1.bf16.msra.mxu1 %v12576_v54  ;;  %v12660_v10 = vld [vmem:[%s14093_s8 + $0xe28] ss:$16 sps:$4 sm:$0xff]   ;;  %v12665_v54 = vld [vmem:[%s14093_s8 + $0xe44] ss:$16 sps:$4 sm:$0xff]  }
 0x3bc   : > { %8918 = vmatprep.subr.bf16.mxu0 %v12581_v11  ;;  %9574 = vmatprep.subr.bf16.mxu1 %v12584_v12  ;;  %v12668_v11 = vld [vmem:[%s14093_s8 + $0xe4c] ss:$16 sps:$4 sm:$0xff]   ;;  %v12663_v12 = vld [vmem:[%s14093_s8 + $0xe40] ss:$16 sps:$4 sm:$0xff]  }
 0x3bf   : > { %8919 = vmatpush1.bf16.msra.mxu0 %v12579_v13  ;;  %9575 = vmatpush1.bf16.msra.mxu1 %v12582_v14  ;;  %v12666_v13 = vld [vmem:[%s14093_s8 + $0xe48] ss:$16 sps:$4 sm:$0xff]   ;;  %v12671_v14 = vld [vmem:[%s14093_s8 + $0xe64] ss:$16 sps:$4 sm:$0xff]  }
 0x3c0   : > { %8920 = vmatprep.subr.bf16.mxu0 %v12587_v15  ;;  %9576 = vmatprep.subr.bf16.mxu1 %v12590_v17  ;;  %v12674_v15 = vld [vmem:[%s14093_s8 + $0xe6c] ss:$16 sps:$4 sm:$0xff]   ;;  %v12669_v17 = vld [vmem:[%s14093_s8 + $0xe60] ss:$16 sps:$4 sm:$0xff]  }
 0x3c3   : > { %8921 = vmatpush1.bf16.msra.mxu0 %v12585_v18  ;;  %9577 = vmatpush1.bf16.msra.mxu1 %v12588_v19  ;;  %v12672_v18 = vld [vmem:[%s14093_s8 + $0xe68] ss:$16 sps:$4 sm:$0xff]   ;;  %v12677_v19 = vld [vmem:[%s14093_s8 + $0xe84] ss:$16 sps:$4 sm:$0xff]  }
 0x3c4   : > { %8922 = vmatprep.subr.bf16.mxu0 %v12593_v20  ;;  %9578 = vmatprep.subr.bf16.mxu1 %v12596_v21  ;;  %v12680_v20 = vld [vmem:[%s14093_s8 + $0xe8c] ss:$16 sps:$4 sm:$0xff]   ;;  %v12675_v21 = vld [vmem:[%s14093_s8 + $0xe80] ss:$16 sps:$4 sm:$0xff]  }
 0x3c7   : > { %8923 = vmatpush1.bf16.msra.mxu0 %v12591_v22  ;;  %9579 = vmatpush1.bf16.msra.mxu1 %v12594_v23  ;;  %v12678_v22 = vld [vmem:[%s14093_s8 + $0xe88] ss:$16 sps:$4 sm:$0xff]   ;;  %v12683_v23 = vld [vmem:[%s14093_s8 + $0xea4] ss:$16 sps:$4 sm:$0xff]  }
 0x3c8   : > { %8924 = vmatprep.subr.bf16.mxu0 %v12599_v24  ;;  %9580 = vmatprep.subr.bf16.mxu1 %v12602_v8  ;;  %v12686_v24 = vld [vmem:[%s14093_s8 + $0xeac] ss:$16 sps:$4 sm:$0xff]   ;;  %v12681_v8 = vld [vmem:[%s14093_s8 + $0xea0] ss:$16 sps:$4 sm:$0xff]  }
 0x3cb   : > { %8925 = vmatpush1.bf16.msra.mxu0 %v12597_v25  ;;  %9581 = vmatpush1.bf16.msra.mxu1 %v12600_v26  ;;  %v12684_v25 = vld [vmem:[%s14093_s8 + $0xea8] ss:$16 sps:$4 sm:$0xff]   ;;  %v12689_v26 = vld [vmem:[%s14093_s8 + $0xec4] ss:$16 sps:$4 sm:$0xff]  }
 0x3cc   : > { %8926 = vmatprep.subr.bf16.mxu0 %v12605_v28  ;;  %9582 = vmatprep.subr.bf16.mxu1 %v12608_v32  ;;  %v12692_v28 = vld [vmem:[%s14093_s8 + $0xecc] ss:$16 sps:$4 sm:$0xff]   ;;  %v12687_v32 = vld [vmem:[%s14093_s8 + $0xec0] ss:$16 sps:$4 sm:$0xff]  }
 0x3cf   : > { %8927 = vmatpush1.bf16.msra.mxu0 %v12603_v34  ;;  %9583 = vmatpush1.bf16.msra.mxu1 %v12606_v33  ;;  %v12690_v34 = vld [vmem:[%s14093_s8 + $0xec8] ss:$16 sps:$4 sm:$0xff]   ;;  %v12695_v33 = vld [vmem:[%s14093_s8 + $0xee4] ss:$16 sps:$4 sm:$0xff]  }
 0x3d0   : > { %8928 = vmatprep.subr.bf16.mxu0 %v12611_v16  ;;  %9584 = vmatprep.subr.bf16.mxu1 %v12614_v44  ;;  %v12698_v16 = vld [vmem:[%s14093_s8 + $0xeec] ss:$16 sps:$4 sm:$0xff]   ;;  %v12693_v44 = vld [vmem:[%s14093_s8 + $0xee0] ss:$16 sps:$4 sm:$0xff]  }
 0x3d3   : > { %8929 = vmatpush1.bf16.msra.mxu0 %v12609_v38  ;;  %9585 = vmatpush1.bf16.msra.mxu1 %v12612_v39  ;;  %v12696_v38 = vld [vmem:[%s14093_s8 + $0xee8] ss:$16 sps:$4 sm:$0xff]   ;;  %v12701_v39 = vld [vmem:[%s14093_s8 + $0xf04] ss:$16 sps:$4 sm:$0xff]  }
 0x3d4   : > { %8930 = vmatprep.subr.bf16.mxu0 %v12617_v27  ;;  %9586 = vmatprep.subr.bf16.mxu1 %v12620_v29  ;;  %v12704_v27 = vld [vmem:[%s14093_s8 + $0xf0c] ss:$16 sps:$4 sm:$0xff]   ;;  %v12699_v29 = vld [vmem:[%s14093_s8 + $0xf00] ss:$16 sps:$4 sm:$0xff]  }
 0x3d7   : > { %8931 = vmatpush1.bf16.msra.mxu0 %v12615_v41  ;;  %9587 = vmatpush1.bf16.msra.mxu1 %v12618_v30  ;;  %v12702_v41 = vld [vmem:[%s14093_s8 + $0xf08] ss:$16 sps:$4 sm:$0xff]   ;;  %v12707_v30 = vld [vmem:[%s14093_s8 + $0xf24] ss:$16 sps:$4 sm:$0xff]  }
 0x3d8   : > { %8932 = vmatprep.subr.bf16.mxu0 %v12623_v36  ;;  %9588 = vmatprep.subr.bf16.mxu1 %v12626_v31  ;;  %v12710_v36 = vld [vmem:[%s14093_s8 + $0xf2c] ss:$16 sps:$4 sm:$0xff]   ;;  %v12705_v31 = vld [vmem:[%s14093_s8 + $0xf20] ss:$16 sps:$4 sm:$0xff]  }
 0x3db   : > { %8933 = vmatpush1.bf16.msra.mxu0 %v12621_v42  ;;  %9589 = vmatpush1.bf16.msra.mxu1 %v12624_v43  ;;  %v12708_v42 = vld [vmem:[%s14093_s8 + $0xf28] ss:$16 sps:$4 sm:$0xff]   ;;  %v12713_v43 = vld [vmem:[%s14093_s8 + $0xf44] ss:$16 sps:$4 sm:$0xff]  }
 0x3dc   : > { %8934 = vmatprep.subr.bf16.mxu0 %v12629_v45  ;;  %9590 = vmatprep.subr.bf16.mxu1 %v12632_v37  ;;  %v12716_v45 = vld [vmem:[%s14093_s8 + $0xf4c] ss:$16 sps:$4 sm:$0xff]   ;;  %v12711_v37 = vld [vmem:[%s14093_s8 + $0xf40] ss:$16 sps:$4 sm:$0xff]  }
 0x3df   : > { %8935 = vmatpush1.bf16.msra.mxu0 %v12627_v47  ;;  %9591 = vmatpush1.bf16.msra.mxu1 %v12630_v50  ;;  %v12714_v47 = vld [vmem:[%s14093_s8 + $0xf48] ss:$16 sps:$4 sm:$0xff]   ;;  %v12719_v50 = vld [vmem:[%s14093_s8 + $0xf64] ss:$16 sps:$4 sm:$0xff]  }
 0x3e0   : > { %8936 = vmatprep.subr.bf16.mxu0 %v12635_v51  ;;  %9592 = vmatprep.subr.bf16.mxu1 %v12638_v35  ;;  %v12722_v51 = vld [vmem:[%s14093_s8 + $0xf6c] ss:$16 sps:$4 sm:$0xff]   ;;  %v12717_v35 = vld [vmem:[%s14093_s8 + $0xf60] ss:$16 sps:$4 sm:$0xff]  }
 0x3e3   : > { %8937 = vmatpush1.bf16.msra.mxu0 %v12633_v52  ;;  %9593 = vmatpush1.bf16.msra.mxu1 %v12636_v55  ;;  %v12720_v52 = vld [vmem:[%s14093_s8 + $0xf68] ss:$16 sps:$4 sm:$0xff]   ;;  %v12725_v55 = vld [vmem:[%s14093_s8 + $0xf84] ss:$16 sps:$4 sm:$0xff]  }
 0x3e4   : > { %8938 = vmatprep.subr.bf16.mxu0 %v12641_v57  ;;  %9594 = vmatprep.subr.bf16.mxu1 %v12644_v58  ;;  %v12728_v57 = vld [vmem:[%s14093_s8 + $0xf8c] ss:$16 sps:$4 sm:$0xff]   ;;  %v12723_v58 = vld [vmem:[%s14093_s8 + $0xf80] ss:$16 sps:$4 sm:$0xff]  }
 0x3e7   : > { %8939 = vmatpush1.bf16.msra.mxu0 %v12639_v59  ;;  %9595 = vmatpush1.bf16.msra.mxu1 %v12642_v60  ;;  %v12731_v59 = vld [vmem:[%s14093_s8 + $0xfa4] ss:$16 sps:$4 sm:$0xff]   ;;  %v12734_v60 = vld [vmem:[%s14093_s8 + $0xfac] ss:$16 sps:$4 sm:$0xff]  }
 0x3e8   : > { %8940 = vmatprep.subr.bf16.mxu0 %v12647_v0  ;;  %9596 = vmatprep.subr.bf16.mxu1 %v12650_v2  ;;  %v12729_v0 = vld [vmem:[%s14093_s8 + $0xfa0] ss:$16 sps:$4 sm:$0xff]   ;;  %v12732_v2 = vld [vmem:[%s14093_s8 + $0xfa8] ss:$16 sps:$4 sm:$0xff]  }
 0x3eb   : > { %8941 = vmatpush1.bf16.msra.mxu0 %v12645_v48  ;;  %9597 = vmatpush1.bf16.msra.mxu1 %v12648_v3  ;;  %v12737_v48 = vld [vmem:[%s14093_s8 + $0xfc4] ss:$16 sps:$4 sm:$0xff]   ;;  %v12740_v3 = vld [vmem:[%s14093_s8 + $0xfcc] ss:$16 sps:$4 sm:$0xff]  }
 0x3ec   : > { %8951 = vmatprep.subr.bf16.mxu0 %v12653_v62  ;;  %9607 = vmatprep.subr.bf16.mxu1 %v12656_v46  ;;  %v14834_v62 = vld [vmem:[#allocation2 + $0x20] sm:$0xff] }
 0x3ed   : > { %v12735_v46 = vld [vmem:[%s14093_s8 + $0xfc0] ss:$16 sps:$4 sm:$0xff]  }
 0x3ee   : > { %8943 = vmatmul.mubr.bf16.vlgmr.msra.gmra.mrb[0].mxu0 %v2478_v63  ;;  %9599 = vmatmul.mubr.bf16.vlgmr.msra.gmra.mrb[0].mxu1 %v2478_v63  ;;  %v12743_v63 = vld [vmem:[%s14093_s8 + $0xfe4] ss:$16 sps:$4 sm:$0xff]  }
 0x3ef   : > { %8952 = vmatpush1.bf16.msra.mxu0 %v12651_v1  ;;  %9608 = vmatpush1.bf16.msra.mxu1 %v12654_v5  ;;  %v12746_v1 = vld [vmem:[%s14093_s8 + $0xfec] ss:$16 sps:$4 sm:$0xff]   ;;  %v14842_v5 = vrot.slane %v14834_v62, %v14307_v56 }
 0x3f0   : > { %8953 = vmatprep.subr.bf16.mxu0 %v12659_v6  ;;  %9609 = vmatprep.subr.bf16.mxu1 %v12662_v7  ;;  %v12741_v6 = vld [vmem:[%s14093_s8 + $0xfe0] ss:$16 sps:$4 sm:$0xff]   ;;  %v12744_v7 = vld [vmem:[%s14093_s8 + $0xfe8] ss:$16 sps:$4 sm:$0xff]  }
 0x3f1   : > { %8983 = vmatprep.mubr.bf16.mxu0 %v2481_v9  ;;  %9639 = vmatprep.mubr.bf16.mxu1 %v2481_v9  ;;  %v12750_v9 = vld [vmem:[%s14093_s8 + $0x1004] ss:$16 sps:$4 sm:$0xff]  }
 0x3f3   : > { %8954 = vmatpush1.bf16.msra.mxu0 %v12657_v53  ;;  %9610 = vmatpush1.bf16.msra.mxu1 %v12660_v10  ;;  %v12753_v53 = vld [vmem:[%s14093_s8 + $0x100c] ss:$16 sps:$4 sm:$0xff]   ;;  %v2381_v10 = vcombine.high %v14842_v5, %v14842_v5 }
 0x3f4   : > { %8955 = vmatprep.subr.bf16.mxu0 %v12665_v54  ;;  %9611 = vmatprep.subr.bf16.mxu1 %v12668_v11  ;;  %v2480_v54 = vpack.c.bf16 %v14768_v61, %v14768_v61  ;;  %v12748_v11 = vld [vmem:[%s14093_s8 + $0x1000] ss:$16 sps:$4 sm:$0xff]  }
 0x3f5   : > { %v12754_v61 = vld [vmem:[%s14093_s8 + $0x1020] ss:$16 sps:$4 sm:$0xff]  }
 0x3f7   : > { %8956 = vmatpush1.bf16.msra.mxu0 %v12663_v12  ;;  %9612 = vmatpush1.bf16.msra.mxu1 %v12666_v13  ;;  %v12751_v12 = vld [vmem:[%s14093_s8 + $0x1008] ss:$16 sps:$4 sm:$0xff]   ;;  %v12756_v13 = vld [vmem:[%s14093_s8 + $0x1024] ss:$16 sps:$4 sm:$0xff]  }
 0x3f8   : > { %8957 = vmatprep.subr.bf16.mxu0 %v12671_v14  ;;  %9613 = vmatprep.subr.bf16.mxu1 %v12674_v15  ;;  %v12759_v14 = vld [vmem:[%s14093_s8 + $0x102c] ss:$16 sps:$4 sm:$0xff]   ;;  %v2483_v15 = vpack.c.bf16 %v2381_v10, %v2381_v10  ;;  %v12832_v10 = vld [vmem:[%s14093_s8 + $0x11c0] ss:$16 sps:$4 sm:$0xff]  }
 0x3fb   : > { %8958 = vmatpush1.bf16.msra.mxu0 %v12669_v17  ;;  %9614 = vmatpush1.bf16.msra.mxu1 %v12672_v18  ;;  %v12757_v17 = vld [vmem:[%s14093_s8 + $0x1028] ss:$16 sps:$4 sm:$0xff]   ;;  %v12762_v18 = vld [vmem:[%s14093_s8 + $0x1044] ss:$16 sps:$4 sm:$0xff]  }
 0x3fc   : > { %8959 = vmatprep.subr.bf16.mxu0 %v12677_v19  ;;  %9615 = vmatprep.subr.bf16.mxu1 %v12680_v20  ;;  %v12765_v19 = vld [vmem:[%s14093_s8 + $0x104c] ss:$16 sps:$4 sm:$0xff]   ;;  %v12760_v20 = vld [vmem:[%s14093_s8 + $0x1040] ss:$16 sps:$4 sm:$0xff]  }
 0x3ff   : > { %8960 = vmatpush1.bf16.msra.mxu0 %v12675_v21  ;;  %9616 = vmatpush1.bf16.msra.mxu1 %v12678_v22  ;;  %v12763_v21 = vld [vmem:[%s14093_s8 + $0x1048] ss:$16 sps:$4 sm:$0xff]   ;;  %v12768_v22 = vld [vmem:[%s14093_s8 + $0x1064] ss:$16 sps:$4 sm:$0xff]  }
 0x400   : > { %8961 = vmatprep.subr.bf16.mxu0 %v12683_v23  ;;  %9617 = vmatprep.subr.bf16.mxu1 %v12686_v24  ;;  %v12771_v23 = vld [vmem:[%s14093_s8 + $0x106c] ss:$16 sps:$4 sm:$0xff]   ;;  %v12766_v24 = vld [vmem:[%s14093_s8 + $0x1060] ss:$16 sps:$4 sm:$0xff]  }
 0x403   : > { %8962 = vmatpush1.bf16.msra.mxu0 %v12681_v8  ;;  %9618 = vmatpush1.bf16.msra.mxu1 %v12684_v25  ;;  %v12769_v8 = vld [vmem:[%s14093_s8 + $0x1068] ss:$16 sps:$4 sm:$0xff]   ;;  %v12774_v25 = vld [vmem:[%s14093_s8 + $0x1084] ss:$16 sps:$4 sm:$0xff]  }
 0x404   : > { %8963 = vmatprep.subr.bf16.mxu0 %v12689_v26  ;;  %9619 = vmatprep.subr.bf16.mxu1 %v12692_v28  ;;  %v12777_v26 = vld [vmem:[%s14093_s8 + $0x108c] ss:$16 sps:$4 sm:$0xff]   ;;  %v12772_v28 = vld [vmem:[%s14093_s8 + $0x1080] ss:$16 sps:$4 sm:$0xff]  }
 0x407   : > { %8964 = vmatpush1.bf16.msra.mxu0 %v12687_v32  ;;  %9620 = vmatpush1.bf16.msra.mxu1 %v12690_v34  ;;  %v12775_v32 = vld [vmem:[%s14093_s8 + $0x1088] ss:$16 sps:$4 sm:$0xff]   ;;  %v12780_v34 = vld [vmem:[%s14093_s8 + $0x10a4] ss:$16 sps:$4 sm:$0xff]  }
 0x408   : > { %8965 = vmatprep.subr.bf16.mxu0 %v12695_v33  ;;  %9621 = vmatprep.subr.bf16.mxu1 %v12698_v16  ;;  %v12783_v33 = vld [vmem:[%s14093_s8 + $0x10ac] ss:$16 sps:$4 sm:$0xff]   ;;  %v12778_v16 = vld [vmem:[%s14093_s8 + $0x10a0] ss:$16 sps:$4 sm:$0xff]  }
 0x40b   : > { %8966 = vmatpush1.bf16.msra.mxu0 %v12693_v44  ;;  %9622 = vmatpush1.bf16.msra.mxu1 %v12696_v38  ;;  %v12781_v44 = vld [vmem:[%s14093_s8 + $0x10a8] ss:$16 sps:$4 sm:$0xff]   ;;  %v12786_v38 = vld [vmem:[%s14093_s8 + $0x10c4] ss:$16 sps:$4 sm:$0xff]  }
 0x40c   : > { %8967 = vmatprep.subr.bf16.mxu0 %v12701_v39  ;;  %9623 = vmatprep.subr.bf16.mxu1 %v12704_v27  ;;  %v12789_v39 = vld [vmem:[%s14093_s8 + $0x10cc] ss:$16 sps:$4 sm:$0xff]   ;;  %v12784_v27 = vld [vmem:[%s14093_s8 + $0x10c0] ss:$16 sps:$4 sm:$0xff]  }
 0x40f   : > { %8968 = vmatpush1.bf16.msra.mxu0 %v12699_v29  ;;  %9624 = vmatpush1.bf16.msra.mxu1 %v12702_v41  ;;  %v12787_v29 = vld [vmem:[%s14093_s8 + $0x10c8] ss:$16 sps:$4 sm:$0xff]   ;;  %v12792_v41 = vld [vmem:[%s14093_s8 + $0x10e4] ss:$16 sps:$4 sm:$0xff]  }
 0x410   : > { %8969 = vmatprep.subr.bf16.mxu0 %v12707_v30  ;;  %9625 = vmatprep.subr.bf16.mxu1 %v12710_v36  ;;  %v12795_v30 = vld [vmem:[%s14093_s8 + $0x10ec] ss:$16 sps:$4 sm:$0xff]   ;;  %v12790_v36 = vld [vmem:[%s14093_s8 + $0x10e0] ss:$16 sps:$4 sm:$0xff]  }
 0x413   : > { %8970 = vmatpush1.bf16.msra.mxu0 %v12705_v31  ;;  %9626 = vmatpush1.bf16.msra.mxu1 %v12708_v42  ;;  %v12793_v31 = vld [vmem:[%s14093_s8 + $0x10e8] ss:$16 sps:$4 sm:$0xff]   ;;  %v12798_v42 = vld [vmem:[%s14093_s8 + $0x1104] ss:$16 sps:$4 sm:$0xff]  }
 0x414   : > { %8971 = vmatprep.subr.bf16.mxu0 %v12713_v43  ;;  %9627 = vmatprep.subr.bf16.mxu1 %v12716_v45  ;;  %v12801_v43 = vld [vmem:[%s14093_s8 + $0x110c] ss:$16 sps:$4 sm:$0xff]   ;;  %v12796_v45 = vld [vmem:[%s14093_s8 + $0x1100] ss:$16 sps:$4 sm:$0xff]  }
 0x417   : > { %8972 = vmatpush1.bf16.msra.mxu0 %v12711_v37  ;;  %9628 = vmatpush1.bf16.msra.mxu1 %v12714_v47  ;;  %v12799_v37 = vld [vmem:[%s14093_s8 + $0x1108] ss:$16 sps:$4 sm:$0xff]   ;;  %v12804_v47 = vld [vmem:[%s14093_s8 + $0x1124] ss:$16 sps:$4 sm:$0xff]  }
 0x418   : > { %8973 = vmatprep.subr.bf16.mxu0 %v12719_v50  ;;  %9629 = vmatprep.subr.bf16.mxu1 %v12722_v51  ;;  %v12807_v50 = vld [vmem:[%s14093_s8 + $0x112c] ss:$16 sps:$4 sm:$0xff]   ;;  %v12802_v51 = vld [vmem:[%s14093_s8 + $0x1120] ss:$16 sps:$4 sm:$0xff]  }
 0x41b   : > { %8974 = vmatpush1.bf16.msra.mxu0 %v12717_v35  ;;  %9630 = vmatpush1.bf16.msra.mxu1 %v12720_v52  ;;  %v12805_v35 = vld [vmem:[%s14093_s8 + $0x1128] ss:$16 sps:$4 sm:$0xff]   ;;  %v12810_v52 = vld [vmem:[%s14093_s8 + $0x1144] ss:$16 sps:$4 sm:$0xff]  }
 0x41c   : > { %8975 = vmatprep.subr.bf16.mxu0 %v12725_v55  ;;  %9631 = vmatprep.subr.bf16.mxu1 %v12728_v57  ;;  %v12813_v55 = vld [vmem:[%s14093_s8 + $0x114c] ss:$16 sps:$4 sm:$0xff]   ;;  %v12808_v57 = vld [vmem:[%s14093_s8 + $0x1140] ss:$16 sps:$4 sm:$0xff]  }
 0x41f   : > { %8976 = vmatpush1.bf16.msra.mxu0 %v12723_v58  ;;  %9632 = vmatpush1.bf16.msra.mxu1 %v12726_v40  ;;  %v12811_v58 = vld [vmem:[%s14093_s8 + $0x1148] ss:$16 sps:$4 sm:$0xff]   ;;  %v12816_v40 = vld [vmem:[%s14093_s8 + $0x1164] ss:$16 sps:$4 sm:$0xff]  }
 0x420   : > { %8977 = vmatprep.subr.bf16.mxu0 %v12731_v59  ;;  %9633 = vmatprep.subr.bf16.mxu1 %v12734_v60  ;;  %v12819_v59 = vld [vmem:[%s14093_s8 + $0x116c] ss:$16 sps:$4 sm:$0xff]   ;;  %v12814_v60 = vld [vmem:[%s14093_s8 + $0x1160] ss:$16 sps:$4 sm:$0xff]  }
 0x423   : > { %8978 = vmatpush1.bf16.msra.mxu0 %v12729_v0  ;;  %9634 = vmatpush1.bf16.msra.mxu1 %v12732_v2  ;;  %v12817_v0 = vld [vmem:[%s14093_s8 + $0x1168] ss:$16 sps:$4 sm:$0xff]   ;;  %v12822_v2 = vld [vmem:[%s14093_s8 + $0x1184] ss:$16 sps:$4 sm:$0xff]  }
 0x424   : > { %8979 = vmatprep.subr.bf16.mxu0 %v12737_v48  ;;  %9635 = vmatprep.subr.bf16.mxu1 %v12740_v3  ;;  %v12825_v48 = vld [vmem:[%s14093_s8 + $0x118c] ss:$16 sps:$4 sm:$0xff]   ;;  %v12820_v3 = vld [vmem:[%s14093_s8 + $0x1180] ss:$16 sps:$4 sm:$0xff]  }
 0x427   : > { %8980 = vmatpush1.bf16.msra.mxu0 %v12735_v46  ;;  %9636 = vmatpush1.bf16.msra.mxu1 %v12738_v4  ;;  %v12823_v46 = vld [vmem:[%s14093_s8 + $0x1188] ss:$16 sps:$4 sm:$0xff]   ;;  %v12828_v4 = vld [vmem:[%s14093_s8 + $0x11a4] ss:$16 sps:$4 sm:$0xff]  }
 0x428   : > { %8981 = vmatprep.subr.bf16.mxu0 %v12743_v63  ;;  %9637 = vmatprep.subr.bf16.mxu1 %v12746_v1  ;;  %v12831_v63 = vld [vmem:[%s14093_s8 + $0x11ac] ss:$16 sps:$4 sm:$0xff]   ;;  %v12826_v1 = vld [vmem:[%s14093_s8 + $0x11a0] ss:$16 sps:$4 sm:$0xff]  }
 0x42b   : > { %8982 = vmatpush1.bf16.msra.mxu0 %v12741_v6  ;;  %9638 = vmatpush1.bf16.msra.mxu1 %v12744_v7  ;;  %v12829_v6 = vld [vmem:[%s14093_s8 + $0x11a8] ss:$16 sps:$4 sm:$0xff]   ;;  %v12834_v7 = vld [vmem:[%s14093_s8 + $0x11c4] ss:$16 sps:$4 sm:$0xff]  }
 0x42c   : > { %8992 = vmatprep.subr.bf16.mxu0 %v12750_v9  ;;  %9648 = vmatprep.subr.bf16.mxu1 %v12753_v53  ;;  %v12837_v9 = vld [vmem:[%s14093_s8 + $0x11cc] ss:$16 sps:$4 sm:$0xff]   ;;  %v2366_v53 = vcombine.high %v14834_v62, %v14834_v62  ;;  %v12838_v62 = vld [vmem:[%s14093_s8 + $0x11e0] ss:$16 sps:$4 sm:$0xff]  }
 0x42e   : > { %8984 = vmatmul.mubr.bf16.vlgmr.msra.gmra.mrb[0].mxu0 %v2480_v54  ;;  %9640 = vmatmul.mubr.bf16.vlgmr.msra.gmra.mrb[0].mxu1 %v2480_v54  ;;  %v12835_v54 = vld [vmem:[%s14093_s8 + $0x11c8] ss:$16 sps:$4 sm:$0xff]  }
 0x42f   : > { %8993 = vmatpush1.bf16.msra.mxu0 %v12748_v11  ;;  %9649 = vmatpush1.bf16.msra.mxu1 %v12751_v12  ;;  %v12840_v11 = vld [vmem:[%s14093_s8 + $0x11e4] ss:$16 sps:$4 sm:$0xff]   ;;  %v12843_v12 = vld [vmem:[%s14093_s8 + $0x11ec] ss:$16 sps:$4 sm:$0xff]  }
 0x430   : > { %8994 = vmatprep.subr.bf16.mxu0 %v12756_v13  ;;  %9650 = vmatprep.subr.bf16.mxu1 %v12759_v14  ;;  %v14915_v13 = vrot.slane %v2366_v53, %v14307_v56  ;;  %v12841_v14 = vld [vmem:[%s14093_s8 + $0x11e8] ss:$16 sps:$4 sm:$0xff]  }
 0x431   : > { %9024 = vmatprep.mubr.bf16.mxu0 %v2483_v15  ;;  %9680 = vmatprep.mubr.bf16.mxu1 %v2483_v15  ;;  %v12846_v15 = vld [vmem:[%s14093_s8 + $0x1204] ss:$16 sps:$4 sm:$0xff]   ;;  %v12919_v53 = vld [vmem:[%s14093_s8 + $0x1388] ss:$16 sps:$4 sm:$0xff]  }
 0x433   : > { %8995 = vmatpush1.bf16.msra.mxu0 %v12754_v61  ;;  %9651 = vmatpush1.bf16.msra.mxu1 %v12757_v17  ;;  %v12849_v61 = vld [vmem:[%s14093_s8 + $0x120c] ss:$16 sps:$4 sm:$0xff]   ;;  %v2382_v17 = vcombine.high %v14915_v13, %v14915_v13 }
 0x434   : > { %8996 = vmatprep.subr.bf16.mxu0 %v12762_v18  ;;  %9652 = vmatprep.subr.bf16.mxu1 %v12765_v19  ;;  %v2482_v18 = vpack.c.bf16 %v14842_v5, %v14842_v5  ;;  %v12844_v19 = vld [vmem:[%s14093_s8 + $0x1200] ss:$16 sps:$4 sm:$0xff]  }
 0x435   : > { %v12850_v5 = vld [vmem:[%s14093_s8 + $0x1220] ss:$16 sps:$4 sm:$0xff]  }
 0x437   : > { %8997 = vmatpush1.bf16.msra.mxu0 %v12760_v20  ;;  %9653 = vmatpush1.bf16.msra.mxu1 %v12763_v21  ;;  %v12847_v20 = vld [vmem:[%s14093_s8 + $0x1208] ss:$16 sps:$4 sm:$0xff]   ;;  %v12852_v21 = vld [vmem:[%s14093_s8 + $0x1224] ss:$16 sps:$4 sm:$0xff]  }
 0x438   : > { %8998 = vmatprep.subr.bf16.mxu0 %v12768_v22  ;;  %9654 = vmatprep.subr.bf16.mxu1 %v12771_v23  ;;  %v12855_v22 = vld [vmem:[%s14093_s8 + $0x122c] ss:$16 sps:$4 sm:$0xff]   ;;  %v2485_v23 = vpack.c.bf16 %v2382_v17, %v2382_v17  ;;  %v12931_v17 = vld [vmem:[%s14093_s8 + $0x13c8] ss:$16 sps:$4 sm:$0xff]  }
 0x43b   : > { %8999 = vmatpush1.bf16.msra.mxu0 %v12766_v24  ;;  %9655 = vmatpush1.bf16.msra.mxu1 %v12769_v8  ;;  %v12853_v24 = vld [vmem:[%s14093_s8 + $0x1228] ss:$16 sps:$4 sm:$0xff]   ;;  %v12858_v8 = vld [vmem:[%s14093_s8 + $0x1244] ss:$16 sps:$4 sm:$0xff]  }
 0x43c   : > { %9000 = vmatprep.subr.bf16.mxu0 %v12774_v25  ;;  %9656 = vmatprep.subr.bf16.mxu1 %v12777_v26  ;;  %v12861_v25 = vld [vmem:[%s14093_s8 + $0x124c] ss:$16 sps:$4 sm:$0xff]   ;;  %v12856_v26 = vld [vmem:[%s14093_s8 + $0x1240] ss:$16 sps:$4 sm:$0xff]  }
 0x43f   : > { %9001 = vmatpush1.bf16.msra.mxu0 %v12772_v28  ;;  %9657 = vmatpush1.bf16.msra.mxu1 %v12775_v32  ;;  %v12859_v28 = vld [vmem:[%s14093_s8 + $0x1248] ss:$16 sps:$4 sm:$0xff]   ;;  %v12864_v32 = vld [vmem:[%s14093_s8 + $0x1264] ss:$16 sps:$4 sm:$0xff]  }
 0x440   : > { %9002 = vmatprep.subr.bf16.mxu0 %v12780_v34  ;;  %9658 = vmatprep.subr.bf16.mxu1 %v12783_v33  ;;  %v12867_v34 = vld [vmem:[%s14093_s8 + $0x126c] ss:$16 sps:$4 sm:$0xff]   ;;  %v12862_v33 = vld [vmem:[%s14093_s8 + $0x1260] ss:$16 sps:$4 sm:$0xff]  }
 0x443   : > { %9003 = vmatpush1.bf16.msra.mxu0 %v12778_v16  ;;  %9659 = vmatpush1.bf16.msra.mxu1 %v12781_v44  ;;  %v12865_v16 = vld [vmem:[%s14093_s8 + $0x1268] ss:$16 sps:$4 sm:$0xff]   ;;  %v12870_v44 = vld [vmem:[%s14093_s8 + $0x1284] ss:$16 sps:$4 sm:$0xff]  }
 0x444   : > { %9004 = vmatprep.subr.bf16.mxu0 %v12786_v38  ;;  %9660 = vmatprep.subr.bf16.mxu1 %v12789_v39  ;;  %v12873_v38 = vld [vmem:[%s14093_s8 + $0x128c] ss:$16 sps:$4 sm:$0xff]   ;;  %v12868_v39 = vld [vmem:[%s14093_s8 + $0x1280] ss:$16 sps:$4 sm:$0xff]  }
 0x447   : > { %9005 = vmatpush1.bf16.msra.mxu0 %v12784_v27  ;;  %9661 = vmatpush1.bf16.msra.mxu1 %v12787_v29  ;;  %v12871_v27 = vld [vmem:[%s14093_s8 + $0x1288] ss:$16 sps:$4 sm:$0xff]   ;;  %v12876_v29 = vld [vmem:[%s14093_s8 + $0x12a4] ss:$16 sps:$4 sm:$0xff]  }
 0x448   : > { %9006 = vmatprep.subr.bf16.mxu0 %v12792_v41  ;;  %9662 = vmatprep.subr.bf16.mxu1 %v12795_v30  ;;  %v12879_v41 = vld [vmem:[%s14093_s8 + $0x12ac] ss:$16 sps:$4 sm:$0xff]   ;;  %v12874_v30 = vld [vmem:[%s14093_s8 + $0x12a0] ss:$16 sps:$4 sm:$0xff]  }
 0x44b   : > { %9007 = vmatpush1.bf16.msra.mxu0 %v12790_v36  ;;  %9663 = vmatpush1.bf16.msra.mxu1 %v12793_v31  ;;  %v12877_v36 = vld [vmem:[%s14093_s8 + $0x12a8] ss:$16 sps:$4 sm:$0xff]   ;;  %v12882_v31 = vld [vmem:[%s14093_s8 + $0x12c4] ss:$16 sps:$4 sm:$0xff]  }
 0x44c   : > { %9008 = vmatprep.subr.bf16.mxu0 %v12798_v42  ;;  %9664 = vmatprep.subr.bf16.mxu1 %v12801_v43  ;;  %v12885_v42 = vld [vmem:[%s14093_s8 + $0x12cc] ss:$16 sps:$4 sm:$0xff]   ;;  %v12880_v43 = vld [vmem:[%s14093_s8 + $0x12c0] ss:$16 sps:$4 sm:$0xff]  }
 0x44f   : > { %9009 = vmatpush1.bf16.msra.mxu0 %v12796_v45  ;;  %9665 = vmatpush1.bf16.msra.mxu1 %v12799_v37  ;;  %v12883_v45 = vld [vmem:[%s14093_s8 + $0x12c8] ss:$16 sps:$4 sm:$0xff]   ;;  %v12888_v37 = vld [vmem:[%s14093_s8 + $0x12e4] ss:$16 sps:$4 sm:$0xff]  }
 0x450   : > { %9010 = vmatprep.subr.bf16.mxu0 %v12804_v47  ;;  %9666 = vmatprep.subr.bf16.mxu1 %v12807_v50  ;;  %v12891_v47 = vld [vmem:[%s14093_s8 + $0x12ec] ss:$16 sps:$4 sm:$0xff]   ;;  %v12886_v50 = vld [vmem:[%s14093_s8 + $0x12e0] ss:$16 sps:$4 sm:$0xff]  }
 0x453   : > { %9011 = vmatpush1.bf16.msra.mxu0 %v12802_v51  ;;  %9667 = vmatpush1.bf16.msra.mxu1 %v12805_v35  ;;  %v12889_v51 = vld [vmem:[%s14093_s8 + $0x12e8] ss:$16 sps:$4 sm:$0xff]   ;;  %v12894_v35 = vld [vmem:[%s14093_s8 + $0x1304] ss:$16 sps:$4 sm:$0xff]  }
 0x454   : > { %9012 = vmatprep.subr.bf16.mxu0 %v12810_v52  ;;  %9668 = vmatprep.subr.bf16.mxu1 %v12813_v55  ;;  %v12897_v52 = vld [vmem:[%s14093_s8 + $0x130c] ss:$16 sps:$4 sm:$0xff]   ;;  %v12892_v55 = vld [vmem:[%s14093_s8 + $0x1300] ss:$16 sps:$4 sm:$0xff]  }
 0x457   : > { %9013 = vmatpush1.bf16.msra.mxu0 %v12808_v57  ;;  %9669 = vmatpush1.bf16.msra.mxu1 %v12811_v58  ;;  %v12895_v57 = vld [vmem:[%s14093_s8 + $0x1308] ss:$16 sps:$4 sm:$0xff]   ;;  %v12900_v58 = vld [vmem:[%s14093_s8 + $0x1324] ss:$16 sps:$4 sm:$0xff]  }
 0x458   : > { %9014 = vmatprep.subr.bf16.mxu0 %v12816_v40  ;;  %9670 = vmatprep.subr.bf16.mxu1 %v12819_v59  ;;  %v12903_v40 = vld [vmem:[%s14093_s8 + $0x132c] ss:$16 sps:$4 sm:$0xff]   ;;  %v12898_v59 = vld [vmem:[%s14093_s8 + $0x1320] ss:$16 sps:$4 sm:$0xff]  }
 0x45b   : > { %9015 = vmatpush1.bf16.msra.mxu0 %v12814_v60  ;;  %9671 = vmatpush1.bf16.msra.mxu1 %v12817_v0  ;;  %v12901_v60 = vld [vmem:[%s14093_s8 + $0x1328] ss:$16 sps:$4 sm:$0xff]   ;;  %v12906_v0 = vld [vmem:[%s14093_s8 + $0x1344] ss:$16 sps:$4 sm:$0xff]  }
 0x45c   : > { %9016 = vmatprep.subr.bf16.mxu0 %v12822_v2  ;;  %9672 = vmatprep.subr.bf16.mxu1 %v12825_v48  ;;  %v12909_v2 = vld [vmem:[%s14093_s8 + $0x134c] ss:$16 sps:$4 sm:$0xff]   ;;  %v12904_v48 = vld [vmem:[%s14093_s8 + $0x1340] ss:$16 sps:$4 sm:$0xff]  }
 0x45f   : > { %9017 = vmatpush1.bf16.msra.mxu0 %v12820_v3  ;;  %9673 = vmatpush1.bf16.msra.mxu1 %v12823_v46  ;;  %v12907_v3 = vld [vmem:[%s14093_s8 + $0x1348] ss:$16 sps:$4 sm:$0xff]   ;;  %v12912_v46 = vld [vmem:[%s14093_s8 + $0x1364] ss:$16 sps:$4 sm:$0xff]  }
 0x460   : > { %9018 = vmatprep.subr.bf16.mxu0 %v12828_v4  ;;  %9674 = vmatprep.subr.bf16.mxu1 %v12831_v63  ;;  %v12915_v4 = vld [vmem:[%s14093_s8 + $0x136c] ss:$16 sps:$4 sm:$0xff]   ;;  %v12910_v63 = vld [vmem:[%s14093_s8 + $0x1360] ss:$16 sps:$4 sm:$0xff]  }
 0x463   : > { %9019 = vmatpush1.bf16.msra.mxu0 %v12826_v1  ;;  %9675 = vmatpush1.bf16.msra.mxu1 %v12829_v6  ;;  %v12913_v1 = vld [vmem:[%s14093_s8 + $0x1368] ss:$16 sps:$4 sm:$0xff]   ;;  %v12918_v6 = vld [vmem:[%s14093_s8 + $0x1384] ss:$16 sps:$4 sm:$0xff]  }
 0x464   : > { %9020 = vmatprep.subr.bf16.mxu0 %v12834_v7  ;;  %9676 = vmatprep.subr.bf16.mxu1 %v12837_v9  ;;  %v12921_v7 = vld [vmem:[%s14093_s8 + $0x138c] ss:$16 sps:$4 sm:$0xff]   ;;  %v12916_v9 = vld [vmem:[%s14093_s8 + $0x1380] ss:$16 sps:$4 sm:$0xff]  }
 0x467   : > { %9021 = vmatpush1.bf16.msra.mxu0 %v12832_v10  ;;  %9677 = vmatpush1.bf16.msra.mxu1 %v12835_v54  ;;  %v12924_v10 = vld [vmem:[%s14093_s8 + $0x13a4] ss:$16 sps:$4 sm:$0xff]   ;;  %v12927_v54 = vld [vmem:[%s14093_s8 + $0x13ac] ss:$16 sps:$4 sm:$0xff]  }
 0x468   : > { %9022 = vmatprep.subr.bf16.mxu0 %v12840_v11  ;;  %9678 = vmatprep.subr.bf16.mxu1 %v12843_v12  ;;  %v12922_v11 = vld [vmem:[%s14093_s8 + $0x13a0] ss:$16 sps:$4 sm:$0xff]   ;;  %v12925_v12 = vld [vmem:[%s14093_s8 + $0x13a8] ss:$16 sps:$4 sm:$0xff]  }
 0x46b   : > { %9023 = vmatpush1.bf16.msra.mxu0 %v12838_v62  ;;  %9679 = vmatpush1.bf16.msra.mxu1 %v12841_v14  ;;  %v12930_v62 = vld [vmem:[%s14093_s8 + $0x13c4] ss:$16 sps:$4 sm:$0xff]   ;;  %v12933_v14 = vld [vmem:[%s14093_s8 + $0x13cc] ss:$16 sps:$4 sm:$0xff]  }
 0x46c   : > { %9033 = vmatprep.subr.bf16.mxu0 %v12846_v15  ;;  %9689 = vmatprep.subr.bf16.mxu1 %v12849_v61  ;;  %v14981_v15 = vld [vmem:[#allocation2 + $0x28] sm:$0xff]  ;;  %v12928_v61 = vld [vmem:[%s14093_s8 + $0x13c0] ss:$16 sps:$4 sm:$0xff]  }
 0x46e   : > { %9025 = vmatmul.mubr.bf16.vlgmr.msra.gmra.mrb[0].mxu0 %v2482_v18  ;;  %9681 = vmatmul.mubr.bf16.vlgmr.msra.gmra.mrb[0].mxu1 %v2482_v18  ;;  %v12936_v18 = vld [vmem:[%s14093_s8 + $0x13e4] ss:$16 sps:$4 sm:$0xff]  }
 0x46f   : > { %9034 = vmatpush1.bf16.msra.mxu0 %v12844_v19  ;;  %9690 = vmatpush1.bf16.msra.mxu1 %v12847_v20  ;;  %v12939_v19 = vld [vmem:[%s14093_s8 + $0x13ec] ss:$16 sps:$4 sm:$0xff]   ;;  %v14989_v20 = vrot.slane %v14981_v15, %v14307_v56 }
 0x470   : > { %9035 = vmatprep.subr.bf16.mxu0 %v12852_v21  ;;  %9691 = vmatprep.subr.bf16.mxu1 %v12855_v22  ;;  %v12934_v21 = vld [vmem:[%s14093_s8 + $0x13e0] ss:$16 sps:$4 sm:$0xff]   ;;  %v12937_v22 = vld [vmem:[%s14093_s8 + $0x13e8] ss:$16 sps:$4 sm:$0xff]  }
 0x471   : > { %9065 = vmatprep.mubr.bf16.mxu0 %v2485_v23  ;;  %9721 = vmatprep.mubr.bf16.mxu1 %v2485_v23  ;;  %v12943_v23 = vld [vmem:[%s14093_s8 + $0x1404] ss:$16 sps:$4 sm:$0xff]  }
 0x473   : > { %9036 = vmatpush1.bf16.msra.mxu0 %v12850_v5  ;;  %9692 = vmatpush1.bf16.msra.mxu1 %v12853_v24  ;;  %v12946_v5 = vld [vmem:[%s14093_s8 + $0x140c] ss:$16 sps:$4 sm:$0xff]   ;;  %v2398_v24 = vcombine.high %v14989_v20, %v14989_v20 }
 0x474   : > { %9037 = vmatprep.subr.bf16.mxu0 %v12858_v8  ;;  %9693 = vmatprep.subr.bf16.mxu1 %v12861_v25  ;;  %v2484_v8 = vpack.c.bf16 %v14915_v13, %v14915_v13  ;;  %v12941_v25 = vld [vmem:[%s14093_s8 + $0x1400] ss:$16 sps:$4 sm:$0xff]  }
 0x475   : > { %v12947_v13 = vld [vmem:[%s14093_s8 + $0x1420] ss:$16 sps:$4 sm:$0xff]  }
 0x477   : > { %9038 = vmatpush1.bf16.msra.mxu0 %v12856_v26  ;;  %9694 = vmatpush1.bf16.msra.mxu1 %v12859_v28  ;;  %v12944_v26 = vld [vmem:[%s14093_s8 + $0x1408] ss:$16 sps:$4 sm:$0xff]   ;;  %v12949_v28 = vld [vmem:[%s14093_s8 + $0x1424] ss:$16 sps:$4 sm:$0xff]  }
 0x478   : > { %9039 = vmatprep.subr.bf16.mxu0 %v12864_v32  ;;  %9695 = vmatprep.subr.bf16.mxu1 %v12867_v34  ;;  %v12952_v32 = vld [vmem:[%s14093_s8 + $0x142c] ss:$16 sps:$4 sm:$0xff]   ;;  %v2487_v34 = vpack.c.bf16 %v2398_v24, %v2398_v24  ;;  %v13025_v24 = vld [vmem:[%s14093_s8 + $0x15c0] ss:$16 sps:$4 sm:$0xff]  }
 0x47b   : > { %9040 = vmatpush1.bf16.msra.mxu0 %v12862_v33  ;;  %9696 = vmatpush1.bf16.msra.mxu1 %v12865_v16  ;;  %v12950_v33 = vld [vmem:[%s14093_s8 + $0x1428] ss:$16 sps:$4 sm:$0xff]   ;;  %v12955_v16 = vld [vmem:[%s14093_s8 + $0x1444] ss:$16 sps:$4 sm:$0xff]  }
 0x47c   : > { %9041 = vmatprep.subr.bf16.mxu0 %v12870_v44  ;;  %9697 = vmatprep.subr.bf16.mxu1 %v12873_v38  ;;  %v12958_v44 = vld [vmem:[%s14093_s8 + $0x144c] ss:$16 sps:$4 sm:$0xff]   ;;  %v12953_v38 = vld [vmem:[%s14093_s8 + $0x1440] ss:$16 sps:$4 sm:$0xff]  }
 0x47f   : > { %9042 = vmatpush1.bf16.msra.mxu0 %v12868_v39  ;;  %9698 = vmatpush1.bf16.msra.mxu1 %v12871_v27  ;;  %v12956_v39 = vld [vmem:[%s14093_s8 + $0x1448] ss:$16 sps:$4 sm:$0xff]   ;;  %v12961_v27 = vld [vmem:[%s14093_s8 + $0x1464] ss:$16 sps:$4 sm:$0xff]  }
 0x480   : > { %9043 = vmatprep.subr.bf16.mxu0 %v12876_v29  ;;  %9699 = vmatprep.subr.bf16.mxu1 %v12879_v41  ;;  %v12964_v29 = vld [vmem:[%s14093_s8 + $0x146c] ss:$16 sps:$4 sm:$0xff]   ;;  %v12959_v41 = vld [vmem:[%s14093_s8 + $0x1460] ss:$16 sps:$4 sm:$0xff]  }
 0x483   : > { %9044 = vmatpush1.bf16.msra.mxu0 %v12874_v30  ;;  %9700 = vmatpush1.bf16.msra.mxu1 %v12877_v36  ;;  %v12962_v30 = vld [vmem:[%s14093_s8 + $0x1468] ss:$16 sps:$4 sm:$0xff]   ;;  %v12967_v36 = vld [vmem:[%s14093_s8 + $0x1484] ss:$16 sps:$4 sm:$0xff]  }
 0x484   : > { %9045 = vmatprep.subr.bf16.mxu0 %v12882_v31  ;;  %9701 = vmatprep.subr.bf16.mxu1 %v12885_v42  ;;  %v12970_v31 = vld [vmem:[%s14093_s8 + $0x148c] ss:$16 sps:$4 sm:$0xff]   ;;  %v12965_v42 = vld [vmem:[%s14093_s8 + $0x1480] ss:$16 sps:$4 sm:$0xff]  }
 0x487   : > { %9046 = vmatpush1.bf16.msra.mxu0 %v12880_v43  ;;  %9702 = vmatpush1.bf16.msra.mxu1 %v12883_v45  ;;  %v12968_v43 = vld [vmem:[%s14093_s8 + $0x1488] ss:$16 sps:$4 sm:$0xff]   ;;  %v12973_v45 = vld [vmem:[%s14093_s8 + $0x14a4] ss:$16 sps:$4 sm:$0xff]  }
 0x488   : > { %9047 = vmatprep.subr.bf16.mxu0 %v12888_v37  ;;  %9703 = vmatprep.subr.bf16.mxu1 %v12891_v47  ;;  %v12976_v37 = vld [vmem:[%s14093_s8 + $0x14ac] ss:$16 sps:$4 sm:$0xff]   ;;  %v12971_v47 = vld [vmem:[%s14093_s8 + $0x14a0] ss:$16 sps:$4 sm:$0xff]  }
 0x48b   : > { %9048 = vmatpush1.bf16.msra.mxu0 %v12886_v50  ;;  %9704 = vmatpush1.bf16.msra.mxu1 %v12889_v51  ;;  %v12974_v50 = vld [vmem:[%s14093_s8 + $0x14a8] ss:$16 sps:$4 sm:$0xff]   ;;  %v12979_v51 = vld [vmem:[%s14093_s8 + $0x14c4] ss:$16 sps:$4 sm:$0xff]  }
 0x48c   : > { %9049 = vmatprep.subr.bf16.mxu0 %v12894_v35  ;;  %9705 = vmatprep.subr.bf16.mxu1 %v12897_v52  ;;  %v12982_v35 = vld [vmem:[%s14093_s8 + $0x14cc] ss:$16 sps:$4 sm:$0xff]   ;;  %v12977_v52 = vld [vmem:[%s14093_s8 + $0x14c0] ss:$16 sps:$4 sm:$0xff]  }
 0x48f   : > { %9050 = vmatpush1.bf16.msra.mxu0 %v12892_v55  ;;  %9706 = vmatpush1.bf16.msra.mxu1 %v12895_v57  ;;  %v12980_v55 = vld [vmem:[%s14093_s8 + $0x14c8] ss:$16 sps:$4 sm:$0xff]   ;;  %v12985_v57 = vld [vmem:[%s14093_s8 + $0x14e4] ss:$16 sps:$4 sm:$0xff]  }
 0x490   : > { %9051 = vmatprep.subr.bf16.mxu0 %v12900_v58  ;;  %9707 = vmatprep.subr.bf16.mxu1 %v12903_v40  ;;  %v12988_v58 = vld [vmem:[%s14093_s8 + $0x14ec] ss:$16 sps:$4 sm:$0xff]   ;;  %v12983_v40 = vld [vmem:[%s14093_s8 + $0x14e0] ss:$16 sps:$4 sm:$0xff]  }
 0x493   : > { %9052 = vmatpush1.bf16.msra.mxu0 %v12898_v59  ;;  %9708 = vmatpush1.bf16.msra.mxu1 %v12901_v60  ;;  %v12986_v59 = vld [vmem:[%s14093_s8 + $0x14e8] ss:$16 sps:$4 sm:$0xff]   ;;  %v12991_v60 = vld [vmem:[%s14093_s8 + $0x1504] ss:$16 sps:$4 sm:$0xff]  }
 0x494   : > { %9053 = vmatprep.subr.bf16.mxu0 %v12906_v0  ;;  %9709 = vmatprep.subr.bf16.mxu1 %v12909_v2  ;;  %v12994_v0 = vld [vmem:[%s14093_s8 + $0x150c] ss:$16 sps:$4 sm:$0xff]   ;;  %v12989_v2 = vld [vmem:[%s14093_s8 + $0x1500] ss:$16 sps:$4 sm:$0xff]  }
 0x497   : > { %9054 = vmatpush1.bf16.msra.mxu0 %v12904_v48  ;;  %9710 = vmatpush1.bf16.msra.mxu1 %v12907_v3  ;;  %v12992_v48 = vld [vmem:[%s14093_s8 + $0x1508] ss:$16 sps:$4 sm:$0xff]   ;;  %v12997_v3 = vld [vmem:[%s14093_s8 + $0x1524] ss:$16 sps:$4 sm:$0xff]  }
 0x498   : > { %9055 = vmatprep.subr.bf16.mxu0 %v12912_v46  ;;  %9711 = vmatprep.subr.bf16.mxu1 %v12915_v4  ;;  %v13000_v46 = vld [vmem:[%s14093_s8 + $0x152c] ss:$16 sps:$4 sm:$0xff]   ;;  %v12995_v4 = vld [vmem:[%s14093_s8 + $0x1520] ss:$16 sps:$4 sm:$0xff]  }
 0x49b   : > { %9056 = vmatpush1.bf16.msra.mxu0 %v12910_v63  ;;  %9712 = vmatpush1.bf16.msra.mxu1 %v12913_v1  ;;  %v12998_v63 = vld [vmem:[%s14093_s8 + $0x1528] ss:$16 sps:$4 sm:$0xff]   ;;  %v13003_v1 = vld [vmem:[%s14093_s8 + $0x1544] ss:$16 sps:$4 sm:$0xff]  }
 0x49c   : > { %9057 = vmatprep.subr.bf16.mxu0 %v12918_v6  ;;  %9713 = vmatprep.subr.bf16.mxu1 %v12921_v7  ;;  %v13006_v6 = vld [vmem:[%s14093_s8 + $0x154c] ss:$16 sps:$4 sm:$0xff]   ;;  %v13001_v7 = vld [vmem:[%s14093_s8 + $0x1540] ss:$16 sps:$4 sm:$0xff]  }
 0x49f   : > { %9058 = vmatpush1.bf16.msra.mxu0 %v12916_v9  ;;  %9714 = vmatpush1.bf16.msra.mxu1 %v12919_v53  ;;  %v13004_v9 = vld [vmem:[%s14093_s8 + $0x1548] ss:$16 sps:$4 sm:$0xff]   ;;  %v13009_v53 = vld [vmem:[%s14093_s8 + $0x1564] ss:$16 sps:$4 sm:$0xff]  }
 0x4a0   : > { %9059 = vmatprep.subr.bf16.mxu0 %v12924_v10  ;;  %9715 = vmatprep.subr.bf16.mxu1 %v12927_v54  ;;  %v13012_v10 = vld [vmem:[%s14093_s8 + $0x156c] ss:$16 sps:$4 sm:$0xff]   ;;  %v13007_v54 = vld [vmem:[%s14093_s8 + $0x1560] ss:$16 sps:$4 sm:$0xff]  }
 0x4a3   : > { %9060 = vmatpush1.bf16.msra.mxu0 %v12922_v11  ;;  %9716 = vmatpush1.bf16.msra.mxu1 %v12925_v12  ;;  %v13010_v11 = vld [vmem:[%s14093_s8 + $0x1568] ss:$16 sps:$4 sm:$0xff]   ;;  %v13015_v12 = vld [vmem:[%s14093_s8 + $0x1584] ss:$16 sps:$4 sm:$0xff]  }
 0x4a4   : > { %9061 = vmatprep.subr.bf16.mxu0 %v12930_v62  ;;  %9717 = vmatprep.subr.bf16.mxu1 %v12933_v14  ;;  %v13018_v62 = vld [vmem:[%s14093_s8 + $0x158c] ss:$16 sps:$4 sm:$0xff]   ;;  %v13013_v14 = vld [vmem:[%s14093_s8 + $0x1580] ss:$16 sps:$4 sm:$0xff]  }
 0x4a7   : > { %9062 = vmatpush1.bf16.msra.mxu0 %v12928_v61  ;;  %9718 = vmatpush1.bf16.msra.mxu1 %v12931_v17  ;;  %v13016_v61 = vld [vmem:[%s14093_s8 + $0x1588] ss:$16 sps:$4 sm:$0xff]   ;;  %v13021_v17 = vld [vmem:[%s14093_s8 + $0x15a4] ss:$16 sps:$4 sm:$0xff]  }
 0x4a8   : > { %9063 = vmatprep.subr.bf16.mxu0 %v12936_v18  ;;  %9719 = vmatprep.subr.bf16.mxu1 %v12939_v19  ;;  %v13024_v18 = vld [vmem:[%s14093_s8 + $0x15ac] ss:$16 sps:$4 sm:$0xff]   ;;  %v13019_v19 = vld [vmem:[%s14093_s8 + $0x15a0] ss:$16 sps:$4 sm:$0xff]  }
 0x4ab   : > { %9064 = vmatpush1.bf16.msra.mxu0 %v12934_v21  ;;  %9720 = vmatpush1.bf16.msra.mxu1 %v12937_v22  ;;  %v13022_v21 = vld [vmem:[%s14093_s8 + $0x15a8] ss:$16 sps:$4 sm:$0xff]   ;;  %v13027_v22 = vld [vmem:[%s14093_s8 + $0x15c4] ss:$16 sps:$4 sm:$0xff]  }
 0x4ac   : > { %9074 = vmatprep.subr.bf16.mxu0 %v12943_v23  ;;  %9730 = vmatprep.subr.bf16.mxu1 %v12946_v5  ;;  %v13030_v23 = vld [vmem:[%s14093_s8 + $0x15cc] ss:$16 sps:$4 sm:$0xff]   ;;  %v2383_v5 = vcombine.high %v14981_v15, %v14981_v15  ;;  %v13031_v15 = vld [vmem:[%s14093_s8 + $0x15e0] ss:$16 sps:$4 sm:$0xff]  }
 0x4ae   : > { %9066 = vmatmul.mubr.bf16.vlgmr.msra.gmra.mrb[0].mxu0 %v2484_v8  ;;  %9722 = vmatmul.mubr.bf16.vlgmr.msra.gmra.mrb[0].mxu1 %v2484_v8  ;;  %v13028_v8 = vld [vmem:[%s14093_s8 + $0x15c8] ss:$16 sps:$4 sm:$0xff]  }
 0x4af   : > { %9075 = vmatpush1.bf16.msra.mxu0 %v12941_v25  ;;  %9731 = vmatpush1.bf16.msra.mxu1 %v12944_v26  ;;  %v13033_v25 = vld [vmem:[%s14093_s8 + $0x15e4] ss:$16 sps:$4 sm:$0xff]   ;;  %v13036_v26 = vld [vmem:[%s14093_s8 + $0x15ec] ss:$16 sps:$4 sm:$0xff]  }
 0x4b0   : > { %9076 = vmatprep.subr.bf16.mxu0 %v12949_v28  ;;  %9732 = vmatprep.subr.bf16.mxu1 %v12952_v32  ;;  %v15062_v28 = vrot.slane %v2383_v5, %v14307_v56  ;;  %v13034_v32 = vld [vmem:[%s14093_s8 + $0x15e8] ss:$16 sps:$4 sm:$0xff]  }
 0x4b1   : > { %9106 = vmatprep.mubr.bf16.mxu0 %v2487_v34  ;;  %9762 = vmatprep.mubr.bf16.mxu1 %v2487_v34  ;;  %v13039_v34 = vld [vmem:[%s14093_s8 + $0x1604] ss:$16 sps:$4 sm:$0xff]   ;;  %v13112_v5 = vld [vmem:[%s14093_s8 + $0x1788] ss:$16 sps:$4 sm:$0xff]  }
 0x4b3   : > { %9077 = vmatpush1.bf16.msra.mxu0 %v12947_v13  ;;  %9733 = vmatpush1.bf16.msra.mxu1 %v12950_v33  ;;  %v13042_v13 = vld [vmem:[%s14093_s8 + $0x160c] ss:$16 sps:$4 sm:$0xff]   ;;  %v2399_v33 = vcombine.high %v15062_v28, %v15062_v28 }
 0x4b4   : > { %9078 = vmatprep.subr.bf16.mxu0 %v12955_v16  ;;  %9734 = vmatprep.subr.bf16.mxu1 %v12958_v44  ;;  %v2486_v16 = vpack.c.bf16 %v14989_v20, %v14989_v20  ;;  %v13037_v44 = vld [vmem:[%s14093_s8 + $0x1600] ss:$16 sps:$4 sm:$0xff]  }
 0x4b5   : > { %v13043_v20 = vld [vmem:[%s14093_s8 + $0x1620] ss:$16 sps:$4 sm:$0xff]  }
 0x4b7   : > { %9079 = vmatpush1.bf16.msra.mxu0 %v12953_v38  ;;  %9735 = vmatpush1.bf16.msra.mxu1 %v12956_v39  ;;  %v13040_v38 = vld [vmem:[%s14093_s8 + $0x1608] ss:$16 sps:$4 sm:$0xff]   ;;  %v13045_v39 = vld [vmem:[%s14093_s8 + $0x1624] ss:$16 sps:$4 sm:$0xff]  }
 0x4b8   : > { %9080 = vmatprep.subr.bf16.mxu0 %v12961_v27  ;;  %9736 = vmatprep.subr.bf16.mxu1 %v12964_v29  ;;  %v13048_v27 = vld [vmem:[%s14093_s8 + $0x162c] ss:$16 sps:$4 sm:$0xff]   ;;  %v2489_v29 = vpack.c.bf16 %v2399_v33, %v2399_v33  ;;  %v13124_v33 = vld [vmem:[%s14093_s8 + $0x17c8] ss:$16 sps:$4 sm:$0xff]  }
 0x4bb   : > { %9081 = vmatpush1.bf16.msra.mxu0 %v12959_v41  ;;  %9737 = vmatpush1.bf16.msra.mxu1 %v12962_v30  ;;  %v13046_v41 = vld [vmem:[%s14093_s8 + $0x1628] ss:$16 sps:$4 sm:$0xff]   ;;  %v13051_v30 = vld [vmem:[%s14093_s8 + $0x1644] ss:$16 sps:$4 sm:$0xff]  }
 0x4bc   : > { %9082 = vmatprep.subr.bf16.mxu0 %v12967_v36  ;;  %9738 = vmatprep.subr.bf16.mxu1 %v12970_v31  ;;  %v13054_v36 = vld [vmem:[%s14093_s8 + $0x164c] ss:$16 sps:$4 sm:$0xff]   ;;  %v13049_v31 = vld [vmem:[%s14093_s8 + $0x1640] ss:$16 sps:$4 sm:$0xff]  }
 0x4bf   : > { %9083 = vmatpush1.bf16.msra.mxu0 %v12965_v42  ;;  %9739 = vmatpush1.bf16.msra.mxu1 %v12968_v43  ;;  %v13052_v42 = vld [vmem:[%s14093_s8 + $0x1648] ss:$16 sps:$4 sm:$0xff]   ;;  %v13057_v43 = vld [vmem:[%s14093_s8 + $0x1664] ss:$16 sps:$4 sm:$0xff]  }
 0x4c0   : > { %9084 = vmatprep.subr.bf16.mxu0 %v12973_v45  ;;  %9740 = vmatprep.subr.bf16.mxu1 %v12976_v37  ;;  %v13060_v45 = vld [vmem:[%s14093_s8 + $0x166c] ss:$16 sps:$4 sm:$0xff]   ;;  %v13055_v37 = vld [vmem:[%s14093_s8 + $0x1660] ss:$16 sps:$4 sm:$0xff]  }
 0x4c3   : > { %9085 = vmatpush1.bf16.msra.mxu0 %v12971_v47  ;;  %9741 = vmatpush1.bf16.msra.mxu1 %v12974_v50  ;;  %v13058_v47 = vld [vmem:[%s14093_s8 + $0x1668] ss:$16 sps:$4 sm:$0xff]   ;;  %v13063_v50 = vld [vmem:[%s14093_s8 + $0x1684] ss:$16 sps:$4 sm:$0xff]  }
 0x4c4   : > { %9086 = vmatprep.subr.bf16.mxu0 %v12979_v51  ;;  %9742 = vmatprep.subr.bf16.mxu1 %v12982_v35  ;;  %v13066_v51 = vld [vmem:[%s14093_s8 + $0x168c] ss:$16 sps:$4 sm:$0xff]   ;;  %v13061_v35 = vld [vmem:[%s14093_s8 + $0x1680] ss:$16 sps:$4 sm:$0xff]  }
 0x4c7   : > { %9087 = vmatpush1.bf16.msra.mxu0 %v12977_v52  ;;  %9743 = vmatpush1.bf16.msra.mxu1 %v12980_v55  ;;  %v13064_v52 = vld [vmem:[%s14093_s8 + $0x1688] ss:$16 sps:$4 sm:$0xff]   ;;  %v13069_v55 = vld [vmem:[%s14093_s8 + $0x16a4] ss:$16 sps:$4 sm:$0xff]  }
 0x4c8   : > { %9088 = vmatprep.subr.bf16.mxu0 %v12985_v57  ;;  %9744 = vmatprep.subr.bf16.mxu1 %v12988_v58  ;;  %v13072_v57 = vld [vmem:[%s14093_s8 + $0x16ac] ss:$16 sps:$4 sm:$0xff]   ;;  %v13067_v58 = vld [vmem:[%s14093_s8 + $0x16a0] ss:$16 sps:$4 sm:$0xff]  }
 0x4cb   : > { %9089 = vmatpush1.bf16.msra.mxu0 %v12983_v40  ;;  %9745 = vmatpush1.bf16.msra.mxu1 %v12986_v59  ;;  %v13070_v40 = vld [vmem:[%s14093_s8 + $0x16a8] ss:$16 sps:$4 sm:$0xff]   ;;  %v13075_v59 = vld [vmem:[%s14093_s8 + $0x16c4] ss:$16 sps:$4 sm:$0xff]  }
 0x4cc   : > { %9090 = vmatprep.subr.bf16.mxu0 %v12991_v60  ;;  %9746 = vmatprep.subr.bf16.mxu1 %v12994_v0  ;;  %v13078_v60 = vld [vmem:[%s14093_s8 + $0x16cc] ss:$16 sps:$4 sm:$0xff]   ;;  %v13073_v0 = vld [vmem:[%s14093_s8 + $0x16c0] ss:$16 sps:$4 sm:$0xff]  }
 0x4cf   : > { %9091 = vmatpush1.bf16.msra.mxu0 %v12989_v2  ;;  %9747 = vmatpush1.bf16.msra.mxu1 %v12992_v48  ;;  %v13076_v2 = vld [vmem:[%s14093_s8 + $0x16c8] ss:$16 sps:$4 sm:$0xff]   ;;  %v13081_v48 = vld [vmem:[%s14093_s8 + $0x16e4] ss:$16 sps:$4 sm:$0xff]  }
 0x4d0   : > { %9092 = vmatprep.subr.bf16.mxu0 %v12997_v3  ;;  %9748 = vmatprep.subr.bf16.mxu1 %v13000_v46  ;;  %v13084_v3 = vld [vmem:[%s14093_s8 + $0x16ec] ss:$16 sps:$4 sm:$0xff]   ;;  %v13079_v46 = vld [vmem:[%s14093_s8 + $0x16e0] ss:$16 sps:$4 sm:$0xff]  }
 0x4d3   : > { %9093 = vmatpush1.bf16.msra.mxu0 %v12995_v4  ;;  %9749 = vmatpush1.bf16.msra.mxu1 %v12998_v63  ;;  %v13082_v4 = vld [vmem:[%s14093_s8 + $0x16e8] ss:$16 sps:$4 sm:$0xff]   ;;  %v13087_v63 = vld [vmem:[%s14093_s8 + $0x1704] ss:$16 sps:$4 sm:$0xff]  }
 0x4d4   : > { %9094 = vmatprep.subr.bf16.mxu0 %v13003_v1  ;;  %9750 = vmatprep.subr.bf16.mxu1 %v13006_v6  ;;  %v13090_v1 = vld [vmem:[%s14093_s8 + $0x170c] ss:$16 sps:$4 sm:$0xff]   ;;  %v13085_v6 = vld [vmem:[%s14093_s8 + $0x1700] ss:$16 sps:$4 sm:$0xff]  }
 0x4d7   : > { %9095 = vmatpush1.bf16.msra.mxu0 %v13001_v7  ;;  %9751 = vmatpush1.bf16.msra.mxu1 %v13004_v9  ;;  %v13088_v7 = vld [vmem:[%s14093_s8 + $0x1708] ss:$16 sps:$4 sm:$0xff]   ;;  %v13093_v9 = vld [vmem:[%s14093_s8 + $0x1724] ss:$16 sps:$4 sm:$0xff]  }
 0x4d8   : > { %9096 = vmatprep.subr.bf16.mxu0 %v13009_v53  ;;  %9752 = vmatprep.subr.bf16.mxu1 %v13012_v10  ;;  %v13096_v53 = vld [vmem:[%s14093_s8 + $0x172c] ss:$16 sps:$4 sm:$0xff]   ;;  %v13091_v10 = vld [vmem:[%s14093_s8 + $0x1720] ss:$16 sps:$4 sm:$0xff]  }
 0x4db   : > { %9097 = vmatpush1.bf16.msra.mxu0 %v13007_v54  ;;  %9753 = vmatpush1.bf16.msra.mxu1 %v13010_v11  ;;  %v13094_v54 = vld [vmem:[%s14093_s8 + $0x1728] ss:$16 sps:$4 sm:$0xff]   ;;  %v13099_v11 = vld [vmem:[%s14093_s8 + $0x1744] ss:$16 sps:$4 sm:$0xff]  }
 0x4dc   : > { %9098 = vmatprep.subr.bf16.mxu0 %v13015_v12  ;;  %9754 = vmatprep.subr.bf16.mxu1 %v13018_v62  ;;  %v13102_v12 = vld [vmem:[%s14093_s8 + $0x174c] ss:$16 sps:$4 sm:$0xff]   ;;  %v13097_v62 = vld [vmem:[%s14093_s8 + $0x1740] ss:$16 sps:$4 sm:$0xff]  }
 0x4df   : > { %9099 = vmatpush1.bf16.msra.mxu0 %v13013_v14  ;;  %9755 = vmatpush1.bf16.msra.mxu1 %v13016_v61  ;;  %v13100_v14 = vld [vmem:[%s14093_s8 + $0x1748] ss:$16 sps:$4 sm:$0xff]   ;;  %v13105_v61 = vld [vmem:[%s14093_s8 + $0x1764] ss:$16 sps:$4 sm:$0xff]  }
 0x4e0   : > { %9100 = vmatprep.subr.bf16.mxu0 %v13021_v17  ;;  %9756 = vmatprep.subr.bf16.mxu1 %v13024_v18  ;;  %v13108_v17 = vld [vmem:[%s14093_s8 + $0x176c] ss:$16 sps:$4 sm:$0xff]   ;;  %v13103_v18 = vld [vmem:[%s14093_s8 + $0x1760] ss:$16 sps:$4 sm:$0xff]  }
 0x4e3   : > { %9101 = vmatpush1.bf16.msra.mxu0 %v13019_v19  ;;  %9757 = vmatpush1.bf16.msra.mxu1 %v13022_v21  ;;  %v13106_v19 = vld [vmem:[%s14093_s8 + $0x1768] ss:$16 sps:$4 sm:$0xff]   ;;  %v13111_v21 = vld [vmem:[%s14093_s8 + $0x1784] ss:$16 sps:$4 sm:$0xff]  }
 0x4e4   : > { %9102 = vmatprep.subr.bf16.mxu0 %v13027_v22  ;;  %9758 = vmatprep.subr.bf16.mxu1 %v13030_v23  ;;  %v13114_v22 = vld [vmem:[%s14093_s8 + $0x178c] ss:$16 sps:$4 sm:$0xff]   ;;  %v13109_v23 = vld [vmem:[%s14093_s8 + $0x1780] ss:$16 sps:$4 sm:$0xff]  }
 0x4e7   : > { %9103 = vmatpush1.bf16.msra.mxu0 %v13025_v24  ;;  %9759 = vmatpush1.bf16.msra.mxu1 %v13028_v8  ;;  %v13117_v24 = vld [vmem:[%s14093_s8 + $0x17a4] ss:$16 sps:$4 sm:$0xff]   ;;  %v13120_v8 = vld [vmem:[%s14093_s8 + $0x17ac] ss:$16 sps:$4 sm:$0xff]  }
 0x4e8   : > { %9104 = vmatprep.subr.bf16.mxu0 %v13033_v25  ;;  %9760 = vmatprep.subr.bf16.mxu1 %v13036_v26  ;;  %v13115_v25 = vld [vmem:[%s14093_s8 + $0x17a0] ss:$16 sps:$4 sm:$0xff]   ;;  %v13118_v26 = vld [vmem:[%s14093_s8 + $0x17a8] ss:$16 sps:$4 sm:$0xff]  }
 0x4eb   : > { %9105 = vmatpush1.bf16.msra.mxu0 %v13031_v15  ;;  %9761 = vmatpush1.bf16.msra.mxu1 %v13034_v32  ;;  %v13123_v15 = vld [vmem:[%s14093_s8 + $0x17c4] ss:$16 sps:$4 sm:$0xff]   ;;  %v13126_v32 = vld [vmem:[%s14093_s8 + $0x17cc] ss:$16 sps:$4 sm:$0xff]  }
 0x4ec   : > { %9115 = vmatprep.subr.bf16.mxu0 %v13039_v34  ;;  %9771 = vmatprep.subr.bf16.mxu1 %v13042_v13  ;;  %v15128_v34 = vld [vmem:[#allocation2 + $0x30] sm:$0xff] }
 0x4ed   : > { %v13121_v13 = vld [vmem:[%s14093_s8 + $0x17c0] ss:$16 sps:$4 sm:$0xff]  }
 0x4ee   : > { %9107 = vmatmul.mubr.bf16.vlgmr.msra.gmra.mrb[0].mxu0 %v2486_v16  ;;  %9763 = vmatmul.mubr.bf16.vlgmr.msra.gmra.mrb[0].mxu1 %v2486_v16  ;;  %v13129_v16 = vld [vmem:[%s14093_s8 + $0x17e4] ss:$16 sps:$4 sm:$0xff]  }
 0x4ef   : > { %9116 = vmatpush1.bf16.msra.mxu0 %v13037_v44  ;;  %9772 = vmatpush1.bf16.msra.mxu1 %v13040_v38  ;;  %v13132_v44 = vld [vmem:[%s14093_s8 + $0x17ec] ss:$16 sps:$4 sm:$0xff]   ;;  %v15136_v38 = vrot.slane %v15128_v34, %v14307_v56 }
 0x4f0   : > { %9117 = vmatprep.subr.bf16.mxu0 %v13045_v39  ;;  %9773 = vmatprep.subr.bf16.mxu1 %v13048_v27  ;;  %v13127_v39 = vld [vmem:[%s14093_s8 + $0x17e0] ss:$16 sps:$4 sm:$0xff]   ;;  %v13130_v27 = vld [vmem:[%s14093_s8 + $0x17e8] ss:$16 sps:$4 sm:$0xff]  }
 0x4f1   : > { %9147 = vmatprep.mubr.bf16.mxu0 %v2489_v29  ;;  %9803 = vmatprep.mubr.bf16.mxu1 %v2489_v29  ;;  %v13136_v29 = vld [vmem:[%s14093_s8 + $0x1804] ss:$16 sps:$4 sm:$0xff]  }
 0x4f3   : > { %9118 = vmatpush1.bf16.msra.mxu0 %v13043_v20  ;;  %9774 = vmatpush1.bf16.msra.mxu1 %v13046_v41  ;;  %v13139_v20 = vld [vmem:[%s14093_s8 + $0x180c] ss:$16 sps:$4 sm:$0xff]   ;;  %v2415_v41 = vcombine.high %v15136_v38, %v15136_v38 }
 0x4f4   : > { %9119 = vmatprep.subr.bf16.mxu0 %v13051_v30  ;;  %9775 = vmatprep.subr.bf16.mxu1 %v13054_v36  ;;  %v2488_v30 = vpack.c.bf16 %v15062_v28, %v15062_v28  ;;  %v13134_v36 = vld [vmem:[%s14093_s8 + $0x1800] ss:$16 sps:$4 sm:$0xff]  }
 0x4f5   : > { %v13140_v28 = vld [vmem:[%s14093_s8 + $0x1820] ss:$16 sps:$4 sm:$0xff]  }
 0x4f7   : > { %9120 = vmatpush1.bf16.msra.mxu0 %v13049_v31  ;;  %9776 = vmatpush1.bf16.msra.mxu1 %v13052_v42  ;;  %v13137_v31 = vld [vmem:[%s14093_s8 + $0x1808] ss:$16 sps:$4 sm:$0xff]   ;;  %v13142_v42 = vld [vmem:[%s14093_s8 + $0x1824] ss:$16 sps:$4 sm:$0xff]  }
 0x4f8   : > { %9121 = vmatprep.subr.bf16.mxu0 %v13057_v43  ;;  %9777 = vmatprep.subr.bf16.mxu1 %v13060_v45  ;;  %v13145_v43 = vld [vmem:[%s14093_s8 + $0x182c] ss:$16 sps:$4 sm:$0xff]   ;;  %v2491_v45 = vpack.c.bf16 %v2415_v41, %v2415_v41  ;;  %v13218_v41 = vld [vmem:[%s14093_s8 + $0x19c0] ss:$16 sps:$4 sm:$0xff]  }
 0x4fb   : > { %9122 = vmatpush1.bf16.msra.mxu0 %v13055_v37  ;;  %9778 = vmatpush1.bf16.msra.mxu1 %v13058_v47  ;;  %v13143_v37 = vld [vmem:[%s14093_s8 + $0x1828] ss:$16 sps:$4 sm:$0xff]   ;;  %v13148_v47 = vld [vmem:[%s14093_s8 + $0x1844] ss:$16 sps:$4 sm:$0xff]  }
 0x4fc   : > { %9123 = vmatprep.subr.bf16.mxu0 %v13063_v50  ;;  %9779 = vmatprep.subr.bf16.mxu1 %v13066_v51  ;;  %v13151_v50 = vld [vmem:[%s14093_s8 + $0x184c] ss:$16 sps:$4 sm:$0xff]   ;;  %v13146_v51 = vld [vmem:[%s14093_s8 + $0x1840] ss:$16 sps:$4 sm:$0xff]  }
 0x4ff   : > { %9124 = vmatpush1.bf16.msra.mxu0 %v13061_v35  ;;  %9780 = vmatpush1.bf16.msra.mxu1 %v13064_v52  ;;  %v13149_v35 = vld [vmem:[%s14093_s8 + $0x1848] ss:$16 sps:$4 sm:$0xff]   ;;  %v13154_v52 = vld [vmem:[%s14093_s8 + $0x1864] ss:$16 sps:$4 sm:$0xff]  }
 0x500   : > { %9125 = vmatprep.subr.bf16.mxu0 %v13069_v55  ;;  %9781 = vmatprep.subr.bf16.mxu1 %v13072_v57  ;;  %v13157_v55 = vld [vmem:[%s14093_s8 + $0x186c] ss:$16 sps:$4 sm:$0xff]   ;;  %v13152_v57 = vld [vmem:[%s14093_s8 + $0x1860] ss:$16 sps:$4 sm:$0xff]  }
 0x503   : > { %9126 = vmatpush1.bf16.msra.mxu0 %v13067_v58  ;;  %9782 = vmatpush1.bf16.msra.mxu1 %v13070_v40  ;;  %v13155_v58 = vld [vmem:[%s14093_s8 + $0x1868] ss:$16 sps:$4 sm:$0xff]   ;;  %v13160_v40 = vld [vmem:[%s14093_s8 + $0x1884] ss:$16 sps:$4 sm:$0xff]  }
 0x504   : > { %9127 = vmatprep.subr.bf16.mxu0 %v13075_v59  ;;  %9783 = vmatprep.subr.bf16.mxu1 %v13078_v60  ;;  %v13163_v59 = vld [vmem:[%s14093_s8 + $0x188c] ss:$16 sps:$4 sm:$0xff]   ;;  %v13158_v60 = vld [vmem:[%s14093_s8 + $0x1880] ss:$16 sps:$4 sm:$0xff]  }
 0x507   : > { %9128 = vmatpush1.bf16.msra.mxu0 %v13073_v0  ;;  %9784 = vmatpush1.bf16.msra.mxu1 %v13076_v2  ;;  %v13161_v0 = vld [vmem:[%s14093_s8 + $0x1888] ss:$16 sps:$4 sm:$0xff]   ;;  %v13166_v2 = vld [vmem:[%s14093_s8 + $0x18a4] ss:$16 sps:$4 sm:$0xff]  }
 0x508   : > { %9129 = vmatprep.subr.bf16.mxu0 %v13081_v48  ;;  %9785 = vmatprep.subr.bf16.mxu1 %v13084_v3  ;;  %v13169_v48 = vld [vmem:[%s14093_s8 + $0x18ac] ss:$16 sps:$4 sm:$0xff]   ;;  %v13164_v3 = vld [vmem:[%s14093_s8 + $0x18a0] ss:$16 sps:$4 sm:$0xff]  }
 0x50b   : > { %9130 = vmatpush1.bf16.msra.mxu0 %v13079_v46  ;;  %9786 = vmatpush1.bf16.msra.mxu1 %v13082_v4  ;;  %v13167_v46 = vld [vmem:[%s14093_s8 + $0x18a8] ss:$16 sps:$4 sm:$0xff]   ;;  %v13172_v4 = vld [vmem:[%s14093_s8 + $0x18c4] ss:$16 sps:$4 sm:$0xff]  }
 0x50c   : > { %9131 = vmatprep.subr.bf16.mxu0 %v13087_v63  ;;  %9787 = vmatprep.subr.bf16.mxu1 %v13090_v1  ;;  %v13175_v63 = vld [vmem:[%s14093_s8 + $0x18cc] ss:$16 sps:$4 sm:$0xff]   ;;  %v13170_v1 = vld [vmem:[%s14093_s8 + $0x18c0] ss:$16 sps:$4 sm:$0xff]  }
 0x50f   : > { %9132 = vmatpush1.bf16.msra.mxu0 %v13085_v6  ;;  %9788 = vmatpush1.bf16.msra.mxu1 %v13088_v7  ;;  %v13173_v6 = vld [vmem:[%s14093_s8 + $0x18c8] ss:$16 sps:$4 sm:$0xff]   ;;  %v13178_v7 = vld [vmem:[%s14093_s8 + $0x18e4] ss:$16 sps:$4 sm:$0xff]  }
 0x510   : > { %9133 = vmatprep.subr.bf16.mxu0 %v13093_v9  ;;  %9789 = vmatprep.subr.bf16.mxu1 %v13096_v53  ;;  %v13181_v9 = vld [vmem:[%s14093_s8 + $0x18ec] ss:$16 sps:$4 sm:$0xff]   ;;  %v13176_v53 = vld [vmem:[%s14093_s8 + $0x18e0] ss:$16 sps:$4 sm:$0xff]  }
 0x513   : > { %9134 = vmatpush1.bf16.msra.mxu0 %v13091_v10  ;;  %9790 = vmatpush1.bf16.msra.mxu1 %v13094_v54  ;;  %v13179_v10 = vld [vmem:[%s14093_s8 + $0x18e8] ss:$16 sps:$4 sm:$0xff]   ;;  %v13184_v54 = vld [vmem:[%s14093_s8 + $0x1904] ss:$16 sps:$4 sm:$0xff]  }
 0x514   : > { %9135 = vmatprep.subr.bf16.mxu0 %v13099_v11  ;;  %9791 = vmatprep.subr.bf16.mxu1 %v13102_v12  ;;  %v13187_v11 = vld [vmem:[%s14093_s8 + $0x190c] ss:$16 sps:$4 sm:$0xff]   ;;  %v13182_v12 = vld [vmem:[%s14093_s8 + $0x1900] ss:$16 sps:$4 sm:$0xff]  }
 0x517   : > { %9136 = vmatpush1.bf16.msra.mxu0 %v13097_v62  ;;  %9792 = vmatpush1.bf16.msra.mxu1 %v13100_v14  ;;  %v13185_v62 = vld [vmem:[%s14093_s8 + $0x1908] ss:$16 sps:$4 sm:$0xff]   ;;  %v13190_v14 = vld [vmem:[%s14093_s8 + $0x1924] ss:$16 sps:$4 sm:$0xff]  }
 0x518   : > { %9137 = vmatprep.subr.bf16.mxu0 %v13105_v61  ;;  %9793 = vmatprep.subr.bf16.mxu1 %v13108_v17  ;;  %v13193_v61 = vld [vmem:[%s14093_s8 + $0x192c] ss:$16 sps:$4 sm:$0xff]   ;;  %v13188_v17 = vld [vmem:[%s14093_s8 + $0x1920] ss:$16 sps:$4 sm:$0xff]  }
 0x51b   : > { %9138 = vmatpush1.bf16.msra.mxu0 %v13103_v18  ;;  %9794 = vmatpush1.bf16.msra.mxu1 %v13106_v19  ;;  %v13191_v18 = vld [vmem:[%s14093_s8 + $0x1928] ss:$16 sps:$4 sm:$0xff]   ;;  %v13196_v19 = vld [vmem:[%s14093_s8 + $0x1944] ss:$16 sps:$4 sm:$0xff]  }
 0x51c   : > { %9139 = vmatprep.subr.bf16.mxu0 %v13111_v21  ;;  %9795 = vmatprep.subr.bf16.mxu1 %v13114_v22  ;;  %v13199_v21 = vld [vmem:[%s14093_s8 + $0x194c] ss:$16 sps:$4 sm:$0xff]   ;;  %v13194_v22 = vld [vmem:[%s14093_s8 + $0x1940] ss:$16 sps:$4 sm:$0xff]  }
 0x51f   : > { %9140 = vmatpush1.bf16.msra.mxu0 %v13109_v23  ;;  %9796 = vmatpush1.bf16.msra.mxu1 %v13112_v5  ;;  %v13197_v23 = vld [vmem:[%s14093_s8 + $0x1948] ss:$16 sps:$4 sm:$0xff]   ;;  %v13202_v5 = vld [vmem:[%s14093_s8 + $0x1964] ss:$16 sps:$4 sm:$0xff]  }
 0x520   : > { %9141 = vmatprep.subr.bf16.mxu0 %v13117_v24  ;;  %9797 = vmatprep.subr.bf16.mxu1 %v13120_v8  ;;  %v13205_v24 = vld [vmem:[%s14093_s8 + $0x196c] ss:$16 sps:$4 sm:$0xff]   ;;  %v13200_v8 = vld [vmem:[%s14093_s8 + $0x1960] ss:$16 sps:$4 sm:$0xff]  }
 0x523   : > { %9142 = vmatpush1.bf16.msra.mxu0 %v13115_v25  ;;  %9798 = vmatpush1.bf16.msra.mxu1 %v13118_v26  ;;  %v13203_v25 = vld [vmem:[%s14093_s8 + $0x1968] ss:$16 sps:$4 sm:$0xff]   ;;  %v13208_v26 = vld [vmem:[%s14093_s8 + $0x1984] ss:$16 sps:$4 sm:$0xff]  }
 0x524   : > { %9143 = vmatprep.subr.bf16.mxu0 %v13123_v15  ;;  %9799 = vmatprep.subr.bf16.mxu1 %v13126_v32  ;;  %v13211_v15 = vld [vmem:[%s14093_s8 + $0x198c] ss:$16 sps:$4 sm:$0xff]   ;;  %v13206_v32 = vld [vmem:[%s14093_s8 + $0x1980] ss:$16 sps:$4 sm:$0xff]  }
 0x527   : > { %9144 = vmatpush1.bf16.msra.mxu0 %v13121_v13  ;;  %9800 = vmatpush1.bf16.msra.mxu1 %v13124_v33  ;;  %v13209_v13 = vld [vmem:[%s14093_s8 + $0x1988] ss:$16 sps:$4 sm:$0xff]   ;;  %v13214_v33 = vld [vmem:[%s14093_s8 + $0x19a4] ss:$16 sps:$4 sm:$0xff]  }
 0x528   : > { %9145 = vmatprep.subr.bf16.mxu0 %v13129_v16  ;;  %9801 = vmatprep.subr.bf16.mxu1 %v13132_v44  ;;  %v13217_v16 = vld [vmem:[%s14093_s8 + $0x19ac] ss:$16 sps:$4 sm:$0xff]   ;;  %v13212_v44 = vld [vmem:[%s14093_s8 + $0x19a0] ss:$16 sps:$4 sm:$0xff]  }
 0x52b   : > { %9146 = vmatpush1.bf16.msra.mxu0 %v13127_v39  ;;  %9802 = vmatpush1.bf16.msra.mxu1 %v13130_v27  ;;  %v13215_v39 = vld [vmem:[%s14093_s8 + $0x19a8] ss:$16 sps:$4 sm:$0xff]   ;;  %v13220_v27 = vld [vmem:[%s14093_s8 + $0x19c4] ss:$16 sps:$4 sm:$0xff]  }
 0x52c   : > { %9156 = vmatprep.subr.bf16.mxu0 %v13136_v29  ;;  %9812 = vmatprep.subr.bf16.mxu1 %v13139_v20  ;;  %v13223_v29 = vld [vmem:[%s14093_s8 + $0x19cc] ss:$16 sps:$4 sm:$0xff]   ;;  %v2400_v20 = vcombine.high %v15128_v34, %v15128_v34  ;;  %v13224_v34 = vld [vmem:[%s14093_s8 + $0x19e0] ss:$16 sps:$4 sm:$0xff]  }
 0x52e   : > { %9148 = vmatmul.mubr.bf16.vlgmr.msra.gmra.mrb[0].mxu0 %v2488_v30  ;;  %9804 = vmatmul.mubr.bf16.vlgmr.msra.gmra.mrb[0].mxu1 %v2488_v30  ;;  %v13221_v30 = vld [vmem:[%s14093_s8 + $0x19c8] ss:$16 sps:$4 sm:$0xff]  }
 0x52f   : > { %9157 = vmatpush1.bf16.msra.mxu0 %v13134_v36  ;;  %9813 = vmatpush1.bf16.msra.mxu1 %v13137_v31  ;;  %v13226_v36 = vld [vmem:[%s14093_s8 + $0x19e4] ss:$16 sps:$4 sm:$0xff]   ;;  %v13229_v31 = vld [vmem:[%s14093_s8 + $0x19ec] ss:$16 sps:$4 sm:$0xff]  }
 0x530   : > { %9158 = vmatprep.subr.bf16.mxu0 %v13142_v42  ;;  %9814 = vmatprep.subr.bf16.mxu1 %v13145_v43  ;;  %v15209_v42 = vrot.slane %v2400_v20, %v14307_v56  ;;  %v13227_v43 = vld [vmem:[%s14093_s8 + $0x19e8] ss:$16 sps:$4 sm:$0xff]  }
 0x531   : > { %9188 = vmatprep.mubr.bf16.mxu0 %v2491_v45  ;;  %9844 = vmatprep.mubr.bf16.mxu1 %v2491_v45  ;;  %v13232_v45 = vld [vmem:[%s14093_s8 + $0x1a04] ss:$16 sps:$4 sm:$0xff]   ;;  %v13305_v20 = vld [vmem:[%s14093_s8 + $0x1b88] ss:$16 sps:$4 sm:$0xff]  }
 0x533   : > { %9159 = vmatpush1.bf16.msra.mxu0 %v13140_v28  ;;  %9815 = vmatpush1.bf16.msra.mxu1 %v13143_v37  ;;  %v13235_v28 = vld [vmem:[%s14093_s8 + $0x1a0c] ss:$16 sps:$4 sm:$0xff]   ;;  %v2416_v37 = vcombine.high %v15209_v42, %v15209_v42 }
 0x534   : > { %9160 = vmatprep.subr.bf16.mxu0 %v13148_v47  ;;  %9816 = vmatprep.subr.bf16.mxu1 %v13151_v50  ;;  %v2490_v47 = vpack.c.bf16 %v15136_v38, %v15136_v38  ;;  %v13230_v50 = vld [vmem:[%s14093_s8 + $0x1a00] ss:$16 sps:$4 sm:$0xff]  }
 0x535   : > { %v13236_v38 = vld [vmem:[%s14093_s8 + $0x1a20] ss:$16 sps:$4 sm:$0xff]  }
 0x537   : > { %9161 = vmatpush1.bf16.msra.mxu0 %v13146_v51  ;;  %9817 = vmatpush1.bf16.msra.mxu1 %v13149_v35  ;;  %v13233_v51 = vld [vmem:[%s14093_s8 + $0x1a08] ss:$16 sps:$4 sm:$0xff]   ;;  %v13238_v35 = vld [vmem:[%s14093_s8 + $0x1a24] ss:$16 sps:$4 sm:$0xff]  }
 0x538   : > { %9162 = vmatprep.subr.bf16.mxu0 %v13154_v52  ;;  %9818 = vmatprep.subr.bf16.mxu1 %v13157_v55  ;;  %v13241_v52 = vld [vmem:[%s14093_s8 + $0x1a2c] ss:$16 sps:$4 sm:$0xff]   ;;  %v2493_v55 = vpack.c.bf16 %v2416_v37, %v2416_v37  ;;  %v13317_v37 = vld [vmem:[%s14093_s8 + $0x1bc8] ss:$16 sps:$4 sm:$0xff]  }
 0x53b   : > { %9163 = vmatpush1.bf16.msra.mxu0 %v13152_v57  ;;  %9819 = vmatpush1.bf16.msra.mxu1 %v13155_v58  ;;  %v13239_v57 = vld [vmem:[%s14093_s8 + $0x1a28] ss:$16 sps:$4 sm:$0xff]   ;;  %v13244_v58 = vld [vmem:[%s14093_s8 + $0x1a44] ss:$16 sps:$4 sm:$0xff]  }
 0x53c   : > { %9164 = vmatprep.subr.bf16.mxu0 %v13160_v40  ;;  %9820 = vmatprep.subr.bf16.mxu1 %v13163_v59  ;;  %v13247_v40 = vld [vmem:[%s14093_s8 + $0x1a4c] ss:$16 sps:$4 sm:$0xff]   ;;  %v13242_v59 = vld [vmem:[%s14093_s8 + $0x1a40] ss:$16 sps:$4 sm:$0xff]  }
 0x53f   : > { %9165 = vmatpush1.bf16.msra.mxu0 %v13158_v60  ;;  %9821 = vmatpush1.bf16.msra.mxu1 %v13161_v0  ;;  %v13245_v60 = vld [vmem:[%s14093_s8 + $0x1a48] ss:$16 sps:$4 sm:$0xff]   ;;  %v13250_v0 = vld [vmem:[%s14093_s8 + $0x1a64] ss:$16 sps:$4 sm:$0xff]  }
 0x540   : > { %9166 = vmatprep.subr.bf16.mxu0 %v13166_v2  ;;  %9822 = vmatprep.subr.bf16.mxu1 %v13169_v48  ;;  %v13253_v2 = vld [vmem:[%s14093_s8 + $0x1a6c] ss:$16 sps:$4 sm:$0xff]   ;;  %v13248_v48 = vld [vmem:[%s14093_s8 + $0x1a60] ss:$16 sps:$4 sm:$0xff]  }
 0x543   : > { %9167 = vmatpush1.bf16.msra.mxu0 %v13164_v3  ;;  %9823 = vmatpush1.bf16.msra.mxu1 %v13167_v46  ;;  %v13251_v3 = vld [vmem:[%s14093_s8 + $0x1a68] ss:$16 sps:$4 sm:$0xff]   ;;  %v13256_v46 = vld [vmem:[%s14093_s8 + $0x1a84] ss:$16 sps:$4 sm:$0xff]  }
 0x544   : > { %9168 = vmatprep.subr.bf16.mxu0 %v13172_v4  ;;  %9824 = vmatprep.subr.bf16.mxu1 %v13175_v63  ;;  %v13259_v4 = vld [vmem:[%s14093_s8 + $0x1a8c] ss:$16 sps:$4 sm:$0xff]   ;;  %v13254_v63 = vld [vmem:[%s14093_s8 + $0x1a80] ss:$16 sps:$4 sm:$0xff]  }
 0x547   : > { %9169 = vmatpush1.bf16.msra.mxu0 %v13170_v1  ;;  %9825 = vmatpush1.bf16.msra.mxu1 %v13173_v6  ;;  %v13257_v1 = vld [vmem:[%s14093_s8 + $0x1a88] ss:$16 sps:$4 sm:$0xff]   ;;  %v13262_v6 = vld [vmem:[%s14093_s8 + $0x1aa4] ss:$16 sps:$4 sm:$0xff]  }
 0x548   : > { %9170 = vmatprep.subr.bf16.mxu0 %v13178_v7  ;;  %9826 = vmatprep.subr.bf16.mxu1 %v13181_v9  ;;  %v13265_v7 = vld [vmem:[%s14093_s8 + $0x1aac] ss:$16 sps:$4 sm:$0xff]   ;;  %v13260_v9 = vld [vmem:[%s14093_s8 + $0x1aa0] ss:$16 sps:$4 sm:$0xff]  }
 0x54b   : > { %9171 = vmatpush1.bf16.msra.mxu0 %v13176_v53  ;;  %9827 = vmatpush1.bf16.msra.mxu1 %v13179_v10  ;;  %v13263_v53 = vld [vmem:[%s14093_s8 + $0x1aa8] ss:$16 sps:$4 sm:$0xff]   ;;  %v13268_v10 = vld [vmem:[%s14093_s8 + $0x1ac4] ss:$16 sps:$4 sm:$0xff]  }
 0x54c   : > { %9172 = vmatprep.subr.bf16.mxu0 %v13184_v54  ;;  %9828 = vmatprep.subr.bf16.mxu1 %v13187_v11  ;;  %v13271_v54 = vld [vmem:[%s14093_s8 + $0x1acc] ss:$16 sps:$4 sm:$0xff]   ;;  %v13266_v11 = vld [vmem:[%s14093_s8 + $0x1ac0] ss:$16 sps:$4 sm:$0xff]  }
 0x54f   : > { %9173 = vmatpush1.bf16.msra.mxu0 %v13182_v12  ;;  %9829 = vmatpush1.bf16.msra.mxu1 %v13185_v62  ;;  %v13269_v12 = vld [vmem:[%s14093_s8 + $0x1ac8] ss:$16 sps:$4 sm:$0xff]   ;;  %v13274_v62 = vld [vmem:[%s14093_s8 + $0x1ae4] ss:$16 sps:$4 sm:$0xff]  }
 0x550   : > { %9174 = vmatprep.subr.bf16.mxu0 %v13190_v14  ;;  %9830 = vmatprep.subr.bf16.mxu1 %v13193_v61  ;;  %v13277_v14 = vld [vmem:[%s14093_s8 + $0x1aec] ss:$16 sps:$4 sm:$0xff]   ;;  %v13272_v61 = vld [vmem:[%s14093_s8 + $0x1ae0] ss:$16 sps:$4 sm:$0xff]  }
 0x553   : > { %9175 = vmatpush1.bf16.msra.mxu0 %v13188_v17  ;;  %9831 = vmatpush1.bf16.msra.mxu1 %v13191_v18  ;;  %v13275_v17 = vld [vmem:[%s14093_s8 + $0x1ae8] ss:$16 sps:$4 sm:$0xff]   ;;  %v13280_v18 = vld [vmem:[%s14093_s8 + $0x1b04] ss:$16 sps:$4 sm:$0xff]  }
 0x554   : > { %9176 = vmatprep.subr.bf16.mxu0 %v13196_v19  ;;  %9832 = vmatprep.subr.bf16.mxu1 %v13199_v21  ;;  %v13283_v19 = vld [vmem:[%s14093_s8 + $0x1b0c] ss:$16 sps:$4 sm:$0xff]   ;;  %v13278_v21 = vld [vmem:[%s14093_s8 + $0x1b00] ss:$16 sps:$4 sm:$0xff]  }
 0x557   : > { %9177 = vmatpush1.bf16.msra.mxu0 %v13194_v22  ;;  %9833 = vmatpush1.bf16.msra.mxu1 %v13197_v23  ;;  %v13281_v22 = vld [vmem:[%s14093_s8 + $0x1b08] ss:$16 sps:$4 sm:$0xff]   ;;  %v13286_v23 = vld [vmem:[%s14093_s8 + $0x1b24] ss:$16 sps:$4 sm:$0xff]  }
 0x558   : > { %9178 = vmatprep.subr.bf16.mxu0 %v13202_v5  ;;  %9834 = vmatprep.subr.bf16.mxu1 %v13205_v24  ;;  %v13289_v5 = vld [vmem:[%s14093_s8 + $0x1b2c] ss:$16 sps:$4 sm:$0xff]   ;;  %v13284_v24 = vld [vmem:[%s14093_s8 + $0x1b20] ss:$16 sps:$4 sm:$0xff]  }
 0x55b   : > { %9179 = vmatpush1.bf16.msra.mxu0 %v13200_v8  ;;  %9835 = vmatpush1.bf16.msra.mxu1 %v13203_v25  ;;  %v13287_v8 = vld [vmem:[%s14093_s8 + $0x1b28] ss:$16 sps:$4 sm:$0xff]   ;;  %v13292_v25 = vld [vmem:[%s14093_s8 + $0x1b44] ss:$16 sps:$4 sm:$0xff]  }
 0x55c   : > { %9180 = vmatprep.subr.bf16.mxu0 %v13208_v26  ;;  %9836 = vmatprep.subr.bf16.mxu1 %v13211_v15  ;;  %v13295_v26 = vld [vmem:[%s14093_s8 + $0x1b4c] ss:$16 sps:$4 sm:$0xff]   ;;  %v13290_v15 = vld [vmem:[%s14093_s8 + $0x1b40] ss:$16 sps:$4 sm:$0xff]  }
 0x55f   : > { %9181 = vmatpush1.bf16.msra.mxu0 %v13206_v32  ;;  %9837 = vmatpush1.bf16.msra.mxu1 %v13209_v13  ;;  %v13293_v32 = vld [vmem:[%s14093_s8 + $0x1b48] ss:$16 sps:$4 sm:$0xff]   ;;  %v13298_v13 = vld [vmem:[%s14093_s8 + $0x1b64] ss:$16 sps:$4 sm:$0xff]  }
 0x560   : > { %9182 = vmatprep.subr.bf16.mxu0 %v13214_v33  ;;  %9838 = vmatprep.subr.bf16.mxu1 %v13217_v16  ;;  %v13301_v33 = vld [vmem:[%s14093_s8 + $0x1b6c] ss:$16 sps:$4 sm:$0xff]   ;;  %v13296_v16 = vld [vmem:[%s14093_s8 + $0x1b60] ss:$16 sps:$4 sm:$0xff]  }
 0x563   : > { %9183 = vmatpush1.bf16.msra.mxu0 %v13212_v44  ;;  %9839 = vmatpush1.bf16.msra.mxu1 %v13215_v39  ;;  %v13299_v44 = vld [vmem:[%s14093_s8 + $0x1b68] ss:$16 sps:$4 sm:$0xff]   ;;  %v13304_v39 = vld [vmem:[%s14093_s8 + $0x1b84] ss:$16 sps:$4 sm:$0xff]  }
 0x564   : > { %9184 = vmatprep.subr.bf16.mxu0 %v13220_v27  ;;  %9840 = vmatprep.subr.bf16.mxu1 %v13223_v29  ;;  %v13307_v27 = vld [vmem:[%s14093_s8 + $0x1b8c] ss:$16 sps:$4 sm:$0xff]   ;;  %v13302_v29 = vld [vmem:[%s14093_s8 + $0x1b80] ss:$16 sps:$4 sm:$0xff]  }
 0x567   : > { %9185 = vmatpush1.bf16.msra.mxu0 %v13218_v41  ;;  %9841 = vmatpush1.bf16.msra.mxu1 %v13221_v30  ;;  %v13310_v41 = vld [vmem:[%s14093_s8 + $0x1ba4] ss:$16 sps:$4 sm:$0xff]   ;;  %v13313_v30 = vld [vmem:[%s14093_s8 + $0x1bac] ss:$16 sps:$4 sm:$0xff]  }
 0x568   : > { %9186 = vmatprep.subr.bf16.mxu0 %v13226_v36  ;;  %9842 = vmatprep.subr.bf16.mxu1 %v13229_v31  ;;  %v13308_v36 = vld [vmem:[%s14093_s8 + $0x1ba0] ss:$16 sps:$4 sm:$0xff]   ;;  %v13311_v31 = vld [vmem:[%s14093_s8 + $0x1ba8] ss:$16 sps:$4 sm:$0xff]  }
 0x56b   : > { %9187 = vmatpush1.bf16.msra.mxu0 %v13224_v34  ;;  %9843 = vmatpush1.bf16.msra.mxu1 %v13227_v43  ;;  %v13316_v34 = vld [vmem:[%s14093_s8 + $0x1bc4] ss:$16 sps:$4 sm:$0xff]   ;;  %v13319_v43 = vld [vmem:[%s14093_s8 + $0x1bcc] ss:$16 sps:$4 sm:$0xff]  }
 0x56c   : > { %9197 = vmatprep.subr.bf16.mxu0 %v13232_v45  ;;  %9853 = vmatprep.subr.bf16.mxu1 %v13235_v28  ;;  %v15275_v45 = vld [vmem:[#allocation2 + $0x38] sm:$0xff]  ;;  %v13314_v28 = vld [vmem:[%s14093_s8 + $0x1bc0] ss:$16 sps:$4 sm:$0xff]  }
 0x56e   : > { %9189 = vmatmul.mubr.bf16.vlgmr.msra.gmra.mrb[0].mxu0 %v2490_v47  ;;  %9845 = vmatmul.mubr.bf16.vlgmr.msra.gmra.mrb[0].mxu1 %v2490_v47  ;;  %v13322_v47 = vld [vmem:[%s14093_s8 + $0x1be4] ss:$16 sps:$4 sm:$0xff]  }
 0x56f   : > { %9198 = vmatpush1.bf16.msra.mxu0 %v13230_v50  ;;  %9854 = vmatpush1.bf16.msra.mxu1 %v13233_v51  ;;  %v13325_v50 = vld [vmem:[%s14093_s8 + $0x1bec] ss:$16 sps:$4 sm:$0xff]   ;;  %v15283_v51 = vrot.slane %v15275_v45, %v14307_v56 }
 0x570   : > { %9199 = vmatprep.subr.bf16.mxu0 %v13238_v35  ;;  %9855 = vmatprep.subr.bf16.mxu1 %v13241_v52  ;;  %v13320_v35 = vld [vmem:[%s14093_s8 + $0x1be0] ss:$16 sps:$4 sm:$0xff]   ;;  %v13323_v52 = vld [vmem:[%s14093_s8 + $0x1be8] ss:$16 sps:$4 sm:$0xff]  }
 0x571   : > { %9229 = vmatprep.mubr.bf16.mxu0 %v2493_v55  ;;  %9885 = vmatprep.mubr.bf16.mxu1 %v2493_v55  ;;  %v13329_v55 = vld [vmem:[%s14093_s8 + $0x1c04] ss:$16 sps:$4 sm:$0xff]  }
 0x573   : > { %9200 = vmatpush1.bf16.msra.mxu0 %v13236_v38  ;;  %9856 = vmatpush1.bf16.msra.mxu1 %v13239_v57  ;;  %v13332_v38 = vld [vmem:[%s14093_s8 + $0x1c0c] ss:$16 sps:$4 sm:$0xff]   ;;  %v2432_v57 = vcombine.high %v15283_v51, %v15283_v51 }
 0x574   : > { %9201 = vmatprep.subr.bf16.mxu0 %v13244_v58  ;;  %9857 = vmatprep.subr.bf16.mxu1 %v13247_v40  ;;  %v2492_v58 = vpack.c.bf16 %v15209_v42, %v15209_v42  ;;  %v13327_v40 = vld [vmem:[%s14093_s8 + $0x1c00] ss:$16 sps:$4 sm:$0xff]  }
 0x575   : > { %v13333_v42 = vld [vmem:[%s14093_s8 + $0x1c20] ss:$16 sps:$4 sm:$0xff]  }
 0x577   : > { %9202 = vmatpush1.bf16.msra.mxu0 %v13242_v59  ;;  %9858 = vmatpush1.bf16.msra.mxu1 %v13245_v60  ;;  %v13330_v59 = vld [vmem:[%s14093_s8 + $0x1c08] ss:$16 sps:$4 sm:$0xff]   ;;  %v13335_v60 = vld [vmem:[%s14093_s8 + $0x1c24] ss:$16 sps:$4 sm:$0xff]  }
 0x578   : > { %9203 = vmatprep.subr.bf16.mxu0 %v13250_v0  ;;  %9859 = vmatprep.subr.bf16.mxu1 %v13253_v2  ;;  %v13338_v0 = vld [vmem:[%s14093_s8 + $0x1c2c] ss:$16 sps:$4 sm:$0xff]   ;;  %v2495_v2 = vpack.c.bf16 %v2432_v57, %v2432_v57  ;;  %v13411_v57 = vld [vmem:[%s14093_s8 + $0x1dc0] ss:$16 sps:$4 sm:$0xff]  }
 0x57b   : > { %9204 = vmatpush1.bf16.msra.mxu0 %v13248_v48  ;;  %9860 = vmatpush1.bf16.msra.mxu1 %v13251_v3  ;;  %v13336_v48 = vld [vmem:[%s14093_s8 + $0x1c28] ss:$16 sps:$4 sm:$0xff]   ;;  %v13341_v3 = vld [vmem:[%s14093_s8 + $0x1c44] ss:$16 sps:$4 sm:$0xff]  }
 0x57c   : > { %9205 = vmatprep.subr.bf16.mxu0 %v13256_v46  ;;  %9861 = vmatprep.subr.bf16.mxu1 %v13259_v4  ;;  %v13344_v46 = vld [vmem:[%s14093_s8 + $0x1c4c] ss:$16 sps:$4 sm:$0xff]   ;;  %v13339_v4 = vld [vmem:[%s14093_s8 + $0x1c40] ss:$16 sps:$4 sm:$0xff]  }
 0x57f   : > { %9206 = vmatpush1.bf16.msra.mxu0 %v13254_v63  ;;  %9862 = vmatpush1.bf16.msra.mxu1 %v13257_v1  ;;  %v13342_v63 = vld [vmem:[%s14093_s8 + $0x1c48] ss:$16 sps:$4 sm:$0xff]   ;;  %v13347_v1 = vld [vmem:[%s14093_s8 + $0x1c64] ss:$16 sps:$4 sm:$0xff]  }
 0x580   : > { %9207 = vmatprep.subr.bf16.mxu0 %v13262_v6  ;;  %9863 = vmatprep.subr.bf16.mxu1 %v13265_v7  ;;  %v13350_v6 = vld [vmem:[%s14093_s8 + $0x1c6c] ss:$16 sps:$4 sm:$0xff]   ;;  %v13345_v7 = vld [vmem:[%s14093_s8 + $0x1c60] ss:$16 sps:$4 sm:$0xff]  }
 0x583   : > { %9208 = vmatpush1.bf16.msra.mxu0 %v13260_v9  ;;  %9864 = vmatpush1.bf16.msra.mxu1 %v13263_v53  ;;  %v13348_v9 = vld [vmem:[%s14093_s8 + $0x1c68] ss:$16 sps:$4 sm:$0xff]   ;;  %v13353_v53 = vld [vmem:[%s14093_s8 + $0x1c84] ss:$16 sps:$4 sm:$0xff]  }
 0x584   : > { %9209 = vmatprep.subr.bf16.mxu0 %v13268_v10  ;;  %9865 = vmatprep.subr.bf16.mxu1 %v13271_v54  ;;  %v13356_v10 = vld [vmem:[%s14093_s8 + $0x1c8c] ss:$16 sps:$4 sm:$0xff]   ;;  %v13351_v54 = vld [vmem:[%s14093_s8 + $0x1c80] ss:$16 sps:$4 sm:$0xff]  }
 0x587   : > { %9210 = vmatpush1.bf16.msra.mxu0 %v13266_v11  ;;  %9866 = vmatpush1.bf16.msra.mxu1 %v13269_v12  ;;  %v13354_v11 = vld [vmem:[%s14093_s8 + $0x1c88] ss:$16 sps:$4 sm:$0xff]   ;;  %v13359_v12 = vld [vmem:[%s14093_s8 + $0x1ca4] ss:$16 sps:$4 sm:$0xff]  }
 0x588   : > { %9211 = vmatprep.subr.bf16.mxu0 %v13274_v62  ;;  %9867 = vmatprep.subr.bf16.mxu1 %v13277_v14  ;;  %v13362_v62 = vld [vmem:[%s14093_s8 + $0x1cac] ss:$16 sps:$4 sm:$0xff]   ;;  %v13357_v14 = vld [vmem:[%s14093_s8 + $0x1ca0] ss:$16 sps:$4 sm:$0xff]  }
 0x58b   : > { %9212 = vmatpush1.bf16.msra.mxu0 %v13272_v61  ;;  %9868 = vmatpush1.bf16.msra.mxu1 %v13275_v17  ;;  %v13360_v61 = vld [vmem:[%s14093_s8 + $0x1ca8] ss:$16 sps:$4 sm:$0xff]   ;;  %v13365_v17 = vld [vmem:[%s14093_s8 + $0x1cc4] ss:$16 sps:$4 sm:$0xff]  }
 0x58c   : > { %9213 = vmatprep.subr.bf16.mxu0 %v13280_v18  ;;  %9869 = vmatprep.subr.bf16.mxu1 %v13283_v19  ;;  %v13368_v18 = vld [vmem:[%s14093_s8 + $0x1ccc] ss:$16 sps:$4 sm:$0xff]   ;;  %v13363_v19 = vld [vmem:[%s14093_s8 + $0x1cc0] ss:$16 sps:$4 sm:$0xff]  }
 0x58f   : > { %9214 = vmatpush1.bf16.msra.mxu0 %v13278_v21  ;;  %9870 = vmatpush1.bf16.msra.mxu1 %v13281_v22  ;;  %v13366_v21 = vld [vmem:[%s14093_s8 + $0x1cc8] ss:$16 sps:$4 sm:$0xff]   ;;  %v13371_v22 = vld [vmem:[%s14093_s8 + $0x1ce4] ss:$16 sps:$4 sm:$0xff]  }
 0x590   : > { %9215 = vmatprep.subr.bf16.mxu0 %v13286_v23  ;;  %9871 = vmatprep.subr.bf16.mxu1 %v13289_v5  ;;  %v13374_v23 = vld [vmem:[%s14093_s8 + $0x1cec] ss:$16 sps:$4 sm:$0xff]   ;;  %v13369_v5 = vld [vmem:[%s14093_s8 + $0x1ce0] ss:$16 sps:$4 sm:$0xff]  }
 0x593   : > { %9216 = vmatpush1.bf16.msra.mxu0 %v13284_v24  ;;  %9872 = vmatpush1.bf16.msra.mxu1 %v13287_v8  ;;  %v13372_v24 = vld [vmem:[%s14093_s8 + $0x1ce8] ss:$16 sps:$4 sm:$0xff]   ;;  %v13377_v8 = vld [vmem:[%s14093_s8 + $0x1d04] ss:$16 sps:$4 sm:$0xff]  }
 0x594   : > { %9217 = vmatprep.subr.bf16.mxu0 %v13292_v25  ;;  %9873 = vmatprep.subr.bf16.mxu1 %v13295_v26  ;;  %v13380_v25 = vld [vmem:[%s14093_s8 + $0x1d0c] ss:$16 sps:$4 sm:$0xff]   ;;  %v13375_v26 = vld [vmem:[%s14093_s8 + $0x1d00] ss:$16 sps:$4 sm:$0xff]  }
 0x597   : > { %9218 = vmatpush1.bf16.msra.mxu0 %v13290_v15  ;;  %9874 = vmatpush1.bf16.msra.mxu1 %v13293_v32  ;;  %v13378_v15 = vld [vmem:[%s14093_s8 + $0x1d08] ss:$16 sps:$4 sm:$0xff]   ;;  %v13383_v32 = vld [vmem:[%s14093_s8 + $0x1d24] ss:$16 sps:$4 sm:$0xff]  }
 0x598   : > { %9219 = vmatprep.subr.bf16.mxu0 %v13298_v13  ;;  %9875 = vmatprep.subr.bf16.mxu1 %v13301_v33  ;;  %v13386_v13 = vld [vmem:[%s14093_s8 + $0x1d2c] ss:$16 sps:$4 sm:$0xff]   ;;  %v13381_v33 = vld [vmem:[%s14093_s8 + $0x1d20] ss:$16 sps:$4 sm:$0xff]  }
 0x59b   : > { %9220 = vmatpush1.bf16.msra.mxu0 %v13296_v16  ;;  %9876 = vmatpush1.bf16.msra.mxu1 %v13299_v44  ;;  %v13384_v16 = vld [vmem:[%s14093_s8 + $0x1d28] ss:$16 sps:$4 sm:$0xff]   ;;  %v13389_v44 = vld [vmem:[%s14093_s8 + $0x1d44] ss:$16 sps:$4 sm:$0xff]  }
 0x59c   : > { %9221 = vmatprep.subr.bf16.mxu0 %v13304_v39  ;;  %9877 = vmatprep.subr.bf16.mxu1 %v13307_v27  ;;  %v13392_v39 = vld [vmem:[%s14093_s8 + $0x1d4c] ss:$16 sps:$4 sm:$0xff]   ;;  %v13387_v27 = vld [vmem:[%s14093_s8 + $0x1d40] ss:$16 sps:$4 sm:$0xff]  }
 0x59f   : > { %9222 = vmatpush1.bf16.msra.mxu0 %v13302_v29  ;;  %9878 = vmatpush1.bf16.msra.mxu1 %v13305_v20  ;;  %v13390_v29 = vld [vmem:[%s14093_s8 + $0x1d48] ss:$16 sps:$4 sm:$0xff]   ;;  %v13395_v20 = vld [vmem:[%s14093_s8 + $0x1d64] ss:$16 sps:$4 sm:$0xff]  }
 0x5a0   : > { %9223 = vmatprep.subr.bf16.mxu0 %v13310_v41  ;;  %9879 = vmatprep.subr.bf16.mxu1 %v13313_v30  ;;  %v13398_v41 = vld [vmem:[%s14093_s8 + $0x1d6c] ss:$16 sps:$4 sm:$0xff]   ;;  %v13393_v30 = vld [vmem:[%s14093_s8 + $0x1d60] ss:$16 sps:$4 sm:$0xff]  }
 0x5a3   : > { %9224 = vmatpush1.bf16.msra.mxu0 %v13308_v36  ;;  %9880 = vmatpush1.bf16.msra.mxu1 %v13311_v31  ;;  %v13396_v36 = vld [vmem:[%s14093_s8 + $0x1d68] ss:$16 sps:$4 sm:$0xff]   ;;  %v13401_v31 = vld [vmem:[%s14093_s8 + $0x1d84] ss:$16 sps:$4 sm:$0xff]  }
 0x5a4   : > { %9225 = vmatprep.subr.bf16.mxu0 %v13316_v34  ;;  %9881 = vmatprep.subr.bf16.mxu1 %v13319_v43  ;;  %v13404_v34 = vld [vmem:[%s14093_s8 + $0x1d8c] ss:$16 sps:$4 sm:$0xff]   ;;  %v13399_v43 = vld [vmem:[%s14093_s8 + $0x1d80] ss:$16 sps:$4 sm:$0xff]  }
 0x5a7   : > { %9226 = vmatpush1.bf16.msra.mxu0 %v13314_v28  ;;  %9882 = vmatpush1.bf16.msra.mxu1 %v13317_v37  ;;  %v13402_v28 = vld [vmem:[%s14093_s8 + $0x1d88] ss:$16 sps:$4 sm:$0xff]   ;;  %v13407_v37 = vld [vmem:[%s14093_s8 + $0x1da4] ss:$16 sps:$4 sm:$0xff]  }
 0x5a8   : > { %9227 = vmatprep.subr.bf16.mxu0 %v13322_v47  ;;  %9883 = vmatprep.subr.bf16.mxu1 %v13325_v50  ;;  %v13410_v47 = vld [vmem:[%s14093_s8 + $0x1dac] ss:$16 sps:$4 sm:$0xff]   ;;  %v13405_v50 = vld [vmem:[%s14093_s8 + $0x1da0] ss:$16 sps:$4 sm:$0xff]  }
 0x5ab   : > { %9228 = vmatpush1.bf16.msra.mxu0 %v13320_v35  ;;  %9884 = vmatpush1.bf16.msra.mxu1 %v13323_v52  ;;  %v13408_v35 = vld [vmem:[%s14093_s8 + $0x1da8] ss:$16 sps:$4 sm:$0xff]   ;;  %v13413_v52 = vld [vmem:[%s14093_s8 + $0x1dc4] ss:$16 sps:$4 sm:$0xff]  }
 0x5ac   : > { %9238 = vmatprep.subr.bf16.mxu0 %v13329_v55  ;;  %9894 = vmatprep.subr.bf16.mxu1 %v13332_v38  ;;  %v13416_v55 = vld [vmem:[%s14093_s8 + $0x1dcc] ss:$16 sps:$4 sm:$0xff]   ;;  %v2417_v38 = vcombine.high %v15275_v45, %v15275_v45  ;;  %v13417_v45 = vld [vmem:[%s14093_s8 + $0x1de0] ss:$16 sps:$4 sm:$0xff]  }
 0x5ae   : > { %9230 = vmatmul.mubr.bf16.vlgmr.msra.gmra.mrb[0].mxu0 %v2492_v58  ;;  %9886 = vmatmul.mubr.bf16.vlgmr.msra.gmra.mrb[0].mxu1 %v2492_v58  ;;  %v13414_v58 = vld [vmem:[%s14093_s8 + $0x1dc8] ss:$16 sps:$4 sm:$0xff]  }
 0x5af   : > { %9239 = vmatpush1.bf16.msra.mxu0 %v13327_v40  ;;  %9895 = vmatpush1.bf16.msra.mxu1 %v13330_v59  ;;  %v13419_v40 = vld [vmem:[%s14093_s8 + $0x1de4] ss:$16 sps:$4 sm:$0xff]   ;;  %v13422_v59 = vld [vmem:[%s14093_s8 + $0x1dec] ss:$16 sps:$4 sm:$0xff]  }
 0x5b0   : > { %9240 = vmatprep.subr.bf16.mxu0 %v13335_v60  ;;  %9896 = vmatprep.subr.bf16.mxu1 %v13338_v0  ;;  %v15356_v60 = vrot.slane %v2417_v38, %v14307_v56  ;;  %v13420_v0 = vld [vmem:[%s14093_s8 + $0x1de8] ss:$16 sps:$4 sm:$0xff]   ;;  %v13423_v56 = vld [vmem:[%s14093_s8 + $0x1e00] ss:$16 sps:$4 sm:$0xff]   ;;  %v13503_v38 = vld [vmem:[%s14093_s8 + $0x1fa4] ss:$16 sps:$4 sm:$0xff]  }
 0x5b1   : > { %9270 = vmatprep.mubr.bf16.mxu0 %v2495_v2  ;;  %9926 = vmatprep.mubr.bf16.mxu1 %v2495_v2  ;;  %v13425_v2 = vld [vmem:[%s14093_s8 + $0x1e04] ss:$16 sps:$4 sm:$0xff]  }
 0x5b3   : > { %9241 = vmatpush1.bf16.msra.mxu0 %v13333_v42  ;;  %9897 = vmatpush1.bf16.msra.mxu1 %v13336_v48  ;;  %v13428_v42 = vld [vmem:[%s14093_s8 + $0x1e0c] ss:$16 sps:$4 sm:$0xff]   ;;  %v2433_v48 = vcombine.high %v15356_v60, %v15356_v60 }
 0x5b4   : > { %9242 = vmatprep.subr.bf16.mxu0 %v13341_v3  ;;  %9898 = vmatprep.subr.bf16.mxu1 %v13344_v46  ;;  %v2494_v3 = vpack.c.bf16 %v15283_v51, %v15283_v51  ;;  %v13426_v46 = vld [vmem:[%s14093_s8 + $0x1e08] ss:$16 sps:$4 sm:$0xff]   ;;  %v13429_v51 = vld [vmem:[%s14093_s8 + $0x1e20] ss:$16 sps:$4 sm:$0xff]  }
 0x5b7   : > { %9243 = vmatpush1.bf16.msra.mxu0 %v13339_v4  ;;  %9899 = vmatpush1.bf16.msra.mxu1 %v13342_v63  ;;  %v13431_v4 = vld [vmem:[%s14093_s8 + $0x1e24] ss:$16 sps:$4 sm:$0xff]   ;;  %v13434_v63 = vld [vmem:[%s14093_s8 + $0x1e2c] ss:$16 sps:$4 sm:$0xff]  }
 0x5b8   : > { %9244 = vmatprep.subr.bf16.mxu0 %v13347_v1  ;;  %9900 = vmatprep.subr.bf16.mxu1 %v13350_v6  ;;  %v2497_v1 = vpack.c.bf16 %v2433_v48, %v2433_v48  ;;  %v13432_v6 = vld [vmem:[%s14093_s8 + $0x1e28] ss:$16 sps:$4 sm:$0xff]   ;;  %v13518_v48 = vld [vmem:[%s14093_s8 + $0x1fec] ss:$16 sps:$4 sm:$0xff]  }
 0x5bb   : > { %9245 = vmatpush1.bf16.msra.mxu0 %v13345_v7  ;;  %9901 = vmatpush1.bf16.msra.mxu1 %v13348_v9  ;;  %v13437_v7 = vld [vmem:[%s14093_s8 + $0x1e44] ss:$16 sps:$4 sm:$0xff]   ;;  %v13440_v9 = vld [vmem:[%s14093_s8 + $0x1e4c] ss:$16 sps:$4 sm:$0xff]  }
 0x5bc   : > { %9246 = vmatprep.subr.bf16.mxu0 %v13353_v53  ;;  %9902 = vmatprep.subr.bf16.mxu1 %v13356_v10  ;;  %v13435_v53 = vld [vmem:[%s14093_s8 + $0x1e40] ss:$16 sps:$4 sm:$0xff]   ;;  %v13438_v10 = vld [vmem:[%s14093_s8 + $0x1e48] ss:$16 sps:$4 sm:$0xff]  }
 0x5bf   : > { %9247 = vmatpush1.bf16.msra.mxu0 %v13351_v54  ;;  %9903 = vmatpush1.bf16.msra.mxu1 %v13354_v11  ;;  %v13443_v54 = vld [vmem:[%s14093_s8 + $0x1e64] ss:$16 sps:$4 sm:$0xff]   ;;  %v13446_v11 = vld [vmem:[%s14093_s8 + $0x1e6c] ss:$16 sps:$4 sm:$0xff]  }
 0x5c0   : > { %9248 = vmatprep.subr.bf16.mxu0 %v13359_v12  ;;  %9904 = vmatprep.subr.bf16.mxu1 %v13362_v62  ;;  %v13441_v12 = vld [vmem:[%s14093_s8 + $0x1e60] ss:$16 sps:$4 sm:$0xff]   ;;  %v13444_v62 = vld [vmem:[%s14093_s8 + $0x1e68] ss:$16 sps:$4 sm:$0xff]  }
 0x5c3   : > { %9249 = vmatpush1.bf16.msra.mxu0 %v13357_v14  ;;  %9905 = vmatpush1.bf16.msra.mxu1 %v13360_v61  ;;  %v13449_v14 = vld [vmem:[%s14093_s8 + $0x1e84] ss:$16 sps:$4 sm:$0xff]   ;;  %v13452_v61 = vld [vmem:[%s14093_s8 + $0x1e8c] ss:$16 sps:$4 sm:$0xff]  }
 0x5c4   : > { %9250 = vmatprep.subr.bf16.mxu0 %v13365_v17  ;;  %9906 = vmatprep.subr.bf16.mxu1 %v13368_v18  ;;  %v13447_v17 = vld [vmem:[%s14093_s8 + $0x1e80] ss:$16 sps:$4 sm:$0xff]   ;;  %v13450_v18 = vld [vmem:[%s14093_s8 + $0x1e88] ss:$16 sps:$4 sm:$0xff]  }
 0x5c7   : > { %9251 = vmatpush1.bf16.msra.mxu0 %v13363_v19  ;;  %9907 = vmatpush1.bf16.msra.mxu1 %v13366_v21  ;;  %v13455_v19 = vld [vmem:[%s14093_s8 + $0x1ea4] ss:$16 sps:$4 sm:$0xff]   ;;  %v13458_v21 = vld [vmem:[%s14093_s8 + $0x1eac] ss:$16 sps:$4 sm:$0xff]  }
 0x5c8   : > { %9252 = vmatprep.subr.bf16.mxu0 %v13371_v22  ;;  %9908 = vmatprep.subr.bf16.mxu1 %v13374_v23  ;;  %v13453_v22 = vld [vmem:[%s14093_s8 + $0x1ea0] ss:$16 sps:$4 sm:$0xff]   ;;  %v13456_v23 = vld [vmem:[%s14093_s8 + $0x1ea8] ss:$16 sps:$4 sm:$0xff]  }
 0x5cb   : > { %9253 = vmatpush1.bf16.msra.mxu0 %v13369_v5  ;;  %9909 = vmatpush1.bf16.msra.mxu1 %v13372_v24  ;;  %v13461_v5 = vld [vmem:[%s14093_s8 + $0x1ec4] ss:$16 sps:$4 sm:$0xff]   ;;  %v13464_v24 = vld [vmem:[%s14093_s8 + $0x1ecc] ss:$16 sps:$4 sm:$0xff]  }
 0x5cc   : > { %9254 = vmatprep.subr.bf16.mxu0 %v13377_v8  ;;  %9910 = vmatprep.subr.bf16.mxu1 %v13380_v25  ;;  %v13459_v8 = vld [vmem:[%s14093_s8 + $0x1ec0] ss:$16 sps:$4 sm:$0xff]   ;;  %v13462_v25 = vld [vmem:[%s14093_s8 + $0x1ec8] ss:$16 sps:$4 sm:$0xff]  }
 0x5cf   : > { %9255 = vmatpush1.bf16.msra.mxu0 %v13375_v26  ;;  %9911 = vmatpush1.bf16.msra.mxu1 %v13378_v15  ;;  %v13467_v26 = vld [vmem:[%s14093_s8 + $0x1ee4] ss:$16 sps:$4 sm:$0xff]   ;;  %v13470_v15 = vld [vmem:[%s14093_s8 + $0x1eec] ss:$16 sps:$4 sm:$0xff]  }
 0x5d0   : > { %9256 = vmatprep.subr.bf16.mxu0 %v13383_v32  ;;  %9912 = vmatprep.subr.bf16.mxu1 %v13386_v13  ;;  %v13465_v32 = vld [vmem:[%s14093_s8 + $0x1ee0] ss:$16 sps:$4 sm:$0xff]   ;;  %v13468_v13 = vld [vmem:[%s14093_s8 + $0x1ee8] ss:$16 sps:$4 sm:$0xff]  }
 0x5d3   : > { %9257 = vmatpush1.bf16.msra.mxu0 %v13381_v33  ;;  %9913 = vmatpush1.bf16.msra.mxu1 %v13384_v16  ;;  %v13473_v33 = vld [vmem:[%s14093_s8 + $0x1f04] ss:$16 sps:$4 sm:$0xff]   ;;  %v13476_v16 = vld [vmem:[%s14093_s8 + $0x1f0c] ss:$16 sps:$4 sm:$0xff]  }
 0x5d4   : > { %9258 = vmatprep.subr.bf16.mxu0 %v13389_v44  ;;  %9914 = vmatprep.subr.bf16.mxu1 %v13392_v39  ;;  %v13471_v44 = vld [vmem:[%s14093_s8 + $0x1f00] ss:$16 sps:$4 sm:$0xff]   ;;  %v13474_v39 = vld [vmem:[%s14093_s8 + $0x1f08] ss:$16 sps:$4 sm:$0xff]  }
 0x5d7   : > { %9259 = vmatpush1.bf16.msra.mxu0 %v13387_v27  ;;  %9915 = vmatpush1.bf16.msra.mxu1 %v13390_v29  ;;  %v13479_v27 = vld [vmem:[%s14093_s8 + $0x1f24] ss:$16 sps:$4 sm:$0xff]   ;;  %v13482_v29 = vld [vmem:[%s14093_s8 + $0x1f2c] ss:$16 sps:$4 sm:$0xff]  }
 0x5d8   : > { %9260 = vmatprep.subr.bf16.mxu0 %v13395_v20  ;;  %9916 = vmatprep.subr.bf16.mxu1 %v13398_v41  ;;  %v13477_v20 = vld [vmem:[%s14093_s8 + $0x1f20] ss:$16 sps:$4 sm:$0xff]   ;;  %v13480_v41 = vld [vmem:[%s14093_s8 + $0x1f28] ss:$16 sps:$4 sm:$0xff]  }
 0x5db   : > { %9261 = vmatpush1.bf16.msra.mxu0 %v13393_v30  ;;  %9917 = vmatpush1.bf16.msra.mxu1 %v13396_v36  ;;  %v13485_v30 = vld [vmem:[%s14093_s8 + $0x1f44] ss:$16 sps:$4 sm:$0xff]   ;;  %v13488_v36 = vld [vmem:[%s14093_s8 + $0x1f4c] ss:$16 sps:$4 sm:$0xff]  }
 0x5dc   : > { %9262 = vmatprep.subr.bf16.mxu0 %v13401_v31  ;;  %9918 = vmatprep.subr.bf16.mxu1 %v13404_v34  ;;  %v13483_v31 = vld [vmem:[%s14093_s8 + $0x1f40] ss:$16 sps:$4 sm:$0xff]   ;;  %v13486_v34 = vld [vmem:[%s14093_s8 + $0x1f48] ss:$16 sps:$4 sm:$0xff]  }
 0x5df   : > { %9263 = vmatpush1.bf16.msra.mxu0 %v13399_v43  ;;  %9919 = vmatpush1.bf16.msra.mxu1 %v13402_v28  ;;  %v13491_v43 = vld [vmem:[%s14093_s8 + $0x1f64] ss:$16 sps:$4 sm:$0xff]   ;;  %v13494_v28 = vld [vmem:[%s14093_s8 + $0x1f6c] ss:$16 sps:$4 sm:$0xff]  }
 0x5e0   : > { %9264 = vmatprep.subr.bf16.mxu0 %v13407_v37  ;;  %9920 = vmatprep.subr.bf16.mxu1 %v13410_v47  ;;  %v13489_v37 = vld [vmem:[%s14093_s8 + $0x1f60] ss:$16 sps:$4 sm:$0xff]   ;;  %v13492_v47 = vld [vmem:[%s14093_s8 + $0x1f68] ss:$16 sps:$4 sm:$0xff]  }
 0x5e3   : > { %9265 = vmatpush1.bf16.msra.mxu0 %v13405_v50  ;;  %9921 = vmatpush1.bf16.msra.mxu1 %v13408_v35  ;;  %v13497_v50 = vld [vmem:[%s14093_s8 + $0x1f84] ss:$16 sps:$4 sm:$0xff]   ;;  %v13500_v35 = vld [vmem:[%s14093_s8 + $0x1f8c] ss:$16 sps:$4 sm:$0xff]  }
 0x5e4   : > { %9266 = vmatprep.subr.bf16.mxu0 %v13413_v52  ;;  %9922 = vmatprep.subr.bf16.mxu1 %v13416_v55  ;;  %v13495_v52 = vld [vmem:[%s14093_s8 + $0x1f80] ss:$16 sps:$4 sm:$0xff]   ;;  %v13498_v55 = vld [vmem:[%s14093_s8 + $0x1f88] ss:$16 sps:$4 sm:$0xff]  }
 0x5e7   : > { %9267 = vmatpush1.bf16.msra.mxu0 %v13411_v57  ;;  %9923 = vmatpush1.bf16.msra.mxu1 %v13414_v58  ;;  %v13506_v57 = vld [vmem:[%s14093_s8 + $0x1fac] ss:$16 sps:$4 sm:$0xff]   ;;  %v13501_v58 = vld [vmem:[%s14093_s8 + $0x1fa0] ss:$16 sps:$4 sm:$0xff]  }
 0x5e8   : > { %9268 = vmatprep.subr.bf16.mxu0 %v13419_v40  ;;  %9924 = vmatprep.subr.bf16.mxu1 %v13422_v59  ;;  %v13504_v40 = vld [vmem:[%s14093_s8 + $0x1fa8] ss:$16 sps:$4 sm:$0xff]   ;;  %v13509_v59 = vld [vmem:[%s14093_s8 + $0x1fc4] ss:$16 sps:$4 sm:$0xff]  }
 0x5eb   : > { %9269 = vmatpush1.bf16.msra.mxu0 %v13417_v45  ;;  %9925 = vmatpush1.bf16.msra.mxu1 %v13420_v0  ;;  %v13512_v45 = vld [vmem:[%s14093_s8 + $0x1fcc] ss:$16 sps:$4 sm:$0xff]   ;;  %v13507_v0 = vld [vmem:[%s14093_s8 + $0x1fc0] ss:$16 sps:$4 sm:$0xff]  }
 0x5ec   : > { %9279 = vmatprep.subr.bf16.mxu0 %v13425_v2  ;;  %9935 = vmatprep.subr.bf16.mxu1 %v13428_v42  ;;  %v13510_v2 = vld [vmem:[%s14093_s8 + $0x1fc8] ss:$16 sps:$4 sm:$0xff]   ;;  %v13515_v42 = vld [vmem:[%s14093_s8 + $0x1fe4] ss:$16 sps:$4 sm:$0xff]  }
 0x5ee   : > { %9271 = vmatmul.mubr.bf16.vlgmr.msra.gmra.mrb[0].mxu0 %v2494_v3  ;;  %9927 = vmatmul.mubr.bf16.vlgmr.msra.gmra.mrb[0].mxu1 %v2494_v3  ;;  %v13513_v3 = vld [vmem:[%s14093_s8 + $0x1fe0] ss:$16 sps:$4 sm:$0xff]  }
 0x5ef   : > { %9280 = vmatpush1.bf16.msra.mxu0 %v13423_v56  ;;  %9936 = vmatpush1.bf16.msra.mxu1 %v13426_v46  ;;  %v13516_v56 = vld [vmem:[%s14093_s8 + $0x1fe8] ss:$16 sps:$4 sm:$0xff]  }
 0x5f0   : > { %9281 = vmatprep.subr.bf16.mxu0 %v13431_v4  ;;  %9937 = vmatprep.subr.bf16.mxu1 %v13434_v63  ;;  %v13520_v46 = vld [vmem:[%s14101_s13 + $0x40] sm:$0xff]   ;;  %v2496_v63 = vpack.c.bf16 %v15356_v60, %v15356_v60  ;;  %v13527_v60 = vld [vmem:[%s14101_s13 + $0x88] sm:$0xff]  }
 0x5f1   : > { %9311 = vmatprep.mubr.bf16.mxu0 %v2497_v1  ;;  %9967 = vmatprep.mubr.bf16.mxu1 %v2497_v1  ;;  %v13521_v4 = vld [vmem:[%s14101_s13 + $0xc0] sm:$0xff]  }
 0x5f2   : > { %v13522_v1 = vld [vmem:[%s14101_s13] sm:$0xff]  }
 0x5f3   : > { %9282 = vmatpush1.bf16.msra.mxu0 %v13429_v51  ;;  %9938 = vmatpush1.bf16.msra.mxu1 %v13432_v6  ;;  %v13523_v51 = vld [vmem:[%s14101_s13 + $0x80] sm:$0xff]   ;;  %v13524_v6 = vld [vmem:[%s14101_s13 + $0x48] sm:$0xff]  }
 0x5f4   : > { %9283 = vmatprep.subr.bf16.mxu0 %v13437_v7  ;;  %9939 = vmatprep.subr.bf16.mxu1 %v13440_v9  ;;  %v13525_v7 = vld [vmem:[%s14101_s13 + $0xc8] sm:$0xff]  }
 0x5f5   : > { %v13526_v9 = vld [vmem:[%s14101_s13 + $0x8] sm:$0xff]  }
 0x5f7   : > { %9284 = vmatpush1.bf16.msra.mxu0 %v13435_v53  ;;  %9940 = vmatpush1.bf16.msra.mxu1 %v13438_v10  ;;  %v13528_v53 = vld [vmem:[%s14101_s13 + $0x50] sm:$0xff]  }
 0x5f8   : > { %9285 = vmatprep.subr.bf16.mxu0 %v13443_v54  ;;  %9941 = vmatprep.subr.bf16.mxu1 %v13446_v11  ;;  %v13529_v10 = vld [vmem:[%s14101_s13 + $0xd0] sm:$0xff]  }
 0x5f9   : > { %v13530_v54 = vld [vmem:[%s14101_s13 + $0x10] sm:$0xff]  }
 0x5fa   : > { %v13531_v11 = vld [vmem:[%s14101_s13 + $0x90] sm:$0xff]  }
 0x5fb   : > { %9286 = vmatpush1.bf16.msra.mxu0 %v13441_v12  ;;  %9942 = vmatpush1.bf16.msra.mxu1 %v13444_v62  ;;  %v13532_v12 = vld [vmem:[%s14101_s13 + $0x58] sm:$0xff]  }
 0x5fc   : > { %9287 = vmatprep.subr.bf16.mxu0 %v13449_v14  ;;  %9943 = vmatprep.subr.bf16.mxu1 %v13452_v61  ;;  %v13533_v62 = vld [vmem:[%s14101_s13 + $0xd8] sm:$0xff]  }
 0x5fd   : > { %v13534_v14 = vld [vmem:[%s14101_s13 + $0x18] sm:$0xff]  }
 0x5fe   : > { %v13535_v61 = vld [vmem:[%s14101_s13 + $0x98] sm:$0xff]  }
 0x5ff   : > { %9288 = vmatpush1.bf16.msra.mxu0 %v13447_v17  ;;  %9944 = vmatpush1.bf16.msra.mxu1 %v13450_v18  ;;  %v13536_v17 = vld [vmem:[%s14101_s13 + $0x60] sm:$0xff]  }
 0x600   : > { %9289 = vmatprep.subr.bf16.mxu0 %v13455_v19  ;;  %9945 = vmatprep.subr.bf16.mxu1 %v13458_v21  ;;  %v13537_v18 = vld [vmem:[%s14101_s13 + $0xe0] sm:$0xff]  }
 0x601   : > { %v13538_v19 = vld [vmem:[%s14101_s13 + $0x20] sm:$0xff]  }
 0x602   : > { %v13539_v21 = vld [vmem:[%s14101_s13 + $0xa0] sm:$0xff]  }
 0x603   : > { %9290 = vmatpush1.bf16.msra.mxu0 %v13453_v22  ;;  %9946 = vmatpush1.bf16.msra.mxu1 %v13456_v23  ;;  %v13540_v22 = vld [vmem:[%s14101_s13 + $0x68] sm:$0xff]  }
 0x604   : > { %9291 = vmatprep.subr.bf16.mxu0 %v13461_v5  ;;  %9947 = vmatprep.subr.bf16.mxu1 %v13464_v24  ;;  %v13541_v23 = vld [vmem:[%s14101_s13 + $0xe8] sm:$0xff]  }
 0x605   : > { %v13542_v5 = vld [vmem:[%s14101_s13 + $0x28] sm:$0xff]  }
 0x606   : > { %v13543_v24 = vld [vmem:[%s14101_s13 + $0xa8] sm:$0xff]  }
 0x607   : > { %9292 = vmatpush1.bf16.msra.mxu0 %v13459_v8  ;;  %9948 = vmatpush1.bf16.msra.mxu1 %v13462_v25  ;;  %v13544_v8 = vld [vmem:[%s14101_s13 + $0x70] sm:$0xff]  }
 0x608   : > { %9293 = vmatprep.subr.bf16.mxu0 %v13467_v26  ;;  %9949 = vmatprep.subr.bf16.mxu1 %v13470_v15  ;;  %v13545_v25 = vld [vmem:[%s14101_s13 + $0xf0] sm:$0xff]  }
 0x609   : > { %v13546_v26 = vld [vmem:[%s14101_s13 + $0x30] sm:$0xff]  }
 0x60a   : > { %v13547_v15 = vld [vmem:[%s14101_s13 + $0xb0] sm:$0xff]  }
 0x60b   : > { %9294 = vmatpush1.bf16.msra.mxu0 %v13465_v32  ;;  %9950 = vmatpush1.bf16.msra.mxu1 %v13468_v13  ;;  %v13548_v32 = vld [vmem:[%s14101_s13 + $0x78] sm:$0xff]  }
 0x60c   : > { %9295 = vmatprep.subr.bf16.mxu0 %v13473_v33  ;;  %9951 = vmatprep.subr.bf16.mxu1 %v13476_v16  ;;  %v13549_v13 = vld [vmem:[%s14101_s13 + $0xf8] sm:$0xff]  }
 0x60d   : > { %v13550_v33 = vld [vmem:[%s14101_s13 + $0x38] sm:$0xff]  }
 0x60e   : > { %v13551_v16 = vld [vmem:[%s14101_s13 + $0xb8] sm:$0xff]  }
 0x60f   : > { %9296 = vmatpush1.bf16.msra.mxu0 %v13471_v44  ;;  %9952 = vmatpush1.bf16.msra.mxu1 %v13474_v39  ;;  %v3526_v44 = vsub.s32 0, %v14299_v49  ;;  %v3534_v39 = vsub.s32 2, %v14299_v49 }
 0x610   : > { %9297 = vmatprep.subr.bf16.mxu0 %v13479_v27  ;;  %9953 = vmatprep.subr.bf16.mxu1 %v13482_v29  ;;  %v3522_v27 = vld [vmem:[%s14099_s1] sm:$0xf]  ;;  %v3530_v29 = vsub.s32 1, %v14299_v49 }
 0x613   : > { %9298 = vmatpush1.bf16.msra.mxu0 %v13477_v20  ;;  %9954 = vmatpush1.bf16.msra.mxu1 %v13480_v41  ;;  %v3538_v20 = vsub.s32 3, %v14299_v49  ;;  %v3527_v41 = vrot.slane %v3522_v27, %v3526_v44 }
 0x614   : > { %9299 = vmatprep.subr.bf16.mxu0 %v13485_v30  ;;  %9955 = vmatprep.subr.bf16.mxu1 %v13488_v36  ;;  %v3535_v30 = vrot.slane %v3522_v27, %v3534_v39  ;;  %v3531_v36 = vrot.slane %v3522_v27, %v3530_v29 }
 0x617   : > { %9300 = vmatpush1.bf16.msra.mxu0 %v13483_v31  ;;  %9956 = vmatpush1.bf16.msra.mxu1 %v13486_v34  ;;  %v3539_v31 = vrot.slane %v3522_v27, %v3538_v20 }
 0x618   : > { %9301 = vmatprep.subr.bf16.mxu0 %v13491_v43  ;;  %9957 = vmatprep.subr.bf16.mxu1 %v13494_v28 }
 0x61b   : > { %9302 = vmatpush1.bf16.msra.mxu0 %v13489_v37  ;;  %9958 = vmatpush1.bf16.msra.mxu1 %v13492_v47 }
 0x61c   : > { %9303 = vmatprep.subr.bf16.mxu0 %v13497_v50  ;;  %9959 = vmatprep.subr.bf16.mxu1 %v13500_v35 }
 0x61f   : > { %9304 = vmatpush1.bf16.msra.mxu0 %v13495_v52  ;;  %9960 = vmatpush1.bf16.msra.mxu1 %v13498_v55 }
 0x620   : > { %9305 = vmatprep.subr.bf16.mxu0 %v13503_v38  ;;  %9961 = vmatprep.subr.bf16.mxu1 %v13506_v57 }
 0x623   : > { %9306 = vmatpush1.bf16.msra.mxu0 %v13501_v58  ;;  %9962 = vmatpush1.bf16.msra.mxu1 %v13504_v40 }
 0x624   : > { %9307 = vmatprep.subr.bf16.mxu0 %v13509_v59  ;;  %9963 = vmatprep.subr.bf16.mxu1 %v13512_v45 }
 0x627   : > { %9308 = vmatpush1.bf16.msra.mxu0 %v13507_v0  ;;  %9964 = vmatpush1.bf16.msra.mxu1 %v13510_v2 }
 0x628   : > { %9309 = vmatprep.subr.bf16.mxu0 %v13515_v42  ;;  %9965 = vmatprep.subr.bf16.mxu1 %v13518_v48 }
 0x62b   : > { %9310 = vmatpush1.bf16.msra.mxu0 %v13513_v3  ;;  %9966 = vmatpush1.bf16.msra.mxu1 %v13516_v56 }
 0x62c   : > { %11710 = vmatprep.subr.bf16.mxu0 %v13520_v46  ;;  %11732 = vmatprep.subr.bf16.mxu1 %v13521_v4 }
 0x62e   : > { %9312 = vmatmul.mubr.bf16.vlgmr.msra.gmra.mrb[0].mxu0 %v2496_v63  ;;  %9968 = vmatmul.mubr.bf16.vlgmr.msra.gmra.mrb[0].mxu1 %v2496_v63 }
 0x62f   : > { %11711 = vmatpush3.bf16.msra.mxu0 %v13522_v1  ;;  %11733 = vmatpush3.bf16.msra.mxu1 %v13523_v51 }
 0x630   : > { %11712 = vmatprep.subr.bf16.mxu0 %v13524_v6  ;;  %11734 = vmatprep.subr.bf16.mxu1 %v13525_v7  ;;  %v9980_v7 = vld [vmem:[#allocation3] sm:$0x3] }
 0x633   : > { %11713 = vmatpush3.bf16.msra.mxu0 %v13526_v9  ;;  %11735 = vmatpush3.bf16.msra.mxu1 %v13527_v60 }
 0x634   : > { %11714 = vmatprep.subr.bf16.mxu0 %v13528_v53  ;;  %11736 = vmatprep.subr.bf16.mxu1 %v13529_v10 }
 0x637   : > { %11715 = vmatpush3.bf16.msra.mxu0 %v13530_v54  ;;  %11737 = vmatpush3.bf16.msra.mxu1 %v13531_v11  ;;  %v11702_v11 = vld [vmem:[#allocation12] ss:$0 sm:$0xff] (!%p11701_p2) }
 0x638   : > { %11716 = vmatprep.subr.bf16.mxu0 %v13532_v12  ;;  %11738 = vmatprep.subr.bf16.mxu1 %v13533_v62 }
 0x63b   : > { %11717 = vmatpush3.bf16.msra.mxu0 %v13534_v14  ;;  %11739 = vmatpush3.bf16.msra.mxu1 %v13535_v61 }
 0x63c   : > { %11718 = vmatprep.subr.bf16.mxu0 %v13536_v17  ;;  %11740 = vmatprep.subr.bf16.mxu1 %v13537_v18 }
 0x63f   : > { %11719 = vmatpush3.bf16.msra.mxu0 %v13538_v19  ;;  %11741 = vmatpush3.bf16.msra.mxu1 %v13539_v21 }
 0x640   : > { %11720 = vmatprep.subr.bf16.mxu0 %v13540_v22  ;;  %11742 = vmatprep.subr.bf16.mxu1 %v13541_v23 }
 0x643   : > { %11721 = vmatpush3.bf16.msra.mxu0 %v13542_v5  ;;  %11743 = vmatpush3.bf16.msra.mxu1 %v13543_v24 }
 0x644   : > { %11722 = vmatprep.subr.bf16.mxu0 %v13544_v8  ;;  %11744 = vmatprep.subr.bf16.mxu1 %v13545_v25 }
 0x647   : > { %11723 = vmatpush3.bf16.msra.mxu0 %v13546_v26  ;;  %11745 = vmatpush3.bf16.msra.mxu1 %v13547_v15 }
 0x648   : > { %11724 = vmatprep.subr.bf16.mxu0 %v13548_v32  ;;  %11746 = vmatprep.subr.bf16.mxu1 %v13549_v13 }
 0x64b   : > { %11725 = vmatpush3.bf16.msra.mxu0 %v13550_v33  ;;  %11747 = vmatpush3.bf16.msra.mxu1 %v13551_v16 }
 0x701   : > { %v9313_v34 = vpop.f32.mrb[0].mxu0  ;;  %v9969_v43 = vpop.f32.mrb[0].mxu1 }
 0x702   : > { %v11754_v28 = vadd.f32 %v9313_v34, %v3527_v41  ;;  %v11756_v37 = vadd.f32 %v9969_v43, %v3535_v30  ;;  %v9315_v47 = vpop.f32.mrb[1].mxu0  ;;  %v9971_v50 = vpop.f32.mrb[1].mxu1 }
 0x703   : > { %v11755_v35 = vadd.f32 %v9315_v47, %v3531_v36  ;;  %v11757_v52 = vadd.f32 %v9971_v50, %v3539_v31  ;;  %v9317_v55 = vpop.f32.mrb[2].mxu0  ;;  %v9973_v38 = vpop.f32.mrb[2].mxu1 }
 0x704   : > { %v9976_v57 = vmax.f32 %v11754_v28, 0.0  ;;  %v9978_v58 = vmax.f32 %v11756_v37, 0.0  ;;  %v9318_v40 = vpop.f32.mrb[3].mxu0  ;;  %v9974_v59 = vpop.f32.mrb[3].mxu1 }
 0x705   : > { %v9977_v45 = vmax.f32 %v11755_v35, 0.0  ;;  %v9979_v49 = vmax.f32 %v11757_v52, 0.0 }
 0x706   : > { %v9981_v42 = vpack.c.bf16 %v9976_v57, %v9976_v57  ;;  %v9983_v48 = vpack.c.bf16 %v9978_v58, %v9978_v58 }
 0x707   : > { %v9982_v0 = vpack.c.bf16 %v9977_v45, %v9977_v45  ;;  %v9984_v2 = vpack.c.bf16 %v9979_v49, %v9979_v49 }
 0x709   : > { %10273 = vmatprep.mubr.bf16.mxu0 %v9982_v0  ;;  %10313 = vmatprep.mubr.bf16.mxu1 %v9984_v2 }
 0x70a   : > { %10274 = vmatmul.mubr.bf16.vlgmr.msra.gmra.mrb[4].mxu0 %v9981_v42  ;;  %10314 = vmatmul.mubr.bf16.vlgmr.msra.gmra.mrb[4].mxu1 %v9983_v48 }
 0x7dd   : > { %v11726_v3 = vpop.f32.mrb[4].mxu0  ;;  %v11748_v56 = vpop.f32.mrb[4].mxu1 }
 0x7de   : > { %v11727_v46 = vpop.f32.mrb[5].mxu0  ;;  %v11749_v4 = vpop.f32.mrb[5].mxu1 }
 0x7df   : > { %v11728_v63 = vadd.f32 %v11727_v46, %v11726_v3  ;;  %v11750_v1 = vadd.f32 %v11749_v4, %v11748_v56  ;;  %v11729_v51 = vpop.f32.mrb[6].mxu0  ;;  %v11751_v6 = vpop.f32.mrb[6].mxu1  ;;  %10326 = sbr.rel (%p11701_p2) target bundleno = 2032 (0x7f0), region = 80 }
 0x7e0   : > { %v11730_v9 = vpop.f32.mrb[7].mxu0  ;;  %v11752_v60 = vpop.f32.mrb[7].mxu1 }
 0x7e1   : > { %v10316_v53 = vadd.f32 %v11750_v1, %v11728_v63 }
 0x7e3   : > { %v10321_v10 = vadd.f32 %v10316_v53, %v9980_v7 }
 0x7e5   : > { %10322 = vst [vmem:[#allocation3] sm:$0x3] %v10321_v10 }
 0x7ec   : > { %v10327_v54 = vld [vmem:[#allocation3] sm:$0x3] }
 0x7ed   : > { %v10335_v12 = vadd.f32 %v11702_v11, %v10327_v54 }
 0x7ef   : > { %10336 = vst [vmem:[#allocation13] sm:$0x3] %v10335_v12 }
 0x7f0 PF: > { %p11927_p7 = scmp.eq.s32.totalorder %s13881_s28, 1  ;;  %s13821_s22 = smov [#allocation13]  }
 0x7f1   : > { %s10344_s23 = sshll.u32 %s13821_s22, 4  ;;  %s10345_s23 = int_to_ptr.vmem [resolvable:$true] %s10344_s23 }
 0x7f2   : > { %s13726_s15 = scalar_lea.vmem %s10345_s23, 32  ;;  %p13733_p9 = scmp.lt.s32.totalorder %s10345_s23, %s10345_s23 }
 0x7f3   : > { %p13727_p12 = scmp.ne.s32.totalorder %s10345_s23, %s13726_s15  ;;  %p13734_p13 = scmp.lt.s32.totalorder %s13726_s15, %s13726_s15 }
 0x7f5   : > { %p13728_p11 = pnand %p13727_p12, %p11927_p7  ;;  %p13735_p5 = por %p13734_p13, %p13733_p9 }
 0x7f7   : > { %p13729_p4 = pneg %p13728_p11 }
 0x7f9   : > { %p13736_p10 = pnand %p13735_p5, %p13729_p4 }
 0x7fb   : > { %13739 = shalt.err (!%p13736_p10)
}
 0x7fc   : > { %s15557_s26 = sld [smem:[#allocation24_spill]] }
 0x802   : > { %s15558_s16 = smov %s15557_s26  ;;  %s13740_s3 = scalar_lea.hbm %s15557_s26, 32 }
 0x803   : > { %p13741_p1 = scmp.ne.s32.totalorder %s15558_s16, %s13740_s3  ;;  %p13746_p8 = scmp.lt.u32.totalorder %s13740_s3, %s15558_s16 }
 0x805   : > { %p13742_p3 = pnand %p13741_p1, %p11927_p7 }
 0x807   : > { %p13743_p0 = pneg %p13742_p3 }
 0x809   : > { %p13748_p6 = pnand %p13746_p8, %p13743_p0 }
 0x80b   : > { %13751 = shalt.err (!%p13748_p6)
}
 0x80c   : > { %11897 = dma.vmem_to_hbm [thread:$0]  (%p11927_p7), %s10345_s23, 32, %s15558_s16, [#allocation6]  }
 0x80d   : > { %13785 = dma.done.wait (%p11927_p7), [#allocation6], 32  }
 0x80e   : > { %13787 = vsyncadd (%p11927_p7), [#allocation6], 4294967264 }
 0x80f PF: > { %s15559_s27 = sld [smem:[#allocation20_spill]]  ;;  %s15560_s29 = sld [smem:[#allocation19_spill]] }
 0x810   : > { %s15561_s26 = sld [smem:[#allocation21_spill]]  ;;  %s15562_s24 = smov %s13794_s25 }
 0x815   : > { %p17_p2 = scmp.ge.s32.totalorder %s15559_s27, 4   ;;  %s15563_s25 = smov %s15560_s29 }
 0x817   :  { %19 = sbr.rel (!%p17_p2) target bundleno = 8 (0x8), region = 126 }
 0x81e   :  { %10357 = vsyncpa [#allocation5], 1 }
 0x81f   :  { %10359 = vsyncpa [#allocation5 + $0x1], 1 }
 0x820   :  { %10360 = vsyncpa [#allocation8], 1 }
 0x821   :  { %10361 = vsyncpa [#allocation6], 1 }
 0x822   :  { %10363 = vsyncpa [#allocation6 + $0x1], 1 }

</bundles_post_ra>
